<compile_context>
chip_gen: v7x
topology: tpu7x:2x2x1
jax: 0.10.0
libtpu: 0.0.40
codegen_flags: <defaults>
</compile_context>

<pallas_src>
import functools

import numpy as np
import jax
import jax.numpy as jnp
from jax.experimental import pallas as pl
from jax.experimental.pallas import tpu as pltpu

# ---------------- configuration (mirrors the ToMoDL kw_dictionary) ----------------
IMG    = 16      # image_size
B      = 2       # batch
CIN    = 1       # in_channels
COUT   = 1       # out_channels
FEAT   = 8       # features
KSZ    = 3       # kernel_size
NLAYER = 4       # number_layers  (resnet denoiser depth)
K_IT   = 2       # K_iterations  (unrolled MoDL iterations, shared weights)
NPROJ  = 16      # number_projections_total
LAM    = 0.05    # lambda
HW     = IMG * IMG

# error budget: MXU f32 pass-decomposition / accumulation-order differences amplified
# by 10-step CG and the min-max normalization.  Structural errors are O(0.1-1).
TOL = 1e-2


# ============================ fused ToMoDL forward kernel ==========================
def _tomodl_kernel(x_ref, mask_ref, *refs, img_size, ksz, k_it, nlayer, relu_flags,
                   inv_lam, bb):
    # refs = (w_1, b_1, ..., w_L, b_L, M, dw_out, dc_out,
    #         pat_scratch, flat_scratch, img_scratch)
    n_w = 2 * nlayer
    w_refs = [refs[2 * l] for l in range(nlayer)]
    b_refs = [refs[2 * l + 1] for l in range(nlayer)]
    m_ref = refs[n_w]
    dw_out_ref = refs[n_w + 1]
    dc_out_ref = refs[n_w + 2]
    pat_ref = refs[n_w + 3]      # (ksz*ksz*max_cin, bb*HW) patch staging scratch
    flat_ref = refs[n_w + 4]     # (1, bb*HW) lane-flattened activation
    img_ref = refs[n_w + 5]      # (bb, HW)  unflatten staging

    ntot = x_ref.shape[1]        # bb * HW lanes
    hw = ntot // bb
    pad = ksz // 2

    # tap shift table (compile-time Python ints)
    shifts = [(kh - pad) * img_size + (kw - pad)
              for kh in range(ksz) for kw in range(ksz)]

    x_flat = x_ref[...]                                  # (1, bb*HW)

    # ------------------------------ conv layer (dwLayer) ---------------------------
    def conv_layer(h, w_ref, b_ref, relu):
        # h: (cin, bb*HW).  Build in-VMEM patches via XLU rolls + precomputed boundary
        # masks, then one MXU dot with the batch folded into the lane dim.
        cin = h.shape[0]
        for k in range(ksz * ksz):
            d = shifts[k]
            sh = h if d == 0 else pltpu.roll(h, shift=(-d) % ntot, axis=1)
            # sh[:, q] == h[:, (q + d) mod ntot]; mask row k zeroes zero-padding taps
            # (and any wrap across image segments).
            pat_ref[k * cin:(k + 1) * cin, :] = sh * mask_ref[k:k + 1, :]
        pat = pat_ref[0:ksz * ksz * cin, :]
        # TODO(synk): per the v5e review note the cin=8 layers could be split into two
        # K=36 half-dots so the second half's patch stores overlap the first matmul.
        acc = jnp.dot(w_ref[...], pat, preferred_element_type=jnp.float32) + b_ref[...]
        if relu:
            acc = jnp.maximum(acc, 0.0)
        return acc

    # -------------------------------- denoiser (dw) --------------------------------
    def dw_apply(dc):
        # dc: (bb, HW).  With bb == 1 the flat layout coincides -> no staging at all.
        if bb == 1:
            h = dc
        else:
            for b in range(bb):
                flat_ref[:, b * hw:(b + 1) * hw] = dc[b:b + 1, :]
            h = flat_ref[...]                            # (1, bb*HW)
        for l in range(nlayer):
            h = conv_layer(h, w_refs[l], b_refs[l], relu_flags[l])
        if bb == 1:
            return h + dc                                # residual add
        for b in range(bb):
            img_ref[b:b + 1, :] = h[:, b * hw:(b + 1) * hw]
        return img_ref[...] + dc                         # residual add

    # ------------------------------ normalize_images -------------------------------
    def normalize(z):
        # standardize-then-minmax algebraically reduces to (z - min) / (max - min).
        # No epsilon, matching the reference (a constant image would NaN in both).
        zmin = jnp.min(z, axis=1, keepdims=True)
        zmax = jnp.max(z, axis=1, keepdims=True)
        return (z - zmin) * (1.0 / (zmax - zmin))

    # ---------------------------- data consistency (CG) ----------------------------
    def cg_solve(rhs):
        # batched 10-iteration CG with the reference's per-image stopping criterion.
        xc = jnp.zeros_like(rhs)
        r = rhs
        p = rhs
        rtr = jnp.sum(r * r, axis=1, keepdims=True)      # (bb, 1)
        # TODO(synk): the (HW, HW) RHS could be staged once in the MXU across all 10
        # iterations with pltpu.matmul_push_rhs / matmul_acc_lhs / matmul_pop.
        for _ in range(10):                              # Python-unrolled
            cont = rtr >= 1e-5
            # Re-read M from VMEM at each dot so the 64-vreg operator is never held
            # live across the unrolled loop (register-pressure review item).
            ap = jnp.dot(p, m_ref[...], preferred_element_type=jnp.float32)
            alpha = rtr / jnp.sum(p * ap, axis=1, keepdims=True)
            x_n = xc + alpha * p
            r_n = r - alpha * ap
            rtr_n = jnp.sum(r_n * r_n, axis=1, keepdims=True)
            beta = rtr_n / rtr
            p_n = r_n + beta * p
            xc = jnp.where(cont, x_n, xc)
            r = jnp.where(cont, r_n, r)
            p = jnp.where(cont, p_n, p)
            rtr = jnp.where(cont, rtr_n, rtr)
        return xc

    # -------------------------------- ToMoDL forward -------------------------------
    if bb == 1:
        x = x_flat                                       # (1, HW)
    else:
        for b in range(bb):
            img_ref[b:b + 1, :] = x_flat[:, b * hw:(b + 1) * hw]
        x = img_ref[...]                                 # (bb, HW) value (scratch reused later)

    dc = x
    for it in range(k_it):
        dw_img = normalize(dw_apply(dc))
        rhs = x * inv_lam + dw_img
        dc = normalize(cg_solve(rhs))
        for b in range(bb):
            dw_out_ref[b, it:it + 1, :] = dw_img[b:b + 1, :]
            dc_out_ref[b, it:it + 1, :] = dc[b:b + 1, :]


# =============================== wrapper / launcher ================================
def _images_per_program(batch):
    """One image per program on dual-TensorCore chips (v4/v5p/v7x), whole batch else.

    The batch-parallel grid lets megacore / dual-TC chips run the two images on
    separate cores; single-TC chips keep the whole batch in one program so the 20
    CG matvecs share one MXU RHS push per dot (review guidance)."""
    kind = ""
    try:
        kind = jax.devices()[0].device_kind.lower()
    except Exception:
        pass
    if any(tag in kind for tag in ("v4", "v5p", "v7")):
        return 1
    return batch


def _build_tap_masks(img_size, ksz, bb):
    """Per-tap zero-padding validity masks, (ksz*ksz, bb*HW) float 0/1."""
    hw = img_size * img_size
    pad = ksz // 2
    lane = np.arange(bb * hw)
    col = lane % img_size
    row = (lane // img_size) % img_size
    rows = []
    for kh in range(ksz):
        for kw in range(ksz):
            dh, dw_ = kh - pad, kw - pad
            ok = ((row + dh >= 0) & (row + dh < img_size) &
                  (col + dw_ >= 0) & (col + dw_ < img_size))
            rows.append(ok.astype(np.float32))
    return jnp.asarray(np.stack(rows, axis=0))


def _const_spec(shape):
    nd = len(shape)
    return pl.BlockSpec(tuple(shape), lambda g: (0,) * nd)


def tomodl_forward(x, dw_weights, m_mat, lam, *, images_per_program=None):
    """Full fused ToMoDL forward.  Returns the same dict as the PyTorch module."""
    bsz, cin, h_, w_ = x.shape
    assert cin == 1, "ToMoDL operates on 1-channel images"
    hw = h_ * w_
    bb = images_per_program if images_per_program is not None else _images_per_program(bsz)
    assert bsz % bb == 0
    grid = (bsz // bb,)
    ntot = bb * hw

    x_flat = x.reshape(1, bsz * hw)                      # image-major lane layout
    mask_arr = _build_tap_masks(h_, KSZ, bb)

    wb_inputs, relu_flags, max_cin = [], [], 1
    for (w, b, relu) in dw_weights:
        cout, cin_l, k, _ = w.shape
        max_cin = max(max_cin, cin_l)
        # (kh, kw) major / ci minor to match the in-kernel patch ordering
        w_mat = jnp.transpose(w, (0, 2, 3, 1)).reshape(cout, k * k * cin_l)
        wb_inputs += [w_mat, b.reshape(cout, 1)]
        relu_flags.append(relu)

    kernel = functools.partial(
        _tomodl_kernel, img_size=h_, ksz=KSZ, k_it=K_IT, nlayer=len(dw_weights),
        relu_flags=tuple(relu_flags), inv_lam=1.0 / float(lam), bb=bb)

    in_specs = ([pl.BlockSpec((1, ntot), lambda g: (0, g)),    # per-program image slab
                 _const_spec(mask_arr.shape)]
                + [_const_spec(a.shape) for a in wb_inputs]
                + [_const_spec(m_mat.shape)])

    # TODO(synk): at larger IMG the dense (HW, HW) operator no longer fits VMEM
    # (64 MiB at IMG=64 on v7x); M would then stay in HBM (memory_space=pl.ANY) and
    # the CG matvec would be K-tiled / bf16-streamed per iteration.
    dw_out, dc_out = pl.pallas_call(
        kernel,
        grid=grid,
        out_shape=(jax.ShapeDtypeStruct((bsz, K_IT, hw), jnp.float32),
                   jax.ShapeDtypeStruct((bsz, K_IT, hw), jnp.float32)),
        in_specs=in_specs,
        out_specs=(pl.BlockSpec((bb, K_IT, hw), lambda g: (g, 0, 0)),
                   pl.BlockSpec((bb, K_IT, hw), lambda g: (g, 0, 0))),
        scratch_shapes=[
            pltpu.VMEM((KSZ * KSZ * max_cin, ntot), jnp.float32),  # conv patches
            pltpu.VMEM((1, ntot), jnp.float32),                    # lane-flattened act
            pltpu.VMEM((bb, hw), jnp.float32),                     # unflatten staging
        ],
        compiler_params=pltpu.CompilerParams(
            dimension_semantics=("parallel",)),
    )(x_flat, mask_arr, *wb_inputs, m_mat)

    out = {"dc0": x}
    for i in range(1, K_IT + 1):
        out["dw" + str(i)] = dw_out[:, i - 1, :].reshape(x.shape)
        out["dc" + str(i)] = dc_out[:, i - 1, :].reshape(x.shape)
    return out


# ------------------ (A^H A + lam I) operator matrix (host precompute) -------------
def build_radon_matrix(n, n_proj):
    # TODO(synk): scikit-image / torch-radon radon+iradon are external CPU libraries
    # with no Pallas equivalent; replaced by an explicit pixel-driven linear Radon
    # matrix (linear interpolation onto detector bins) built deterministically here.
    det = int(np.ceil(np.sqrt(2) * n))
    angles = np.linspace(0, 2 * np.pi, n_proj, endpoint=False)
    c = (n - 1) / 2.0
    ii, jj = np.meshgrid(np.arange(n), np.arange(n), indexing="ij")
    xs = (jj - c).ravel()
    ys = (c - ii).ravel()
    pix = np.arange(n * n)
    R = np.zeros((n_proj * det, n * n), dtype=np.float64)
    for k, th in enumerate(angles):
        t = xs * np.cos(th) + ys * np.sin(th) + (det - 1) / 2.0
        lo = np.floor(t).astype(np.int64)
        frac = t - lo
        ok_lo = (lo >= 0) & (lo < det)
        ok_hi = (lo + 1 >= 0) & (lo + 1 < det)
        np.add.at(R, (k * det + np.clip(lo, 0, det - 1), pix),
                  np.where(ok_lo, 1.0 - frac, 0.0))
        np.add.at(R, (k * det + np.clip(lo + 1, 0, det - 1), pix),
                  np.where(ok_hi, frac, 0.0))
    return R


def build_ata_matrix(n, n_proj, lam):
    # Aclass.forward: sino = R(img)/img_size ; back = R^T(sino) * pi / n_proj ; + lam*img
    R = build_radon_matrix(n, n_proj)
    M = (np.pi / (n * n_proj)) * (R.T @ R) + lam * np.eye(n * n)
    return jnp.asarray(M, dtype=jnp.float32)             # exactly symmetric


# ================================ denoiser weights =================================
def init_dw_weights(key):
    sizes = {i: (FEAT, FEAT, KSZ) for i in range(2, NLAYER)}
    sizes[1] = (CIN, FEAT, KSZ)
    sizes[NLAYER] = (FEAT, COUT, KSZ)
    weights = []
    for i in range(1, NLAYER + 1):
        cin, cout, k = sizes[i]
        key, kw_, kb_ = jax.random.split(key, 3)
        fan_in, fan_out = cin * k * k, cout * k * k
        limit = float(np.sqrt(6.0 / (fan_in + fan_out)))          # xavier-uniform scale
        w = jax.random.uniform(kw_, (cout, cin, k, k), jnp.float32, -limit, limit)
        b = jax.random.uniform(kb_, (cout,), jnp.float32, -limit, limit)
        # shared-dict quirk in `dw.__init__`: is_last_layer becomes True at
        # i == NLAYER-1 and stays True, so the last TWO layers skip ReLU.
        relu = i < NLAYER - 1
        weights.append((w, b, relu))
    return weights


# =========================== pure-JAX reference (for checking) =====================
def tomodl_reference(x, dw_weights, m_mat, lam):
    hp = jax.lax.Precision.HIGHEST

    def conv(h, w, b, relu):
        out = jax.lax.conv_general_dilated(
            h, w, window_strides=(1, 1), padding="SAME",
            dimension_numbers=("NCHW", "OIHW", "NCHW"), precision=hp)
        out = out + b.reshape(1, -1, 1, 1)
        return jnp.maximum(out, 0.0) if relu else out

    def dw_fwd(h):
        res = h
        for (w, b, relu) in dw_weights:
            h = conv(h, w, b, relu)
        return h + res

    def norm(imgs):
        bsz = imgs.shape[0]
        flat = imgs.reshape(bsz, -1)
        mean = jnp.mean(flat, axis=1, keepdims=True)
        std = jnp.std(flat, axis=1, ddof=1, keepdims=True)
        y = (flat - mean) / std
        ymin = jnp.min(y, axis=1, keepdims=True)
        ymax = jnp.max(y, axis=1, keepdims=True)
        return ((y - ymin) / (ymax - ymin)).reshape(imgs.shape)

    def cg(rhs_vec):
        def body(_, carry):
            xc, r, p, rtr = carry
            cont = rtr >= 1e-5
            ap = jnp.dot(m_mat, p, precision=hp)
            alpha = rtr / jnp.sum(p * ap)
            x_n = xc + alpha * p
            r_n = r - alpha * ap
            rtr_n = jnp.sum(r_n * r_n)
            beta = rtr_n / rtr
            p_n = r_n + beta * p
            sel = lambda a, o: jnp.where(cont, a, o)
            return sel(x_n, xc), sel(r_n, r), sel(p_n, p), sel(rtr_n, rtr)
        init = (jnp.zeros_like(rhs_vec), rhs_vec, rhs_vec, jnp.sum(rhs_vec * rhs_vec))
        xc, _, _, _ = jax.lax.fori_loop(0, 10, body, init)
        return xc

    out = {"dc0": x}
    for i in range(1, K_IT + 1):
        dw_i = norm(dw_fwd(out["dc" + str(i - 1)]))
        rhs = x / lam + dw_i
        dc_flat = jnp.stack([cg(rhs[b, 0].reshape(-1)) for b in range(x.shape[0])])
        dc_i = norm(dc_flat.reshape(x.shape))
        out["dw" + str(i)] = dw_i
        out["dc" + str(i)] = dc_i
    return out


if __name__ == "__main__":
    key = jax.random.PRNGKey(0)
    key, kx = jax.random.split(key)
    x = jax.random.uniform(kx, (B, CIN, IMG, IMG), dtype=jnp.float32)

    dw_weights = init_dw_weights(key)
    m_mat = build_ata_matrix(IMG, NPROJ, LAM)

    out = tomodl_forward(x, dw_weights, m_mat, LAM)
    jax.block_until_ready(out["dc" + str(K_IT)])

    ref = tomodl_reference(x, dw_weights, m_mat, LAM)
    err = max(float(jnp.max(jnp.abs(out[k] - ref[k]))) for k in out)
    if not np.isfinite(err) or err > TOL:
        raise SystemExit("mismatch vs pure-JAX reference: max abs err %.3e" % err)
    print("KERNEL_OK")
</pallas_src>

<mosaic_0001>
module attributes {stable_mosaic.version = 11 : i64} {
  func.func @_tomodl_kernel(%arg0: i32, %arg1: memref<1x512xf32, #tpu.memory_space<vmem>>, %arg2: memref<9x512xf32, #tpu.memory_space<vmem>>, %arg3: memref<8x9xf32, #tpu.memory_space<vmem>>, %arg4: memref<8x1xf32, #tpu.memory_space<vmem>>, %arg5: memref<8x72xf32, #tpu.memory_space<vmem>>, %arg6: memref<8x1xf32, #tpu.memory_space<vmem>>, %arg7: memref<8x72xf32, #tpu.memory_space<vmem>>, %arg8: memref<8x1xf32, #tpu.memory_space<vmem>>, %arg9: memref<1x72xf32, #tpu.memory_space<vmem>>, %arg10: memref<1x1xf32, #tpu.memory_space<vmem>>, %arg11: memref<256x256xf32, #tpu.memory_space<vmem>>, %arg12: memref<2x2x256xf32, #tpu.memory_space<vmem>>, %arg13: memref<2x2x256xf32, #tpu.memory_space<vmem>>, %arg14: memref<72x512xf32, #tpu.memory_space<vmem>>, %arg15: memref<1x512xf32, #tpu.memory_space<vmem>>, %arg16: memref<2x256xf32, #tpu.memory_space<vmem>>) attributes {dimension_semantics = [#tpu.dimension_semantics<parallel>], iteration_bounds = array<i64: 1>, scalar_prefetch = 0 : i64, scratch_operands = 3 : i64, tpu.core_type = #tpu.core_type<tc>, window_params = [{transform_indices = @transform_0, window_bounds = array<i64: 1, 512>}, {pipeline_mode = #tpu.pipeline_mode<synchronous>, transform_indices = @transform_1, window_bounds = array<i64: 9, 512>}, {pipeline_mode = #tpu.pipeline_mode<synchronous>, transform_indices = @transform_2, window_bounds = array<i64: 8, 9>}, {pipeline_mode = #tpu.pipeline_mode<synchronous>, transform_indices = @transform_3, window_bounds = array<i64: 8, 1>}, {pipeline_mode = #tpu.pipeline_mode<synchronous>, transform_indices = @transform_4, window_bounds = array<i64: 8, 72>}, {pipeline_mode = #tpu.pipeline_mode<synchronous>, transform_indices = @transform_5, window_bounds = array<i64: 8, 1>}, {pipeline_mode = #tpu.pipeline_mode<synchronous>, transform_indices = @transform_6, window_bounds = array<i64: 8, 72>}, {pipeline_mode = #tpu.pipeline_mode<synchronous>, transform_indices = @transform_7, window_bounds = array<i64: 8, 1>}, {pipeline_mode = #tpu.pipeline_mode<synchronous>, transform_indices = @transform_8, window_bounds = array<i64: 1, 72>}, {pipeline_mode = #tpu.pipeline_mode<synchronous>, transform_indices = @transform_9, window_bounds = array<i64: 1, 1>}, {pipeline_mode = #tpu.pipeline_mode<synchronous>, transform_indices = @transform_10, window_bounds = array<i64: 256, 256>}, {transform_indices = @transform_11, window_bounds = array<i64: 2, 2, 256>}, {transform_indices = @transform_12, window_bounds = array<i64: 2, 2, 256>}]} {
    %c0 = arith.constant 0 : index
    %c0_0 = arith.constant 0 : index
    %0 = vector.load %arg1[%c0, %c0_0] : memref<1x512xf32, #tpu.memory_space<vmem>>, vector<1x512xf32>
    %1 = vector.extract_strided_slice %0 {offsets = [0, 0], sizes = [1, 256], strides = [1, 1]} : vector<1x512xf32> to vector<1x256xf32>
    %c0_1 = arith.constant 0 : index
    %c0_2 = arith.constant 0 : index
    %2 = vector.load %arg16[%c0_1, %c0_2] : memref<2x256xf32, #tpu.memory_space<vmem>>, vector<1x256xf32>
    tpu.vector_store %arg16[%c0_1, %c0_2], %1 {strides = array<i32>} : memref<2x256xf32, #tpu.memory_space<vmem>>, vector<1x256xf32>,
    %3 = vector.extract_strided_slice %0 {offsets = [0, 256], sizes = [1, 256], strides = [1, 1]} : vector<1x512xf32> to vector<1x256xf32>
    %c1 = arith.constant 1 : index
    %c0_3 = arith.constant 0 : index
    %4 = vector.load %arg16[%c1, %c0_3] : memref<2x256xf32, #tpu.memory_space<vmem>>, vector<1x256xf32>
    tpu.vector_store %arg16[%c1, %c0_3], %3 {strides = array<i32>} : memref<2x256xf32, #tpu.memory_space<vmem>>, vector<1x256xf32>,
    %c0_4 = arith.constant 0 : index
    %c0_5 = arith.constant 0 : index
    %5 = vector.load %arg16[%c0_4, %c0_5] : memref<2x256xf32, #tpu.memory_space<vmem>>, vector<2x256xf32>
    %6 = vector.extract_strided_slice %5 {offsets = [0, 0], sizes = [1, 256], strides = [1, 1]} : vector<2x256xf32> to vector<1x256xf32>
    %c0_6 = arith.constant 0 : index
    %c0_7 = arith.constant 0 : index
    %7 = vector.load %arg15[%c0_6, %c0_7] : memref<1x512xf32, #tpu.memory_space<vmem>>, vector<1x256xf32>
    tpu.vector_store %arg15[%c0_6, %c0_7], %6 {strides = array<i32>} : memref<1x512xf32, #tpu.memory_space<vmem>>, vector<1x256xf32>,
    %8 = vector.extract_strided_slice %5 {offsets = [1, 0], sizes = [1, 256], strides = [1, 1]} : vector<2x256xf32> to vector<1x256xf32>
    %c0_8 = arith.constant 0 : index
    %c256 = arith.constant 256 : index
    %9 = vector.load %arg15[%c0_8, %c256] : memref<1x512xf32, #tpu.memory_space<vmem>>, vector<1x256xf32>
    tpu.vector_store %arg15[%c0_8, %c256], %8 {strides = array<i32>} : memref<1x512xf32, #tpu.memory_space<vmem>>, vector<1x256xf32>,
    %c0_9 = arith.constant 0 : index
    %c0_10 = arith.constant 0 : index
    %10 = vector.load %arg15[%c0_9, %c0_10] : memref<1x512xf32, #tpu.memory_space<vmem>>, vector<1x512xf32>
    %c17_i32 = arith.constant 17 : i32
    %11 = tpu.dynamic_rotate %10 by %c17_i32 dim 1 : vector<1x512xf32>, i32 -> vector<1x512xf32>
    %c0_11 = arith.constant 0 : index
    %c0_12 = arith.constant 0 : index
    %12 = vector.load %arg2[%c0_11, %c0_12] : memref<9x512xf32, #tpu.memory_space<vmem>>, vector<1x512xf32>
    %13 = arith.mulf %11, %12 : vector<1x512xf32>
    %c0_13 = arith.constant 0 : index
    %c0_14 = arith.constant 0 : index
    %14 = vector.load %arg14[%c0_13, %c0_14] : memref<72x512xf32, #tpu.memory_space<vmem>>, vector<1x512xf32>
    tpu.vector_store %arg14[%c0_13, %c0_14], %13 {strides = array<i32>} : memref<72x512xf32, #tpu.memory_space<vmem>>, vector<1x512xf32>,
    %c16_i32 = arith.constant 16 : i32
    %15 = tpu.dynamic_rotate %10 by %c16_i32 dim 1 : vector<1x512xf32>, i32 -> vector<1x512xf32>
    %c1_15 = arith.constant 1 : index
    %c0_16 = arith.constant 0 : index
    %16 = vector.load %arg2[%c1_15, %c0_16] : memref<9x512xf32, #tpu.memory_space<vmem>>, vector<1x512xf32>
    %17 = arith.mulf %15, %16 : vector<1x512xf32>
    %c1_17 = arith.constant 1 : index
    %c0_18 = arith.constant 0 : index
    %18 = vector.load %arg14[%c1_17, %c0_18] : memref<72x512xf32, #tpu.memory_space<vmem>>, vector<1x512xf32>
    tpu.vector_store %arg14[%c1_17, %c0_18], %17 {strides = array<i32>} : memref<72x512xf32, #tpu.memory_space<vmem>>, vector<1x512xf32>,
    %c15_i32 = arith.constant 15 : i32
    %19 = tpu.dynamic_rotate %10 by %c15_i32 dim 1 : vector<1x512xf32>, i32 -> vector<1x512xf32>
    %c2 = arith.constant 2 : index
    %c0_19 = arith.constant 0 : index
    %20 = vector.load %arg2[%c2, %c0_19] : memref<9x512xf32, #tpu.memory_space<vmem>>, vector<1x512xf32>
    %21 = arith.mulf %19, %20 : vector<1x512xf32>
    %c2_20 = arith.constant 2 : index
    %c0_21 = arith.constant 0 : index
    %22 = vector.load %arg14[%c2_20, %c0_21] : memref<72x512xf32, #tpu.memory_space<vmem>>, vector<1x512xf32>
    tpu.vector_store %arg14[%c2_20, %c0_21], %21 {strides = array<i32>} : memref<72x512xf32, #tpu.memory_space<vmem>>, vector<1x512xf32>,
    %c1_i32 = arith.constant 1 : i32
    %23 = tpu.dynamic_rotate %10 by %c1_i32 dim 1 : vector<1x512xf32>, i32 -> vector<1x512xf32>
    %c3 = arith.constant 3 : index
    %c0_22 = arith.constant 0 : index
    %24 = vector.load %arg2[%c3, %c0_22] : memref<9x512xf32, #tpu.memory_space<vmem>>, vector<1x512xf32>
    %25 = arith.mulf %23, %24 : vector<1x512xf32>
    %c3_23 = arith.constant 3 : index
    %c0_24 = arith.constant 0 : index
    %26 = vector.load %arg14[%c3_23, %c0_24] : memref<72x512xf32, #tpu.memory_space<vmem>>, vector<1x512xf32>
    tpu.vector_store %arg14[%c3_23, %c0_24], %25 {strides = array<i32>} : memref<72x512xf32, #tpu.memory_space<vmem>>, vector<1x512xf32>,
    %c4 = arith.constant 4 : index
    %c0_25 = arith.constant 0 : index
    %27 = vector.load %arg2[%c4, %c0_25] : memref<9x512xf32, #tpu.memory_space<vmem>>, vector<1x512xf32>
    %28 = arith.mulf %10, %27 : vector<1x512xf32>
    %c4_26 = arith.constant 4 : index
    %c0_27 = arith.constant 0 : index
    %29 = vector.load %arg14[%c4_26, %c0_27] : memref<72x512xf32, #tpu.memory_space<vmem>>, vector<1x512xf32>
    tpu.vector_store %arg14[%c4_26, %c0_27], %28 {strides = array<i32>} : memref<72x512xf32, #tpu.memory_space<vmem>>, vector<1x512xf32>,
    %c511_i32 = arith.constant 511 : i32
    %30 = tpu.dynamic_rotate %10 by %c511_i32 dim 1 : vector<1x512xf32>, i32 -> vector<1x512xf32>
    %c5 = arith.constant 5 : index
    %c0_28 = arith.constant 0 : index
    %31 = vector.load %arg2[%c5, %c0_28] : memref<9x512xf32, #tpu.memory_space<vmem>>, vector<1x512xf32>
    %32 = arith.mulf %30, %31 : vector<1x512xf32>
    %c5_29 = arith.constant 5 : index
    %c0_30 = arith.constant 0 : index
    %33 = vector.load %arg14[%c5_29, %c0_30] : memref<72x512xf32, #tpu.memory_space<vmem>>, vector<1x512xf32>
    tpu.vector_store %arg14[%c5_29, %c0_30], %32 {strides = array<i32>} : memref<72x512xf32, #tpu.memory_space<vmem>>, vector<1x512xf32>,
    %c497_i32 = arith.constant 497 : i32
    %34 = tpu.dynamic_rotate %10 by %c497_i32 dim 1 : vector<1x512xf32>, i32 -> vector<1x512xf32>
    %c6 = arith.constant 6 : index
    %c0_31 = arith.constant 0 : index
    %35 = vector.load %arg2[%c6, %c0_31] : memref<9x512xf32, #tpu.memory_space<vmem>>, vector<1x512xf32>
    %36 = arith.mulf %34, %35 : vector<1x512xf32>
    %c6_32 = arith.constant 6 : index
    %c0_33 = arith.constant 0 : index
    %37 = vector.load %arg14[%c6_32, %c0_33] : memref<72x512xf32, #tpu.memory_space<vmem>>, vector<1x512xf32>
    tpu.vector_store %arg14[%c6_32, %c0_33], %36 {strides = array<i32>} : memref<72x512xf32, #tpu.memory_space<vmem>>, vector<1x512xf32>,
    %c496_i32 = arith.constant 496 : i32
    %38 = tpu.dynamic_rotate %10 by %c496_i32 dim 1 : vector<1x512xf32>, i32 -> vector<1x512xf32>
    %c7 = arith.constant 7 : index
    %c0_34 = arith.constant 0 : index
    %39 = vector.load %arg2[%c7, %c0_34] : memref<9x512xf32, #tpu.memory_space<vmem>>, vector<1x512xf32>
    %40 = arith.mulf %38, %39 : vector<1x512xf32>
    %c7_35 = arith.constant 7 : index
    %c0_36 = arith.constant 0 : index
    %41 = vector.load %arg14[%c7_35, %c0_36] : memref<72x512xf32, #tpu.memory_space<vmem>>, vector<1x512xf32>
    tpu.vector_store %arg14[%c7_35, %c0_36], %40 {strides = array<i32>} : memref<72x512xf32, #tpu.memory_space<vmem>>, vector<1x512xf32>,
    %c495_i32 = arith.constant 495 : i32
    %42 = tpu.dynamic_rotate %10 by %c495_i32 dim 1 : vector<1x512xf32>, i32 -> vector<1x512xf32>
    %c8 = arith.constant 8 : index
    %c0_37 = arith.constant 0 : index
    %43 = vector.load %arg2[%c8, %c0_37] : memref<9x512xf32, #tpu.memory_space<vmem>>, vector<1x512xf32>
    %44 = arith.mulf %42, %43 : vector<1x512xf32>
    %c8_38 = arith.constant 8 : index
    %c0_39 = arith.constant 0 : index
    %45 = vector.load %arg14[%c8_38, %c0_39] : memref<72x512xf32, #tpu.memory_space<vmem>>, vector<1x512xf32>
    tpu.vector_store %arg14[%c8_38, %c0_39], %44 {strides = array<i32>} : memref<72x512xf32, #tpu.memory_space<vmem>>, vector<1x512xf32>,
    %c0_40 = arith.constant 0 : index
    %c0_41 = arith.constant 0 : index
    %46 = vector.load %arg14[%c0_40, %c0_41] : memref<72x512xf32, #tpu.memory_space<vmem>>, vector<9x512xf32>
    %c0_42 = arith.constant 0 : index
    %c0_43 = arith.constant 0 : index
    %47 = vector.load %arg3[%c0_42, %c0_43] : memref<8x9xf32, #tpu.memory_space<vmem>>, vector<8x9xf32>
    %cst = arith.constant dense<0.000000e+00> : vector<8x512xf32>
    %48 = tpu.matmul %47, %46, %cst {dimension_numbers = #tpu.dot_dimension_numbers<[1], [0], [0], [1], [0, 0, 1, 1], [], []>} : vector<8x9xf32>, vector<9x512xf32>, vector<8x512xf32> -> vector<8x512xf32>
    %c0_44 = arith.constant 0 : index
    %c0_45 = arith.constant 0 : index
    %49 = vector.load %arg4[%c0_44, %c0_45] : memref<8x1xf32, #tpu.memory_space<vmem>>, vector<8x1xf32>
    %50 = vector.broadcast %49 : vector<8x1xf32> to vector<8x512xf32>
    %51 = arith.addf %48, %50 : vector<8x512xf32>
    %cst_46 = arith.constant 0.000000e+00 : f32
    %52 = vector.broadcast %cst_46 : f32 to vector<8x512xf32>
    %53 = arith.maximumf %51, %52 : vector<8x512xf32>
    %c17_i32_47 = arith.constant 17 : i32
    %54 = tpu.dynamic_rotate %53 by %c17_i32_47 dim 1 : vector<8x512xf32>, i32 -> vector<8x512xf32>
    %c0_48 = arith.constant 0 : index
    %c0_49 = arith.constant 0 : index
    %55 = vector.load %arg2[%c0_48, %c0_49] : memref<9x512xf32, #tpu.memory_space<vmem>>, vector<1x512xf32>
    %56 = vector.broadcast %55 : vector<1x512xf32> to vector<8x512xf32>
    %57 = arith.mulf %54, %56 : vector<8x512xf32>
    %c0_50 = arith.constant 0 : index
    %c0_51 = arith.constant 0 : index
    %58 = vector.load %arg14[%c0_50, %c0_51] : memref<72x512xf32, #tpu.memory_space<vmem>>, vector<8x512xf32>
    tpu.vector_store %arg14[%c0_50, %c0_51], %57 {strides = array<i32>} : memref<72x512xf32, #tpu.memory_space<vmem>>, vector<8x512xf32>,
    %c16_i32_52 = arith.constant 16 : i32
    %59 = tpu.dynamic_rotate %53 by %c16_i32_52 dim 1 : vector<8x512xf32>, i32 -> vector<8x512xf32>
    %c1_53 = arith.constant 1 : index
    %c0_54 = arith.constant 0 : index
    %60 = vector.load %arg2[%c1_53, %c0_54] : memref<9x512xf32, #tpu.memory_space<vmem>>, vector<1x512xf32>
    %61 = vector.broadcast %60 : vector<1x512xf32> to vector<8x512xf32>
    %62 = arith.mulf %59, %61 : vector<8x512xf32>
    %c8_55 = arith.constant 8 : index
    %c0_56 = arith.constant 0 : index
    %63 = vector.load %arg14[%c8_55, %c0_56] : memref<72x512xf32, #tpu.memory_space<vmem>>, vector<8x512xf32>
    tpu.vector_store %arg14[%c8_55, %c0_56], %62 {strides = array<i32>} : memref<72x512xf32, #tpu.memory_space<vmem>>, vector<8x512xf32>,
    %c15_i32_57 = arith.constant 15 : i32
    %64 = tpu.dynamic_rotate %53 by %c15_i32_57 dim 1 : vector<8x512xf32>, i32 -> vector<8x512xf32>
    %c2_58 = arith.constant 2 : index
    %c0_59 = arith.constant 0 : index
    %65 = vector.load %arg2[%c2_58, %c0_59] : memref<9x512xf32, #tpu.memory_space<vmem>>, vector<1x512xf32>
    %66 = vector.broadcast %65 : vector<1x512xf32> to vector<8x512xf32>
    %67 = arith.mulf %64, %66 : vector<8x512xf32>
    %c16 = arith.constant 16 : index
    %c0_60 = arith.constant 0 : index
    %68 = vector.load %arg14[%c16, %c0_60] : memref<72x512xf32, #tpu.memory_space<vmem>>, vector<8x512xf32>
    tpu.vector_store %arg14[%c16, %c0_60], %67 {strides = array<i32>} : memref<72x512xf32, #tpu.memory_space<vmem>>, vector<8x512xf32>,
    %c1_i32_61 = arith.constant 1 : i32
    %69 = tpu.dynamic_rotate %53 by %c1_i32_61 dim 1 : vector<8x512xf32>, i32 -> vector<8x512xf32>
    %c3_62 = arith.constant 3 : index
    %c0_63 = arith.constant 0 : index
    %70 = vector.load %arg2[%c3_62, %c0_63] : memref<9x512xf32, #tpu.memory_space<vmem>>, vector<1x512xf32>
    %71 = vector.broadcast %70 : vector<1x512xf32> to vector<8x512xf32>
    %72 = arith.mulf %69, %71 : vector<8x512xf32>
    %c24 = arith.constant 24 : index
    %c0_64 = arith.constant 0 : index
    %73 = vector.load %arg14[%c24, %c0_64] : memref<72x512xf32, #tpu.memory_space<vmem>>, vector<8x512xf32>
    tpu.vector_store %arg14[%c24, %c0_64], %72 {strides = array<i32>} : memref<72x512xf32, #tpu.memory_space<vmem>>, vector<8x512xf32>,
    %c4_65 = arith.constant 4 : index
    %c0_66 = arith.constant 0 : index
    %74 = vector.load %arg2[%c4_65, %c0_66] : memref<9x512xf32, #tpu.memory_space<vmem>>, vector<1x512xf32>
    %75 = vector.broadcast %74 : vector<1x512xf32> to vector<8x512xf32>
    %76 = arith.mulf %53, %75 : vector<8x512xf32>
    %c32 = arith.constant 32 : index
    %c0_67 = arith.constant 0 : index
    %77 = vector.load %arg14[%c32, %c0_67] : memref<72x512xf32, #tpu.memory_space<vmem>>, vector<8x512xf32>
    tpu.vector_store %arg14[%c32, %c0_67], %76 {strides = array<i32>} : memref<72x512xf32, #tpu.memory_space<vmem>>, vector<8x512xf32>,
    %c511_i32_68 = arith.constant 511 : i32
    %78 = tpu.dynamic_rotate %53 by %c511_i32_68 dim 1 : vector<8x512xf32>, i32 -> vector<8x512xf32>
    %c5_69 = arith.constant 5 : index
    %c0_70 = arith.constant 0 : index
    %79 = vector.load %arg2[%c5_69, %c0_70] : memref<9x512xf32, #tpu.memory_space<vmem>>, vector<1x512xf32>
    %80 = vector.broadcast %79 : vector<1x512xf32> to vector<8x512xf32>
    %81 = arith.mulf %78, %80 : vector<8x512xf32>
    %c40 = arith.constant 40 : index
    %c0_71 = arith.constant 0 : index
    %82 = vector.load %arg14[%c40, %c0_71] : memref<72x512xf32, #tpu.memory_space<vmem>>, vector<8x512xf32>
    tpu.vector_store %arg14[%c40, %c0_71], %81 {strides = array<i32>} : memref<72x512xf32, #tpu.memory_space<vmem>>, vector<8x512xf32>,
    %c497_i32_72 = arith.constant 497 : i32
    %83 = tpu.dynamic_rotate %53 by %c497_i32_72 dim 1 : vector<8x512xf32>, i32 -> vector<8x512xf32>
    %c6_73 = arith.constant 6 : index
    %c0_74 = arith.constant 0 : index
    %84 = vector.load %arg2[%c6_73, %c0_74] : memref<9x512xf32, #tpu.memory_space<vmem>>, vector<1x512xf32>
    %85 = vector.broadcast %84 : vector<1x512xf32> to vector<8x512xf32>
    %86 = arith.mulf %83, %85 : vector<8x512xf32>
    %c48 = arith.constant 48 : index
    %c0_75 = arith.constant 0 : index
    %87 = vector.load %arg14[%c48, %c0_75] : memref<72x512xf32, #tpu.memory_space<vmem>>, vector<8x512xf32>
    tpu.vector_store %arg14[%c48, %c0_75], %86 {strides = array<i32>} : memref<72x512xf32, #tpu.memory_space<vmem>>, vector<8x512xf32>,
    %c496_i32_76 = arith.constant 496 : i32
    %88 = tpu.dynamic_rotate %53 by %c496_i32_76 dim 1 : vector<8x512xf32>, i32 -> vector<8x512xf32>
    %c7_77 = arith.constant 7 : index
    %c0_78 = arith.constant 0 : index
    %89 = vector.load %arg2[%c7_77, %c0_78] : memref<9x512xf32, #tpu.memory_space<vmem>>, vector<1x512xf32>
    %90 = vector.broadcast %89 : vector<1x512xf32> to vector<8x512xf32>
    %91 = arith.mulf %88, %90 : vector<8x512xf32>
    %c56 = arith.constant 56 : index
    %c0_79 = arith.constant 0 : index
    %92 = vector.load %arg14[%c56, %c0_79] : memref<72x512xf32, #tpu.memory_space<vmem>>, vector<8x512xf32>
    tpu.vector_store %arg14[%c56, %c0_79], %91 {strides = array<i32>} : memref<72x512xf32, #tpu.memory_space<vmem>>, vector<8x512xf32>,
    %c495_i32_80 = arith.constant 495 : i32
    %93 = tpu.dynamic_rotate %53 by %c495_i32_80 dim 1 : vector<8x512xf32>, i32 -> vector<8x512xf32>
    %c8_81 = arith.constant 8 : index
    %c0_82 = arith.constant 0 : index
    %94 = vector.load %arg2[%c8_81, %c0_82] : memref<9x512xf32, #tpu.memory_space<vmem>>, vector<1x512xf32>
    %95 = vector.broadcast %94 : vector<1x512xf32> to vector<8x512xf32>
    %96 = arith.mulf %93, %95 : vector<8x512xf32>
    %c64 = arith.constant 64 : index
    %c0_83 = arith.constant 0 : index
    %97 = vector.load %arg14[%c64, %c0_83] : memref<72x512xf32, #tpu.memory_space<vmem>>, vector<8x512xf32>
    tpu.vector_store %arg14[%c64, %c0_83], %96 {strides = array<i32>} : memref<72x512xf32, #tpu.memory_space<vmem>>, vector<8x512xf32>,
    %c0_84 = arith.constant 0 : index
    %c0_85 = arith.constant 0 : index
    %98 = vector.load %arg14[%c0_84, %c0_85] : memref<72x512xf32, #tpu.memory_space<vmem>>, vector<72x512xf32>
    %c0_86 = arith.constant 0 : index
    %c0_87 = arith.constant 0 : index
    %99 = vector.load %arg5[%c0_86, %c0_87] : memref<8x72xf32, #tpu.memory_space<vmem>>, vector<8x72xf32>
    %cst_88 = arith.constant dense<0.000000e+00> : vector<8x512xf32>
    %100 = tpu.matmul %99, %98, %cst_88 {dimension_numbers = #tpu.dot_dimension_numbers<[1], [0], [0], [1], [0, 0, 1, 1], [], []>} : vector<8x72xf32>, vector<72x512xf32>, vector<8x512xf32> -> vector<8x512xf32>
    %c0_89 = arith.constant 0 : index
    %c0_90 = arith.constant 0 : index
    %101 = vector.load %arg6[%c0_89, %c0_90] : memref<8x1xf32, #tpu.memory_space<vmem>>, vector<8x1xf32>
    %102 = vector.broadcast %101 : vector<8x1xf32> to vector<8x512xf32>
    %103 = arith.addf %100, %102 : vector<8x512xf32>
    %cst_91 = arith.constant 0.000000e+00 : f32
    %104 = vector.broadcast %cst_91 : f32 to vector<8x512xf32>
    %105 = arith.maximumf %103, %104 : vector<8x512xf32>
    %c17_i32_92 = arith.constant 17 : i32
    %106 = tpu.dynamic_rotate %105 by %c17_i32_92 dim 1 : vector<8x512xf32>, i32 -> vector<8x512xf32>
    %c0_93 = arith.constant 0 : index
    %c0_94 = arith.constant 0 : index
    %107 = vector.load %arg2[%c0_93, %c0_94] : memref<9x512xf32, #tpu.memory_space<vmem>>, vector<1x512xf32>
    %108 = vector.broadcast %107 : vector<1x512xf32> to vector<8x512xf32>
    %109 = arith.mulf %106, %108 : vector<8x512xf32>
    %c0_95 = arith.constant 0 : index
    %c0_96 = arith.constant 0 : index
    %110 = vector.load %arg14[%c0_95, %c0_96] : memref<72x512xf32, #tpu.memory_space<vmem>>, vector<8x512xf32>
    tpu.vector_store %arg14[%c0_95, %c0_96], %109 {strides = array<i32>} : memref<72x512xf32, #tpu.memory_space<vmem>>, vector<8x512xf32>,
    %c16_i32_97 = arith.constant 16 : i32
    %111 = tpu.dynamic_rotate %105 by %c16_i32_97 dim 1 : vector<8x512xf32>, i32 -> vector<8x512xf32>
    %c1_98 = arith.constant 1 : index
    %c0_99 = arith.constant 0 : index
    %112 = vector.load %arg2[%c1_98, %c0_99] : memref<9x512xf32, #tpu.memory_space<vmem>>, vector<1x512xf32>
    %113 = vector.broadcast %112 : vector<1x512xf32> to vector<8x512xf32>
    %114 = arith.mulf %111, %113 : vector<8x512xf32>
    %c8_100 = arith.constant 8 : index
    %c0_101 = arith.constant 0 : index
    %115 = vector.load %arg14[%c8_100, %c0_101] : memref<72x512xf32, #tpu.memory_space<vmem>>, vector<8x512xf32>
    tpu.vector_store %arg14[%c8_100, %c0_101], %114 {strides = array<i32>} : memref<72x512xf32, #tpu.memory_space<vmem>>, vector<8x512xf32>,
    %c15_i32_102 = arith.constant 15 : i32
    %116 = tpu.dynamic_rotate %105 by %c15_i32_102 dim 1 : vector<8x512xf32>, i32 -> vector<8x512xf32>
    %c2_103 = arith.constant 2 : index
    %c0_104 = arith.constant 0 : index
    %117 = vector.load %arg2[%c2_103, %c0_104] : memref<9x512xf32, #tpu.memory_space<vmem>>, vector<1x512xf32>
    %118 = vector.broadcast %117 : vector<1x512xf32> to vector<8x512xf32>
    %119 = arith.mulf %116, %118 : vector<8x512xf32>
    %c16_105 = arith.constant 16 : index
    %c0_106 = arith.constant 0 : index
    %120 = vector.load %arg14[%c16_105, %c0_106] : memref<72x512xf32, #tpu.memory_space<vmem>>, vector<8x512xf32>
    tpu.vector_store %arg14[%c16_105, %c0_106], %119 {strides = array<i32>} : memref<72x512xf32, #tpu.memory_space<vmem>>, vector<8x512xf32>,
    %c1_i32_107 = arith.constant 1 : i32
    %121 = tpu.dynamic_rotate %105 by %c1_i32_107 dim 1 : vector<8x512xf32>, i32 -> vector<8x512xf32>
    %c3_108 = arith.constant 3 : index
    %c0_109 = arith.constant 0 : index
    %122 = vector.load %arg2[%c3_108, %c0_109] : memref<9x512xf32, #tpu.memory_space<vmem>>, vector<1x512xf32>
    %123 = vector.broadcast %122 : vector<1x512xf32> to vector<8x512xf32>
    %124 = arith.mulf %121, %123 : vector<8x512xf32>
    %c24_110 = arith.constant 24 : index
    %c0_111 = arith.constant 0 : index
    %125 = vector.load %arg14[%c24_110, %c0_111] : memref<72x512xf32, #tpu.memory_space<vmem>>, vector<8x512xf32>
    tpu.vector_store %arg14[%c24_110, %c0_111], %124 {strides = array<i32>} : memref<72x512xf32, #tpu.memory_space<vmem>>, vector<8x512xf32>,
    %c4_112 = arith.constant 4 : index
    %c0_113 = arith.constant 0 : index
    %126 = vector.load %arg2[%c4_112, %c0_113] : memref<9x512xf32, #tpu.memory_space<vmem>>, vector<1x512xf32>
    %127 = vector.broadcast %126 : vector<1x512xf32> to vector<8x512xf32>
    %128 = arith.mulf %105, %127 : vector<8x512xf32>
    %c32_114 = arith.constant 32 : index
    %c0_115 = arith.constant 0 : index
    %129 = vector.load %arg14[%c32_114, %c0_115] : memref<72x512xf32, #tpu.memory_space<vmem>>, vector<8x512xf32>
    tpu.vector_store %arg14[%c32_114, %c0_115], %128 {strides = array<i32>} : memref<72x512xf32, #tpu.memory_space<vmem>>, vector<8x512xf32>,
    %c511_i32_116 = arith.constant 511 : i32
    %130 = tpu.dynamic_rotate %105 by %c511_i32_116 dim 1 : vector<8x512xf32>, i32 -> vector<8x512xf32>
    %c5_117 = arith.constant 5 : index
    %c0_118 = arith.constant 0 : index
    %131 = vector.load %arg2[%c5_117, %c0_118] : memref<9x512xf32, #tpu.memory_space<vmem>>, vector<1x512xf32>
    %132 = vector.broadcast %131 : vector<1x512xf32> to vector<8x512xf32>
    %133 = arith.mulf %130, %132 : vector<8x512xf32>
    %c40_119 = arith.constant 40 : index
    %c0_120 = arith.constant 0 : index
    %134 = vector.load %arg14[%c40_119, %c0_120] : memref<72x512xf32, #tpu.memory_space<vmem>>, vector<8x512xf32>
    tpu.vector_store %arg14[%c40_119, %c0_120], %133 {strides = array<i32>} : memref<72x512xf32, #tpu.memory_space<vmem>>, vector<8x512xf32>,
    %c497_i32_121 = arith.constant 497 : i32
    %135 = tpu.dynamic_rotate %105 by %c497_i32_121 dim 1 : vector<8x512xf32>, i32 -> vector<8x512xf32>
    %c6_122 = arith.constant 6 : index
    %c0_123 = arith.constant 0 : index
    %136 = vector.load %arg2[%c6_122, %c0_123] : memref<9x512xf32, #tpu.memory_space<vmem>>, vector<1x512xf32>
    %137 = vector.broadcast %136 : vector<1x512xf32> to vector<8x512xf32>
    %138 = arith.mulf %135, %137 : vector<8x512xf32>
    %c48_124 = arith.constant 48 : index
    %c0_125 = arith.constant 0 : index
    %139 = vector.load %arg14[%c48_124, %c0_125] : memref<72x512xf32, #tpu.memory_space<vmem>>, vector<8x512xf32>
    tpu.vector_store %arg14[%c48_124, %c0_125], %138 {strides = array<i32>} : memref<72x512xf32, #tpu.memory_space<vmem>>, vector<8x512xf32>,
    %c496_i32_126 = arith.constant 496 : i32
    %140 = tpu.dynamic_rotate %105 by %c496_i32_126 dim 1 : vector<8x512xf32>, i32 -> vector<8x512xf32>
    %c7_127 = arith.constant 7 : index
    %c0_128 = arith.constant 0 : index
    %141 = vector.load %arg2[%c7_127, %c0_128] : memref<9x512xf32, #tpu.memory_space<vmem>>, vector<1x512xf32>
    %142 = vector.broadcast %141 : vector<1x512xf32> to vector<8x512xf32>
    %143 = arith.mulf %140, %142 : vector<8x512xf32>
    %c56_129 = arith.constant 56 : index
    %c0_130 = arith.constant 0 : index
    %144 = vector.load %arg14[%c56_129, %c0_130] : memref<72x512xf32, #tpu.memory_space<vmem>>, vector<8x512xf32>
    tpu.vector_store %arg14[%c56_129, %c0_130], %143 {strides = array<i32>} : memref<72x512xf32, #tpu.memory_space<vmem>>, vector<8x512xf32>,
    %c495_i32_131 = arith.constant 495 : i32
    %145 = tpu.dynamic_rotate %105 by %c495_i32_131 dim 1 : vector<8x512xf32>, i32 -> vector<8x512xf32>
    %c8_132 = arith.constant 8 : index
    %c0_133 = arith.constant 0 : index
    %146 = vector.load %arg2[%c8_132, %c0_133] : memref<9x512xf32, #tpu.memory_space<vmem>>, vector<1x512xf32>
    %147 = vector.broadcast %146 : vector<1x512xf32> to vector<8x512xf32>
    %148 = arith.mulf %145, %147 : vector<8x512xf32>
    %c64_134 = arith.constant 64 : index
    %c0_135 = arith.constant 0 : index
    %149 = vector.load %arg14[%c64_134, %c0_135] : memref<72x512xf32, #tpu.memory_space<vmem>>, vector<8x512xf32>
    tpu.vector_store %arg14[%c64_134, %c0_135], %148 {strides = array<i32>} : memref<72x512xf32, #tpu.memory_space<vmem>>, vector<8x512xf32>,
    %c0_136 = arith.constant 0 : index
    %c0_137 = arith.constant 0 : index
    %150 = vector.load %arg14[%c0_136, %c0_137] : memref<72x512xf32, #tpu.memory_space<vmem>>, vector<72x512xf32>
    %c0_138 = arith.constant 0 : index
    %c0_139 = arith.constant 0 : index
    %151 = vector.load %arg7[%c0_138, %c0_139] : memref<8x72xf32, #tpu.memory_space<vmem>>, vector<8x72xf32>
    %cst_140 = arith.constant dense<0.000000e+00> : vector<8x512xf32>
    %152 = tpu.matmul %151, %150, %cst_140 {dimension_numbers = #tpu.dot_dimension_numbers<[1], [0], [0], [1], [0, 0, 1, 1], [], []>} : vector<8x72xf32>, vector<72x512xf32>, vector<8x512xf32> -> vector<8x512xf32>
    %c0_141 = arith.constant 0 : index
    %c0_142 = arith.constant 0 : index
    %153 = vector.load %arg8[%c0_141, %c0_142] : memref<8x1xf32, #tpu.memory_space<vmem>>, vector<8x1xf32>
    %154 = vector.broadcast %153 : vector<8x1xf32> to vector<8x512xf32>
    %155 = arith.addf %152, %154 : vector<8x512xf32>
    %c17_i32_143 = arith.constant 17 : i32
    %156 = tpu.dynamic_rotate %155 by %c17_i32_143 dim 1 : vector<8x512xf32>, i32 -> vector<8x512xf32>
    %c0_144 = arith.constant 0 : index
    %c0_145 = arith.constant 0 : index
    %157 = vector.load %arg2[%c0_144, %c0_145] : memref<9x512xf32, #tpu.memory_space<vmem>>, vector<1x512xf32>
    %158 = vector.broadcast %157 : vector<1x512xf32> to vector<8x512xf32>
    %159 = arith.mulf %156, %158 : vector<8x512xf32>
    %c0_146 = arith.constant 0 : index
    %c0_147 = arith.constant 0 : index
    %160 = vector.load %arg14[%c0_146, %c0_147] : memref<72x512xf32, #tpu.memory_space<vmem>>, vector<8x512xf32>
    tpu.vector_store %arg14[%c0_146, %c0_147], %159 {strides = array<i32>} : memref<72x512xf32, #tpu.memory_space<vmem>>, vector<8x512xf32>,
    %c16_i32_148 = arith.constant 16 : i32
    %161 = tpu.dynamic_rotate %155 by %c16_i32_148 dim 1 : vector<8x512xf32>, i32 -> vector<8x512xf32>
    %c1_149 = arith.constant 1 : index
    %c0_150 = arith.constant 0 : index
    %162 = vector.load %arg2[%c1_149, %c0_150] : memref<9x512xf32, #tpu.memory_space<vmem>>, vector<1x512xf32>
    %163 = vector.broadcast %162 : vector<1x512xf32> to vector<8x512xf32>
    %164 = arith.mulf %161, %163 : vector<8x512xf32>
    %c8_151 = arith.constant 8 : index
    %c0_152 = arith.constant 0 : index
    %165 = vector.load %arg14[%c8_151, %c0_152] : memref<72x512xf32, #tpu.memory_space<vmem>>, vector<8x512xf32>
    tpu.vector_store %arg14[%c8_151, %c0_152], %164 {strides = array<i32>} : memref<72x512xf32, #tpu.memory_space<vmem>>, vector<8x512xf32>,
    %c15_i32_153 = arith.constant 15 : i32
    %166 = tpu.dynamic_rotate %155 by %c15_i32_153 dim 1 : vector<8x512xf32>, i32 -> vector<8x512xf32>
    %c2_154 = arith.constant 2 : index
    %c0_155 = arith.constant 0 : index
    %167 = vector.load %arg2[%c2_154, %c0_155] : memref<9x512xf32, #tpu.memory_space<vmem>>, vector<1x512xf32>
    %168 = vector.broadcast %167 : vector<1x512xf32> to vector<8x512xf32>
    %169 = arith.mulf %166, %168 : vector<8x512xf32>
    %c16_156 = arith.constant 16 : index
    %c0_157 = arith.constant 0 : index
    %170 = vector.load %arg14[%c16_156, %c0_157] : memref<72x512xf32, #tpu.memory_space<vmem>>, vector<8x512xf32>
    tpu.vector_store %arg14[%c16_156, %c0_157], %169 {strides = array<i32>} : memref<72x512xf32, #tpu.memory_space<vmem>>, vector<8x512xf32>,
    %c1_i32_158 = arith.constant 1 : i32
    %171 = tpu.dynamic_rotate %155 by %c1_i32_158 dim 1 : vector<8x512xf32>, i32 -> vector<8x512xf32>
    %c3_159 = arith.constant 3 : index
    %c0_160 = arith.constant 0 : index
    %172 = vector.load %arg2[%c3_159, %c0_160] : memref<9x512xf32, #tpu.memory_space<vmem>>, vector<1x512xf32>
    %173 = vector.broadcast %172 : vector<1x512xf32> to vector<8x512xf32>
    %174 = arith.mulf %171, %173 : vector<8x512xf32>
    %c24_161 = arith.constant 24 : index
    %c0_162 = arith.constant 0 : index
    %175 = vector.load %arg14[%c24_161, %c0_162] : memref<72x512xf32, #tpu.memory_space<vmem>>, vector<8x512xf32>
    tpu.vector_store %arg14[%c24_161, %c0_162], %174 {strides = array<i32>} : memref<72x512xf32, #tpu.memory_space<vmem>>, vector<8x512xf32>,
    %c4_163 = arith.constant 4 : index
    %c0_164 = arith.constant 0 : index
    %176 = vector.load %arg2[%c4_163, %c0_164] : memref<9x512xf32, #tpu.memory_space<vmem>>, vector<1x512xf32>
    %177 = vector.broadcast %176 : vector<1x512xf32> to vector<8x512xf32>
    %178 = arith.mulf %155, %177 : vector<8x512xf32>
    %c32_165 = arith.constant 32 : index
    %c0_166 = arith.constant 0 : index
    %179 = vector.load %arg14[%c32_165, %c0_166] : memref<72x512xf32, #tpu.memory_space<vmem>>, vector<8x512xf32>
    tpu.vector_store %arg14[%c32_165, %c0_166], %178 {strides = array<i32>} : memref<72x512xf32, #tpu.memory_space<vmem>>, vector<8x512xf32>,
    %c511_i32_167 = arith.constant 511 : i32
    %180 = tpu.dynamic_rotate %155 by %c511_i32_167 dim 1 : vector<8x512xf32>, i32 -> vector<8x512xf32>
    %c5_168 = arith.constant 5 : index
    %c0_169 = arith.constant 0 : index
    %181 = vector.load %arg2[%c5_168, %c0_169] : memref<9x512xf32, #tpu.memory_space<vmem>>, vector<1x512xf32>
    %182 = vector.broadcast %181 : vector<1x512xf32> to vector<8x512xf32>
    %183 = arith.mulf %180, %182 : vector<8x512xf32>
    %c40_170 = arith.constant 40 : index
    %c0_171 = arith.constant 0 : index
    %184 = vector.load %arg14[%c40_170, %c0_171] : memref<72x512xf32, #tpu.memory_space<vmem>>, vector<8x512xf32>
    tpu.vector_store %arg14[%c40_170, %c0_171], %183 {strides = array<i32>} : memref<72x512xf32, #tpu.memory_space<vmem>>, vector<8x512xf32>,
    %c497_i32_172 = arith.constant 497 : i32
    %185 = tpu.dynamic_rotate %155 by %c497_i32_172 dim 1 : vector<8x512xf32>, i32 -> vector<8x512xf32>
    %c6_173 = arith.constant 6 : index
    %c0_174 = arith.constant 0 : index
    %186 = vector.load %arg2[%c6_173, %c0_174] : memref<9x512xf32, #tpu.memory_space<vmem>>, vector<1x512xf32>
    %187 = vector.broadcast %186 : vector<1x512xf32> to vector<8x512xf32>
    %188 = arith.mulf %185, %187 : vector<8x512xf32>
    %c48_175 = arith.constant 48 : index
    %c0_176 = arith.constant 0 : index
    %189 = vector.load %arg14[%c48_175, %c0_176] : memref<72x512xf32, #tpu.memory_space<vmem>>, vector<8x512xf32>
    tpu.vector_store %arg14[%c48_175, %c0_176], %188 {strides = array<i32>} : memref<72x512xf32, #tpu.memory_space<vmem>>, vector<8x512xf32>,
    %c496_i32_177 = arith.constant 496 : i32
    %190 = tpu.dynamic_rotate %155 by %c496_i32_177 dim 1 : vector<8x512xf32>, i32 -> vector<8x512xf32>
    %c7_178 = arith.constant 7 : index
    %c0_179 = arith.constant 0 : index
    %191 = vector.load %arg2[%c7_178, %c0_179] : memref<9x512xf32, #tpu.memory_space<vmem>>, vector<1x512xf32>
    %192 = vector.broadcast %191 : vector<1x512xf32> to vector<8x512xf32>
    %193 = arith.mulf %190, %192 : vector<8x512xf32>
    %c56_180 = arith.constant 56 : index
    %c0_181 = arith.constant 0 : index
    %194 = vector.load %arg14[%c56_180, %c0_181] : memref<72x512xf32, #tpu.memory_space<vmem>>, vector<8x512xf32>
    tpu.vector_store %arg14[%c56_180, %c0_181], %193 {strides = array<i32>} : memref<72x512xf32, #tpu.memory_space<vmem>>, vector<8x512xf32>,
    %c495_i32_182 = arith.constant 495 : i32
    %195 = tpu.dynamic_rotate %155 by %c495_i32_182 dim 1 : vector<8x512xf32>, i32 -> vector<8x512xf32>
    %c8_183 = arith.constant 8 : index
    %c0_184 = arith.constant 0 : index
    %196 = vector.load %arg2[%c8_183, %c0_184] : memref<9x512xf32, #tpu.memory_space<vmem>>, vector<1x512xf32>
    %197 = vector.broadcast %196 : vector<1x512xf32> to vector<8x512xf32>
    %198 = arith.mulf %195, %197 : vector<8x512xf32>
    %c64_185 = arith.constant 64 : index
    %c0_186 = arith.constant 0 : index
    %199 = vector.load %arg14[%c64_185, %c0_186] : memref<72x512xf32, #tpu.memory_space<vmem>>, vector<8x512xf32>
    tpu.vector_store %arg14[%c64_185, %c0_186], %198 {strides = array<i32>} : memref<72x512xf32, #tpu.memory_space<vmem>>, vector<8x512xf32>,
    %c0_187 = arith.constant 0 : index
    %c0_188 = arith.constant 0 : index
    %200 = vector.load %arg14[%c0_187, %c0_188] : memref<72x512xf32, #tpu.memory_space<vmem>>, vector<72x512xf32>
    %c0_189 = arith.constant 0 : index
    %c0_190 = arith.constant 0 : index
    %201 = vector.load %arg9[%c0_189, %c0_190] : memref<1x72xf32, #tpu.memory_space<vmem>>, vector<1x72xf32>
    %cst_191 = arith.constant dense<0.000000e+00> : vector<1x512xf32>
    %202 = tpu.matmul %201, %200, %cst_191 {dimension_numbers = #tpu.dot_dimension_numbers<[1], [0], [0], [1], [0, 0, 1, 1], [], []>} : vector<1x72xf32>, vector<72x512xf32>, vector<1x512xf32> -> vector<1x512xf32>
    %c0_192 = arith.constant 0 : index
    %c0_193 = arith.constant 0 : index
    %203 = vector.load %arg10[%c0_192, %c0_193] : memref<1x1xf32, #tpu.memory_space<vmem>>, vector<1x1xf32>
    %204 = vector.broadcast %203 : vector<1x1xf32> to vector<1x512xf32>
    %205 = arith.addf %202, %204 : vector<1x512xf32>
    %206 = vector.extract_strided_slice %205 {offsets = [0, 0], sizes = [1, 256], strides = [1, 1]} : vector<1x512xf32> to vector<1x256xf32>
    %c0_194 = arith.constant 0 : index
    %c0_195 = arith.constant 0 : index
    %207 = vector.load %arg16[%c0_194, %c0_195] : memref<2x256xf32, #tpu.memory_space<vmem>>, vector<1x256xf32>
    tpu.vector_store %arg16[%c0_194, %c0_195], %206 {strides = array<i32>} : memref<2x256xf32, #tpu.memory_space<vmem>>, vector<1x256xf32>,
    %208 = vector.extract_strided_slice %205 {offsets = [0, 256], sizes = [1, 256], strides = [1, 1]} : vector<1x512xf32> to vector<1x256xf32>
    %c1_196 = arith.constant 1 : index
    %c0_197 = arith.constant 0 : index
    %209 = vector.load %arg16[%c1_196, %c0_197] : memref<2x256xf32, #tpu.memory_space<vmem>>, vector<1x256xf32>
    tpu.vector_store %arg16[%c1_196, %c0_197], %208 {strides = array<i32>} : memref<2x256xf32, #tpu.memory_space<vmem>>, vector<1x256xf32>,
    %c0_198 = arith.constant 0 : index
    %c0_199 = arith.constant 0 : index
    %210 = vector.load %arg16[%c0_198, %c0_199] : memref<2x256xf32, #tpu.memory_space<vmem>>, vector<2x256xf32>
    %211 = arith.addf %210, %5 : vector<2x256xf32>
    %cst_200 = arith.constant dense<0x7F800000> : vector<2xf32>
    %212 = vector.multi_reduction <minimumf>, %211, %cst_200 [1] : vector<2x256xf32> to vector<2xf32>
    %213 = vector.shape_cast %212 : vector<2xf32> to vector<2x1xf32>
    %cst_201 = arith.constant dense<0xFF800000> : vector<2xf32>
    %214 = vector.multi_reduction <maximumf>, %211, %cst_201 [1] : vector<2x256xf32> to vector<2xf32>
    %215 = vector.shape_cast %214 : vector<2xf32> to vector<2x1xf32>
    %216 = vector.broadcast %213 : vector<2x1xf32> to vector<2x256xf32>
    %217 = arith.subf %211, %216 : vector<2x256xf32>
    %218 = arith.subf %215, %213 : vector<2x1xf32>
    %cst_202 = arith.constant 1.000000e+00 : f32
    %219 = vector.broadcast %cst_202 : f32 to vector<2x1xf32>
    %220 = arith.divf %219, %218 : vector<2x1xf32>
    %221 = vector.broadcast %220 : vector<2x1xf32> to vector<2x256xf32>
    %222 = arith.mulf %217, %221 : vector<2x256xf32>
    %cst_203 = arith.constant 2.000000e+01 : f32
    %223 = vector.broadcast %cst_203 : f32 to vector<2x256xf32>
    %224 = arith.mulf %5, %223 : vector<2x256xf32>
    %225 = arith.addf %224, %222 : vector<2x256xf32>
    %cst_204 = arith.constant 0.000000e+00 : f32
    %226 = vector.broadcast %cst_204 : f32 to vector<2x256xf32>
    %227 = arith.mulf %225, %225 : vector<2x256xf32>
    %cst_205 = arith.constant dense<0.000000e+00> : vector<2xf32>
    %228 = vector.multi_reduction <add>, %227, %cst_205 [1] : vector<2x256xf32> to vector<2xf32>
    %229 = vector.shape_cast %228 : vector<2xf32> to vector<2x1xf32>
    %cst_206 = arith.constant 9.99999974E-6 : f32
    %230 = vector.broadcast %cst_206 : f32 to vector<2x1xf32>
    %231 = arith.cmpf oge, %229, %230 : vector<2x1xf32>
    %c0_207 = arith.constant 0 : index
    %c0_208 = arith.constant 0 : index
    %232 = vector.load %arg11[%c0_207, %c0_208] : memref<256x256xf32, #tpu.memory_space<vmem>>, vector<256x256xf32>
    %cst_209 = arith.constant dense<0.000000e+00> : vector<2x256xf32>
    %233 = tpu.matmul %225, %232, %cst_209 {dimension_numbers = #tpu.dot_dimension_numbers<[1], [0], [0], [1], [0, 0, 1, 1], [], []>} : vector<2x256xf32>, vector<256x256xf32>, vector<2x256xf32> -> vector<2x256xf32>
    %234 = arith.mulf %225, %233 : vector<2x256xf32>
    %cst_210 = arith.constant dense<0.000000e+00> : vector<2xf32>
    %235 = vector.multi_reduction <add>, %234, %cst_210 [1] : vector<2x256xf32> to vector<2xf32>
    %236 = vector.shape_cast %235 : vector<2xf32> to vector<2x1xf32>
    %237 = arith.divf %229, %236 : vector<2x1xf32>
    %238 = vector.broadcast %237 : vector<2x1xf32> to vector<2x256xf32>
    %239 = arith.mulf %238, %225 : vector<2x256xf32>
    %240 = arith.addf %226, %239 : vector<2x256xf32>
    %241 = vector.broadcast %237 : vector<2x1xf32> to vector<2x256xf32>
    %242 = arith.mulf %241, %233 : vector<2x256xf32>
    %243 = arith.subf %225, %242 : vector<2x256xf32>
    %244 = arith.mulf %243, %243 : vector<2x256xf32>
    %cst_211 = arith.constant dense<0.000000e+00> : vector<2xf32>
    %245 = vector.multi_reduction <add>, %244, %cst_211 [1] : vector<2x256xf32> to vector<2xf32>
    %246 = vector.shape_cast %245 : vector<2xf32> to vector<2x1xf32>
    %247 = arith.divf %246, %229 : vector<2x1xf32>
    %248 = vector.broadcast %247 : vector<2x1xf32> to vector<2x256xf32>
    %249 = arith.mulf %248, %225 : vector<2x256xf32>
    %250 = arith.addf %243, %249 : vector<2x256xf32>
    %251 = vector.shape_cast %231 : vector<2x1xi1> to vector<2x1xi1>
    %252 = vector.broadcast %251 : vector<2x1xi1> to vector<2x256xi1>
    %253 = arith.select %252, %240, %226 : vector<2x256xi1>, vector<2x256xf32>
    %254 = vector.shape_cast %231 : vector<2x1xi1> to vector<2x1xi1>
    %255 = vector.broadcast %254 : vector<2x1xi1> to vector<2x256xi1>
    %256 = arith.select %255, %243, %225 : vector<2x256xi1>, vector<2x256xf32>
    %257 = vector.shape_cast %231 : vector<2x1xi1> to vector<2x1xi1>
    %258 = vector.broadcast %257 : vector<2x1xi1> to vector<2x256xi1>
    %259 = arith.select %258, %250, %225 : vector<2x256xi1>, vector<2x256xf32>
    %260 = arith.select %231, %246, %229 : vector<2x1xi1>, vector<2x1xf32>
    %cst_212 = arith.constant 9.99999974E-6 : f32
    %261 = vector.broadcast %cst_212 : f32 to vector<2x1xf32>
    %262 = arith.cmpf oge, %260, %261 : vector<2x1xf32>
    %c0_213 = arith.constant 0 : index
    %c0_214 = arith.constant 0 : index
    %263 = vector.load %arg11[%c0_213, %c0_214] : memref<256x256xf32, #tpu.memory_space<vmem>>, vector<256x256xf32>
    %cst_215 = arith.constant dense<0.000000e+00> : vector<2x256xf32>
    %264 = tpu.matmul %259, %263, %cst_215 {dimension_numbers = #tpu.dot_dimension_numbers<[1], [0], [0], [1], [0, 0, 1, 1], [], []>} : vector<2x256xf32>, vector<256x256xf32>, vector<2x256xf32> -> vector<2x256xf32>
    %265 = arith.mulf %259, %264 : vector<2x256xf32>
    %cst_216 = arith.constant dense<0.000000e+00> : vector<2xf32>
    %266 = vector.multi_reduction <add>, %265, %cst_216 [1] : vector<2x256xf32> to vector<2xf32>
    %267 = vector.shape_cast %266 : vector<2xf32> to vector<2x1xf32>
    %268 = arith.divf %260, %267 : vector<2x1xf32>
    %269 = vector.broadcast %268 : vector<2x1xf32> to vector<2x256xf32>
    %270 = arith.mulf %269, %259 : vector<2x256xf32>
    %271 = arith.addf %253, %270 : vector<2x256xf32>
    %272 = vector.broadcast %268 : vector<2x1xf32> to vector<2x256xf32>
    %273 = arith.mulf %272, %264 : vector<2x256xf32>
    %274 = arith.subf %256, %273 : vector<2x256xf32>
    %275 = arith.mulf %274, %274 : vector<2x256xf32>
    %cst_217 = arith.constant dense<0.000000e+00> : vector<2xf32>
    %276 = vector.multi_reduction <add>, %275, %cst_217 [1] : vector<2x256xf32> to vector<2xf32>
    %277 = vector.shape_cast %276 : vector<2xf32> to vector<2x1xf32>
    %278 = arith.divf %277, %260 : vector<2x1xf32>
    %279 = vector.broadcast %278 : vector<2x1xf32> to vector<2x256xf32>
    %280 = arith.mulf %279, %259 : vector<2x256xf32>
    %281 = arith.addf %274, %280 : vector<2x256xf32>
    %282 = vector.shape_cast %262 : vector<2x1xi1> to vector<2x1xi1>
    %283 = vector.broadcast %282 : vector<2x1xi1> to vector<2x256xi1>
    %284 = arith.select %283, %271, %253 : vector<2x256xi1>, vector<2x256xf32>
    %285 = vector.shape_cast %262 : vector<2x1xi1> to vector<2x1xi1>
    %286 = vector.broadcast %285 : vector<2x1xi1> to vector<2x256xi1>
    %287 = arith.select %286, %274, %256 : vector<2x256xi1>, vector<2x256xf32>
    %288 = vector.shape_cast %262 : vector<2x1xi1> to vector<2x1xi1>
    %289 = vector.broadcast %288 : vector<2x1xi1> to vector<2x256xi1>
    %290 = arith.select %289, %281, %259 : vector<2x256xi1>, vector<2x256xf32>
    %291 = arith.select %262, %277, %260 : vector<2x1xi1>, vector<2x1xf32>
    %cst_218 = arith.constant 9.99999974E-6 : f32
    %292 = vector.broadcast %cst_218 : f32 to vector<2x1xf32>
    %293 = arith.cmpf oge, %291, %292 : vector<2x1xf32>
    %c0_219 = arith.constant 0 : index
    %c0_220 = arith.constant 0 : index
    %294 = vector.load %arg11[%c0_219, %c0_220] : memref<256x256xf32, #tpu.memory_space<vmem>>, vector<256x256xf32>
    %cst_221 = arith.constant dense<0.000000e+00> : vector<2x256xf32>
    %295 = tpu.matmul %290, %294, %cst_221 {dimension_numbers = #tpu.dot_dimension_numbers<[1], [0], [0], [1], [0, 0, 1, 1], [], []>} : vector<2x256xf32>, vector<256x256xf32>, vector<2x256xf32> -> vector<2x256xf32>
    %296 = arith.mulf %290, %295 : vector<2x256xf32>
    %cst_222 = arith.constant dense<0.000000e+00> : vector<2xf32>
    %297 = vector.multi_reduction <add>, %296, %cst_222 [1] : vector<2x256xf32> to vector<2xf32>
    %298 = vector.shape_cast %297 : vector<2xf32> to vector<2x1xf32>
    %299 = arith.divf %291, %298 : vector<2x1xf32>
    %300 = vector.broadcast %299 : vector<2x1xf32> to vector<2x256xf32>
    %301 = arith.mulf %300, %290 : vector<2x256xf32>
    %302 = arith.addf %284, %301 : vector<2x256xf32>
    %303 = vector.broadcast %299 : vector<2x1xf32> to vector<2x256xf32>
    %304 = arith.mulf %303, %295 : vector<2x256xf32>
    %305 = arith.subf %287, %304 : vector<2x256xf32>
    %306 = arith.mulf %305, %305 : vector<2x256xf32>
    %cst_223 = arith.constant dense<0.000000e+00> : vector<2xf32>
    %307 = vector.multi_reduction <add>, %306, %cst_223 [1] : vector<2x256xf32> to vector<2xf32>
    %308 = vector.shape_cast %307 : vector<2xf32> to vector<2x1xf32>
    %309 = arith.divf %308, %291 : vector<2x1xf32>
    %310 = vector.broadcast %309 : vector<2x1xf32> to vector<2x256xf32>
    %311 = arith.mulf %310, %290 : vector<2x256xf32>
    %312 = arith.addf %305, %311 : vector<2x256xf32>
    %313 = vector.shape_cast %293 : vector<2x1xi1> to vector<2x1xi1>
    %314 = vector.broadcast %313 : vector<2x1xi1> to vector<2x256xi1>
    %315 = arith.select %314, %302, %284 : vector<2x256xi1>, vector<2x256xf32>
    %316 = vector.shape_cast %293 : vector<2x1xi1> to vector<2x1xi1>
    %317 = vector.broadcast %316 : vector<2x1xi1> to vector<2x256xi1>
    %318 = arith.select %317, %305, %287 : vector<2x256xi1>, vector<2x256xf32>
    %319 = vector.shape_cast %293 : vector<2x1xi1> to vector<2x1xi1>
    %320 = vector.broadcast %319 : vector<2x1xi1> to vector<2x256xi1>
    %321 = arith.select %320, %312, %290 : vector<2x256xi1>, vector<2x256xf32>
    %322 = arith.select %293, %308, %291 : vector<2x1xi1>, vector<2x1xf32>
    %cst_224 = arith.constant 9.99999974E-6 : f32
    %323 = vector.broadcast %cst_224 : f32 to vector<2x1xf32>
    %324 = arith.cmpf oge, %322, %323 : vector<2x1xf32>
    %c0_225 = arith.constant 0 : index
    %c0_226 = arith.constant 0 : index
    %325 = vector.load %arg11[%c0_225, %c0_226] : memref<256x256xf32, #tpu.memory_space<vmem>>, vector<256x256xf32>
    %cst_227 = arith.constant dense<0.000000e+00> : vector<2x256xf32>
    %326 = tpu.matmul %321, %325, %cst_227 {dimension_numbers = #tpu.dot_dimension_numbers<[1], [0], [0], [1], [0, 0, 1, 1], [], []>} : vector<2x256xf32>, vector<256x256xf32>, vector<2x256xf32> -> vector<2x256xf32>
    %327 = arith.mulf %321, %326 : vector<2x256xf32>
    %cst_228 = arith.constant dense<0.000000e+00> : vector<2xf32>
    %328 = vector.multi_reduction <add>, %327, %cst_228 [1] : vector<2x256xf32> to vector<2xf32>
    %329 = vector.shape_cast %328 : vector<2xf32> to vector<2x1xf32>
    %330 = arith.divf %322, %329 : vector<2x1xf32>
    %331 = vector.broadcast %330 : vector<2x1xf32> to vector<2x256xf32>
    %332 = arith.mulf %331, %321 : vector<2x256xf32>
    %333 = arith.addf %315, %332 : vector<2x256xf32>
    %334 = vector.broadcast %330 : vector<2x1xf32> to vector<2x256xf32>
    %335 = arith.mulf %334, %326 : vector<2x256xf32>
    %336 = arith.subf %318, %335 : vector<2x256xf32>
    %337 = arith.mulf %336, %336 : vector<2x256xf32>
    %cst_229 = arith.constant dense<0.000000e+00> : vector<2xf32>
    %338 = vector.multi_reduction <add>, %337, %cst_229 [1] : vector<2x256xf32> to vector<2xf32>
    %339 = vector.shape_cast %338 : vector<2xf32> to vector<2x1xf32>
    %340 = arith.divf %339, %322 : vector<2x1xf32>
    %341 = vector.broadcast %340 : vector<2x1xf32> to vector<2x256xf32>
    %342 = arith.mulf %341, %321 : vector<2x256xf32>
    %343 = arith.addf %336, %342 : vector<2x256xf32>
    %344 = vector.shape_cast %324 : vector<2x1xi1> to vector<2x1xi1>
    %345 = vector.broadcast %344 : vector<2x1xi1> to vector<2x256xi1>
    %346 = arith.select %345, %333, %315 : vector<2x256xi1>, vector<2x256xf32>
    %347 = vector.shape_cast %324 : vector<2x1xi1> to vector<2x1xi1>
    %348 = vector.broadcast %347 : vector<2x1xi1> to vector<2x256xi1>
    %349 = arith.select %348, %336, %318 : vector<2x256xi1>, vector<2x256xf32>
    %350 = vector.shape_cast %324 : vector<2x1xi1> to vector<2x1xi1>
    %351 = vector.broadcast %350 : vector<2x1xi1> to vector<2x256xi1>
    %352 = arith.select %351, %343, %321 : vector<2x256xi1>, vector<2x256xf32>
    %353 = arith.select %324, %339, %322 : vector<2x1xi1>, vector<2x1xf32>
    %cst_230 = arith.constant 9.99999974E-6 : f32
    %354 = vector.broadcast %cst_230 : f32 to vector<2x1xf32>
    %355 = arith.cmpf oge, %353, %354 : vector<2x1xf32>
    %c0_231 = arith.constant 0 : index
    %c0_232 = arith.constant 0 : index
    %356 = vector.load %arg11[%c0_231, %c0_232] : memref<256x256xf32, #tpu.memory_space<vmem>>, vector<256x256xf32>
    %cst_233 = arith.constant dense<0.000000e+00> : vector<2x256xf32>
    %357 = tpu.matmul %352, %356, %cst_233 {dimension_numbers = #tpu.dot_dimension_numbers<[1], [0], [0], [1], [0, 0, 1, 1], [], []>} : vector<2x256xf32>, vector<256x256xf32>, vector<2x256xf32> -> vector<2x256xf32>
    %358 = arith.mulf %352, %357 : vector<2x256xf32>
    %cst_234 = arith.constant dense<0.000000e+00> : vector<2xf32>
    %359 = vector.multi_reduction <add>, %358, %cst_234 [1] : vector<2x256xf32> to vector<2xf32>
    %360 = vector.shape_cast %359 : vector<2xf32> to vector<2x1xf32>
    %361 = arith.divf %353, %360 : vector<2x1xf32>
    %362 = vector.broadcast %361 : vector<2x1xf32> to vector<2x256xf32>
    %363 = arith.mulf %362, %352 : vector<2x256xf32>
    %364 = arith.addf %346, %363 : vector<2x256xf32>
    %365 = vector.broadcast %361 : vector<2x1xf32> to vector<2x256xf32>
    %366 = arith.mulf %365, %357 : vector<2x256xf32>
    %367 = arith.subf %349, %366 : vector<2x256xf32>
    %368 = arith.mulf %367, %367 : vector<2x256xf32>
    %cst_235 = arith.constant dense<0.000000e+00> : vector<2xf32>
    %369 = vector.multi_reduction <add>, %368, %cst_235 [1] : vector<2x256xf32> to vector<2xf32>
    %370 = vector.shape_cast %369 : vector<2xf32> to vector<2x1xf32>
    %371 = arith.divf %370, %353 : vector<2x1xf32>
    %372 = vector.broadcast %371 : vector<2x1xf32> to vector<2x256xf32>
    %373 = arith.mulf %372, %352 : vector<2x256xf32>
    %374 = arith.addf %367, %373 : vector<2x256xf32>
    %375 = vector.shape_cast %355 : vector<2x1xi1> to vector<2x1xi1>
    %376 = vector.broadcast %375 : vector<2x1xi1> to vector<2x256xi1>
    %377 = arith.select %376, %364, %346 : vector<2x256xi1>, vector<2x256xf32>
    %378 = vector.shape_cast %355 : vector<2x1xi1> to vector<2x1xi1>
    %379 = vector.broadcast %378 : vector<2x1xi1> to vector<2x256xi1>
    %380 = arith.select %379, %367, %349 : vector<2x256xi1>, vector<2x256xf32>
    %381 = vector.shape_cast %355 : vector<2x1xi1> to vector<2x1xi1>
    %382 = vector.broadcast %381 : vector<2x1xi1> to vector<2x256xi1>
    %383 = arith.select %382, %374, %352 : vector<2x256xi1>, vector<2x256xf32>
    %384 = arith.select %355, %370, %353 : vector<2x1xi1>, vector<2x1xf32>
    %cst_236 = arith.constant 9.99999974E-6 : f32
    %385 = vector.broadcast %cst_236 : f32 to vector<2x1xf32>
    %386 = arith.cmpf oge, %384, %385 : vector<2x1xf32>
    %c0_237 = arith.constant 0 : index
    %c0_238 = arith.constant 0 : index
    %387 = vector.load %arg11[%c0_237, %c0_238] : memref<256x256xf32, #tpu.memory_space<vmem>>, vector<256x256xf32>
    %cst_239 = arith.constant dense<0.000000e+00> : vector<2x256xf32>
    %388 = tpu.matmul %383, %387, %cst_239 {dimension_numbers = #tpu.dot_dimension_numbers<[1], [0], [0], [1], [0, 0, 1, 1], [], []>} : vector<2x256xf32>, vector<256x256xf32>, vector<2x256xf32> -> vector<2x256xf32>
    %389 = arith.mulf %383, %388 : vector<2x256xf32>
    %cst_240 = arith.constant dense<0.000000e+00> : vector<2xf32>
    %390 = vector.multi_reduction <add>, %389, %cst_240 [1] : vector<2x256xf32> to vector<2xf32>
    %391 = vector.shape_cast %390 : vector<2xf32> to vector<2x1xf32>
    %392 = arith.divf %384, %391 : vector<2x1xf32>
    %393 = vector.broadcast %392 : vector<2x1xf32> to vector<2x256xf32>
    %394 = arith.mulf %393, %383 : vector<2x256xf32>
    %395 = arith.addf %377, %394 : vector<2x256xf32>
    %396 = vector.broadcast %392 : vector<2x1xf32> to vector<2x256xf32>
    %397 = arith.mulf %396, %388 : vector<2x256xf32>
    %398 = arith.subf %380, %397 : vector<2x256xf32>
    %399 = arith.mulf %398, %398 : vector<2x256xf32>
    %cst_241 = arith.constant dense<0.000000e+00> : vector<2xf32>
    %400 = vector.multi_reduction <add>, %399, %cst_241 [1] : vector<2x256xf32> to vector<2xf32>
    %401 = vector.shape_cast %400 : vector<2xf32> to vector<2x1xf32>
    %402 = arith.divf %401, %384 : vector<2x1xf32>
    %403 = vector.broadcast %402 : vector<2x1xf32> to vector<2x256xf32>
    %404 = arith.mulf %403, %383 : vector<2x256xf32>
    %405 = arith.addf %398, %404 : vector<2x256xf32>
    %406 = vector.shape_cast %386 : vector<2x1xi1> to vector<2x1xi1>
    %407 = vector.broadcast %406 : vector<2x1xi1> to vector<2x256xi1>
    %408 = arith.select %407, %395, %377 : vector<2x256xi1>, vector<2x256xf32>
    %409 = vector.shape_cast %386 : vector<2x1xi1> to vector<2x1xi1>
    %410 = vector.broadcast %409 : vector<2x1xi1> to vector<2x256xi1>
    %411 = arith.select %410, %398, %380 : vector<2x256xi1>, vector<2x256xf32>
    %412 = vector.shape_cast %386 : vector<2x1xi1> to vector<2x1xi1>
    %413 = vector.broadcast %412 : vector<2x1xi1> to vector<2x256xi1>
    %414 = arith.select %413, %405, %383 : vector<2x256xi1>, vector<2x256xf32>
    %415 = arith.select %386, %401, %384 : vector<2x1xi1>, vector<2x1xf32>
    %cst_242 = arith.constant 9.99999974E-6 : f32
    %416 = vector.broadcast %cst_242 : f32 to vector<2x1xf32>
    %417 = arith.cmpf oge, %415, %416 : vector<2x1xf32>
    %c0_243 = arith.constant 0 : index
    %c0_244 = arith.constant 0 : index
    %418 = vector.load %arg11[%c0_243, %c0_244] : memref<256x256xf32, #tpu.memory_space<vmem>>, vector<256x256xf32>
    %cst_245 = arith.constant dense<0.000000e+00> : vector<2x256xf32>
    %419 = tpu.matmul %414, %418, %cst_245 {dimension_numbers = #tpu.dot_dimension_numbers<[1], [0], [0], [1], [0, 0, 1, 1], [], []>} : vector<2x256xf32>, vector<256x256xf32>, vector<2x256xf32> -> vector<2x256xf32>
    %420 = arith.mulf %414, %419 : vector<2x256xf32>
    %cst_246 = arith.constant dense<0.000000e+00> : vector<2xf32>
    %421 = vector.multi_reduction <add>, %420, %cst_246 [1] : vector<2x256xf32> to vector<2xf32>
    %422 = vector.shape_cast %421 : vector<2xf32> to vector<2x1xf32>
    %423 = arith.divf %415, %422 : vector<2x1xf32>
    %424 = vector.broadcast %423 : vector<2x1xf32> to vector<2x256xf32>
    %425 = arith.mulf %424, %414 : vector<2x256xf32>
    %426 = arith.addf %408, %425 : vector<2x256xf32>
    %427 = vector.broadcast %423 : vector<2x1xf32> to vector<2x256xf32>
    %428 = arith.mulf %427, %419 : vector<2x256xf32>
    %429 = arith.subf %411, %428 : vector<2x256xf32>
    %430 = arith.mulf %429, %429 : vector<2x256xf32>
    %cst_247 = arith.constant dense<0.000000e+00> : vector<2xf32>
    %431 = vector.multi_reduction <add>, %430, %cst_247 [1] : vector<2x256xf32> to vector<2xf32>
    %432 = vector.shape_cast %431 : vector<2xf32> to vector<2x1xf32>
    %433 = arith.divf %432, %415 : vector<2x1xf32>
    %434 = vector.broadcast %433 : vector<2x1xf32> to vector<2x256xf32>
    %435 = arith.mulf %434, %414 : vector<2x256xf32>
    %436 = arith.addf %429, %435 : vector<2x256xf32>
    %437 = vector.shape_cast %417 : vector<2x1xi1> to vector<2x1xi1>
    %438 = vector.broadcast %437 : vector<2x1xi1> to vector<2x256xi1>
    %439 = arith.select %438, %426, %408 : vector<2x256xi1>, vector<2x256xf32>
    %440 = vector.shape_cast %417 : vector<2x1xi1> to vector<2x1xi1>
    %441 = vector.broadcast %440 : vector<2x1xi1> to vector<2x256xi1>
    %442 = arith.select %441, %429, %411 : vector<2x256xi1>, vector<2x256xf32>
    %443 = vector.shape_cast %417 : vector<2x1xi1> to vector<2x1xi1>
    %444 = vector.broadcast %443 : vector<2x1xi1> to vector<2x256xi1>
    %445 = arith.select %444, %436, %414 : vector<2x256xi1>, vector<2x256xf32>
    %446 = arith.select %417, %432, %415 : vector<2x1xi1>, vector<2x1xf32>
    %cst_248 = arith.constant 9.99999974E-6 : f32
    %447 = vector.broadcast %cst_248 : f32 to vector<2x1xf32>
    %448 = arith.cmpf oge, %446, %447 : vector<2x1xf32>
    %c0_249 = arith.constant 0 : index
    %c0_250 = arith.constant 0 : index
    %449 = vector.load %arg11[%c0_249, %c0_250] : memref<256x256xf32, #tpu.memory_space<vmem>>, vector<256x256xf32>
    %cst_251 = arith.constant dense<0.000000e+00> : vector<2x256xf32>
    %450 = tpu.matmul %445, %449, %cst_251 {dimension_numbers = #tpu.dot_dimension_numbers<[1], [0], [0], [1], [0, 0, 1, 1], [], []>} : vector<2x256xf32>, vector<256x256xf32>, vector<2x256xf32> -> vector<2x256xf32>
    %451 = arith.mulf %445, %450 : vector<2x256xf32>
    %cst_252 = arith.constant dense<0.000000e+00> : vector<2xf32>
    %452 = vector.multi_reduction <add>, %451, %cst_252 [1] : vector<2x256xf32> to vector<2xf32>
    %453 = vector.shape_cast %452 : vector<2xf32> to vector<2x1xf32>
    %454 = arith.divf %446, %453 : vector<2x1xf32>
    %455 = vector.broadcast %454 : vector<2x1xf32> to vector<2x256xf32>
    %456 = arith.mulf %455, %445 : vector<2x256xf32>
    %457 = arith.addf %439, %456 : vector<2x256xf32>
    %458 = vector.broadcast %454 : vector<2x1xf32> to vector<2x256xf32>
    %459 = arith.mulf %458, %450 : vector<2x256xf32>
    %460 = arith.subf %442, %459 : vector<2x256xf32>
    %461 = arith.mulf %460, %460 : vector<2x256xf32>
    %cst_253 = arith.constant dense<0.000000e+00> : vector<2xf32>
    %462 = vector.multi_reduction <add>, %461, %cst_253 [1] : vector<2x256xf32> to vector<2xf32>
    %463 = vector.shape_cast %462 : vector<2xf32> to vector<2x1xf32>
    %464 = arith.divf %463, %446 : vector<2x1xf32>
    %465 = vector.broadcast %464 : vector<2x1xf32> to vector<2x256xf32>
    %466 = arith.mulf %465, %445 : vector<2x256xf32>
    %467 = arith.addf %460, %466 : vector<2x256xf32>
    %468 = vector.shape_cast %448 : vector<2x1xi1> to vector<2x1xi1>
    %469 = vector.broadcast %468 : vector<2x1xi1> to vector<2x256xi1>
    %470 = arith.select %469, %457, %439 : vector<2x256xi1>, vector<2x256xf32>
    %471 = vector.shape_cast %448 : vector<2x1xi1> to vector<2x1xi1>
    %472 = vector.broadcast %471 : vector<2x1xi1> to vector<2x256xi1>
    %473 = arith.select %472, %460, %442 : vector<2x256xi1>, vector<2x256xf32>
    %474 = vector.shape_cast %448 : vector<2x1xi1> to vector<2x1xi1>
    %475 = vector.broadcast %474 : vector<2x1xi1> to vector<2x256xi1>
    %476 = arith.select %475, %467, %445 : vector<2x256xi1>, vector<2x256xf32>
    %477 = arith.select %448, %463, %446 : vector<2x1xi1>, vector<2x1xf32>
    %cst_254 = arith.constant 9.99999974E-6 : f32
    %478 = vector.broadcast %cst_254 : f32 to vector<2x1xf32>
    %479 = arith.cmpf oge, %477, %478 : vector<2x1xf32>
    %c0_255 = arith.constant 0 : index
    %c0_256 = arith.constant 0 : index
    %480 = vector.load %arg11[%c0_255, %c0_256] : memref<256x256xf32, #tpu.memory_space<vmem>>, vector<256x256xf32>
    %cst_257 = arith.constant dense<0.000000e+00> : vector<2x256xf32>
    %481 = tpu.matmul %476, %480, %cst_257 {dimension_numbers = #tpu.dot_dimension_numbers<[1], [0], [0], [1], [0, 0, 1, 1], [], []>} : vector<2x256xf32>, vector<256x256xf32>, vector<2x256xf32> -> vector<2x256xf32>
    %482 = arith.mulf %476, %481 : vector<2x256xf32>
    %cst_258 = arith.constant dense<0.000000e+00> : vector<2xf32>
    %483 = vector.multi_reduction <add>, %482, %cst_258 [1] : vector<2x256xf32> to vector<2xf32>
    %484 = vector.shape_cast %483 : vector<2xf32> to vector<2x1xf32>
    %485 = arith.divf %477, %484 : vector<2x1xf32>
    %486 = vector.broadcast %485 : vector<2x1xf32> to vector<2x256xf32>
    %487 = arith.mulf %486, %476 : vector<2x256xf32>
    %488 = arith.addf %470, %487 : vector<2x256xf32>
    %489 = vector.broadcast %485 : vector<2x1xf32> to vector<2x256xf32>
    %490 = arith.mulf %489, %481 : vector<2x256xf32>
    %491 = arith.subf %473, %490 : vector<2x256xf32>
    %492 = arith.mulf %491, %491 : vector<2x256xf32>
    %cst_259 = arith.constant dense<0.000000e+00> : vector<2xf32>
    %493 = vector.multi_reduction <add>, %492, %cst_259 [1] : vector<2x256xf32> to vector<2xf32>
    %494 = vector.shape_cast %493 : vector<2xf32> to vector<2x1xf32>
    %495 = arith.divf %494, %477 : vector<2x1xf32>
    %496 = vector.broadcast %495 : vector<2x1xf32> to vector<2x256xf32>
    %497 = arith.mulf %496, %476 : vector<2x256xf32>
    %498 = arith.addf %491, %497 : vector<2x256xf32>
    %499 = vector.shape_cast %479 : vector<2x1xi1> to vector<2x1xi1>
    %500 = vector.broadcast %499 : vector<2x1xi1> to vector<2x256xi1>
    %501 = arith.select %500, %488, %470 : vector<2x256xi1>, vector<2x256xf32>
    %502 = vector.shape_cast %479 : vector<2x1xi1> to vector<2x1xi1>
    %503 = vector.broadcast %502 : vector<2x1xi1> to vector<2x256xi1>
    %504 = arith.select %503, %498, %476 : vector<2x256xi1>, vector<2x256xf32>
    %505 = arith.select %479, %494, %477 : vector<2x1xi1>, vector<2x1xf32>
    %cst_260 = arith.constant 9.99999974E-6 : f32
    %506 = vector.broadcast %cst_260 : f32 to vector<2x1xf32>
    %507 = arith.cmpf oge, %505, %506 : vector<2x1xf32>
    %c0_261 = arith.constant 0 : index
    %c0_262 = arith.constant 0 : index
    %508 = vector.load %arg11[%c0_261, %c0_262] : memref<256x256xf32, #tpu.memory_space<vmem>>, vector<256x256xf32>
    %cst_263 = arith.constant dense<0.000000e+00> : vector<2x256xf32>
    %509 = tpu.matmul %504, %508, %cst_263 {dimension_numbers = #tpu.dot_dimension_numbers<[1], [0], [0], [1], [0, 0, 1, 1], [], []>} : vector<2x256xf32>, vector<256x256xf32>, vector<2x256xf32> -> vector<2x256xf32>
    %510 = arith.mulf %504, %509 : vector<2x256xf32>
    %cst_264 = arith.constant dense<0.000000e+00> : vector<2xf32>
    %511 = vector.multi_reduction <add>, %510, %cst_264 [1] : vector<2x256xf32> to vector<2xf32>
    %512 = vector.shape_cast %511 : vector<2xf32> to vector<2x1xf32>
    %513 = arith.divf %505, %512 : vector<2x1xf32>
    %514 = vector.broadcast %513 : vector<2x1xf32> to vector<2x256xf32>
    %515 = arith.mulf %514, %504 : vector<2x256xf32>
    %516 = arith.addf %501, %515 : vector<2x256xf32>
    %517 = vector.shape_cast %507 : vector<2x1xi1> to vector<2x1xi1>
    %518 = vector.broadcast %517 : vector<2x1xi1> to vector<2x256xi1>
    %519 = arith.select %518, %516, %501 : vector<2x256xi1>, vector<2x256xf32>
    %cst_265 = arith.constant dense<0x7F800000> : vector<2xf32>
    %520 = vector.multi_reduction <minimumf>, %519, %cst_265 [1] : vector<2x256xf32> to vector<2xf32>
    %521 = vector.shape_cast %520 : vector<2xf32> to vector<2x1xf32>
    %cst_266 = arith.constant dense<0xFF800000> : vector<2xf32>
    %522 = vector.multi_reduction <maximumf>, %519, %cst_266 [1] : vector<2x256xf32> to vector<2xf32>
    %523 = vector.shape_cast %522 : vector<2xf32> to vector<2x1xf32>
    %524 = vector.broadcast %521 : vector<2x1xf32> to vector<2x256xf32>
    %525 = arith.subf %519, %524 : vector<2x256xf32>
    %526 = arith.subf %523, %521 : vector<2x1xf32>
    %cst_267 = arith.constant 1.000000e+00 : f32
    %527 = vector.broadcast %cst_267 : f32 to vector<2x1xf32>
    %528 = arith.divf %527, %526 : vector<2x1xf32>
    %529 = vector.broadcast %528 : vector<2x1xf32> to vector<2x256xf32>
    %530 = arith.mulf %525, %529 : vector<2x256xf32>
    %531 = vector.extract_strided_slice %222 {offsets = [0, 0], sizes = [1, 256], strides = [1, 1]} : vector<2x256xf32> to vector<1x256xf32>
    %c0_268 = arith.constant 0 : index
    %c0_269 = arith.constant 0 : index
    %c0_270 = arith.constant 0 : index
    %532 = vector.load %arg12[%c0_268, %c0_269, %c0_270] : memref<2x2x256xf32, #tpu.memory_space<vmem>>, vector<1x1x256xf32>
    %533 = vector.shape_cast %532 : vector<1x1x256xf32> to vector<1x256xf32>
    %534 = vector.shape_cast %531 : vector<1x256xf32> to vector<1x1x256xf32>
    tpu.vector_store %arg12[%c0_268, %c0_269, %c0_270], %534 {strides = array<i32>} : memref<2x2x256xf32, #tpu.memory_space<vmem>>, vector<1x1x256xf32>,
    %535 = vector.extract_strided_slice %530 {offsets = [0, 0], sizes = [1, 256], strides = [1, 1]} : vector<2x256xf32> to vector<1x256xf32>
    %c0_271 = arith.constant 0 : index
    %c0_272 = arith.constant 0 : index
    %c0_273 = arith.constant 0 : index
    %536 = vector.load %arg13[%c0_271, %c0_272, %c0_273] : memref<2x2x256xf32, #tpu.memory_space<vmem>>, vector<1x1x256xf32>
    %537 = vector.shape_cast %536 : vector<1x1x256xf32> to vector<1x256xf32>
    %538 = vector.shape_cast %535 : vector<1x256xf32> to vector<1x1x256xf32>
    tpu.vector_store %arg13[%c0_271, %c0_272, %c0_273], %538 {strides = array<i32>} : memref<2x2x256xf32, #tpu.memory_space<vmem>>, vector<1x1x256xf32>,
    %539 = vector.extract_strided_slice %222 {offsets = [1, 0], sizes = [1, 256], strides = [1, 1]} : vector<2x256xf32> to vector<1x256xf32>
    %c1_274 = arith.constant 1 : index
    %c0_275 = arith.constant 0 : index
    %c0_276 = arith.constant 0 : index
    %540 = vector.load %arg12[%c1_274, %c0_275, %c0_276] : memref<2x2x256xf32, #tpu.memory_space<vmem>>, vector<1x1x256xf32>
    %541 = vector.shape_cast %540 : vector<1x1x256xf32> to vector<1x256xf32>
    %542 = vector.shape_cast %539 : vector<1x256xf32> to vector<1x1x256xf32>
    tpu.vector_store %arg12[%c1_274, %c0_275, %c0_276], %542 {strides = array<i32>} : memref<2x2x256xf32, #tpu.memory_space<vmem>>, vector<1x1x256xf32>,
    %543 = vector.extract_strided_slice %530 {offsets = [1, 0], sizes = [1, 256], strides = [1, 1]} : vector<2x256xf32> to vector<1x256xf32>
    %c1_277 = arith.constant 1 : index
    %c0_278 = arith.constant 0 : index
    %c0_279 = arith.constant 0 : index
    %544 = vector.load %arg13[%c1_277, %c0_278, %c0_279] : memref<2x2x256xf32, #tpu.memory_space<vmem>>, vector<1x1x256xf32>
    %545 = vector.shape_cast %544 : vector<1x1x256xf32> to vector<1x256xf32>
    %546 = vector.shape_cast %543 : vector<1x256xf32> to vector<1x1x256xf32>
    tpu.vector_store %arg13[%c1_277, %c0_278, %c0_279], %546 {strides = array<i32>} : memref<2x2x256xf32, #tpu.memory_space<vmem>>, vector<1x1x256xf32>,
    %547 = vector.extract_strided_slice %530 {offsets = [0, 0], sizes = [1, 256], strides = [1, 1]} : vector<2x256xf32> to vector<1x256xf32>
    %c0_280 = arith.constant 0 : index
    %c0_281 = arith.constant 0 : index
    %548 = vector.load %arg15[%c0_280, %c0_281] : memref<1x512xf32, #tpu.memory_space<vmem>>, vector<1x256xf32>
    tpu.vector_store %arg15[%c0_280, %c0_281], %547 {strides = array<i32>} : memref<1x512xf32, #tpu.memory_space<vmem>>, vector<1x256xf32>,
    %549 = vector.extract_strided_slice %530 {offsets = [1, 0], sizes = [1, 256], strides = [1, 1]} : vector<2x256xf32> to vector<1x256xf32>
    %c0_282 = arith.constant 0 : index
    %c256_283 = arith.constant 256 : index
    %550 = vector.load %arg15[%c0_282, %c256_283] : memref<1x512xf32, #tpu.memory_space<vmem>>, vector<1x256xf32>
    tpu.vector_store %arg15[%c0_282, %c256_283], %549 {strides = array<i32>} : memref<1x512xf32, #tpu.memory_space<vmem>>, vector<1x256xf32>,
    %c0_284 = arith.constant 0 : index
    %c0_285 = arith.constant 0 : index
    %551 = vector.load %arg15[%c0_284, %c0_285] : memref<1x512xf32, #tpu.memory_space<vmem>>, vector<1x512xf32>
    %c17_i32_286 = arith.constant 17 : i32
    %552 = tpu.dynamic_rotate %551 by %c17_i32_286 dim 1 : vector<1x512xf32>, i32 -> vector<1x512xf32>
    %c0_287 = arith.constant 0 : index
    %c0_288 = arith.constant 0 : index
    %553 = vector.load %arg2[%c0_287, %c0_288] : memref<9x512xf32, #tpu.memory_space<vmem>>, vector<1x512xf32>
    %554 = arith.mulf %552, %553 : vector<1x512xf32>
    %c0_289 = arith.constant 0 : index
    %c0_290 = arith.constant 0 : index
    %555 = vector.load %arg14[%c0_289, %c0_290] : memref<72x512xf32, #tpu.memory_space<vmem>>, vector<1x512xf32>
    tpu.vector_store %arg14[%c0_289, %c0_290], %554 {strides = array<i32>} : memref<72x512xf32, #tpu.memory_space<vmem>>, vector<1x512xf32>,
    %c16_i32_291 = arith.constant 16 : i32
    %556 = tpu.dynamic_rotate %551 by %c16_i32_291 dim 1 : vector<1x512xf32>, i32 -> vector<1x512xf32>
    %c1_292 = arith.constant 1 : index
    %c0_293 = arith.constant 0 : index
    %557 = vector.load %arg2[%c1_292, %c0_293] : memref<9x512xf32, #tpu.memory_space<vmem>>, vector<1x512xf32>
    %558 = arith.mulf %556, %557 : vector<1x512xf32>
    %c1_294 = arith.constant 1 : index
    %c0_295 = arith.constant 0 : index
    %559 = vector.load %arg14[%c1_294, %c0_295] : memref<72x512xf32, #tpu.memory_space<vmem>>, vector<1x512xf32>
    tpu.vector_store %arg14[%c1_294, %c0_295], %558 {strides = array<i32>} : memref<72x512xf32, #tpu.memory_space<vmem>>, vector<1x512xf32>,
    %c15_i32_296 = arith.constant 15 : i32
    %560 = tpu.dynamic_rotate %551 by %c15_i32_296 dim 1 : vector<1x512xf32>, i32 -> vector<1x512xf32>
    %c2_297 = arith.constant 2 : index
    %c0_298 = arith.constant 0 : index
    %561 = vector.load %arg2[%c2_297, %c0_298] : memref<9x512xf32, #tpu.memory_space<vmem>>, vector<1x512xf32>
    %562 = arith.mulf %560, %561 : vector<1x512xf32>
    %c2_299 = arith.constant 2 : index
    %c0_300 = arith.constant 0 : index
    %563 = vector.load %arg14[%c2_299, %c0_300] : memref<72x512xf32, #tpu.memory_space<vmem>>, vector<1x512xf32>
    tpu.vector_store %arg14[%c2_299, %c0_300], %562 {strides = array<i32>} : memref<72x512xf32, #tpu.memory_space<vmem>>, vector<1x512xf32>,
    %c1_i32_301 = arith.constant 1 : i32
    %564 = tpu.dynamic_rotate %551 by %c1_i32_301 dim 1 : vector<1x512xf32>, i32 -> vector<1x512xf32>
    %c3_302 = arith.constant 3 : index
    %c0_303 = arith.constant 0 : index
    %565 = vector.load %arg2[%c3_302, %c0_303] : memref<9x512xf32, #tpu.memory_space<vmem>>, vector<1x512xf32>
    %566 = arith.mulf %564, %565 : vector<1x512xf32>
    %c3_304 = arith.constant 3 : index
    %c0_305 = arith.constant 0 : index
    %567 = vector.load %arg14[%c3_304, %c0_305] : memref<72x512xf32, #tpu.memory_space<vmem>>, vector<1x512xf32>
    tpu.vector_store %arg14[%c3_304, %c0_305], %566 {strides = array<i32>} : memref<72x512xf32, #tpu.memory_space<vmem>>, vector<1x512xf32>,
    %c4_306 = arith.constant 4 : index
    %c0_307 = arith.constant 0 : index
    %568 = vector.load %arg2[%c4_306, %c0_307] : memref<9x512xf32, #tpu.memory_space<vmem>>, vector<1x512xf32>
    %569 = arith.mulf %551, %568 : vector<1x512xf32>
    %c4_308 = arith.constant 4 : index
    %c0_309 = arith.constant 0 : index
    %570 = vector.load %arg14[%c4_308, %c0_309] : memref<72x512xf32, #tpu.memory_space<vmem>>, vector<1x512xf32>
    tpu.vector_store %arg14[%c4_308, %c0_309], %569 {strides = array<i32>} : memref<72x512xf32, #tpu.memory_space<vmem>>, vector<1x512xf32>,
    %c511_i32_310 = arith.constant 511 : i32
    %571 = tpu.dynamic_rotate %551 by %c511_i32_310 dim 1 : vector<1x512xf32>, i32 -> vector<1x512xf32>
    %c5_311 = arith.constant 5 : index
    %c0_312 = arith.constant 0 : index
    %572 = vector.load %arg2[%c5_311, %c0_312] : memref<9x512xf32, #tpu.memory_space<vmem>>, vector<1x512xf32>
    %573 = arith.mulf %571, %572 : vector<1x512xf32>
    %c5_313 = arith.constant 5 : index
    %c0_314 = arith.constant 0 : index
    %574 = vector.load %arg14[%c5_313, %c0_314] : memref<72x512xf32, #tpu.memory_space<vmem>>, vector<1x512xf32>
    tpu.vector_store %arg14[%c5_313, %c0_314], %573 {strides = array<i32>} : memref<72x512xf32, #tpu.memory_space<vmem>>, vector<1x512xf32>,
    %c497_i32_315 = arith.constant 497 : i32
    %575 = tpu.dynamic_rotate %551 by %c497_i32_315 dim 1 : vector<1x512xf32>, i32 -> vector<1x512xf32>
    %c6_316 = arith.constant 6 : index
    %c0_317 = arith.constant 0 : index
    %576 = vector.load %arg2[%c6_316, %c0_317] : memref<9x512xf32, #tpu.memory_space<vmem>>, vector<1x512xf32>
    %577 = arith.mulf %575, %576 : vector<1x512xf32>
    %c6_318 = arith.constant 6 : index
    %c0_319 = arith.constant 0 : index
    %578 = vector.load %arg14[%c6_318, %c0_319] : memref<72x512xf32, #tpu.memory_space<vmem>>, vector<1x512xf32>
    tpu.vector_store %arg14[%c6_318, %c0_319], %577 {strides = array<i32>} : memref<72x512xf32, #tpu.memory_space<vmem>>, vector<1x512xf32>,
    %c496_i32_320 = arith.constant 496 : i32
    %579 = tpu.dynamic_rotate %551 by %c496_i32_320 dim 1 : vector<1x512xf32>, i32 -> vector<1x512xf32>
    %c7_321 = arith.constant 7 : index
    %c0_322 = arith.constant 0 : index
    %580 = vector.load %arg2[%c7_321, %c0_322] : memref<9x512xf32, #tpu.memory_space<vmem>>, vector<1x512xf32>
    %581 = arith.mulf %579, %580 : vector<1x512xf32>
    %c7_323 = arith.constant 7 : index
    %c0_324 = arith.constant 0 : index
    %582 = vector.load %arg14[%c7_323, %c0_324] : memref<72x512xf32, #tpu.memory_space<vmem>>, vector<1x512xf32>
    tpu.vector_store %arg14[%c7_323, %c0_324], %581 {strides = array<i32>} : memref<72x512xf32, #tpu.memory_space<vmem>>, vector<1x512xf32>,
    %c495_i32_325 = arith.constant 495 : i32
    %583 = tpu.dynamic_rotate %551 by %c495_i32_325 dim 1 : vector<1x512xf32>, i32 -> vector<1x512xf32>
    %c8_326 = arith.constant 8 : index
    %c0_327 = arith.constant 0 : index
    %584 = vector.load %arg2[%c8_326, %c0_327] : memref<9x512xf32, #tpu.memory_space<vmem>>, vector<1x512xf32>
    %585 = arith.mulf %583, %584 : vector<1x512xf32>
    %c8_328 = arith.constant 8 : index
    %c0_329 = arith.constant 0 : index
    %586 = vector.load %arg14[%c8_328, %c0_329] : memref<72x512xf32, #tpu.memory_space<vmem>>, vector<1x512xf32>
    tpu.vector_store %arg14[%c8_328, %c0_329], %585 {strides = array<i32>} : memref<72x512xf32, #tpu.memory_space<vmem>>, vector<1x512xf32>,
    %c0_330 = arith.constant 0 : index
    %c0_331 = arith.constant 0 : index
    %587 = vector.load %arg14[%c0_330, %c0_331] : memref<72x512xf32, #tpu.memory_space<vmem>>, vector<9x512xf32>
    %c0_332 = arith.constant 0 : index
    %c0_333 = arith.constant 0 : index
    %588 = vector.load %arg3[%c0_332, %c0_333] : memref<8x9xf32, #tpu.memory_space<vmem>>, vector<8x9xf32>
    %cst_334 = arith.constant dense<0.000000e+00> : vector<8x512xf32>
    %589 = tpu.matmul %588, %587, %cst_334 {dimension_numbers = #tpu.dot_dimension_numbers<[1], [0], [0], [1], [0, 0, 1, 1], [], []>} : vector<8x9xf32>, vector<9x512xf32>, vector<8x512xf32> -> vector<8x512xf32>
    %c0_335 = arith.constant 0 : index
    %c0_336 = arith.constant 0 : index
    %590 = vector.load %arg4[%c0_335, %c0_336] : memref<8x1xf32, #tpu.memory_space<vmem>>, vector<8x1xf32>
    %591 = vector.broadcast %590 : vector<8x1xf32> to vector<8x512xf32>
    %592 = arith.addf %589, %591 : vector<8x512xf32>
    %cst_337 = arith.constant 0.000000e+00 : f32
    %593 = vector.broadcast %cst_337 : f32 to vector<8x512xf32>
    %594 = arith.maximumf %592, %593 : vector<8x512xf32>
    %c17_i32_338 = arith.constant 17 : i32
    %595 = tpu.dynamic_rotate %594 by %c17_i32_338 dim 1 : vector<8x512xf32>, i32 -> vector<8x512xf32>
    %c0_339 = arith.constant 0 : index
    %c0_340 = arith.constant 0 : index
    %596 = vector.load %arg2[%c0_339, %c0_340] : memref<9x512xf32, #tpu.memory_space<vmem>>, vector<1x512xf32>
    %597 = vector.broadcast %596 : vector<1x512xf32> to vector<8x512xf32>
    %598 = arith.mulf %595, %597 : vector<8x512xf32>
    %c0_341 = arith.constant 0 : index
    %c0_342 = arith.constant 0 : index
    %599 = vector.load %arg14[%c0_341, %c0_342] : memref<72x512xf32, #tpu.memory_space<vmem>>, vector<8x512xf32>
    tpu.vector_store %arg14[%c0_341, %c0_342], %598 {strides = array<i32>} : memref<72x512xf32, #tpu.memory_space<vmem>>, vector<8x512xf32>,
    %c16_i32_343 = arith.constant 16 : i32
    %600 = tpu.dynamic_rotate %594 by %c16_i32_343 dim 1 : vector<8x512xf32>, i32 -> vector<8x512xf32>
    %c1_344 = arith.constant 1 : index
    %c0_345 = arith.constant 0 : index
    %601 = vector.load %arg2[%c1_344, %c0_345] : memref<9x512xf32, #tpu.memory_space<vmem>>, vector<1x512xf32>
    %602 = vector.broadcast %601 : vector<1x512xf32> to vector<8x512xf32>
    %603 = arith.mulf %600, %602 : vector<8x512xf32>
    %c8_346 = arith.constant 8 : index
    %c0_347 = arith.constant 0 : index
    %604 = vector.load %arg14[%c8_346, %c0_347] : memref<72x512xf32, #tpu.memory_space<vmem>>, vector<8x512xf32>
    tpu.vector_store %arg14[%c8_346, %c0_347], %603 {strides = array<i32>} : memref<72x512xf32, #tpu.memory_space<vmem>>, vector<8x512xf32>,
    %c15_i32_348 = arith.constant 15 : i32
    %605 = tpu.dynamic_rotate %594 by %c15_i32_348 dim 1 : vector<8x512xf32>, i32 -> vector<8x512xf32>
    %c2_349 = arith.constant 2 : index
    %c0_350 = arith.constant 0 : index
    %606 = vector.load %arg2[%c2_349, %c0_350] : memref<9x512xf32, #tpu.memory_space<vmem>>, vector<1x512xf32>
    %607 = vector.broadcast %606 : vector<1x512xf32> to vector<8x512xf32>
    %608 = arith.mulf %605, %607 : vector<8x512xf32>
    %c16_351 = arith.constant 16 : index
    %c0_352 = arith.constant 0 : index
    %609 = vector.load %arg14[%c16_351, %c0_352] : memref<72x512xf32, #tpu.memory_space<vmem>>, vector<8x512xf32>
    tpu.vector_store %arg14[%c16_351, %c0_352], %608 {strides = array<i32>} : memref<72x512xf32, #tpu.memory_space<vmem>>, vector<8x512xf32>,
    %c1_i32_353 = arith.constant 1 : i32
    %610 = tpu.dynamic_rotate %594 by %c1_i32_353 dim 1 : vector<8x512xf32>, i32 -> vector<8x512xf32>
    %c3_354 = arith.constant 3 : index
    %c0_355 = arith.constant 0 : index
    %611 = vector.load %arg2[%c3_354, %c0_355] : memref<9x512xf32, #tpu.memory_space<vmem>>, vector<1x512xf32>
    %612 = vector.broadcast %611 : vector<1x512xf32> to vector<8x512xf32>
    %613 = arith.mulf %610, %612 : vector<8x512xf32>
    %c24_356 = arith.constant 24 : index
    %c0_357 = arith.constant 0 : index
    %614 = vector.load %arg14[%c24_356, %c0_357] : memref<72x512xf32, #tpu.memory_space<vmem>>, vector<8x512xf32>
    tpu.vector_store %arg14[%c24_356, %c0_357], %613 {strides = array<i32>} : memref<72x512xf32, #tpu.memory_space<vmem>>, vector<8x512xf32>,
    %c4_358 = arith.constant 4 : index
    %c0_359 = arith.constant 0 : index
    %615 = vector.load %arg2[%c4_358, %c0_359] : memref<9x512xf32, #tpu.memory_space<vmem>>, vector<1x512xf32>
    %616 = vector.broadcast %615 : vector<1x512xf32> to vector<8x512xf32>
    %617 = arith.mulf %594, %616 : vector<8x512xf32>
    %c32_360 = arith.constant 32 : index
    %c0_361 = arith.constant 0 : index
    %618 = vector.load %arg14[%c32_360, %c0_361] : memref<72x512xf32, #tpu.memory_space<vmem>>, vector<8x512xf32>
    tpu.vector_store %arg14[%c32_360, %c0_361], %617 {strides = array<i32>} : memref<72x512xf32, #tpu.memory_space<vmem>>, vector<8x512xf32>,
    %c511_i32_362 = arith.constant 511 : i32
    %619 = tpu.dynamic_rotate %594 by %c511_i32_362 dim 1 : vector<8x512xf32>, i32 -> vector<8x512xf32>
    %c5_363 = arith.constant 5 : index
    %c0_364 = arith.constant 0 : index
    %620 = vector.load %arg2[%c5_363, %c0_364] : memref<9x512xf32, #tpu.memory_space<vmem>>, vector<1x512xf32>
    %621 = vector.broadcast %620 : vector<1x512xf32> to vector<8x512xf32>
    %622 = arith.mulf %619, %621 : vector<8x512xf32>
    %c40_365 = arith.constant 40 : index
    %c0_366 = arith.constant 0 : index
    %623 = vector.load %arg14[%c40_365, %c0_366] : memref<72x512xf32, #tpu.memory_space<vmem>>, vector<8x512xf32>
    tpu.vector_store %arg14[%c40_365, %c0_366], %622 {strides = array<i32>} : memref<72x512xf32, #tpu.memory_space<vmem>>, vector<8x512xf32>,
    %c497_i32_367 = arith.constant 497 : i32
    %624 = tpu.dynamic_rotate %594 by %c497_i32_367 dim 1 : vector<8x512xf32>, i32 -> vector<8x512xf32>
    %c6_368 = arith.constant 6 : index
    %c0_369 = arith.constant 0 : index
    %625 = vector.load %arg2[%c6_368, %c0_369] : memref<9x512xf32, #tpu.memory_space<vmem>>, vector<1x512xf32>
    %626 = vector.broadcast %625 : vector<1x512xf32> to vector<8x512xf32>
    %627 = arith.mulf %624, %626 : vector<8x512xf32>
    %c48_370 = arith.constant 48 : index
    %c0_371 = arith.constant 0 : index
    %628 = vector.load %arg14[%c48_370, %c0_371] : memref<72x512xf32, #tpu.memory_space<vmem>>, vector<8x512xf32>
    tpu.vector_store %arg14[%c48_370, %c0_371], %627 {strides = array<i32>} : memref<72x512xf32, #tpu.memory_space<vmem>>, vector<8x512xf32>,
    %c496_i32_372 = arith.constant 496 : i32
    %629 = tpu.dynamic_rotate %594 by %c496_i32_372 dim 1 : vector<8x512xf32>, i32 -> vector<8x512xf32>
    %c7_373 = arith.constant 7 : index
    %c0_374 = arith.constant 0 : index
    %630 = vector.load %arg2[%c7_373, %c0_374] : memref<9x512xf32, #tpu.memory_space<vmem>>, vector<1x512xf32>
    %631 = vector.broadcast %630 : vector<1x512xf32> to vector<8x512xf32>
    %632 = arith.mulf %629, %631 : vector<8x512xf32>
    %c56_375 = arith.constant 56 : index
    %c0_376 = arith.constant 0 : index
    %633 = vector.load %arg14[%c56_375, %c0_376] : memref<72x512xf32, #tpu.memory_space<vmem>>, vector<8x512xf32>
    tpu.vector_store %arg14[%c56_375, %c0_376], %632 {strides = array<i32>} : memref<72x512xf32, #tpu.memory_space<vmem>>, vector<8x512xf32>,
    %c495_i32_377 = arith.constant 495 : i32
    %634 = tpu.dynamic_rotate %594 by %c495_i32_377 dim 1 : vector<8x512xf32>, i32 -> vector<8x512xf32>
    %c8_378 = arith.constant 8 : index
    %c0_379 = arith.constant 0 : index
    %635 = vector.load %arg2[%c8_378, %c0_379] : memref<9x512xf32, #tpu.memory_space<vmem>>, vector<1x512xf32>
    %636 = vector.broadcast %635 : vector<1x512xf32> to vector<8x512xf32>
    %637 = arith.mulf %634, %636 : vector<8x512xf32>
    %c64_380 = arith.constant 64 : index
    %c0_381 = arith.constant 0 : index
    %638 = vector.load %arg14[%c64_380, %c0_381] : memref<72x512xf32, #tpu.memory_space<vmem>>, vector<8x512xf32>
    tpu.vector_store %arg14[%c64_380, %c0_381], %637 {strides = array<i32>} : memref<72x512xf32, #tpu.memory_space<vmem>>, vector<8x512xf32>,
    %c0_382 = arith.constant 0 : index
    %c0_383 = arith.constant 0 : index
    %639 = vector.load %arg14[%c0_382, %c0_383] : memref<72x512xf32, #tpu.memory_space<vmem>>, vector<72x512xf32>
    %c0_384 = arith.constant 0 : index
    %c0_385 = arith.constant 0 : index
    %640 = vector.load %arg5[%c0_384, %c0_385] : memref<8x72xf32, #tpu.memory_space<vmem>>, vector<8x72xf32>
    %cst_386 = arith.constant dense<0.000000e+00> : vector<8x512xf32>
    %641 = tpu.matmul %640, %639, %cst_386 {dimension_numbers = #tpu.dot_dimension_numbers<[1], [0], [0], [1], [0, 0, 1, 1], [], []>} : vector<8x72xf32>, vector<72x512xf32>, vector<8x512xf32> -> vector<8x512xf32>
    %c0_387 = arith.constant 0 : index
    %c0_388 = arith.constant 0 : index
    %642 = vector.load %arg6[%c0_387, %c0_388] : memref<8x1xf32, #tpu.memory_space<vmem>>, vector<8x1xf32>
    %643 = vector.broadcast %642 : vector<8x1xf32> to vector<8x512xf32>
    %644 = arith.addf %641, %643 : vector<8x512xf32>
    %cst_389 = arith.constant 0.000000e+00 : f32
    %645 = vector.broadcast %cst_389 : f32 to vector<8x512xf32>
    %646 = arith.maximumf %644, %645 : vector<8x512xf32>
    %c17_i32_390 = arith.constant 17 : i32
    %647 = tpu.dynamic_rotate %646 by %c17_i32_390 dim 1 : vector<8x512xf32>, i32 -> vector<8x512xf32>
    %c0_391 = arith.constant 0 : index
    %c0_392 = arith.constant 0 : index
    %648 = vector.load %arg2[%c0_391, %c0_392] : memref<9x512xf32, #tpu.memory_space<vmem>>, vector<1x512xf32>
    %649 = vector.broadcast %648 : vector<1x512xf32> to vector<8x512xf32>
    %650 = arith.mulf %647, %649 : vector<8x512xf32>
    %c0_393 = arith.constant 0 : index
    %c0_394 = arith.constant 0 : index
    %651 = vector.load %arg14[%c0_393, %c0_394] : memref<72x512xf32, #tpu.memory_space<vmem>>, vector<8x512xf32>
    tpu.vector_store %arg14[%c0_393, %c0_394], %650 {strides = array<i32>} : memref<72x512xf32, #tpu.memory_space<vmem>>, vector<8x512xf32>,
    %c16_i32_395 = arith.constant 16 : i32
    %652 = tpu.dynamic_rotate %646 by %c16_i32_395 dim 1 : vector<8x512xf32>, i32 -> vector<8x512xf32>
    %c1_396 = arith.constant 1 : index
    %c0_397 = arith.constant 0 : index
    %653 = vector.load %arg2[%c1_396, %c0_397] : memref<9x512xf32, #tpu.memory_space<vmem>>, vector<1x512xf32>
    %654 = vector.broadcast %653 : vector<1x512xf32> to vector<8x512xf32>
    %655 = arith.mulf %652, %654 : vector<8x512xf32>
    %c8_398 = arith.constant 8 : index
    %c0_399 = arith.constant 0 : index
    %656 = vector.load %arg14[%c8_398, %c0_399] : memref<72x512xf32, #tpu.memory_space<vmem>>, vector<8x512xf32>
    tpu.vector_store %arg14[%c8_398, %c0_399], %655 {strides = array<i32>} : memref<72x512xf32, #tpu.memory_space<vmem>>, vector<8x512xf32>,
    %c15_i32_400 = arith.constant 15 : i32
    %657 = tpu.dynamic_rotate %646 by %c15_i32_400 dim 1 : vector<8x512xf32>, i32 -> vector<8x512xf32>
    %c2_401 = arith.constant 2 : index
    %c0_402 = arith.constant 0 : index
    %658 = vector.load %arg2[%c2_401, %c0_402] : memref<9x512xf32, #tpu.memory_space<vmem>>, vector<1x512xf32>
    %659 = vector.broadcast %658 : vector<1x512xf32> to vector<8x512xf32>
    %660 = arith.mulf %657, %659 : vector<8x512xf32>
    %c16_403 = arith.constant 16 : index
    %c0_404 = arith.constant 0 : index
    %661 = vector.load %arg14[%c16_403, %c0_404] : memref<72x512xf32, #tpu.memory_space<vmem>>, vector<8x512xf32>
    tpu.vector_store %arg14[%c16_403, %c0_404], %660 {strides = array<i32>} : memref<72x512xf32, #tpu.memory_space<vmem>>, vector<8x512xf32>,
    %c1_i32_405 = arith.constant 1 : i32
    %662 = tpu.dynamic_rotate %646 by %c1_i32_405 dim 1 : vector<8x512xf32>, i32 -> vector<8x512xf32>
    %c3_406 = arith.constant 3 : index
    %c0_407 = arith.constant 0 : index
    %663 = vector.load %arg2[%c3_406, %c0_407] : memref<9x512xf32, #tpu.memory_space<vmem>>, vector<1x512xf32>
    %664 = vector.broadcast %663 : vector<1x512xf32> to vector<8x512xf32>
    %665 = arith.mulf %662, %664 : vector<8x512xf32>
    %c24_408 = arith.constant 24 : index
    %c0_409 = arith.constant 0 : index
    %666 = vector.load %arg14[%c24_408, %c0_409] : memref<72x512xf32, #tpu.memory_space<vmem>>, vector<8x512xf32>
    tpu.vector_store %arg14[%c24_408, %c0_409], %665 {strides = array<i32>} : memref<72x512xf32, #tpu.memory_space<vmem>>, vector<8x512xf32>,
    %c4_410 = arith.constant 4 : index
    %c0_411 = arith.constant 0 : index
    %667 = vector.load %arg2[%c4_410, %c0_411] : memref<9x512xf32, #tpu.memory_space<vmem>>, vector<1x512xf32>
    %668 = vector.broadcast %667 : vector<1x512xf32> to vector<8x512xf32>
    %669 = arith.mulf %646, %668 : vector<8x512xf32>
    %c32_412 = arith.constant 32 : index
    %c0_413 = arith.constant 0 : index
    %670 = vector.load %arg14[%c32_412, %c0_413] : memref<72x512xf32, #tpu.memory_space<vmem>>, vector<8x512xf32>
    tpu.vector_store %arg14[%c32_412, %c0_413], %669 {strides = array<i32>} : memref<72x512xf32, #tpu.memory_space<vmem>>, vector<8x512xf32>,
    %c511_i32_414 = arith.constant 511 : i32
    %671 = tpu.dynamic_rotate %646 by %c511_i32_414 dim 1 : vector<8x512xf32>, i32 -> vector<8x512xf32>
    %c5_415 = arith.constant 5 : index
    %c0_416 = arith.constant 0 : index
    %672 = vector.load %arg2[%c5_415, %c0_416] : memref<9x512xf32, #tpu.memory_space<vmem>>, vector<1x512xf32>
    %673 = vector.broadcast %672 : vector<1x512xf32> to vector<8x512xf32>
    %674 = arith.mulf %671, %673 : vector<8x512xf32>
    %c40_417 = arith.constant 40 : index
    %c0_418 = arith.constant 0 : index
    %675 = vector.load %arg14[%c40_417, %c0_418] : memref<72x512xf32, #tpu.memory_space<vmem>>, vector<8x512xf32>
    tpu.vector_store %arg14[%c40_417, %c0_418], %674 {strides = array<i32>} : memref<72x512xf32, #tpu.memory_space<vmem>>, vector<8x512xf32>,
    %c497_i32_419 = arith.constant 497 : i32
    %676 = tpu.dynamic_rotate %646 by %c497_i32_419 dim 1 : vector<8x512xf32>, i32 -> vector<8x512xf32>
    %c6_420 = arith.constant 6 : index
    %c0_421 = arith.constant 0 : index
    %677 = vector.load %arg2[%c6_420, %c0_421] : memref<9x512xf32, #tpu.memory_space<vmem>>, vector<1x512xf32>
    %678 = vector.broadcast %677 : vector<1x512xf32> to vector<8x512xf32>
    %679 = arith.mulf %676, %678 : vector<8x512xf32>
    %c48_422 = arith.constant 48 : index
    %c0_423 = arith.constant 0 : index
    %680 = vector.load %arg14[%c48_422, %c0_423] : memref<72x512xf32, #tpu.memory_space<vmem>>, vector<8x512xf32>
    tpu.vector_store %arg14[%c48_422, %c0_423], %679 {strides = array<i32>} : memref<72x512xf32, #tpu.memory_space<vmem>>, vector<8x512xf32>,
    %c496_i32_424 = arith.constant 496 : i32
    %681 = tpu.dynamic_rotate %646 by %c496_i32_424 dim 1 : vector<8x512xf32>, i32 -> vector<8x512xf32>
    %c7_425 = arith.constant 7 : index
    %c0_426 = arith.constant 0 : index
    %682 = vector.load %arg2[%c7_425, %c0_426] : memref<9x512xf32, #tpu.memory_space<vmem>>, vector<1x512xf32>
    %683 = vector.broadcast %682 : vector<1x512xf32> to vector<8x512xf32>
    %684 = arith.mulf %681, %683 : vector<8x512xf32>
    %c56_427 = arith.constant 56 : index
    %c0_428 = arith.constant 0 : index
    %685 = vector.load %arg14[%c56_427, %c0_428] : memref<72x512xf32, #tpu.memory_space<vmem>>, vector<8x512xf32>
    tpu.vector_store %arg14[%c56_427, %c0_428], %684 {strides = array<i32>} : memref<72x512xf32, #tpu.memory_space<vmem>>, vector<8x512xf32>,
    %c495_i32_429 = arith.constant 495 : i32
    %686 = tpu.dynamic_rotate %646 by %c495_i32_429 dim 1 : vector<8x512xf32>, i32 -> vector<8x512xf32>
    %c8_430 = arith.constant 8 : index
    %c0_431 = arith.constant 0 : index
    %687 = vector.load %arg2[%c8_430, %c0_431] : memref<9x512xf32, #tpu.memory_space<vmem>>, vector<1x512xf32>
    %688 = vector.broadcast %687 : vector<1x512xf32> to vector<8x512xf32>
    %689 = arith.mulf %686, %688 : vector<8x512xf32>
    %c64_432 = arith.constant 64 : index
    %c0_433 = arith.constant 0 : index
    %690 = vector.load %arg14[%c64_432, %c0_433] : memref<72x512xf32, #tpu.memory_space<vmem>>, vector<8x512xf32>
    tpu.vector_store %arg14[%c64_432, %c0_433], %689 {strides = array<i32>} : memref<72x512xf32, #tpu.memory_space<vmem>>, vector<8x512xf32>,
    %c0_434 = arith.constant 0 : index
    %c0_435 = arith.constant 0 : index
    %691 = vector.load %arg14[%c0_434, %c0_435] : memref<72x512xf32, #tpu.memory_space<vmem>>, vector<72x512xf32>
    %c0_436 = arith.constant 0 : index
    %c0_437 = arith.constant 0 : index
    %692 = vector.load %arg7[%c0_436, %c0_437] : memref<8x72xf32, #tpu.memory_space<vmem>>, vector<8x72xf32>
    %cst_438 = arith.constant dense<0.000000e+00> : vector<8x512xf32>
    %693 = tpu.matmul %692, %691, %cst_438 {dimension_numbers = #tpu.dot_dimension_numbers<[1], [0], [0], [1], [0, 0, 1, 1], [], []>} : vector<8x72xf32>, vector<72x512xf32>, vector<8x512xf32> -> vector<8x512xf32>
    %c0_439 = arith.constant 0 : index
    %c0_440 = arith.constant 0 : index
    %694 = vector.load %arg8[%c0_439, %c0_440] : memref<8x1xf32, #tpu.memory_space<vmem>>, vector<8x1xf32>
    %695 = vector.broadcast %694 : vector<8x1xf32> to vector<8x512xf32>
    %696 = arith.addf %693, %695 : vector<8x512xf32>
    %c17_i32_441 = arith.constant 17 : i32
    %697 = tpu.dynamic_rotate %696 by %c17_i32_441 dim 1 : vector<8x512xf32>, i32 -> vector<8x512xf32>
    %c0_442 = arith.constant 0 : index
    %c0_443 = arith.constant 0 : index
    %698 = vector.load %arg2[%c0_442, %c0_443] : memref<9x512xf32, #tpu.memory_space<vmem>>, vector<1x512xf32>
    %699 = vector.broadcast %698 : vector<1x512xf32> to vector<8x512xf32>
    %700 = arith.mulf %697, %699 : vector<8x512xf32>
    %c0_444 = arith.constant 0 : index
    %c0_445 = arith.constant 0 : index
    %701 = vector.load %arg14[%c0_444, %c0_445] : memref<72x512xf32, #tpu.memory_space<vmem>>, vector<8x512xf32>
    tpu.vector_store %arg14[%c0_444, %c0_445], %700 {strides = array<i32>} : memref<72x512xf32, #tpu.memory_space<vmem>>, vector<8x512xf32>,
    %c16_i32_446 = arith.constant 16 : i32
    %702 = tpu.dynamic_rotate %696 by %c16_i32_446 dim 1 : vector<8x512xf32>, i32 -> vector<8x512xf32>
    %c1_447 = arith.constant 1 : index
    %c0_448 = arith.constant 0 : index
    %703 = vector.load %arg2[%c1_447, %c0_448] : memref<9x512xf32, #tpu.memory_space<vmem>>, vector<1x512xf32>
    %704 = vector.broadcast %703 : vector<1x512xf32> to vector<8x512xf32>
    %705 = arith.mulf %702, %704 : vector<8x512xf32>
    %c8_449 = arith.constant 8 : index
    %c0_450 = arith.constant 0 : index
    %706 = vector.load %arg14[%c8_449, %c0_450] : memref<72x512xf32, #tpu.memory_space<vmem>>, vector<8x512xf32>
    tpu.vector_store %arg14[%c8_449, %c0_450], %705 {strides = array<i32>} : memref<72x512xf32, #tpu.memory_space<vmem>>, vector<8x512xf32>,
    %c15_i32_451 = arith.constant 15 : i32
    %707 = tpu.dynamic_rotate %696 by %c15_i32_451 dim 1 : vector<8x512xf32>, i32 -> vector<8x512xf32>
    %c2_452 = arith.constant 2 : index
    %c0_453 = arith.constant 0 : index
    %708 = vector.load %arg2[%c2_452, %c0_453] : memref<9x512xf32, #tpu.memory_space<vmem>>, vector<1x512xf32>
    %709 = vector.broadcast %708 : vector<1x512xf32> to vector<8x512xf32>
    %710 = arith.mulf %707, %709 : vector<8x512xf32>
    %c16_454 = arith.constant 16 : index
    %c0_455 = arith.constant 0 : index
    %711 = vector.load %arg14[%c16_454, %c0_455] : memref<72x512xf32, #tpu.memory_space<vmem>>, vector<8x512xf32>
    tpu.vector_store %arg14[%c16_454, %c0_455], %710 {strides = array<i32>} : memref<72x512xf32, #tpu.memory_space<vmem>>, vector<8x512xf32>,
    %c1_i32_456 = arith.constant 1 : i32
    %712 = tpu.dynamic_rotate %696 by %c1_i32_456 dim 1 : vector<8x512xf32>, i32 -> vector<8x512xf32>
    %c3_457 = arith.constant 3 : index
    %c0_458 = arith.constant 0 : index
    %713 = vector.load %arg2[%c3_457, %c0_458] : memref<9x512xf32, #tpu.memory_space<vmem>>, vector<1x512xf32>
    %714 = vector.broadcast %713 : vector<1x512xf32> to vector<8x512xf32>
    %715 = arith.mulf %712, %714 : vector<8x512xf32>
    %c24_459 = arith.constant 24 : index
    %c0_460 = arith.constant 0 : index
    %716 = vector.load %arg14[%c24_459, %c0_460] : memref<72x512xf32, #tpu.memory_space<vmem>>, vector<8x512xf32>
    tpu.vector_store %arg14[%c24_459, %c0_460], %715 {strides = array<i32>} : memref<72x512xf32, #tpu.memory_space<vmem>>, vector<8x512xf32>,
    %c4_461 = arith.constant 4 : index
    %c0_462 = arith.constant 0 : index
    %717 = vector.load %arg2[%c4_461, %c0_462] : memref<9x512xf32, #tpu.memory_space<vmem>>, vector<1x512xf32>
    %718 = vector.broadcast %717 : vector<1x512xf32> to vector<8x512xf32>
    %719 = arith.mulf %696, %718 : vector<8x512xf32>
    %c32_463 = arith.constant 32 : index
    %c0_464 = arith.constant 0 : index
    %720 = vector.load %arg14[%c32_463, %c0_464] : memref<72x512xf32, #tpu.memory_space<vmem>>, vector<8x512xf32>
    tpu.vector_store %arg14[%c32_463, %c0_464], %719 {strides = array<i32>} : memref<72x512xf32, #tpu.memory_space<vmem>>, vector<8x512xf32>,
    %c511_i32_465 = arith.constant 511 : i32
    %721 = tpu.dynamic_rotate %696 by %c511_i32_465 dim 1 : vector<8x512xf32>, i32 -> vector<8x512xf32>
    %c5_466 = arith.constant 5 : index
    %c0_467 = arith.constant 0 : index
    %722 = vector.load %arg2[%c5_466, %c0_467] : memref<9x512xf32, #tpu.memory_space<vmem>>, vector<1x512xf32>
    %723 = vector.broadcast %722 : vector<1x512xf32> to vector<8x512xf32>
    %724 = arith.mulf %721, %723 : vector<8x512xf32>
    %c40_468 = arith.constant 40 : index
    %c0_469 = arith.constant 0 : index
    %725 = vector.load %arg14[%c40_468, %c0_469] : memref<72x512xf32, #tpu.memory_space<vmem>>, vector<8x512xf32>
    tpu.vector_store %arg14[%c40_468, %c0_469], %724 {strides = array<i32>} : memref<72x512xf32, #tpu.memory_space<vmem>>, vector<8x512xf32>,
    %c497_i32_470 = arith.constant 497 : i32
    %726 = tpu.dynamic_rotate %696 by %c497_i32_470 dim 1 : vector<8x512xf32>, i32 -> vector<8x512xf32>
    %c6_471 = arith.constant 6 : index
    %c0_472 = arith.constant 0 : index
    %727 = vector.load %arg2[%c6_471, %c0_472] : memref<9x512xf32, #tpu.memory_space<vmem>>, vector<1x512xf32>
    %728 = vector.broadcast %727 : vector<1x512xf32> to vector<8x512xf32>
    %729 = arith.mulf %726, %728 : vector<8x512xf32>
    %c48_473 = arith.constant 48 : index
    %c0_474 = arith.constant 0 : index
    %730 = vector.load %arg14[%c48_473, %c0_474] : memref<72x512xf32, #tpu.memory_space<vmem>>, vector<8x512xf32>
    tpu.vector_store %arg14[%c48_473, %c0_474], %729 {strides = array<i32>} : memref<72x512xf32, #tpu.memory_space<vmem>>, vector<8x512xf32>,
    %c496_i32_475 = arith.constant 496 : i32
    %731 = tpu.dynamic_rotate %696 by %c496_i32_475 dim 1 : vector<8x512xf32>, i32 -> vector<8x512xf32>
    %c7_476 = arith.constant 7 : index
    %c0_477 = arith.constant 0 : index
    %732 = vector.load %arg2[%c7_476, %c0_477] : memref<9x512xf32, #tpu.memory_space<vmem>>, vector<1x512xf32>
    %733 = vector.broadcast %732 : vector<1x512xf32> to vector<8x512xf32>
    %734 = arith.mulf %731, %733 : vector<8x512xf32>
    %c56_478 = arith.constant 56 : index
    %c0_479 = arith.constant 0 : index
    %735 = vector.load %arg14[%c56_478, %c0_479] : memref<72x512xf32, #tpu.memory_space<vmem>>, vector<8x512xf32>
    tpu.vector_store %arg14[%c56_478, %c0_479], %734 {strides = array<i32>} : memref<72x512xf32, #tpu.memory_space<vmem>>, vector<8x512xf32>,
    %c495_i32_480 = arith.constant 495 : i32
    %736 = tpu.dynamic_rotate %696 by %c495_i32_480 dim 1 : vector<8x512xf32>, i32 -> vector<8x512xf32>
    %c8_481 = arith.constant 8 : index
    %c0_482 = arith.constant 0 : index
    %737 = vector.load %arg2[%c8_481, %c0_482] : memref<9x512xf32, #tpu.memory_space<vmem>>, vector<1x512xf32>
    %738 = vector.broadcast %737 : vector<1x512xf32> to vector<8x512xf32>
    %739 = arith.mulf %736, %738 : vector<8x512xf32>
    %c64_483 = arith.constant 64 : index
    %c0_484 = arith.constant 0 : index
    %740 = vector.load %arg14[%c64_483, %c0_484] : memref<72x512xf32, #tpu.memory_space<vmem>>, vector<8x512xf32>
    tpu.vector_store %arg14[%c64_483, %c0_484], %739 {strides = array<i32>} : memref<72x512xf32, #tpu.memory_space<vmem>>, vector<8x512xf32>,
    %c0_485 = arith.constant 0 : index
    %c0_486 = arith.constant 0 : index
    %741 = vector.load %arg14[%c0_485, %c0_486] : memref<72x512xf32, #tpu.memory_space<vmem>>, vector<72x512xf32>
    %c0_487 = arith.constant 0 : index
    %c0_488 = arith.constant 0 : index
    %742 = vector.load %arg9[%c0_487, %c0_488] : memref<1x72xf32, #tpu.memory_space<vmem>>, vector<1x72xf32>
    %cst_489 = arith.constant dense<0.000000e+00> : vector<1x512xf32>
    %743 = tpu.matmul %742, %741, %cst_489 {dimension_numbers = #tpu.dot_dimension_numbers<[1], [0], [0], [1], [0, 0, 1, 1], [], []>} : vector<1x72xf32>, vector<72x512xf32>, vector<1x512xf32> -> vector<1x512xf32>
    %c0_490 = arith.constant 0 : index
    %c0_491 = arith.constant 0 : index
    %744 = vector.load %arg10[%c0_490, %c0_491] : memref<1x1xf32, #tpu.memory_space<vmem>>, vector<1x1xf32>
    %745 = vector.broadcast %744 : vector<1x1xf32> to vector<1x512xf32>
    %746 = arith.addf %743, %745 : vector<1x512xf32>
    %747 = vector.extract_strided_slice %746 {offsets = [0, 0], sizes = [1, 256], strides = [1, 1]} : vector<1x512xf32> to vector<1x256xf32>
    %c0_492 = arith.constant 0 : index
    %c0_493 = arith.constant 0 : index
    %748 = vector.load %arg16[%c0_492, %c0_493] : memref<2x256xf32, #tpu.memory_space<vmem>>, vector<1x256xf32>
    tpu.vector_store %arg16[%c0_492, %c0_493], %747 {strides = array<i32>} : memref<2x256xf32, #tpu.memory_space<vmem>>, vector<1x256xf32>,
    %749 = vector.extract_strided_slice %746 {offsets = [0, 256], sizes = [1, 256], strides = [1, 1]} : vector<1x512xf32> to vector<1x256xf32>
    %c1_494 = arith.constant 1 : index
    %c0_495 = arith.constant 0 : index
    %750 = vector.load %arg16[%c1_494, %c0_495] : memref<2x256xf32, #tpu.memory_space<vmem>>, vector<1x256xf32>
    tpu.vector_store %arg16[%c1_494, %c0_495], %749 {strides = array<i32>} : memref<2x256xf32, #tpu.memory_space<vmem>>, vector<1x256xf32>,
    %c0_496 = arith.constant 0 : index
    %c0_497 = arith.constant 0 : index
    %751 = vector.load %arg16[%c0_496, %c0_497] : memref<2x256xf32, #tpu.memory_space<vmem>>, vector<2x256xf32>
    %752 = arith.addf %751, %530 : vector<2x256xf32>
    %cst_498 = arith.constant dense<0x7F800000> : vector<2xf32>
    %753 = vector.multi_reduction <minimumf>, %752, %cst_498 [1] : vector<2x256xf32> to vector<2xf32>
    %754 = vector.shape_cast %753 : vector<2xf32> to vector<2x1xf32>
    %cst_499 = arith.constant dense<0xFF800000> : vector<2xf32>
    %755 = vector.multi_reduction <maximumf>, %752, %cst_499 [1] : vector<2x256xf32> to vector<2xf32>
    %756 = vector.shape_cast %755 : vector<2xf32> to vector<2x1xf32>
    %757 = vector.broadcast %754 : vector<2x1xf32> to vector<2x256xf32>
    %758 = arith.subf %752, %757 : vector<2x256xf32>
    %759 = arith.subf %756, %754 : vector<2x1xf32>
    %cst_500 = arith.constant 1.000000e+00 : f32
    %760 = vector.broadcast %cst_500 : f32 to vector<2x1xf32>
    %761 = arith.divf %760, %759 : vector<2x1xf32>
    %762 = vector.broadcast %761 : vector<2x1xf32> to vector<2x256xf32>
    %763 = arith.mulf %758, %762 : vector<2x256xf32>
    %cst_501 = arith.constant 2.000000e+01 : f32
    %764 = vector.broadcast %cst_501 : f32 to vector<2x256xf32>
    %765 = arith.mulf %5, %764 : vector<2x256xf32>
    %766 = arith.addf %765, %763 : vector<2x256xf32>
    %cst_502 = arith.constant 0.000000e+00 : f32
    %767 = vector.broadcast %cst_502 : f32 to vector<2x256xf32>
    %768 = arith.mulf %766, %766 : vector<2x256xf32>
    %cst_503 = arith.constant dense<0.000000e+00> : vector<2xf32>
    %769 = vector.multi_reduction <add>, %768, %cst_503 [1] : vector<2x256xf32> to vector<2xf32>
    %770 = vector.shape_cast %769 : vector<2xf32> to vector<2x1xf32>
    %cst_504 = arith.constant 9.99999974E-6 : f32
    %771 = vector.broadcast %cst_504 : f32 to vector<2x1xf32>
    %772 = arith.cmpf oge, %770, %771 : vector<2x1xf32>
    %c0_505 = arith.constant 0 : index
    %c0_506 = arith.constant 0 : index
    %773 = vector.load %arg11[%c0_505, %c0_506] : memref<256x256xf32, #tpu.memory_space<vmem>>, vector<256x256xf32>
    %cst_507 = arith.constant dense<0.000000e+00> : vector<2x256xf32>
    %774 = tpu.matmul %766, %773, %cst_507 {dimension_numbers = #tpu.dot_dimension_numbers<[1], [0], [0], [1], [0, 0, 1, 1], [], []>} : vector<2x256xf32>, vector<256x256xf32>, vector<2x256xf32> -> vector<2x256xf32>
    %775 = arith.mulf %766, %774 : vector<2x256xf32>
    %cst_508 = arith.constant dense<0.000000e+00> : vector<2xf32>
    %776 = vector.multi_reduction <add>, %775, %cst_508 [1] : vector<2x256xf32> to vector<2xf32>
    %777 = vector.shape_cast %776 : vector<2xf32> to vector<2x1xf32>
    %778 = arith.divf %770, %777 : vector<2x1xf32>
    %779 = vector.broadcast %778 : vector<2x1xf32> to vector<2x256xf32>
    %780 = arith.mulf %779, %766 : vector<2x256xf32>
    %781 = arith.addf %767, %780 : vector<2x256xf32>
    %782 = vector.broadcast %778 : vector<2x1xf32> to vector<2x256xf32>
    %783 = arith.mulf %782, %774 : vector<2x256xf32>
    %784 = arith.subf %766, %783 : vector<2x256xf32>
    %785 = arith.mulf %784, %784 : vector<2x256xf32>
    %cst_509 = arith.constant dense<0.000000e+00> : vector<2xf32>
    %786 = vector.multi_reduction <add>, %785, %cst_509 [1] : vector<2x256xf32> to vector<2xf32>
    %787 = vector.shape_cast %786 : vector<2xf32> to vector<2x1xf32>
    %788 = arith.divf %787, %770 : vector<2x1xf32>
    %789 = vector.broadcast %788 : vector<2x1xf32> to vector<2x256xf32>
    %790 = arith.mulf %789, %766 : vector<2x256xf32>
    %791 = arith.addf %784, %790 : vector<2x256xf32>
    %792 = vector.shape_cast %772 : vector<2x1xi1> to vector<2x1xi1>
    %793 = vector.broadcast %792 : vector<2x1xi1> to vector<2x256xi1>
    %794 = arith.select %793, %781, %767 : vector<2x256xi1>, vector<2x256xf32>
    %795 = vector.shape_cast %772 : vector<2x1xi1> to vector<2x1xi1>
    %796 = vector.broadcast %795 : vector<2x1xi1> to vector<2x256xi1>
    %797 = arith.select %796, %784, %766 : vector<2x256xi1>, vector<2x256xf32>
    %798 = vector.shape_cast %772 : vector<2x1xi1> to vector<2x1xi1>
    %799 = vector.broadcast %798 : vector<2x1xi1> to vector<2x256xi1>
    %800 = arith.select %799, %791, %766 : vector<2x256xi1>, vector<2x256xf32>
    %801 = arith.select %772, %787, %770 : vector<2x1xi1>, vector<2x1xf32>
    %cst_510 = arith.constant 9.99999974E-6 : f32
    %802 = vector.broadcast %cst_510 : f32 to vector<2x1xf32>
    %803 = arith.cmpf oge, %801, %802 : vector<2x1xf32>
    %c0_511 = arith.constant 0 : index
    %c0_512 = arith.constant 0 : index
    %804 = vector.load %arg11[%c0_511, %c0_512] : memref<256x256xf32, #tpu.memory_space<vmem>>, vector<256x256xf32>
    %cst_513 = arith.constant dense<0.000000e+00> : vector<2x256xf32>
    %805 = tpu.matmul %800, %804, %cst_513 {dimension_numbers = #tpu.dot_dimension_numbers<[1], [0], [0], [1], [0, 0, 1, 1], [], []>} : vector<2x256xf32>, vector<256x256xf32>, vector<2x256xf32> -> vector<2x256xf32>
    %806 = arith.mulf %800, %805 : vector<2x256xf32>
    %cst_514 = arith.constant dense<0.000000e+00> : vector<2xf32>
    %807 = vector.multi_reduction <add>, %806, %cst_514 [1] : vector<2x256xf32> to vector<2xf32>
    %808 = vector.shape_cast %807 : vector<2xf32> to vector<2x1xf32>
    %809 = arith.divf %801, %808 : vector<2x1xf32>
    %810 = vector.broadcast %809 : vector<2x1xf32> to vector<2x256xf32>
    %811 = arith.mulf %810, %800 : vector<2x256xf32>
    %812 = arith.addf %794, %811 : vector<2x256xf32>
    %813 = vector.broadcast %809 : vector<2x1xf32> to vector<2x256xf32>
    %814 = arith.mulf %813, %805 : vector<2x256xf32>
    %815 = arith.subf %797, %814 : vector<2x256xf32>
    %816 = arith.mulf %815, %815 : vector<2x256xf32>
    %cst_515 = arith.constant dense<0.000000e+00> : vector<2xf32>
    %817 = vector.multi_reduction <add>, %816, %cst_515 [1] : vector<2x256xf32> to vector<2xf32>
    %818 = vector.shape_cast %817 : vector<2xf32> to vector<2x1xf32>
    %819 = arith.divf %818, %801 : vector<2x1xf32>
    %820 = vector.broadcast %819 : vector<2x1xf32> to vector<2x256xf32>
    %821 = arith.mulf %820, %800 : vector<2x256xf32>
    %822 = arith.addf %815, %821 : vector<2x256xf32>
    %823 = vector.shape_cast %803 : vector<2x1xi1> to vector<2x1xi1>
    %824 = vector.broadcast %823 : vector<2x1xi1> to vector<2x256xi1>
    %825 = arith.select %824, %812, %794 : vector<2x256xi1>, vector<2x256xf32>
    %826 = vector.shape_cast %803 : vector<2x1xi1> to vector<2x1xi1>
    %827 = vector.broadcast %826 : vector<2x1xi1> to vector<2x256xi1>
    %828 = arith.select %827, %815, %797 : vector<2x256xi1>, vector<2x256xf32>
    %829 = vector.shape_cast %803 : vector<2x1xi1> to vector<2x1xi1>
    %830 = vector.broadcast %829 : vector<2x1xi1> to vector<2x256xi1>
    %831 = arith.select %830, %822, %800 : vector<2x256xi1>, vector<2x256xf32>
    %832 = arith.select %803, %818, %801 : vector<2x1xi1>, vector<2x1xf32>
    %cst_516 = arith.constant 9.99999974E-6 : f32
    %833 = vector.broadcast %cst_516 : f32 to vector<2x1xf32>
    %834 = arith.cmpf oge, %832, %833 : vector<2x1xf32>
    %c0_517 = arith.constant 0 : index
    %c0_518 = arith.constant 0 : index
    %835 = vector.load %arg11[%c0_517, %c0_518] : memref<256x256xf32, #tpu.memory_space<vmem>>, vector<256x256xf32>
    %cst_519 = arith.constant dense<0.000000e+00> : vector<2x256xf32>
    %836 = tpu.matmul %831, %835, %cst_519 {dimension_numbers = #tpu.dot_dimension_numbers<[1], [0], [0], [1], [0, 0, 1, 1], [], []>} : vector<2x256xf32>, vector<256x256xf32>, vector<2x256xf32> -> vector<2x256xf32>
    %837 = arith.mulf %831, %836 : vector<2x256xf32>
    %cst_520 = arith.constant dense<0.000000e+00> : vector<2xf32>
    %838 = vector.multi_reduction <add>, %837, %cst_520 [1] : vector<2x256xf32> to vector<2xf32>
    %839 = vector.shape_cast %838 : vector<2xf32> to vector<2x1xf32>
    %840 = arith.divf %832, %839 : vector<2x1xf32>
    %841 = vector.broadcast %840 : vector<2x1xf32> to vector<2x256xf32>
    %842 = arith.mulf %841, %831 : vector<2x256xf32>
    %843 = arith.addf %825, %842 : vector<2x256xf32>
    %844 = vector.broadcast %840 : vector<2x1xf32> to vector<2x256xf32>
    %845 = arith.mulf %844, %836 : vector<2x256xf32>
    %846 = arith.subf %828, %845 : vector<2x256xf32>
    %847 = arith.mulf %846, %846 : vector<2x256xf32>
    %cst_521 = arith.constant dense<0.000000e+00> : vector<2xf32>
    %848 = vector.multi_reduction <add>, %847, %cst_521 [1] : vector<2x256xf32> to vector<2xf32>
    %849 = vector.shape_cast %848 : vector<2xf32> to vector<2x1xf32>
    %850 = arith.divf %849, %832 : vector<2x1xf32>
    %851 = vector.broadcast %850 : vector<2x1xf32> to vector<2x256xf32>
    %852 = arith.mulf %851, %831 : vector<2x256xf32>
    %853 = arith.addf %846, %852 : vector<2x256xf32>
    %854 = vector.shape_cast %834 : vector<2x1xi1> to vector<2x1xi1>
    %855 = vector.broadcast %854 : vector<2x1xi1> to vector<2x256xi1>
    %856 = arith.select %855, %843, %825 : vector<2x256xi1>, vector<2x256xf32>
    %857 = vector.shape_cast %834 : vector<2x1xi1> to vector<2x1xi1>
    %858 = vector.broadcast %857 : vector<2x1xi1> to vector<2x256xi1>
    %859 = arith.select %858, %846, %828 : vector<2x256xi1>, vector<2x256xf32>
    %860 = vector.shape_cast %834 : vector<2x1xi1> to vector<2x1xi1>
    %861 = vector.broadcast %860 : vector<2x1xi1> to vector<2x256xi1>
    %862 = arith.select %861, %853, %831 : vector<2x256xi1>, vector<2x256xf32>
    %863 = arith.select %834, %849, %832 : vector<2x1xi1>, vector<2x1xf32>
    %cst_522 = arith.constant 9.99999974E-6 : f32
    %864 = vector.broadcast %cst_522 : f32 to vector<2x1xf32>
    %865 = arith.cmpf oge, %863, %864 : vector<2x1xf32>
    %c0_523 = arith.constant 0 : index
    %c0_524 = arith.constant 0 : index
    %866 = vector.load %arg11[%c0_523, %c0_524] : memref<256x256xf32, #tpu.memory_space<vmem>>, vector<256x256xf32>
    %cst_525 = arith.constant dense<0.000000e+00> : vector<2x256xf32>
    %867 = tpu.matmul %862, %866, %cst_525 {dimension_numbers = #tpu.dot_dimension_numbers<[1], [0], [0], [1], [0, 0, 1, 1], [], []>} : vector<2x256xf32>, vector<256x256xf32>, vector<2x256xf32> -> vector<2x256xf32>
    %868 = arith.mulf %862, %867 : vector<2x256xf32>
    %cst_526 = arith.constant dense<0.000000e+00> : vector<2xf32>
    %869 = vector.multi_reduction <add>, %868, %cst_526 [1] : vector<2x256xf32> to vector<2xf32>
    %870 = vector.shape_cast %869 : vector<2xf32> to vector<2x1xf32>
    %871 = arith.divf %863, %870 : vector<2x1xf32>
    %872 = vector.broadcast %871 : vector<2x1xf32> to vector<2x256xf32>
    %873 = arith.mulf %872, %862 : vector<2x256xf32>
    %874 = arith.addf %856, %873 : vector<2x256xf32>
    %875 = vector.broadcast %871 : vector<2x1xf32> to vector<2x256xf32>
    %876 = arith.mulf %875, %867 : vector<2x256xf32>
    %877 = arith.subf %859, %876 : vector<2x256xf32>
    %878 = arith.mulf %877, %877 : vector<2x256xf32>
    %cst_527 = arith.constant dense<0.000000e+00> : vector<2xf32>
    %879 = vector.multi_reduction <add>, %878, %cst_527 [1] : vector<2x256xf32> to vector<2xf32>
    %880 = vector.shape_cast %879 : vector<2xf32> to vector<2x1xf32>
    %881 = arith.divf %880, %863 : vector<2x1xf32>
    %882 = vector.broadcast %881 : vector<2x1xf32> to vector<2x256xf32>
    %883 = arith.mulf %882, %862 : vector<2x256xf32>
    %884 = arith.addf %877, %883 : vector<2x256xf32>
    %885 = vector.shape_cast %865 : vector<2x1xi1> to vector<2x1xi1>
    %886 = vector.broadcast %885 : vector<2x1xi1> to vector<2x256xi1>
    %887 = arith.select %886, %874, %856 : vector<2x256xi1>, vector<2x256xf32>
    %888 = vector.shape_cast %865 : vector<2x1xi1> to vector<2x1xi1>
    %889 = vector.broadcast %888 : vector<2x1xi1> to vector<2x256xi1>
    %890 = arith.select %889, %877, %859 : vector<2x256xi1>, vector<2x256xf32>
    %891 = vector.shape_cast %865 : vector<2x1xi1> to vector<2x1xi1>
    %892 = vector.broadcast %891 : vector<2x1xi1> to vector<2x256xi1>
    %893 = arith.select %892, %884, %862 : vector<2x256xi1>, vector<2x256xf32>
    %894 = arith.select %865, %880, %863 : vector<2x1xi1>, vector<2x1xf32>
    %cst_528 = arith.constant 9.99999974E-6 : f32
    %895 = vector.broadcast %cst_528 : f32 to vector<2x1xf32>
    %896 = arith.cmpf oge, %894, %895 : vector<2x1xf32>
    %c0_529 = arith.constant 0 : index
    %c0_530 = arith.constant 0 : index
    %897 = vector.load %arg11[%c0_529, %c0_530] : memref<256x256xf32, #tpu.memory_space<vmem>>, vector<256x256xf32>
    %cst_531 = arith.constant dense<0.000000e+00> : vector<2x256xf32>
    %898 = tpu.matmul %893, %897, %cst_531 {dimension_numbers = #tpu.dot_dimension_numbers<[1], [0], [0], [1], [0, 0, 1, 1], [], []>} : vector<2x256xf32>, vector<256x256xf32>, vector<2x256xf32> -> vector<2x256xf32>
    %899 = arith.mulf %893, %898 : vector<2x256xf32>
    %cst_532 = arith.constant dense<0.000000e+00> : vector<2xf32>
    %900 = vector.multi_reduction <add>, %899, %cst_532 [1] : vector<2x256xf32> to vector<2xf32>
    %901 = vector.shape_cast %900 : vector<2xf32> to vector<2x1xf32>
    %902 = arith.divf %894, %901 : vector<2x1xf32>
    %903 = vector.broadcast %902 : vector<2x1xf32> to vector<2x256xf32>
    %904 = arith.mulf %903, %893 : vector<2x256xf32>
    %905 = arith.addf %887, %904 : vector<2x256xf32>
    %906 = vector.broadcast %902 : vector<2x1xf32> to vector<2x256xf32>
    %907 = arith.mulf %906, %898 : vector<2x256xf32>
    %908 = arith.subf %890, %907 : vector<2x256xf32>
    %909 = arith.mulf %908, %908 : vector<2x256xf32>
    %cst_533 = arith.constant dense<0.000000e+00> : vector<2xf32>
    %910 = vector.multi_reduction <add>, %909, %cst_533 [1] : vector<2x256xf32> to vector<2xf32>
    %911 = vector.shape_cast %910 : vector<2xf32> to vector<2x1xf32>
    %912 = arith.divf %911, %894 : vector<2x1xf32>
    %913 = vector.broadcast %912 : vector<2x1xf32> to vector<2x256xf32>
    %914 = arith.mulf %913, %893 : vector<2x256xf32>
    %915 = arith.addf %908, %914 : vector<2x256xf32>
    %916 = vector.shape_cast %896 : vector<2x1xi1> to vector<2x1xi1>
    %917 = vector.broadcast %916 : vector<2x1xi1> to vector<2x256xi1>
    %918 = arith.select %917, %905, %887 : vector<2x256xi1>, vector<2x256xf32>
    %919 = vector.shape_cast %896 : vector<2x1xi1> to vector<2x1xi1>
    %920 = vector.broadcast %919 : vector<2x1xi1> to vector<2x256xi1>
    %921 = arith.select %920, %908, %890 : vector<2x256xi1>, vector<2x256xf32>
    %922 = vector.shape_cast %896 : vector<2x1xi1> to vector<2x1xi1>
    %923 = vector.broadcast %922 : vector<2x1xi1> to vector<2x256xi1>
    %924 = arith.select %923, %915, %893 : vector<2x256xi1>, vector<2x256xf32>
    %925 = arith.select %896, %911, %894 : vector<2x1xi1>, vector<2x1xf32>
    %cst_534 = arith.constant 9.99999974E-6 : f32
    %926 = vector.broadcast %cst_534 : f32 to vector<2x1xf32>
    %927 = arith.cmpf oge, %925, %926 : vector<2x1xf32>
    %c0_535 = arith.constant 0 : index
    %c0_536 = arith.constant 0 : index
    %928 = vector.load %arg11[%c0_535, %c0_536] : memref<256x256xf32, #tpu.memory_space<vmem>>, vector<256x256xf32>
    %cst_537 = arith.constant dense<0.000000e+00> : vector<2x256xf32>
    %929 = tpu.matmul %924, %928, %cst_537 {dimension_numbers = #tpu.dot_dimension_numbers<[1], [0], [0], [1], [0, 0, 1, 1], [], []>} : vector<2x256xf32>, vector<256x256xf32>, vector<2x256xf32> -> vector<2x256xf32>
    %930 = arith.mulf %924, %929 : vector<2x256xf32>
    %cst_538 = arith.constant dense<0.000000e+00> : vector<2xf32>
    %931 = vector.multi_reduction <add>, %930, %cst_538 [1] : vector<2x256xf32> to vector<2xf32>
    %932 = vector.shape_cast %931 : vector<2xf32> to vector<2x1xf32>
    %933 = arith.divf %925, %932 : vector<2x1xf32>
    %934 = vector.broadcast %933 : vector<2x1xf32> to vector<2x256xf32>
    %935 = arith.mulf %934, %924 : vector<2x256xf32>
    %936 = arith.addf %918, %935 : vector<2x256xf32>
    %937 = vector.broadcast %933 : vector<2x1xf32> to vector<2x256xf32>
    %938 = arith.mulf %937, %929 : vector<2x256xf32>
    %939 = arith.subf %921, %938 : vector<2x256xf32>
    %940 = arith.mulf %939, %939 : vector<2x256xf32>
    %cst_539 = arith.constant dense<0.000000e+00> : vector<2xf32>
    %941 = vector.multi_reduction <add>, %940, %cst_539 [1] : vector<2x256xf32> to vector<2xf32>
    %942 = vector.shape_cast %941 : vector<2xf32> to vector<2x1xf32>
    %943 = arith.divf %942, %925 : vector<2x1xf32>
    %944 = vector.broadcast %943 : vector<2x1xf32> to vector<2x256xf32>
    %945 = arith.mulf %944, %924 : vector<2x256xf32>
    %946 = arith.addf %939, %945 : vector<2x256xf32>
    %947 = vector.shape_cast %927 : vector<2x1xi1> to vector<2x1xi1>
    %948 = vector.broadcast %947 : vector<2x1xi1> to vector<2x256xi1>
    %949 = arith.select %948, %936, %918 : vector<2x256xi1>, vector<2x256xf32>
    %950 = vector.shape_cast %927 : vector<2x1xi1> to vector<2x1xi1>
    %951 = vector.broadcast %950 : vector<2x1xi1> to vector<2x256xi1>
    %952 = arith.select %951, %939, %921 : vector<2x256xi1>, vector<2x256xf32>
    %953 = vector.shape_cast %927 : vector<2x1xi1> to vector<2x1xi1>
    %954 = vector.broadcast %953 : vector<2x1xi1> to vector<2x256xi1>
    %955 = arith.select %954, %946, %924 : vector<2x256xi1>, vector<2x256xf32>
    %956 = arith.select %927, %942, %925 : vector<2x1xi1>, vector<2x1xf32>
    %cst_540 = arith.constant 9.99999974E-6 : f32
    %957 = vector.broadcast %cst_540 : f32 to vector<2x1xf32>
    %958 = arith.cmpf oge, %956, %957 : vector<2x1xf32>
    %c0_541 = arith.constant 0 : index
    %c0_542 = arith.constant 0 : index
    %959 = vector.load %arg11[%c0_541, %c0_542] : memref<256x256xf32, #tpu.memory_space<vmem>>, vector<256x256xf32>
    %cst_543 = arith.constant dense<0.000000e+00> : vector<2x256xf32>
    %960 = tpu.matmul %955, %959, %cst_543 {dimension_numbers = #tpu.dot_dimension_numbers<[1], [0], [0], [1], [0, 0, 1, 1], [], []>} : vector<2x256xf32>, vector<256x256xf32>, vector<2x256xf32> -> vector<2x256xf32>
    %961 = arith.mulf %955, %960 : vector<2x256xf32>
    %cst_544 = arith.constant dense<0.000000e+00> : vector<2xf32>
    %962 = vector.multi_reduction <add>, %961, %cst_544 [1] : vector<2x256xf32> to vector<2xf32>
    %963 = vector.shape_cast %962 : vector<2xf32> to vector<2x1xf32>
    %964 = arith.divf %956, %963 : vector<2x1xf32>
    %965 = vector.broadcast %964 : vector<2x1xf32> to vector<2x256xf32>
    %966 = arith.mulf %965, %955 : vector<2x256xf32>
    %967 = arith.addf %949, %966 : vector<2x256xf32>
    %968 = vector.broadcast %964 : vector<2x1xf32> to vector<2x256xf32>
    %969 = arith.mulf %968, %960 : vector<2x256xf32>
    %970 = arith.subf %952, %969 : vector<2x256xf32>
    %971 = arith.mulf %970, %970 : vector<2x256xf32>
    %cst_545 = arith.constant dense<0.000000e+00> : vector<2xf32>
    %972 = vector.multi_reduction <add>, %971, %cst_545 [1] : vector<2x256xf32> to vector<2xf32>
    %973 = vector.shape_cast %972 : vector<2xf32> to vector<2x1xf32>
    %974 = arith.divf %973, %956 : vector<2x1xf32>
    %975 = vector.broadcast %974 : vector<2x1xf32> to vector<2x256xf32>
    %976 = arith.mulf %975, %955 : vector<2x256xf32>
    %977 = arith.addf %970, %976 : vector<2x256xf32>
    %978 = vector.shape_cast %958 : vector<2x1xi1> to vector<2x1xi1>
    %979 = vector.broadcast %978 : vector<2x1xi1> to vector<2x256xi1>
    %980 = arith.select %979, %967, %949 : vector<2x256xi1>, vector<2x256xf32>
    %981 = vector.shape_cast %958 : vector<2x1xi1> to vector<2x1xi1>
    %982 = vector.broadcast %981 : vector<2x1xi1> to vector<2x256xi1>
    %983 = arith.select %982, %970, %952 : vector<2x256xi1>, vector<2x256xf32>
    %984 = vector.shape_cast %958 : vector<2x1xi1> to vector<2x1xi1>
    %985 = vector.broadcast %984 : vector<2x1xi1> to vector<2x256xi1>
    %986 = arith.select %985, %977, %955 : vector<2x256xi1>, vector<2x256xf32>
    %987 = arith.select %958, %973, %956 : vector<2x1xi1>, vector<2x1xf32>
    %cst_546 = arith.constant 9.99999974E-6 : f32
    %988 = vector.broadcast %cst_546 : f32 to vector<2x1xf32>
    %989 = arith.cmpf oge, %987, %988 : vector<2x1xf32>
    %c0_547 = arith.constant 0 : index
    %c0_548 = arith.constant 0 : index
    %990 = vector.load %arg11[%c0_547, %c0_548] : memref<256x256xf32, #tpu.memory_space<vmem>>, vector<256x256xf32>
    %cst_549 = arith.constant dense<0.000000e+00> : vector<2x256xf32>
    %991 = tpu.matmul %986, %990, %cst_549 {dimension_numbers = #tpu.dot_dimension_numbers<[1], [0], [0], [1], [0, 0, 1, 1], [], []>} : vector<2x256xf32>, vector<256x256xf32>, vector<2x256xf32> -> vector<2x256xf32>
    %992 = arith.mulf %986, %991 : vector<2x256xf32>
    %cst_550 = arith.constant dense<0.000000e+00> : vector<2xf32>
    %993 = vector.multi_reduction <add>, %992, %cst_550 [1] : vector<2x256xf32> to vector<2xf32>
    %994 = vector.shape_cast %993 : vector<2xf32> to vector<2x1xf32>
    %995 = arith.divf %987, %994 : vector<2x1xf32>
    %996 = vector.broadcast %995 : vector<2x1xf32> to vector<2x256xf32>
    %997 = arith.mulf %996, %986 : vector<2x256xf32>
    %998 = arith.addf %980, %997 : vector<2x256xf32>
    %999 = vector.broadcast %995 : vector<2x1xf32> to vector<2x256xf32>
    %1000 = arith.mulf %999, %991 : vector<2x256xf32>
    %1001 = arith.subf %983, %1000 : vector<2x256xf32>
    %1002 = arith.mulf %1001, %1001 : vector<2x256xf32>
    %cst_551 = arith.constant dense<0.000000e+00> : vector<2xf32>
    %1003 = vector.multi_reduction <add>, %1002, %cst_551 [1] : vector<2x256xf32> to vector<2xf32>
    %1004 = vector.shape_cast %1003 : vector<2xf32> to vector<2x1xf32>
    %1005 = arith.divf %1004, %987 : vector<2x1xf32>
    %1006 = vector.broadcast %1005 : vector<2x1xf32> to vector<2x256xf32>
    %1007 = arith.mulf %1006, %986 : vector<2x256xf32>
    %1008 = arith.addf %1001, %1007 : vector<2x256xf32>
    %1009 = vector.shape_cast %989 : vector<2x1xi1> to vector<2x1xi1>
    %1010 = vector.broadcast %1009 : vector<2x1xi1> to vector<2x256xi1>
    %1011 = arith.select %1010, %998, %980 : vector<2x256xi1>, vector<2x256xf32>
    %1012 = vector.shape_cast %989 : vector<2x1xi1> to vector<2x1xi1>
    %1013 = vector.broadcast %1012 : vector<2x1xi1> to vector<2x256xi1>
    %1014 = arith.select %1013, %1001, %983 : vector<2x256xi1>, vector<2x256xf32>
    %1015 = vector.shape_cast %989 : vector<2x1xi1> to vector<2x1xi1>
    %1016 = vector.broadcast %1015 : vector<2x1xi1> to vector<2x256xi1>
    %1017 = arith.select %1016, %1008, %986 : vector<2x256xi1>, vector<2x256xf32>
    %1018 = arith.select %989, %1004, %987 : vector<2x1xi1>, vector<2x1xf32>
    %cst_552 = arith.constant 9.99999974E-6 : f32
    %1019 = vector.broadcast %cst_552 : f32 to vector<2x1xf32>
    %1020 = arith.cmpf oge, %1018, %1019 : vector<2x1xf32>
    %c0_553 = arith.constant 0 : index
    %c0_554 = arith.constant 0 : index
    %1021 = vector.load %arg11[%c0_553, %c0_554] : memref<256x256xf32, #tpu.memory_space<vmem>>, vector<256x256xf32>
    %cst_555 = arith.constant dense<0.000000e+00> : vector<2x256xf32>
    %1022 = tpu.matmul %1017, %1021, %cst_555 {dimension_numbers = #tpu.dot_dimension_numbers<[1], [0], [0], [1], [0, 0, 1, 1], [], []>} : vector<2x256xf32>, vector<256x256xf32>, vector<2x256xf32> -> vector<2x256xf32>
    %1023 = arith.mulf %1017, %1022 : vector<2x256xf32>
    %cst_556 = arith.constant dense<0.000000e+00> : vector<2xf32>
    %1024 = vector.multi_reduction <add>, %1023, %cst_556 [1] : vector<2x256xf32> to vector<2xf32>
    %1025 = vector.shape_cast %1024 : vector<2xf32> to vector<2x1xf32>
    %1026 = arith.divf %1018, %1025 : vector<2x1xf32>
    %1027 = vector.broadcast %1026 : vector<2x1xf32> to vector<2x256xf32>
    %1028 = arith.mulf %1027, %1017 : vector<2x256xf32>
    %1029 = arith.addf %1011, %1028 : vector<2x256xf32>
    %1030 = vector.broadcast %1026 : vector<2x1xf32> to vector<2x256xf32>
    %1031 = arith.mulf %1030, %1022 : vector<2x256xf32>
    %1032 = arith.subf %1014, %1031 : vector<2x256xf32>
    %1033 = arith.mulf %1032, %1032 : vector<2x256xf32>
    %cst_557 = arith.constant dense<0.000000e+00> : vector<2xf32>
    %1034 = vector.multi_reduction <add>, %1033, %cst_557 [1] : vector<2x256xf32> to vector<2xf32>
    %1035 = vector.shape_cast %1034 : vector<2xf32> to vector<2x1xf32>
    %1036 = arith.divf %1035, %1018 : vector<2x1xf32>
    %1037 = vector.broadcast %1036 : vector<2x1xf32> to vector<2x256xf32>
    %1038 = arith.mulf %1037, %1017 : vector<2x256xf32>
    %1039 = arith.addf %1032, %1038 : vector<2x256xf32>
    %1040 = vector.shape_cast %1020 : vector<2x1xi1> to vector<2x1xi1>
    %1041 = vector.broadcast %1040 : vector<2x1xi1> to vector<2x256xi1>
    %1042 = arith.select %1041, %1029, %1011 : vector<2x256xi1>, vector<2x256xf32>
    %1043 = vector.shape_cast %1020 : vector<2x1xi1> to vector<2x1xi1>
    %1044 = vector.broadcast %1043 : vector<2x1xi1> to vector<2x256xi1>
    %1045 = arith.select %1044, %1039, %1017 : vector<2x256xi1>, vector<2x256xf32>
    %1046 = arith.select %1020, %1035, %1018 : vector<2x1xi1>, vector<2x1xf32>
    %cst_558 = arith.constant 9.99999974E-6 : f32
    %1047 = vector.broadcast %cst_558 : f32 to vector<2x1xf32>
    %1048 = arith.cmpf oge, %1046, %1047 : vector<2x1xf32>
    %c0_559 = arith.constant 0 : index
    %c0_560 = arith.constant 0 : index
    %1049 = vector.load %arg11[%c0_559, %c0_560] : memref<256x256xf32, #tpu.memory_space<vmem>>, vector<256x256xf32>
    %cst_561 = arith.constant dense<0.000000e+00> : vector<2x256xf32>
    %1050 = tpu.matmul %1045, %1049, %cst_561 {dimension_numbers = #tpu.dot_dimension_numbers<[1], [0], [0], [1], [0, 0, 1, 1], [], []>} : vector<2x256xf32>, vector<256x256xf32>, vector<2x256xf32> -> vector<2x256xf32>
    %1051 = arith.mulf %1045, %1050 : vector<2x256xf32>
    %cst_562 = arith.constant dense<0.000000e+00> : vector<2xf32>
    %1052 = vector.multi_reduction <add>, %1051, %cst_562 [1] : vector<2x256xf32> to vector<2xf32>
    %1053 = vector.shape_cast %1052 : vector<2xf32> to vector<2x1xf32>
    %1054 = arith.divf %1046, %1053 : vector<2x1xf32>
    %1055 = vector.broadcast %1054 : vector<2x1xf32> to vector<2x256xf32>
    %1056 = arith.mulf %1055, %1045 : vector<2x256xf32>
    %1057 = arith.addf %1042, %1056 : vector<2x256xf32>
    %1058 = vector.shape_cast %1048 : vector<2x1xi1> to vector<2x1xi1>
    %1059 = vector.broadcast %1058 : vector<2x1xi1> to vector<2x256xi1>
    %1060 = arith.select %1059, %1057, %1042 : vector<2x256xi1>, vector<2x256xf32>
    %cst_563 = arith.constant dense<0x7F800000> : vector<2xf32>
    %1061 = vector.multi_reduction <minimumf>, %1060, %cst_563 [1] : vector<2x256xf32> to vector<2xf32>
    %1062 = vector.shape_cast %1061 : vector<2xf32> to vector<2x1xf32>
    %cst_564 = arith.constant dense<0xFF800000> : vector<2xf32>
    %1063 = vector.multi_reduction <maximumf>, %1060, %cst_564 [1] : vector<2x256xf32> to vector<2xf32>
    %1064 = vector.shape_cast %1063 : vector<2xf32> to vector<2x1xf32>
    %1065 = vector.broadcast %1062 : vector<2x1xf32> to vector<2x256xf32>
    %1066 = arith.subf %1060, %1065 : vector<2x256xf32>
    %1067 = arith.subf %1064, %1062 : vector<2x1xf32>
    %cst_565 = arith.constant 1.000000e+00 : f32
    %1068 = vector.broadcast %cst_565 : f32 to vector<2x1xf32>
    %1069 = arith.divf %1068, %1067 : vector<2x1xf32>
    %1070 = vector.broadcast %1069 : vector<2x1xf32> to vector<2x256xf32>
    %1071 = arith.mulf %1066, %1070 : vector<2x256xf32>
    %1072 = vector.extract_strided_slice %763 {offsets = [0, 0], sizes = [1, 256], strides = [1, 1]} : vector<2x256xf32> to vector<1x256xf32>
    %c0_566 = arith.constant 0 : index
    %c1_567 = arith.constant 1 : index
    %c0_568 = arith.constant 0 : index
    %1073 = vector.load %arg12[%c0_566, %c1_567, %c0_568] : memref<2x2x256xf32, #tpu.memory_space<vmem>>, vector<1x1x256xf32>
    %1074 = vector.shape_cast %1073 : vector<1x1x256xf32> to vector<1x256xf32>
    %1075 = vector.shape_cast %1072 : vector<1x256xf32> to vector<1x1x256xf32>
    tpu.vector_store %arg12[%c0_566, %c1_567, %c0_568], %1075 {strides = array<i32>} : memref<2x2x256xf32, #tpu.memory_space<vmem>>, vector<1x1x256xf32>,
    %1076 = vector.extract_strided_slice %1071 {offsets = [0, 0], sizes = [1, 256], strides = [1, 1]} : vector<2x256xf32> to vector<1x256xf32>
    %c0_569 = arith.constant 0 : index
    %c1_570 = arith.constant 1 : index
    %c0_571 = arith.constant 0 : index
    %1077 = vector.load %arg13[%c0_569, %c1_570, %c0_571] : memref<2x2x256xf32, #tpu.memory_space<vmem>>, vector<1x1x256xf32>
    %1078 = vector.shape_cast %1077 : vector<1x1x256xf32> to vector<1x256xf32>
    %1079 = vector.shape_cast %1076 : vector<1x256xf32> to vector<1x1x256xf32>
    tpu.vector_store %arg13[%c0_569, %c1_570, %c0_571], %1079 {strides = array<i32>} : memref<2x2x256xf32, #tpu.memory_space<vmem>>, vector<1x1x256xf32>,
    %1080 = vector.extract_strided_slice %763 {offsets = [1, 0], sizes = [1, 256], strides = [1, 1]} : vector<2x256xf32> to vector<1x256xf32>
    %c1_572 = arith.constant 1 : index
    %c1_573 = arith.constant 1 : index
    %c0_574 = arith.constant 0 : index
    %1081 = vector.load %arg12[%c1_572, %c1_573, %c0_574] : memref<2x2x256xf32, #tpu.memory_space<vmem>>, vector<1x1x256xf32>
    %1082 = vector.shape_cast %1081 : vector<1x1x256xf32> to vector<1x256xf32>
    %1083 = vector.shape_cast %1080 : vector<1x256xf32> to vector<1x1x256xf32>
    tpu.vector_store %arg12[%c1_572, %c1_573, %c0_574], %1083 {strides = array<i32>} : memref<2x2x256xf32, #tpu.memory_space<vmem>>, vector<1x1x256xf32>,
    %1084 = vector.extract_strided_slice %1071 {offsets = [1, 0], sizes = [1, 256], strides = [1, 1]} : vector<2x256xf32> to vector<1x256xf32>
    %c1_575 = arith.constant 1 : index
    %c1_576 = arith.constant 1 : index
    %c0_577 = arith.constant 0 : index
    %1085 = vector.load %arg13[%c1_575, %c1_576, %c0_577] : memref<2x2x256xf32, #tpu.memory_space<vmem>>, vector<1x1x256xf32>
    %1086 = vector.shape_cast %1085 : vector<1x1x256xf32> to vector<1x256xf32>
    %1087 = vector.shape_cast %1084 : vector<1x256xf32> to vector<1x1x256xf32>
    tpu.vector_store %arg13[%c1_575, %c1_576, %c0_577], %1087 {strides = array<i32>} : memref<2x2x256xf32, #tpu.memory_space<vmem>>, vector<1x1x256xf32>,
    return
  }
  func.func @transform_0(%arg0: i32) -> (i32, i32) {
    %c0_i32 = arith.constant 0 : i32
    %c0_i32_0 = arith.constant 0 : i32
    return %c0_i32, %arg0 : i32, i32
  }
  func.func @transform_1(%arg0: i32) -> (i32, i32) {
    %c0_i32 = arith.constant 0 : i32
    %c0_i32_0 = arith.constant 0 : i32
    %c0_i32_1 = arith.constant 0 : i32
    return %c0_i32, %c0_i32_0 : i32, i32
  }
  func.func @transform_2(%arg0: i32) -> (i32, i32) {
    %c0_i32 = arith.constant 0 : i32
    %c0_i32_0 = arith.constant 0 : i32
    %c0_i32_1 = arith.constant 0 : i32
    return %c0_i32, %c0_i32_0 : i32, i32
  }
  func.func @transform_3(%arg0: i32) -> (i32, i32) {
    %c0_i32 = arith.constant 0 : i32
    %c0_i32_0 = arith.constant 0 : i32
    %c0_i32_1 = arith.constant 0 : i32
    return %c0_i32, %c0_i32_0 : i32, i32
  }
  func.func @transform_4(%arg0: i32) -> (i32, i32) {
    %c0_i32 = arith.constant 0 : i32
    %c0_i32_0 = arith.constant 0 : i32
    %c0_i32_1 = arith.constant 0 : i32
    return %c0_i32, %c0_i32_0 : i32, i32
  }
  func.func @transform_5(%arg0: i32) -> (i32, i32) {
    %c0_i32 = arith.constant 0 : i32
    %c0_i32_0 = arith.constant 0 : i32
    %c0_i32_1 = arith.constant 0 : i32
    return %c0_i32, %c0_i32_0 : i32, i32
  }
  func.func @transform_6(%arg0: i32) -> (i32, i32) {
    %c0_i32 = arith.constant 0 : i32
    %c0_i32_0 = arith.constant 0 : i32
    %c0_i32_1 = arith.constant 0 : i32
    return %c0_i32, %c0_i32_0 : i32, i32
  }
  func.func @transform_7(%arg0: i32) -> (i32, i32) {
    %c0_i32 = arith.constant 0 : i32
    %c0_i32_0 = arith.constant 0 : i32
    %c0_i32_1 = arith.constant 0 : i32
    return %c0_i32, %c0_i32_0 : i32, i32
  }
  func.func @transform_8(%arg0: i32) -> (i32, i32) {
    %c0_i32 = arith.constant 0 : i32
    %c0_i32_0 = arith.constant 0 : i32
    %c0_i32_1 = arith.constant 0 : i32
    return %c0_i32, %c0_i32_0 : i32, i32
  }
  func.func @transform_9(%arg0: i32) -> (i32, i32) {
    %c0_i32 = arith.constant 0 : i32
    %c0_i32_0 = arith.constant 0 : i32
    %c0_i32_1 = arith.constant 0 : i32
    return %c0_i32, %c0_i32_0 : i32, i32
  }
  func.func @transform_10(%arg0: i32) -> (i32, i32) {
    %c0_i32 = arith.constant 0 : i32
    %c0_i32_0 = arith.constant 0 : i32
    %c0_i32_1 = arith.constant 0 : i32
    return %c0_i32, %c0_i32_0 : i32, i32
  }
  func.func @transform_11(%arg0: i32) -> (i32, i32, i32) {
    %c0_i32 = arith.constant 0 : i32
    %c0_i32_0 = arith.constant 0 : i32
    %c0_i32_1 = arith.constant 0 : i32
    return %arg0, %c0_i32, %c0_i32_0 : i32, i32, i32
  }
  func.func @transform_12(%arg0: i32) -> (i32, i32, i32) {
    %c0_i32 = arith.constant 0 : i32
    %c0_i32_0 = arith.constant 0 : i32
    %c0_i32_1 = arith.constant 0 : i32
    return %arg0, %c0_i32, %c0_i32_0 : i32, i32, i32
  }
}

</mosaic_0001>

<bundles_post_ra>
// kernel: tpu_custom_call.1
= control target key start
LH: loop header
LB: loop body
LE: loop exit
PB: predicated region body
PF: predicated region fallthrough
CT: control target
= control target key end

     0   :  { %s13076_s0 = inlined_call_operand.vmem [shape: f32[1,512], index: 0, kind: input, shape index: {}]   ;;  %s13077_s1 = inlined_call_operand.hbm [shape: f32[9,512], index: 1, kind: input, shape index: {}]   ;;  %s13078_s2 = inlined_call_operand.vmem [shape: f32[8,9], index: 2, kind: input, shape index: {}]   ;;  %s13079_s3 = inlined_call_operand.vmem [shape: f32[8,1], index: 3, kind: input, shape index: {}]   ;;  %s13080_s4 = inlined_call_operand.vmem [shape: f32[8,72], index: 4, kind: input, shape index: {}]   ;;  %s13081_s5 = inlined_call_operand.vmem [shape: f32[8,1], index: 5, kind: input, shape index: {}]   ;;  %s13082_s6 = inlined_call_operand.vmem [shape: f32[8,72], index: 6, kind: input, shape index: {}]   ;;  %s13083_s7 = inlined_call_operand.vmem [shape: f32[8,1], index: 7, kind: input, shape index: {}]   ;;  %s13084_s8 = inlined_call_operand.vmem [shape: f32[1,72], index: 8, kind: input, shape index: {}]   ;;  %s13085_s9 = inlined_call_operand.<no memory space> [shape: f32[1,1], index: 9, kind: input, shape index: {}]   ;;  %s13086_s10 = inlined_call_operand.hbm [shape: f32[256,256], index: 10, kind: input, shape index: {}]   ;;  %s13087_s11 = inlined_call_operand.hbm [shape: f32[2,2,256], index: 11, kind: output, shape index: {0}]   ;;  %s13088_s12 = inlined_call_operand.hbm [shape: f32[2,2,256], index: 12, kind: output, shape index: {1}]  }
   0x1   :  { %v18_v0 = vstv %s13085_s9 }
   0x2   :  { %19 = vst [vmem:[#allocation5] sm:$0x1] %v18_v0 }
   0x3   :  { %20 = vsyncpa [#allocation7], 0 }
   0x4   :  { %21 = vsyncpa [#allocation10], 0 }
   0x5   :  { %22 = vsyncpa [#allocation8], 0 }
   0x6   :  { %23 = vsyncpa [#allocation13], 0  ;;  %s9545_s23 = smov [#allocation6]   ;;  %s9449_s27 = scalar_lea.hbm %s13077_s1, 1024 }
   0x7   :  { %s31_s24 = sshll.u32 %s9545_s23, 4  ;;  %p9450_p0 = scmp.ne.s32.totalorder %s13077_s1, %s9449_s27  ;;  %s32_s24 = int_to_ptr.vmem [resolvable:$true] %s31_s24 }
   0x8   :  { %p9453_p1 = scmp.lt.u32.totalorder %s9449_s27, %s13077_s1 }
   0xa   :  { %p9455_p2 = pnand %p9453_p1, %p9450_p0 }
   0xc   :  { %9458 = shalt.err (!%p9455_p2)
}
   0xd   :  { %s9459_s9 = scalar_lea.vmem %s32_s24, 1024  ;;  %p9464_p4 = scmp.lt.s32.totalorder %s32_s24, %s32_s24 }
   0xe   :  { %p9460_p3 = scmp.ne.s32.totalorder %s32_s24, %s9459_s9  ;;  %p9465_p5 = scmp.lt.s32.totalorder %s9459_s9, %s9459_s9 }
  0x10   :  { %p9466_p6 = por %p9465_p5, %p9464_p4 }
  0x12   :  { %p9467_p7 = pnand %p9466_p6, %p9460_p3 }
  0x14   :  { %9470 = shalt.err (!%p9467_p7)
}
  0x15   :  { %s9546_s14 = smov 512   ;;  %s9547_s15 = smov 32  }
  0x16   :  { %37 = dma.hbm_to_vmem [thread:$0]  %s13077_s1, 1024, %s32_s24, [#allocation7], %s9546_s14, %s9546_s14, %s9547_s15  }
  0x17   :  { %s9548_s18 = smov [#allocation9]   ;;  %s9471_s22 = scalar_lea.hbm %s13086_s10, 8192 }
  0x18   :  { %s59_s19 = sshll.u32 %s9548_s18, 4  ;;  %p9472_p8 = scmp.ne.s32.totalorder %s13086_s10, %s9471_s22  ;;  %s60_s19 = int_to_ptr.vmem [resolvable:$true] %s59_s19 }
  0x19   :  { %p9475_p9 = scmp.lt.u32.totalorder %s9471_s22, %s13086_s10 }
  0x1b   :  { %p9477_p10 = pnand %p9475_p9, %p9472_p8 }
  0x1d   :  { %9480 = shalt.err (!%p9477_p10)
}
  0x1e   :  { %s9481_s28 = scalar_lea.vmem %s60_s19, 8192  ;;  %p9486_p12 = scmp.lt.s32.totalorder %s60_s19, %s60_s19 }
  0x1f   :  { %p9482_p11 = scmp.ne.s32.totalorder %s60_s19, %s9481_s28  ;;  %p9487_p13 = scmp.lt.s32.totalorder %s9481_s28, %s9481_s28 }
  0x21   :  { %p9488_p0 = por %p9487_p13, %p9486_p12 }
  0x23   :  { %p9489_p1 = pnand %p9488_p0, %p9482_p11 }
  0x25   :  { %9492 = shalt.err (!%p9489_p1)
}
  0x26   :  { %s9549_s1 = smov 256   ;;  %s9550_s24 = smov 16  }
  0x27   :  { %65 = dma.hbm_to_vmem [thread:$0]  %s13086_s10, 8192, %s60_s19, [#allocation10], %s9549_s1, %s9549_s1, %s9550_s24  }
  0x28   :  { %9537 = dma.done.wait [#allocation7], 1024  }
  0x29   :  { %9538 = vsyncadd [#allocation7], 4294966272 }
  0x2a   :  { %9539 = dma.done.wait [#allocation10], 8192  }
  0x2b   :  { %9540 = vsyncadd [#allocation10], 4294959104  ;;  %v73_v1 = vlaneseq  ;;  %v9551_v3 = vmov 1966171168   ;;  %v72_v5 = vld [vmem:[%s13076_s0] sm:$0xf] }
  0x2c   :  { %v86_v4 = vunpack.c.l.s4 %v9551_v3  ;;  %v79_v6 = vrot.slane %v72_v5, 2  ;;  %s9552_s0 = smov 17   ;;  %s9553_s10 = smov 15   ;;  %v410_v22 = vld [vmem:[#allocation6 + $0x4] ss:$8 sm:$0xf] }
  0x2d   :  { %vm9662_vm0 = vcmp.lt.s32.totalorder %v73_v1, 256  ;;  %v9674_v8 = vshrl.u32 %v73_v1, 7  ;;  %s9554_s14 = smov 1   ;;  %s9555_s15 = smov 127   ;;  %vm9730_vm1 = vcmp.lt.s32.totalorder %v73_v1, 512  ;;  %v13089_v25 = vmov 0.0  }
  0x2e   :  { %77 = vst.msk [vmem:[#allocation4] ss:$2 sm:$0x3] %vm9662_vm0, %v72_v5  ;;  %82 = vst.msk [vmem:[#allocation4 + $0x1] ss:$2 sm:$0x3] %vm9662_vm0, %v79_v6  ;;  %v87_v7 = vunpack.c.0.s8 %v86_v4  ;;  %799 = vmatprep.mubr.f32.mxu0 %v13089_v25  ;;  %870 = vmatprep.mubr.f32.mxu1 %v13089_v25 }
  0x2f   :  { %v9688_v13 = vsub.s32 0, %v9674_v8  ;;  %v9691_v14 = vsub.s32 2, %v9674_v8  ;;  %v9694_v15 = vsub.s32 1, %v9674_v8  ;;  %v9697_v16 = vsub.s32 3, %v9674_v8  ;;  %s9556_s16 = smov 113   ;;  %s9557_s17 = smov 112  }
  0x30   :  { %v9677_v9 = vsub.s32 %v87_v7, %v9674_v8  ;;  %s9558_s18 = smov 111   ;;  %v712_v26 = vld [vmem:[%s13079_s3] sm:$0xff]  ;;  %v9560_v27 = vmov 0   ;;  %v9748_v28 = vand.u32 127, %v73_v1  ;;  %vm722_vm10 = vcmask 1040384  }
  0x31   :  { %9363 = vset.pattern.permute.xlu0 %v9560_v27  ;;  %9364 = vset.pattern.permute.xlu1 %v9560_v27  ;;  %v134_v29 = vld [vmem:[#allocation6] ss:$8 sm:$0xf]  ;;  %v207_v46 = vld [vmem:[#allocation6 + $0x1] ss:$8 sm:$0xf] }
  0x32   :  { %vm129_vm2 = vcmp.lt.s32.totalorder %v9748_v28, 17  ;;  %v139_v32 = vrot.slane %v134_v29, %v9688_v13  ;;  %v151_v33 = vrot.slane %v134_v29, %v9697_v16  ;;  %v143_v34 = vrot.slane %v134_v29, %v9694_v15  ;;  %v279_v6 = vld [vmem:[#allocation6 + $0x2] ss:$8 sm:$0xf] }
  0x33   :  { %v147_v35 = vrot.slane %v134_v29, %v9691_v14  ;;  %vm201_vm3 = vcmp.lt.s32.totalorder %v9748_v28, 16  ;;  %v216_v51 = vrot.slane %v207_v46, %v9694_v15  ;;  %v212_v52 = vrot.slane %v207_v46, %v9688_v13  ;;  %v4539_v24 = vld [vmem:[%s13078_s2] sm:$0xff] }
  0x34   :  { %v220_v53 = vrot.slane %v207_v46, %v9691_v14  ;;  %v224_v57 = vrot.slane %v207_v46, %v9697_v16  ;;  %vm273_vm4 = vcmp.lt.s32.totalorder %v9748_v28, 15  ;;  %vm345_vm5 = vcmp.lt.s32.totalorder %v9748_v28, 1 }
  0x35   :  { %v9679_v10 = vld [vmem:[#allocation4] sm:$0xf]  ;;  %vm423_vm6 = vcmp.lt.s32.totalorder %v9748_v28, 127  ;;  %vm495_vm7 = vcmp.lt.s32.totalorder %v9748_v28, 113  ;;  %vm567_vm8 = vcmp.lt.s32.totalorder %v9748_v28, 112  ;;  %vm639_vm9 = vcmp.lt.s32.totalorder %v9748_v28, 111 }
  0x36   :  { %v91_v11 = vrot.slane %v9679_v10, %v9677_v9  ;;  %vm9561_vm11 = vmmov 1   ;;  %vm718_vm13 = vcmask 72704   ;;  %vm1290_vm14 = vcmask 588800   ;;  %v6490_v28 = vld [vmem:[#allocation9 + $0x10] sm:$0xff] }
  0x37   :  { %vm9894_vm12 = vmpackc.low %vm722_vm10, %vm9561_vm11  ;;  %vm2603_vm15 = vcmask 1041408  }
  0x38   :  { %93 = vst.msk [vmem:[#allocation3] sm:$0x3] %vm9662_vm0, %v91_v11  ;;  %v94_v12 = vcombine.high %v91_v11, %v91_v11 }
  0x3a   :  { %96 = vst.msk [vmem:[#allocation3 + $0x2] sm:$0x3] %vm9662_vm0, %v94_v12 }
  0x41   :  { %v97_v17 = vld [vmem:[#allocation3] sm:$0xf] }
  0x42   :  { %v110_v18 = vrot.slane %v97_v17, %v9691_v14  ;;  %v102_v19 = vrot.slane %v97_v17, %v9688_v13  ;;  %v114_v20 = vrot.slane %v97_v17, %v9697_v16  ;;  %v106_v21 = vrot.slane %v97_v17, %v9694_v15 }
  0x43   :  { %v411_v23 = vmul.f32 %v410_v22, %v97_v17 }
  0x44   :  { %123 = vrot.lane.b32.xlu1 %v110_v18, %s9552_s0  ;;  %119 = vrot.lane.b32.xlu0 %v102_v19, %s9552_s0 }
  0x45   :  { %413 = vst.msk [vmem:[#allocation2 + $0x4] ss:$8 sm:$0xf] %vm9730_vm1, %v411_v23 }
  0x48   :  { %125 = vrot.lane.b32.xlu1 %v114_v20, %s9552_s0  ;;  %121 = vrot.lane.b32.xlu0 %v106_v21, %s9552_s0 }
  0x4c   :  { %195 = vrot.lane.b32.xlu1 %v106_v21, %s9550_s24  ;;  %193 = vrot.lane.b32.xlu0 %v102_v19, %s9550_s24 }
  0x50   :  { %199 = vrot.lane.b32.xlu1 %v114_v20, %s9550_s24  ;;  %197 = vrot.lane.b32.xlu0 %v110_v18, %s9550_s24 }
  0x54   :  { %267 = vrot.lane.b32.xlu1 %v106_v21, %s9553_s10  ;;  %265 = vrot.lane.b32.xlu0 %v102_v19, %s9553_s10 }
  0x58   :  { %271 = vrot.lane.b32.xlu1 %v114_v20, %s9553_s10  ;;  %269 = vrot.lane.b32.xlu0 %v110_v18, %s9553_s10 }
  0x5c   :  { %339 = vrot.lane.b32.xlu1 %v106_v21, %s9554_s14  ;;  %337 = vrot.lane.b32.xlu0 %v102_v19, %s9554_s14 }
  0x60   :  { %343 = vrot.lane.b32.xlu1 %v114_v20, %s9554_s14  ;;  %341 = vrot.lane.b32.xlu0 %v110_v18, %s9554_s14 }
  0x64   :  { %417 = vrot.lane.b32.xlu1 %v106_v21, %s9555_s15  ;;  %415 = vrot.lane.b32.xlu0 %v102_v19, %s9555_s15 }
  0x68   :  { %421 = vrot.lane.b32.xlu1 %v114_v20, %s9555_s15  ;;  %419 = vrot.lane.b32.xlu0 %v110_v18, %s9555_s15 }
  0x6c   :  { %489 = vrot.lane.b32.xlu1 %v106_v21, %s9556_s16  ;;  %487 = vrot.lane.b32.xlu0 %v102_v19, %s9556_s16 }
  0x70   :  { %493 = vrot.lane.b32.xlu1 %v114_v20, %s9556_s16  ;;  %491 = vrot.lane.b32.xlu0 %v110_v18, %s9556_s16 }
  0x74   :  { %561 = vrot.lane.b32.xlu1 %v106_v21, %s9557_s17  ;;  %559 = vrot.lane.b32.xlu0 %v102_v19, %s9557_s17 }
  0x78   :  { %565 = vrot.lane.b32.xlu1 %v114_v20, %s9557_s17  ;;  %563 = vrot.lane.b32.xlu0 %v110_v18, %s9557_s17 }
  0x7c   :  { %633 = vrot.lane.b32.xlu1 %v106_v21, %s9558_s18  ;;  %631 = vrot.lane.b32.xlu0 %v102_v19, %s9558_s18  ;;  %v284_v19 = vrot.slane %v279_v6, %v9688_v13 }
  0x80   :  { %637 = vrot.lane.b32.xlu1 %v114_v20, %s9558_s18  ;;  %635 = vrot.lane.b32.xlu0 %v110_v18, %s9558_s18  ;;  %v288_v18 = vrot.slane %v279_v6, %v9694_v15  ;;  %v292_v20 = vrot.slane %v279_v6, %v9691_v14 }
  0x84   :  { %715 = vperm.xlu0 %9363, %v712_v26   ;;  %v296_v26 = vrot.slane %v279_v6, %v9697_v16 }
  0xb6   :  { %v124_v30 = vpop.permute.xlu1 %123  ;;  %v120_v31 = vpop.permute.xlu0 %119 }
  0xba   :  { %v126_v36 = vpop.permute.xlu1 %125  ;;  %v122_v37 = vpop.permute.xlu0 %121 }
  0xbb   :  { %v130_v38 = vsel %vm129_vm2, %v124_v30, %v126_v36  ;;  %v133_v39 = vsel %vm129_vm2, %v126_v36, %v120_v31  ;;  %v131_v40 = vsel %vm129_vm2, %v122_v37, %v124_v30  ;;  %v132_v41 = vsel %vm129_vm2, %v120_v31, %v122_v37 }
  0xbc   :  { %v156_v42 = vmul.f32 %v139_v32, %v133_v39  ;;  %v159_v43 = vmul.f32 %v151_v33, %v130_v38  ;;  %v157_v44 = vmul.f32 %v143_v34, %v132_v41  ;;  %v158_v45 = vmul.f32 %v147_v35, %v131_v40  ;;  %v351_v39 = vld [vmem:[#allocation6 + $0x3] ss:$8 sm:$0xf] }
  0xbd   :  { %v364_v46 = vrot.slane %v351_v39, %v9691_v14 }
  0xbe   :  { %v164_v47 = vcombine.low %v156_v42, %v157_v44  ;;  %v165_v48 = vcombine.low %v158_v45, %v159_v43  ;;  %v196_v49 = vpop.permute.xlu1 %195  ;;  %v194_v50 = vpop.permute.xlu0 %193  ;;  %v360_v44 = vrot.slane %v351_v39, %v9694_v15  ;;  %v356_v45 = vrot.slane %v351_v39, %v9688_v13 }
  0xbf   :  { %v204_v56 = vsel %vm201_vm3, %v194_v50, %v196_v49 }
  0xc0   :  { %v172_v54 = vrot.slane %v164_v47, %v9677_v9  ;;  %v179_v55 = vrot.slane %v165_v48, %v9677_v9  ;;  %v230_v61 = vmul.f32 %v216_v51, %v204_v56 }
  0xc2   :  { %v180_v58 = vcombine.low %v172_v54, %v179_v55  ;;  %v200_v59 = vpop.permute.xlu1 %199  ;;  %v198_v60 = vpop.permute.xlu0 %197 }
  0xc3   :  { %v205_v62 = vsel %vm201_vm3, %v200_v59, %v194_v50  ;;  %v202_v63 = vsel %vm201_vm3, %v198_v60, %v200_v59  ;;  %v203_v0 = vsel %vm201_vm3, %v196_v49, %v198_v60  ;;  %v368_v50 = vrot.slane %v351_v39, %v9697_v16 }
  0xc4   :  { %v187_v1 = vrot.slane %v180_v58, %v9677_v9  ;;  %v229_v3 = vmul.f32 %v212_v52, %v205_v62  ;;  %v231_v4 = vmul.f32 %v220_v53, %v203_v0  ;;  %v232_v5 = vmul.f32 %v224_v57, %v202_v63  ;;  %v429_v62 = vld [vmem:[#allocation6 + $0x5] ss:$8 sm:$0xf] }
  0xc5   :  { %v438_v6 = vrot.slane %v429_v62, %v9694_v15 }
  0xc6   :  { %191 = vst.msk [vmem:[#allocation2] ss:$8 sm:$0xf] %vm9730_vm1, %v187_v1  ;;  %v237_v7 = vcombine.low %v229_v3, %v230_v61  ;;  %v238_v11 = vcombine.low %v231_v4, %v232_v5  ;;  %v268_v12 = vpop.permute.xlu1 %267  ;;  %v266_v17 = vpop.permute.xlu0 %265  ;;  %v434_v4 = vrot.slane %v429_v62, %v9688_v13  ;;  %v446_v5 = vrot.slane %v429_v62, %v9697_v16 }
  0xc7   :  { %v276_v23 = vsel %vm273_vm4, %v266_v17, %v268_v12 }
  0xc8   :  { %v245_v21 = vrot.slane %v237_v7, %v9677_v9  ;;  %v252_v22 = vrot.slane %v238_v11, %v9677_v9  ;;  %v302_v31 = vmul.f32 %v288_v18, %v276_v23 }
  0xca   :  { %v253_v27 = vcombine.low %v245_v21, %v252_v22  ;;  %v272_v29 = vpop.permute.xlu1 %271  ;;  %v270_v30 = vpop.permute.xlu0 %269 }
  0xcb   :  { %v277_v32 = vsel %vm273_vm4, %v272_v29, %v266_v17  ;;  %v274_v33 = vsel %vm273_vm4, %v270_v30, %v272_v29  ;;  %v275_v34 = vsel %vm273_vm4, %v268_v12, %v270_v30  ;;  %v442_v17 = vrot.slane %v429_v62, %v9691_v14 }
  0xcc   :  { %v260_v35 = vrot.slane %v253_v27, %v9677_v9  ;;  %v301_v36 = vmul.f32 %v284_v19, %v277_v32  ;;  %v303_v37 = vmul.f32 %v292_v20, %v275_v34  ;;  %v304_v38 = vmul.f32 %v296_v26, %v274_v33  ;;  %v501_v32 = vld [vmem:[#allocation6 + $0x6] ss:$8 sm:$0xf] }
  0xcd   :  { %v510_v39 = vrot.slane %v501_v32, %v9694_v15 }
  0xce   :  { %263 = vst.msk [vmem:[#allocation2 + $0x1] ss:$8 sm:$0xf] %vm9730_vm1, %v260_v35  ;;  %v309_v40 = vcombine.low %v301_v36, %v302_v31  ;;  %v310_v41 = vcombine.low %v303_v37, %v304_v38  ;;  %v340_v42 = vpop.permute.xlu1 %339  ;;  %v338_v43 = vpop.permute.xlu0 %337  ;;  %v506_v37 = vrot.slane %v501_v32, %v9688_v13  ;;  %v518_v38 = vrot.slane %v501_v32, %v9697_v16 }
  0xcf   :  { %v348_v49 = vsel %vm345_vm5, %v338_v43, %v340_v42 }
  0xd0   :  { %v317_v47 = vrot.slane %v309_v40, %v9677_v9  ;;  %v324_v48 = vrot.slane %v310_v41, %v9677_v9  ;;  %v374_v54 = vmul.f32 %v360_v44, %v348_v49 }
  0xd2   :  { %v325_v51 = vcombine.low %v317_v47, %v324_v48  ;;  %v344_v52 = vpop.permute.xlu1 %343  ;;  %v342_v53 = vpop.permute.xlu0 %341 }
  0xd3   :  { %v349_v55 = vsel %vm345_vm5, %v344_v52, %v338_v43  ;;  %v346_v56 = vsel %vm345_vm5, %v342_v53, %v344_v52  ;;  %v347_v57 = vsel %vm345_vm5, %v340_v42, %v342_v53  ;;  %v514_v43 = vrot.slane %v501_v32, %v9691_v14 }
  0xd4   :  { %v332_v58 = vrot.slane %v325_v51, %v9677_v9  ;;  %v373_v59 = vmul.f32 %v356_v45, %v349_v55  ;;  %v375_v60 = vmul.f32 %v364_v46, %v347_v57  ;;  %v376_v61 = vmul.f32 %v368_v50, %v346_v56  ;;  %v573_v55 = vld [vmem:[#allocation6 + $0x7] ss:$8 sm:$0xf] }
  0xd5   :  { %v582_v62 = vrot.slane %v573_v55, %v9694_v15 }
  0xd6   :  { %335 = vst.msk [vmem:[#allocation2 + $0x2] ss:$8 sm:$0xf] %vm9730_vm1, %v332_v58  ;;  %v381_v63 = vcombine.low %v373_v59, %v374_v54  ;;  %v382_v0 = vcombine.low %v375_v60, %v376_v61  ;;  %v418_v1 = vpop.permute.xlu1 %417  ;;  %v416_v3 = vpop.permute.xlu0 %415  ;;  %v578_v60 = vrot.slane %v573_v55, %v9688_v13  ;;  %v590_v61 = vrot.slane %v573_v55, %v9697_v16 }
  0xd7   :  { %v426_v12 = vsel %vm423_vm6, %v416_v3, %v418_v1 }
  0xd8   :  { %v389_v7 = vrot.slane %v381_v63, %v9677_v9  ;;  %v396_v11 = vrot.slane %v382_v0, %v9677_v9  ;;  %v451_v21 = vmul.f32 %v434_v4, %v426_v12 }
  0xda   :  { %v397_v18 = vcombine.low %v389_v7, %v396_v11  ;;  %v422_v19 = vpop.permute.xlu1 %421  ;;  %v420_v20 = vpop.permute.xlu0 %419 }
  0xdb   :  { %v427_v22 = vsel %vm423_vm6, %v422_v19, %v416_v3  ;;  %v424_v23 = vsel %vm423_vm6, %v420_v20, %v422_v19  ;;  %v425_v26 = vsel %vm423_vm6, %v418_v1, %v420_v20  ;;  %v586_v3 = vrot.slane %v573_v55, %v9691_v14 }
  0xdc   :  { %v404_v27 = vrot.slane %v397_v18, %v9677_v9  ;;  %v454_v29 = vmul.f32 %v446_v5, %v427_v22  ;;  %v452_v30 = vmul.f32 %v438_v6, %v425_v26  ;;  %v453_v31 = vmul.f32 %v442_v17, %v424_v23  ;;  %v645_v22 = vld [vmem:[#allocation6 + $0x20] ss:$8 sm:$0xf] }
  0xdd   :  { %v654_v32 = vrot.slane %v645_v22, %v9694_v15 }
  0xde   :  { %407 = vst.msk [vmem:[#allocation2 + $0x3] ss:$8 sm:$0xf] %vm9730_vm1, %v404_v27  ;;  %v459_v33 = vcombine.low %v451_v21, %v452_v30  ;;  %v460_v34 = vcombine.low %v453_v31, %v454_v29  ;;  %v490_v35 = vpop.permute.xlu1 %489  ;;  %v488_v36 = vpop.permute.xlu0 %487  ;;  %v650_v30 = vrot.slane %v645_v22, %v9688_v13  ;;  %v662_v31 = vrot.slane %v645_v22, %v9697_v16 }
  0xdf   :  { %v498_v42 = vsel %vm495_vm7, %v488_v36, %v490_v35 }
  0xe0   :  { %v467_v40 = vrot.slane %v459_v33, %v9677_v9  ;;  %v474_v41 = vrot.slane %v460_v34, %v9677_v9  ;;  %v523_v47 = vmul.f32 %v506_v37, %v498_v42 }
  0xe2   :  { %v475_v44 = vcombine.low %v467_v40, %v474_v41  ;;  %v494_v45 = vpop.permute.xlu1 %493  ;;  %v492_v46 = vpop.permute.xlu0 %491 }
  0xe3   :  { %v499_v48 = vsel %vm495_vm7, %v494_v45, %v488_v36  ;;  %v496_v49 = vsel %vm495_vm7, %v492_v46, %v494_v45  ;;  %v497_v50 = vsel %vm495_vm7, %v490_v35, %v492_v46  ;;  %v658_v36 = vrot.slane %v645_v22, %v9691_v14 }
  0xe4   :  { %v482_v51 = vrot.slane %v475_v44, %v9677_v9  ;;  %v526_v52 = vmul.f32 %v518_v38, %v499_v48  ;;  %v524_v53 = vmul.f32 %v510_v39, %v497_v50  ;;  %v525_v54 = vmul.f32 %v514_v43, %v496_v49 }
  0xe6   :  { %485 = vst.msk [vmem:[#allocation2 + $0x5] ss:$8 sm:$0xf] %vm9730_vm1, %v482_v51  ;;  %v531_v56 = vcombine.low %v523_v47, %v524_v53  ;;  %v532_v57 = vcombine.low %v525_v54, %v526_v52  ;;  %v562_v58 = vpop.permute.xlu1 %561  ;;  %v560_v59 = vpop.permute.xlu0 %559  ;;  %v13102_v54 = vmov 0 }
  0xe7   :  { %v570_v1 = vsel %vm567_vm8, %v560_v59, %v562_v58  ;;  %v13103_v54 = vsel %vm9894_vm12, 4294967295, %v13102_v54 }
  0xe8   :  { %v539_v63 = vrot.slane %v531_v56, %v9677_v9  ;;  %v546_v0 = vrot.slane %v532_v57, %v9677_v9  ;;  %v595_v7 = vmul.f32 %v578_v60, %v570_v1  ;;  %13104 = vst [vmem:[#allocation18_spill] sm:$0xff] %v13103_v54 }
  0xea   :  { %v547_v4 = vcombine.low %v539_v63, %v546_v0  ;;  %v566_v5 = vpop.permute.xlu1 %565  ;;  %v564_v6 = vpop.permute.xlu0 %563 }
  0xeb   :  { %v571_v11 = vsel %vm567_vm8, %v566_v5, %v560_v59  ;;  %v568_v12 = vsel %vm567_vm8, %v564_v6, %v566_v5  ;;  %v569_v17 = vsel %vm567_vm8, %v562_v58, %v564_v6 }
  0xec   :  { %v554_v18 = vrot.slane %v547_v4, %v9677_v9  ;;  %v598_v19 = vmul.f32 %v590_v61, %v571_v11  ;;  %v596_v20 = vmul.f32 %v582_v62, %v569_v17  ;;  %v597_v21 = vmul.f32 %v586_v3, %v568_v12  ;;  %v711_v4 = vld [vmem:[%s13078_s2] sm:$0xff] }
  0xee   :  { %557 = vst.msk [vmem:[#allocation2 + $0x6] ss:$8 sm:$0xf] %vm9730_vm1, %v554_v18  ;;  %v603_v23 = vcombine.low %v595_v7, %v596_v20  ;;  %v604_v26 = vcombine.low %v597_v21, %v598_v19  ;;  %v634_v27 = vpop.permute.xlu1 %633  ;;  %v632_v29 = vpop.permute.xlu0 %631 }
  0xef   :  { %v642_v35 = vsel %vm639_vm9, %v632_v29, %v634_v27 }
  0xf0   :  { %v611_v33 = vrot.slane %v603_v23, %v9677_v9  ;;  %v618_v34 = vrot.slane %v604_v26, %v9677_v9  ;;  %v667_v40 = vmul.f32 %v650_v30, %v642_v35 }
  0xf2   :  { %v619_v37 = vcombine.low %v611_v33, %v618_v34  ;;  %v638_v38 = vpop.permute.xlu1 %637  ;;  %v636_v39 = vpop.permute.xlu0 %635  ;;  %v893_v33 = vld [vmem:[#allocation6] ss:$8 sm:$0xf]  ;;  %v935_v34 = vld [vmem:[#allocation6 + $0x1] ss:$8 sm:$0xf] }
  0xf3   :  { %v643_v41 = vsel %vm639_vm9, %v638_v38, %v632_v29  ;;  %v640_v42 = vsel %vm639_vm9, %v636_v39, %v638_v38  ;;  %v641_v43 = vsel %vm639_vm9, %v634_v27, %v636_v39  ;;  %v1284_v27 = vld [vmem:[%s13081_s5] sm:$0xff]  ;;  %v944_v38 = vrot.slane %v935_v34, %v9694_v15 }
  0xf4   :  { %v626_v44 = vrot.slane %v619_v37, %v9677_v9  ;;  %v670_v45 = vmul.f32 %v662_v31, %v643_v41  ;;  %v668_v46 = vmul.f32 %v654_v32, %v641_v43  ;;  %v669_v47 = vmul.f32 %v658_v36, %v640_v42 }
  0xf5   :  { %v902_v37 = vrot.slane %v893_v33, %v9694_v15  ;;  %v910_v43 = vrot.slane %v893_v33, %v9697_v16 }
  0xf6   :  { %629 = vst.msk [vmem:[#allocation2 + $0x7] ss:$8 sm:$0xf] %vm9730_vm1, %v626_v44  ;;  %v675_v48 = vcombine.low %v667_v40, %v668_v46  ;;  %v676_v49 = vcombine.low %v669_v47, %v670_v45  ;;  %v898_v40 = vrot.slane %v893_v33, %v9688_v13  ;;  %v948_v44 = vrot.slane %v935_v34, %v9691_v14 }
  0xf7   :  { %v940_v46 = vrot.slane %v935_v34, %v9688_v13 }
  0xf8   :  { %v683_v50 = vrot.slane %v675_v48, %v9677_v9  ;;  %v690_v51 = vrot.slane %v676_v49, %v9677_v9 }
  0xfa   :  { %v691_v52 = vcombine.low %v683_v50, %v690_v51  ;;  %v952_v50 = vrot.slane %v935_v34, %v9697_v16  ;;  %v906_v51 = vrot.slane %v893_v33, %v9691_v14  ;;  %v1049_v33 = vld [vmem:[#allocation6 + $0x4] ss:$8 sm:$0xf] }
  0xfc   :  { %v698_v53 = vrot.slane %v691_v52, %v9677_v9 }
  0xfd   :  { %v704_v55 = vld [vmem:[#allocation2 + $0x8] sm:$0xff]  ;;  %v706_v56 = vld [vmem:[#allocation2 + $0x18] sm:$0xff]  ;;  %v703_v57 = vld [vmem:[#allocation2] sm:$0xff] }
  0xfe   :  { %701 = vst.msk [vmem:[#allocation2 + $0x20] ss:$8 sm:$0xf] %vm9730_vm1, %v698_v53  ;;  %v705_v0 = vld [vmem:[#allocation2 + $0x10] sm:$0xff] }
 0x103   :  { %v716_v5 = vpop.permute.xlu0 %715 }
 0x105   :  { %v708_v58 = vld [vmem:[#allocation2 + $0x28] sm:$0x1]  ;;  %v710_v59 = vld [vmem:[#allocation2 + $0x38] sm:$0x1]  ;;  %v707_v60 = vld [vmem:[#allocation2 + $0x20] sm:$0x1] }
 0x106   :  { %v7844_v61 = vpack.c.bf16 %v708_v58, %v704_v55  ;;  %v7850_v62 = vpack.c.bf16 %v710_v59, %v706_v56  ;;  %v7847_v63 = vpack.c.bf16 %v707_v60, %v703_v57  ;;  %v709_v1 = vld [vmem:[#allocation2 + $0x30] sm:$0x1] }
 0x107   :  { %v7853_v3 = vpack.c.bf16 %v709_v1, %v705_v0 }
 0x108   :  { %7846 = vmatprep.subr.msk.bf16.mxu0 %vm9894_vm12, %v7844_v61  ;;  %7852 = vmatprep.subr.msk.bf16.mxu1 %vm9894_vm12, %v7850_v62 }
 0x109   :  { %7849 = vmatpush1.bf16.msk.msra.mxu0 %vm9894_vm12, %v7847_v63  ;;  %7855 = vmatpush1.bf16.msk.msra.mxu1 %vm9894_vm12, %v7853_v3 }
 0x10c   :  { %7822 = vmatmul.mubr.msk.f32.vlgmr.msra.gmra.mrb[0].mxu0 %vm718_vm13, %v711_v4  ;;  %7825 = vmatmul.mubr.msk.f32.vlgmr.msra.gmra.mrb[0].mxu1 %vm718_vm13, %v711_v4 }
 0x10d   :  { %1358 = vmatprep.mubr.f32.mxu0 %v13089_v25  ;;  %1429 = vmatprep.mubr.f32.mxu1 %v13089_v25 }
 0x1df   :  { %v801_v6 = vpop.f32.mrb[0].mxu0  ;;  %v872_v7 = vpop.f32.mrb[0].mxu1 }
 0x1e0   :  { %v802_v11 = vadd.f32 %v801_v6, %v716_v5  ;;  %v873_v12 = vadd.f32 %v872_v7, %v716_v5  ;;  %v803_v17 = vpop.f32.mrb[1].mxu0  ;;  %v874_v18 = vpop.f32.mrb[1].mxu1 }
 0x1e1   :  { %v804_v21 = vadd.f32 %v803_v17, %v716_v5  ;;  %v875_v23 = vadd.f32 %v874_v18, %v716_v5  ;;  %v1019_v17 = vld [vmem:[#allocation6 + $0x3] ss:$8 sm:$0xf] }
 0x1e2   :  { %v9913_v19 = vmax.f32 %v802_v11, 0.0  ;;  %v9915_v20 = vmax.f32 %v873_v12, 0.0  ;;  %v977_v12 = vld [vmem:[#allocation6 + $0x2] ss:$8 sm:$0xf] }
 0x1e3   :  { %v9921_v22 = vmax.f32 %v804_v21, 0.0  ;;  %v9927_v26 = vmax.f32 %v875_v23, 0.0  ;;  %v986_v23 = vrot.slane %v977_v12, %v9694_v15  ;;  %v994_v34 = vrot.slane %v977_v12, %v9697_v16 }
 0x1e4   :  { %885 = vrot.lane.b32.xlu0 %v9915_v20, %s9552_s0  ;;  %881 = vrot.lane.b32.xlu1 %v9913_v19, %s9552_s0 }
 0x1e8   :  { %923 = vrot.lane.b32.xlu0 %v9913_v19, %s9550_s24  ;;  %883 = vrot.lane.b32.xlu1 %v9921_v22, %s9552_s0 }
 0x1ec   :  { %927 = vrot.lane.b32.xlu0 %v9915_v20, %s9550_s24  ;;  %887 = vrot.lane.b32.xlu1 %v9927_v26, %s9552_s0 }
 0x1f0   :  { %965 = vrot.lane.b32.xlu0 %v9913_v19, %s9553_s10  ;;  %925 = vrot.lane.b32.xlu1 %v9921_v22, %s9550_s24 }
 0x1f4   :  { %969 = vrot.lane.b32.xlu0 %v9915_v20, %s9553_s10  ;;  %929 = vrot.lane.b32.xlu1 %v9927_v26, %s9550_s24 }
 0x1f8   :  { %1007 = vrot.lane.b32.xlu0 %v9913_v19, %s9554_s14  ;;  %967 = vrot.lane.b32.xlu1 %v9921_v22, %s9553_s10 }
 0x1fc   :  { %1011 = vrot.lane.b32.xlu0 %v9915_v20, %s9554_s14  ;;  %971 = vrot.lane.b32.xlu1 %v9927_v26, %s9553_s10 }
 0x200   :  { %1079 = vrot.lane.b32.xlu0 %v9913_v19, %s9555_s15  ;;  %1009 = vrot.lane.b32.xlu1 %v9921_v22, %s9554_s14 }
 0x204   :  { %1083 = vrot.lane.b32.xlu0 %v9915_v20, %s9555_s15  ;;  %1013 = vrot.lane.b32.xlu1 %v9927_v26, %s9554_s14 }
 0x208   :  { %1121 = vrot.lane.b32.xlu0 %v9913_v19, %s9556_s16  ;;  %1081 = vrot.lane.b32.xlu1 %v9921_v22, %s9555_s15 }
 0x20c   :  { %1125 = vrot.lane.b32.xlu0 %v9915_v20, %s9556_s16  ;;  %1085 = vrot.lane.b32.xlu1 %v9927_v26, %s9555_s15 }
 0x210   :  { %1163 = vrot.lane.b32.xlu0 %v9913_v19, %s9557_s17  ;;  %1123 = vrot.lane.b32.xlu1 %v9921_v22, %s9556_s16 }
 0x214   :  { %1167 = vrot.lane.b32.xlu0 %v9915_v20, %s9557_s17  ;;  %1127 = vrot.lane.b32.xlu1 %v9927_v26, %s9556_s16 }
 0x218   :  { %1205 = vrot.lane.b32.xlu0 %v9913_v19, %s9558_s18  ;;  %1165 = vrot.lane.b32.xlu1 %v9921_v22, %s9557_s17 }
 0x21c   :  { %1209 = vrot.lane.b32.xlu0 %v9915_v20, %s9558_s18  ;;  %1169 = vrot.lane.b32.xlu1 %v9927_v26, %s9557_s17 }
 0x220   :  { %1287 = vperm.xlu0 %9363, %v1284_v27   ;;  %1207 = vrot.lane.b32.xlu1 %v9921_v22, %s9558_s18  ;;  %v1028_v27 = vrot.slane %v1019_v17, %v9694_v15 }
 0x224   :  { %1211 = vrot.lane.b32.xlu1 %v9927_v26, %s9558_s18 }
 0x256   :  { %v886_v29 = vpop.permute.xlu0 %885  ;;  %v882_v30 = vpop.permute.xlu1 %881 }
 0x25a   :  { %v924_v31 = vpop.permute.xlu0 %923  ;;  %v884_v32 = vpop.permute.xlu1 %883 }
 0x25b   :  { %v891_v39 = vsel %vm129_vm2, %v882_v30, %v884_v32  ;;  %v890_v55 = vsel %vm129_vm2, %v884_v32, %v886_v29 }
 0x25c   :  { %v916_v47 = vmul.f32 %v902_v37, %v891_v39  ;;  %v917_v3 = vmul.f32 %v906_v51, %v890_v55  ;;  %v1024_v37 = vrot.slane %v1019_v17, %v9688_v13 }
 0x25e   :  { %v928_v35 = vpop.permute.xlu0 %927  ;;  %v888_v36 = vpop.permute.xlu1 %887 }
 0x25f   :  { %v889_v52 = vsel %vm129_vm2, %v886_v29, %v888_v36  ;;  %v892_v53 = vsel %vm129_vm2, %v888_v36, %v882_v30  ;;  %v982_v30 = vrot.slane %v977_v12, %v9688_v13 }
 0x260   :  { %v915_v62 = vmul.f32 %v898_v40, %v892_v53  ;;  %v918_v63 = vmul.f32 %v910_v43, %v889_v52  ;;  %v1036_v43 = vrot.slane %v1019_v17, %v9697_v16  ;;  %v1058_v53 = vrot.slane %v1049_v33, %v9694_v15 }
 0x262   :  { %v966_v41 = vpop.permute.xlu0 %965  ;;  %v926_v42 = vpop.permute.xlu1 %925 }
 0x263   :  { %v933_v45 = vsel %vm201_vm3, %v924_v31, %v926_v42  ;;  %v932_v48 = vsel %vm201_vm3, %v926_v42, %v928_v35 }
 0x264   :  { %v958_v49 = vmul.f32 %v944_v38, %v933_v45  ;;  %v959_v59 = vmul.f32 %v948_v44, %v932_v48  ;;  %v1091_v38 = vld [vmem:[#allocation6 + $0x5] ss:$8 sm:$0xf]  ;;  %v990_v44 = vrot.slane %v977_v12, %v9691_v14 }
 0x265   :  { %v1096_v51 = vrot.slane %v1091_v38, %v9688_v13 }
 0x266   :  { %v970_v56 = vpop.permute.xlu0 %969  ;;  %v930_v57 = vpop.permute.xlu1 %929  ;;  %v7856_v58 = vpack.c.bf16 %v958_v49, %v916_v47  ;;  %v7874_v11 = vpack.c.bf16 %v959_v59, %v917_v3  ;;  %v1054_v47 = vrot.slane %v1049_v33, %v9688_v13 }
 0x267   :  { %v931_v60 = vsel %vm201_vm3, %v928_v35, %v930_v57  ;;  %v934_v61 = vsel %vm201_vm3, %v930_v57, %v924_v31  ;;  %v1032_v35 = vrot.slane %v1019_v17, %v9691_v14  ;;  %v1104_v17 = vrot.slane %v1091_v38, %v9691_v14 }
 0x268   :  { %v957_v0 = vmul.f32 %v940_v46, %v934_v61  ;;  %v960_v1 = vmul.f32 %v952_v50, %v931_v60  ;;  %7857 = vmatprep.subr.bf16.mxu0 %v7856_v58 }
 0x26a   :  { %v1008_v4 = vpop.permute.xlu0 %1007  ;;  %v968_v5 = vpop.permute.xlu1 %967  ;;  %v7858_v6 = vpack.c.bf16 %v957_v0, %v915_v62  ;;  %v7872_v7 = vpack.c.bf16 %v960_v1, %v918_v63  ;;  %v1066_v63 = vrot.slane %v1049_v33, %v9697_v16  ;;  %v1062_v0 = vrot.slane %v1049_v33, %v9691_v14 }
 0x26b   :  { %v975_v29 = vsel %vm273_vm4, %v966_v41, %v968_v5  ;;  %v974_v48 = vsel %vm273_vm4, %v968_v5, %v970_v56 }
 0x26c   :  { %7859 = vmatpush1.bf16.msra.mxu0 %v7858_v6  ;;  %7873 = vmatprep.subr.bf16.mxu1 %v7872_v7  ;;  %v1000_v39 = vmul.f32 %v986_v23, %v975_v29  ;;  %v1001_v62 = vmul.f32 %v990_v44, %v974_v48  ;;  %v1072_v7 = vmul.f32 %v1058_v53, %v9921_v22  ;;  %v1175_v44 = vld [vmem:[#allocation6 + $0x7] ss:$8 sm:$0xf] }
 0x26d   :  { %7875 = vmatpush1.bf16.msra.mxu1 %v7874_v11  ;;  %v1180_v48 = vrot.slane %v1175_v44, %v9688_v13 }
 0x26e   :  { %v1012_v18 = vpop.permute.xlu0 %1011  ;;  %v972_v21 = vpop.permute.xlu1 %971 }
 0x26f   :  { %v973_v45 = vsel %vm273_vm4, %v970_v56, %v972_v21  ;;  %v976_v46 = vsel %vm273_vm4, %v972_v21, %v966_v41  ;;  %v1100_v41 = vrot.slane %v1091_v38, %v9694_v15 }
 0x270   :  { %v999_v59 = vmul.f32 %v982_v30, %v976_v46  ;;  %v1002_v60 = vmul.f32 %v994_v34, %v973_v45 }
 0x272   :  { %v1080_v31 = vpop.permute.xlu0 %1079  ;;  %v1010_v32 = vpop.permute.xlu1 %1009 }
 0x273   :  { %v1017_v36 = vsel %vm345_vm5, %v1008_v4, %v1010_v32  ;;  %v1016_v40 = vsel %vm345_vm5, %v1010_v32, %v1012_v18 }
 0x274   :  { %v1042_v42 = vmul.f32 %v1028_v27, %v1017_v36  ;;  %v1043_v55 = vmul.f32 %v1032_v35, %v1016_v40  ;;  %v1108_v27 = vrot.slane %v1091_v38, %v9697_v16  ;;  %v1074_v36 = vmul.f32 %v1066_v63, %v9927_v26 }
 0x275   :  { %v1184_v26 = vrot.slane %v1175_v44, %v9694_v15 }
 0x276   :  { %v1084_v49 = vpop.permute.xlu0 %1083  ;;  %v1014_v50 = vpop.permute.xlu1 %1013  ;;  %v7860_v52 = vpack.c.bf16 %v1042_v42, %v1000_v39 }
 0x277   :  { %v1015_v57 = vsel %vm345_vm5, %v1012_v18, %v1014_v50  ;;  %v1018_v58 = vsel %vm345_vm5, %v1014_v50, %v1008_v4  ;;  %v1071_v4 = vmul.f32 %v1054_v47, %v9913_v19  ;;  %v7878_v18 = vpack.c.bf16 %v1043_v55, %v1001_v62  ;;  %v1217_v62 = vld [vmem:[#allocation6 + $0x20] ss:$8 sm:$0xf] }
 0x278   :  { %v1041_v61 = vmul.f32 %v1024_v37, %v1018_v58  ;;  %v1044_v56 = vmul.f32 %v1036_v43, %v1015_v57  ;;  %7861 = vmatprep.subr.bf16.mxu0 %v7860_v52  ;;  %v1073_v37 = vmul.f32 %v1062_v0, %v9915_v20  ;;  %v1133_v43 = vld [vmem:[#allocation6 + $0x6] ss:$8 sm:$0xf]  ;;  %v1188_v57 = vrot.slane %v1175_v44, %v9691_v14 }
 0x279   :  { %v1142_v47 = vrot.slane %v1133_v43, %v9694_v15  ;;  %v1146_v50 = vrot.slane %v1133_v43, %v9691_v14  ;;  %v1192_v58 = vrot.slane %v1175_v44, %v9697_v16 }
 0x27a   :  { %v1122_v1 = vpop.permute.xlu0 %1121  ;;  %v1082_v3 = vpop.permute.xlu1 %1081  ;;  %v7862_v5 = vpack.c.bf16 %v1041_v61, %v999_v59  ;;  %v7876_v6 = vpack.c.bf16 %v1044_v56, %v1002_v60 }
 0x27b   :  { %v1088_v11 = vsel %vm423_vm6, %v1082_v3, %v1084_v49  ;;  %v1089_v12 = vsel %vm423_vm6, %v1080_v31, %v1082_v3 }
 0x27c   :  { %v1113_v21 = vmul.f32 %v1096_v51, %v1089_v12  ;;  %v1114_v23 = vmul.f32 %v1100_v41, %v1088_v11  ;;  %7863 = vmatpush1.bf16.msra.mxu0 %v7862_v5  ;;  %7877 = vmatprep.subr.bf16.mxu1 %v7876_v6  ;;  %v1150_v51 = vrot.slane %v1133_v43, %v9697_v16 }
 0x27d   :  { %7879 = vmatpush1.bf16.msra.mxu1 %v7878_v18  ;;  %v1222_v11 = vrot.slane %v1217_v62, %v9688_v13  ;;  %v1226_v12 = vrot.slane %v1217_v62, %v9694_v15 }
 0x27e   :  { %v1126_v29 = vpop.permute.xlu0 %1125  ;;  %v1086_v22 = vpop.permute.xlu1 %1085  ;;  %v7864_v30 = vpack.c.bf16 %v1114_v23, %v1072_v7  ;;  %v7866_v19 = vpack.c.bf16 %v1113_v21, %v1071_v4 }
 0x27f   :  { %v1087_v32 = vsel %vm423_vm6, %v1084_v49, %v1086_v22  ;;  %v1090_v33 = vsel %vm423_vm6, %v1086_v22, %v1080_v31  ;;  %v1138_v31 = vrot.slane %v1133_v43, %v9688_v13 }
 0x280   :  { %v1115_v34 = vmul.f32 %v1104_v17, %v1087_v32  ;;  %v1116_v35 = vmul.f32 %v1108_v27, %v1090_v33  ;;  %7865 = vmatprep.subr.bf16.mxu0 %v7864_v30 }
 0x281   :  { %7867 = vmatpush1.bf16.msra.mxu0 %v7866_v19 }
 0x282   :  { %v1164_v38 = vpop.permute.xlu0 %1163  ;;  %v1124_v39 = vpop.permute.xlu1 %1123  ;;  %v7880_v40 = vpack.c.bf16 %v1116_v35, %v1074_v36  ;;  %v7882_v42 = vpack.c.bf16 %v1115_v34, %v1073_v37  ;;  %v1230_v34 = vrot.slane %v1217_v62, %v9691_v14  ;;  %v1234_v35 = vrot.slane %v1217_v62, %v9697_v16  ;;  %v1283_v36 = vld [vmem:[%s13080_s4] sm:$0xff] }
 0x283   :  { %v1130_v20 = vsel %vm495_vm7, %v1124_v39, %v1126_v29  ;;  %v1131_v49 = vsel %vm495_vm7, %v1122_v1, %v1124_v39 }
 0x284   :  { %7881 = vmatprep.subr.bf16.mxu1 %v7880_v40  ;;  %v1155_v41 = vmul.f32 %v1138_v31, %v1131_v49  ;;  %v1156_v59 = vmul.f32 %v1142_v47, %v1130_v20 }
 0x285   :  { %7883 = vmatpush1.bf16.msra.mxu1 %v7882_v42 }
 0x286   :  { %v1168_v45 = vpop.permute.xlu0 %1167  ;;  %v1128_v46 = vpop.permute.xlu1 %1127 }
 0x287   :  { %v1129_v63 = vsel %vm495_vm7, %v1126_v29, %v1128_v46  ;;  %v1132_v0 = vsel %vm495_vm7, %v1128_v46, %v1122_v1 }
 0x288   :  { %v1157_v17 = vmul.f32 %v1146_v50, %v1129_v63  ;;  %v1158_v18 = vmul.f32 %v1150_v51, %v1132_v0 }
 0x28a   :  { %v1166_v52 = vpop.permute.xlu1 %1165  ;;  %v1206_v60 = vpop.permute.xlu0 %1205 }
 0x28b   :  { %v1172_v53 = vsel %vm567_vm8, %v1166_v52, %v1168_v45  ;;  %v1173_v55 = vsel %vm567_vm8, %v1164_v38, %v1166_v52 }
 0x28c   :  { %v1197_v61 = vmul.f32 %v1180_v48, %v1173_v55  ;;  %v1198_v56 = vmul.f32 %v1184_v26, %v1172_v53  ;;  %v1843_v53 = vld [vmem:[%s13083_s7] sm:$0xff] }
 0x28e   :  { %v1170_v3 = vpop.permute.xlu1 %1169  ;;  %v7868_v5 = vpack.c.bf16 %v1198_v56, %v1156_v59  ;;  %v7870_v6 = vpack.c.bf16 %v1197_v61, %v1155_v41  ;;  %v1210_v1 = vpop.permute.xlu0 %1209  ;;  %v1494_v59 = vld [vmem:[#allocation6 + $0x1] ss:$8 sm:$0xf] }
 0x28f   :  { %v1171_v7 = vsel %vm567_vm8, %v1168_v45, %v1170_v3  ;;  %v1174_v4 = vsel %vm567_vm8, %v1170_v3, %v1164_v38  ;;  %v1503_v56 = vrot.slane %v1494_v59, %v9694_v15 }
 0x290   :  { %v1199_v21 = vmul.f32 %v1188_v57, %v1171_v7  ;;  %v1200_v23 = vmul.f32 %v1192_v58, %v1174_v4  ;;  %7869 = vmatprep.subr.bf16.mxu0 %v7868_v5  ;;  %v1452_v58 = vld [vmem:[#allocation6] ss:$8 sm:$0xf]  ;;  %v1507_v7 = vrot.slane %v1494_v59, %v9691_v14 }
 0x291   :  { %7871 = vmatpush1.bf16.msra.mxu0 %v7870_v6  ;;  %v1461_v61 = vrot.slane %v1452_v58, %v9694_v15  ;;  %v1457_v3 = vrot.slane %v1452_v58, %v9688_v13  ;;  %v1469_v5 = vrot.slane %v1452_v58, %v9697_v16 }
 0x292   :  { %v1208_v27 = vpop.permute.xlu1 %1207  ;;  %v7884_v29 = vpack.c.bf16 %v1200_v23, %v1158_v18  ;;  %v7886_v22 = vpack.c.bf16 %v1199_v21, %v1157_v17  ;;  %v1511_v17 = vrot.slane %v1494_v59, %v9697_v16  ;;  %v1465_v18 = vrot.slane %v1452_v58, %v9691_v14 }
 0x293   :  { %v1214_v30 = vsel %vm639_vm9, %v1208_v27, %v1210_v1  ;;  %v1215_v19 = vsel %vm639_vm9, %v1206_v60, %v1208_v27 }
 0x294   :  { %v1239_v32 = vmul.f32 %v1222_v11, %v1215_v19  ;;  %v1240_v33 = vmul.f32 %v1226_v12, %v1214_v30  ;;  %7885 = vmatprep.subr.bf16.mxu1 %v7884_v29  ;;  %v1499_v12 = vrot.slane %v1494_v59, %v9688_v13 }
 0x295   :  { %7887 = vmatpush1.bf16.msra.mxu1 %v7886_v22 }
 0x296   :  { %v1212_v37 = vpop.permute.xlu1 %1211  ;;  %1310 = vmatprep.subr.mxu0 %v1240_v33 }
 0x297   :  { %v1213_v38 = vsel %vm639_vm9, %v1210_v1, %v1212_v37  ;;  %v1216_v39 = vsel %vm639_vm9, %v1212_v37, %v1206_v60  ;;  %1311 = vmatpush1.msra.mxu0 %v1239_v32 }
 0x298   :  { %v1241_v40 = vmul.f32 %v1230_v34, %v1213_v38  ;;  %v1242_v42 = vmul.f32 %v1234_v35, %v1216_v39  ;;  %7826 = vmatmul.mubr.msk.f32.vlgmr.msra.gmra.mrb[2].mxu0 %vm1290_vm14, %v1283_v36 }
 0x299   :  { %1916 = vmatprep.mubr.f32.mxu0 %v13089_v25 }
 0x29a   :  { %1381 = vmatprep.subr.mxu1 %v1242_v42 }
 0x29b   :  { %1382 = vmatpush1.msra.mxu1 %v1241_v40 }
 0x29c   :  { %7827 = vmatmul.mubr.msk.f32.vlgmr.msra.gmra.mrb[2].mxu1 %vm1290_vm14, %v1283_v36 }
 0x29d   :  { %1987 = vmatprep.mubr.f32.mxu1 %v13089_v25 }
 0x29f   :  { %v1288_v43 = vpop.permute.xlu0 %1287 }
 0x36b   :  { %v1360_v44 = vpop.f32.mrb[2].mxu0 }
 0x36c   :  { %v1361_v45 = vadd.f32 %v1360_v44, %v1288_v43  ;;  %v1362_v46 = vpop.f32.mrb[3].mxu0 }
 0x36d   :  { %v1363_v31 = vadd.f32 %v1362_v46, %v1288_v43 }
 0x36e   :  { %v10099_v47 = vmax.f32 %v1361_v45, 0.0  ;;  %v1536_v45 = vld [vmem:[#allocation6 + $0x2] ss:$8 sm:$0xf] }
 0x36f   :  { %v10101_v48 = vmax.f32 %v1363_v31, 0.0  ;;  %v1431_v26 = vpop.f32.mrb[2].mxu1  ;;  %v1578_v31 = vld [vmem:[#allocation6 + $0x3] ss:$8 sm:$0xf]  ;;  %v1553_v58 = vrot.slane %v1536_v45, %v9697_v16 }
 0x370   :  { %v1432_v20 = vadd.f32 %v1431_v26, %v1288_v43  ;;  %v1433_v49 = vpop.f32.mrb[3].mxu1  ;;  %1440 = vrot.lane.b32.xlu1 %v10099_v47, %s9552_s0  ;;  %v1591_v59 = vrot.slane %v1578_v31, %v9691_v14 }
 0x371   :  { %v1434_v50 = vadd.f32 %v1433_v49, %v1288_v43  ;;  %1442 = vrot.lane.b32.xlu0 %v10101_v48, %s9552_s0  ;;  %v1587_v49 = vrot.slane %v1578_v31, %v9694_v15 }
 0x372   :  { %v10107_v51 = vmax.f32 %v1432_v20, 0.0  ;;  %v1545_v20 = vrot.slane %v1536_v45, %v9694_v15 }
 0x373   :  { %v10109_v52 = vmax.f32 %v1434_v50, 0.0 }
 0x374   :  { %1444 = vrot.lane.b32.xlu1 %v10107_v51, %s9552_s0 }
 0x375   :  { %1446 = vrot.lane.b32.xlu0 %v10109_v52, %s9552_s0 }
 0x378   :  { %1482 = vrot.lane.b32.xlu1 %v10099_v47, %s9550_s24 }
 0x379   :  { %1484 = vrot.lane.b32.xlu0 %v10101_v48, %s9550_s24 }
 0x37c   :  { %1486 = vrot.lane.b32.xlu1 %v10107_v51, %s9550_s24 }
 0x37d   :  { %1488 = vrot.lane.b32.xlu0 %v10109_v52, %s9550_s24 }
 0x380   :  { %1524 = vrot.lane.b32.xlu1 %v10099_v47, %s9553_s10 }
 0x381   :  { %1526 = vrot.lane.b32.xlu0 %v10101_v48, %s9553_s10 }
 0x384   :  { %1528 = vrot.lane.b32.xlu1 %v10107_v51, %s9553_s10 }
 0x385   :  { %1530 = vrot.lane.b32.xlu0 %v10109_v52, %s9553_s10 }
 0x388   :  { %1566 = vrot.lane.b32.xlu1 %v10099_v47, %s9554_s14 }
 0x389   :  { %1568 = vrot.lane.b32.xlu0 %v10101_v48, %s9554_s14 }
 0x38c   :  { %1570 = vrot.lane.b32.xlu1 %v10107_v51, %s9554_s14 }
 0x38d   :  { %1572 = vrot.lane.b32.xlu0 %v10109_v52, %s9554_s14 }
 0x390   :  { %1638 = vrot.lane.b32.xlu1 %v10099_v47, %s9555_s15 }
 0x391   :  { %1640 = vrot.lane.b32.xlu0 %v10101_v48, %s9555_s15 }
 0x394   :  { %1642 = vrot.lane.b32.xlu1 %v10107_v51, %s9555_s15 }
 0x395   :  { %1644 = vrot.lane.b32.xlu0 %v10109_v52, %s9555_s15 }
 0x398   :  { %1680 = vrot.lane.b32.xlu1 %v10099_v47, %s9556_s16 }
 0x399   :  { %1682 = vrot.lane.b32.xlu0 %v10101_v48, %s9556_s16 }
 0x39c   :  { %1684 = vrot.lane.b32.xlu1 %v10107_v51, %s9556_s16 }
 0x39d   :  { %1686 = vrot.lane.b32.xlu0 %v10109_v52, %s9556_s16 }
 0x3a0   :  { %1722 = vrot.lane.b32.xlu1 %v10099_v47, %s9557_s17 }
 0x3a1   :  { %1724 = vrot.lane.b32.xlu0 %v10101_v48, %s9557_s17 }
 0x3a4   :  { %1726 = vrot.lane.b32.xlu1 %v10107_v51, %s9557_s17 }
 0x3a5   :  { %1728 = vrot.lane.b32.xlu0 %v10109_v52, %s9557_s17 }
 0x3a8   :  { %1764 = vrot.lane.b32.xlu1 %v10099_v47, %s9558_s18 }
 0x3a9   :  { %1766 = vrot.lane.b32.xlu0 %v10101_v48, %s9558_s18 }
 0x3ac   :  { %1768 = vrot.lane.b32.xlu1 %v10107_v51, %s9558_s18 }
 0x3ad   :  { %1770 = vrot.lane.b32.xlu0 %v10109_v52, %s9558_s18 }
 0x3b0   :  { %1846 = vperm.xlu1 %9364, %v1843_v53  }
 0x3e2   :  { %v1441_v55 = vpop.permute.xlu1 %1440 }
 0x3e3   :  { %v1443_v57 = vpop.permute.xlu0 %1442 }
 0x3e4   :  { %v1450_v62 = vsel %vm129_vm2, %v1441_v55, %v1443_v57 }
 0x3e5   :  { %v1475_v4 = vmul.f32 %v1461_v61, %v1450_v62  ;;  %v1595_v62 = vrot.slane %v1578_v31, %v9697_v16 }
 0x3e6   :  { %v1445_v41 = vpop.permute.xlu1 %1444 }
 0x3e7   :  { %v1447_v60 = vpop.permute.xlu0 %1446  ;;  %v1449_v27 = vsel %vm129_vm2, %v1443_v57, %v1445_v41  ;;  %v1541_v57 = vrot.slane %v1536_v45, %v9688_v13 }
 0x3e8   :  { %v1448_v21 = vsel %vm129_vm2, %v1445_v41, %v1447_v60  ;;  %v1451_v23 = vsel %vm129_vm2, %v1447_v60, %v1441_v55  ;;  %v1476_v38 = vmul.f32 %v1465_v18, %v1449_v27 }
 0x3e9   :  { %v1474_v34 = vmul.f32 %v1457_v3, %v1451_v23  ;;  %v1477_v35 = vmul.f32 %v1469_v5, %v1448_v21  ;;  %v1650_v23 = vld [vmem:[#allocation6 + $0x5] ss:$8 sm:$0xf] }
 0x3ea   :  { %v1483_v63 = vpop.permute.xlu1 %1482 }
 0x3eb   :  { %v1485_v0 = vpop.permute.xlu0 %1484 }
 0x3ec   :  { %v1492_v6 = vsel %vm201_vm3, %v1483_v63, %v1485_v0 }
 0x3ed   :  { %v1517_v11 = vmul.f32 %v1503_v56, %v1492_v6  ;;  %v1583_v56 = vrot.slane %v1578_v31, %v9688_v13  ;;  %v1608_v6 = vld [vmem:[#allocation6 + $0x4] ss:$8 sm:$0xf] }
 0x3ee   :  { %v1487_v1 = vpop.permute.xlu1 %1486 }
 0x3ef   :  { %v1491_v29 = vsel %vm201_vm3, %v1485_v0, %v1487_v1  ;;  %v1489_v22 = vpop.permute.xlu0 %1488  ;;  %v7888_v30 = vpack.c.bf16 %v1517_v11, %v1475_v4 }
 0x3f0   :  { %v1518_v19 = vmul.f32 %v1507_v7, %v1491_v29  ;;  %v1490_v32 = vsel %vm201_vm3, %v1487_v1, %v1489_v22  ;;  %v1493_v33 = vsel %vm201_vm3, %v1489_v22, %v1483_v63  ;;  %v1549_v63 = vrot.slane %v1536_v45, %v9691_v14 }
 0x3f1   :  { %v1516_v36 = vmul.f32 %v1499_v12, %v1493_v33  ;;  %v1519_v37 = vmul.f32 %v1511_v17, %v1490_v32  ;;  %7889 = vmatprep.subr.bf16.mxu0 %v7888_v30  ;;  %v1613_v30 = vrot.slane %v1608_v6, %v9688_v13  ;;  %v1617_v33 = vrot.slane %v1608_v6, %v9694_v15 }
 0x3f2   :  { %v1525_v39 = vpop.permute.xlu1 %1524  ;;  %v7906_v44 = vpack.c.bf16 %v1518_v19, %v1476_v38  ;;  %v1621_v38 = vrot.slane %v1608_v6, %v9691_v14  ;;  %v1667_v45 = vrot.slane %v1650_v23, %v9697_v16 }
 0x3f3   :  { %v1527_v40 = vpop.permute.xlu0 %1526  ;;  %v7890_v42 = vpack.c.bf16 %v1516_v36, %v1474_v34  ;;  %v7904_v43 = vpack.c.bf16 %v1519_v37, %v1477_v35  ;;  %v1655_v34 = vrot.slane %v1650_v23, %v9688_v13  ;;  %v1630_v31 = vmul.f32 %v1613_v30, %v10099_v47 }
 0x3f4   :  { %v1534_v50 = vsel %vm273_vm4, %v1525_v39, %v1527_v40 }
 0x3f5   :  { %7891 = vmatpush1.bf16.msra.mxu0 %v7890_v42  ;;  %7905 = vmatprep.subr.bf16.mxu1 %v7904_v43  ;;  %v1559_v60 = vmul.f32 %v1545_v20, %v1534_v50  ;;  %v1625_v43 = vrot.slane %v1608_v6, %v9697_v16  ;;  %v1631_v50 = vmul.f32 %v1617_v33, %v10101_v48  ;;  %v1734_v6 = vld [vmem:[#allocation6 + $0x7] ss:$8 sm:$0xf] }
 0x3f6   :  { %v1529_v46 = vpop.permute.xlu1 %1528  ;;  %7907 = vmatpush1.bf16.msra.mxu1 %v7906_v44  ;;  %v1663_v44 = vrot.slane %v1650_v23, %v9691_v14 }
 0x3f7   :  { %v1531_v26 = vpop.permute.xlu0 %1530  ;;  %v1533_v7 = vsel %vm273_vm4, %v1527_v40, %v1529_v46  ;;  %v1659_v40 = vrot.slane %v1650_v23, %v9694_v15 }
 0x3f8   :  { %v1532_v0 = vsel %vm273_vm4, %v1529_v46, %v1531_v26  ;;  %v1535_v3 = vsel %vm273_vm4, %v1531_v26, %v1525_v39  ;;  %v1560_v19 = vmul.f32 %v1549_v63, %v1533_v7 }
 0x3f9   :  { %v1558_v1 = vmul.f32 %v1541_v57, %v1535_v3  ;;  %v1561_v27 = vmul.f32 %v1553_v58, %v1532_v0  ;;  %v1632_v58 = vmul.f32 %v1621_v38, %v10107_v51 }
 0x3fa   :  { %v1567_v53 = vpop.permute.xlu1 %1566 }
 0x3fb   :  { %v1569_v55 = vpop.permute.xlu0 %1568 }
 0x3fc   :  { %v1576_v41 = vsel %vm345_vm5, %v1567_v53, %v1569_v55 }
 0x3fd   :  { %v1601_v61 = vmul.f32 %v1587_v49, %v1576_v41  ;;  %v1633_v41 = vmul.f32 %v1625_v43, %v10109_v52 }
 0x3fe   :  { %v1571_v5 = vpop.permute.xlu1 %1570 }
 0x3ff   :  { %v1575_v4 = vsel %vm345_vm5, %v1569_v55, %v1571_v5  ;;  %v1573_v11 = vpop.permute.xlu0 %1572  ;;  %v7892_v12 = vpack.c.bf16 %v1601_v61, %v1559_v60 }
 0x400   :  { %v1602_v17 = vmul.f32 %v1591_v59, %v1575_v4  ;;  %v1574_v18 = vsel %vm345_vm5, %v1571_v5, %v1573_v11  ;;  %v1577_v21 = vsel %vm345_vm5, %v1573_v11, %v1567_v53  ;;  %v1692_v5 = vld [vmem:[#allocation6 + $0x6] ss:$8 sm:$0xf]  ;;  %v1739_v4 = vrot.slane %v1734_v6, %v9688_v13 }
 0x401   :  { %v1600_v29 = vmul.f32 %v1583_v56, %v1577_v21  ;;  %v1603_v22 = vmul.f32 %v1595_v62, %v1574_v18  ;;  %7893 = vmatprep.subr.bf16.mxu0 %v7892_v12  ;;  %v1697_v51 = vrot.slane %v1692_v5, %v9688_v13  ;;  %v1701_v52 = vrot.slane %v1692_v5, %v9694_v15 }
 0x402   :  { %v1639_v32 = vpop.permute.xlu1 %1638  ;;  %v7910_v42 = vpack.c.bf16 %v1602_v17, %v1560_v19  ;;  %v1705_v17 = vrot.slane %v1692_v5, %v9691_v14  ;;  %v1743_v21 = vrot.slane %v1734_v6, %v9694_v15 }
 0x403   :  { %v1641_v35 = vpop.permute.xlu0 %1640  ;;  %v7894_v36 = vpack.c.bf16 %v1600_v29, %v1558_v1  ;;  %v7908_v37 = vpack.c.bf16 %v1603_v22, %v1561_v27  ;;  %v1709_v1 = vrot.slane %v1692_v5, %v9697_v16  ;;  %v1747_v27 = vrot.slane %v1734_v6, %v9691_v14 }
 0x404   :  { %v1648_v39 = vsel %vm423_vm6, %v1639_v32, %v1641_v35  ;;  %v1751_v29 = vrot.slane %v1734_v6, %v9697_v16 }
 0x405   :  { %7895 = vmatpush1.bf16.msra.mxu0 %v7894_v36  ;;  %7909 = vmatprep.subr.bf16.mxu1 %v7908_v37  ;;  %v1672_v26 = vmul.f32 %v1655_v34, %v1648_v39 }
 0x406   :  { %v1643_v46 = vpop.permute.xlu1 %1642  ;;  %7911 = vmatpush1.bf16.msra.mxu1 %v7910_v42 }
 0x407   :  { %v1647_v20 = vsel %vm423_vm6, %v1641_v35, %v1643_v46  ;;  %v1645_v49 = vpop.permute.xlu0 %1644  ;;  %v7898_v62 = vpack.c.bf16 %v1672_v26, %v1630_v31 }
 0x408   :  { %v1673_v53 = vmul.f32 %v1659_v40, %v1647_v20  ;;  %v1646_v55 = vsel %vm423_vm6, %v1643_v46, %v1645_v49  ;;  %v1649_v57 = vsel %vm423_vm6, %v1645_v49, %v1639_v32  ;;  %v1776_v46 = vld [vmem:[#allocation6 + $0x20] ss:$8 sm:$0xf] }
 0x409   :  { %v1674_v59 = vmul.f32 %v1663_v44, %v1646_v55  ;;  %v1675_v47 = vmul.f32 %v1667_v45, %v1649_v57  ;;  %v1781_v55 = vrot.slane %v1776_v46, %v9688_v13  ;;  %v1789_v57 = vrot.slane %v1776_v46, %v9691_v14 }
 0x40a   :  { %v1681_v60 = vpop.permute.xlu1 %1680  ;;  %v7896_v61 = vpack.c.bf16 %v1673_v53, %v1631_v50  ;;  %v1785_v53 = vrot.slane %v1776_v46, %v9694_v15 }
 0x40b   :  { %v1683_v56 = vpop.permute.xlu0 %1682  ;;  %v7912_v63 = vpack.c.bf16 %v1675_v47, %v1633_v41  ;;  %v7914_v0 = vpack.c.bf16 %v1674_v59, %v1632_v58  ;;  %v1793_v58 = vrot.slane %v1776_v46, %v9697_v16 }
 0x40c   :  { %7897 = vmatprep.subr.bf16.mxu0 %v7896_v61  ;;  %v1690_v12 = vsel %vm495_vm7, %v1681_v60, %v1683_v56 }
 0x40d   :  { %7899 = vmatpush1.bf16.msra.mxu0 %v7898_v62  ;;  %7913 = vmatprep.subr.bf16.mxu1 %v7912_v63  ;;  %v1714_v32 = vmul.f32 %v1697_v51, %v1690_v12 }
 0x40e   :  { %v1685_v48 = vpop.permute.xlu1 %1684  ;;  %7915 = vmatpush1.bf16.msra.mxu1 %v7914_v0 }
 0x40f   :  { %v1687_v3 = vpop.permute.xlu0 %1686  ;;  %v1689_v23 = vsel %vm495_vm7, %v1683_v56, %v1685_v48 }
 0x410   :  { %v1688_v22 = vsel %vm495_vm7, %v1685_v48, %v1687_v3  ;;  %v1691_v30 = vsel %vm495_vm7, %v1687_v3, %v1681_v60  ;;  %v1715_v36 = vmul.f32 %v1701_v52, %v1689_v23  ;;  %v1842_v3 = vld [vmem:[%s13082_s6] sm:$0xff] }
 0x411   :  { %v1716_v40 = vmul.f32 %v1705_v17, %v1688_v22  ;;  %v1717_v42 = vmul.f32 %v1709_v1, %v1691_v30 }
 0x412   :  { %v1723_v7 = vpop.permute.xlu1 %1722 }
 0x413   :  { %v1725_v11 = vpop.permute.xlu0 %1724 }
 0x414   :  { %v1732_v18 = vsel %vm567_vm8, %v1723_v7, %v1725_v11 }
 0x415   :  { %v1756_v33 = vmul.f32 %v1739_v4, %v1732_v18  ;;  %v2397_v18 = vld [vmem:[#allocation5] sm:$0x1] }
 0x416   :  { %v1727_v19 = vpop.permute.xlu1 %1726 }
 0x417   :  { %v1731_v34 = vsel %vm567_vm8, %v1725_v11, %v1727_v19  ;;  %v1729_v35 = vpop.permute.xlu0 %1728  ;;  %v7902_v20 = vpack.c.bf16 %v1756_v33, %v1714_v32 }
 0x418   :  { %v1757_v37 = vmul.f32 %v1743_v21, %v1731_v34  ;;  %v1730_v38 = vsel %vm567_vm8, %v1727_v19, %v1729_v35  ;;  %v1733_v39 = vsel %vm567_vm8, %v1729_v35, %v1723_v7  ;;  %v2006_v21 = vld [vmem:[#allocation6] ss:$8 sm:$0xf]  ;;  %v2048_v34 = vld [vmem:[#allocation6 + $0x1] ss:$8 sm:$0xf] }
 0x419   :  { %v1758_v43 = vmul.f32 %v1747_v27, %v1730_v38  ;;  %v1759_v44 = vmul.f32 %v1751_v29, %v1733_v39  ;;  %v2015_v23 = vrot.slane %v2006_v21, %v9694_v15  ;;  %v2019_v22 = vrot.slane %v2006_v21, %v9691_v14 }
 0x41a   :  { %v1765_v45 = vpop.permute.xlu1 %1764  ;;  %v7900_v31 = vpack.c.bf16 %v1757_v37, %v1715_v36  ;;  %v2011_v19 = vrot.slane %v2006_v21, %v9688_v13  ;;  %v2023_v32 = vrot.slane %v2006_v21, %v9697_v16 }
 0x41b   :  { %v1767_v26 = vpop.permute.xlu0 %1766  ;;  %v7916_v49 = vpack.c.bf16 %v1759_v44, %v1717_v42  ;;  %v7918_v50 = vpack.c.bf16 %v1758_v43, %v1716_v40  ;;  %v2057_v43 = vrot.slane %v2048_v34, %v9694_v15 }
 0x41c   :  { %7901 = vmatprep.subr.bf16.mxu0 %v7900_v31  ;;  %v1774_v41 = vsel %vm639_vm9, %v1765_v45, %v1767_v26  ;;  %v2061_v31 = vrot.slane %v2048_v34, %v9691_v14 }
 0x41d   :  { %7903 = vmatpush1.bf16.msra.mxu0 %v7902_v20  ;;  %7917 = vmatprep.subr.bf16.mxu1 %v7916_v49  ;;  %v1798_v63 = vmul.f32 %v1781_v55, %v1774_v41  ;;  %v2053_v20 = vrot.slane %v2048_v34, %v9688_v13  ;;  %v2065_v49 = vrot.slane %v2048_v34, %v9697_v16 }
 0x41e   :  { %v1769_v59 = vpop.permute.xlu1 %1768  ;;  %7919 = vmatpush1.bf16.msra.mxu1 %v7918_v50 }
 0x41f   :  { %v1773_v47 = vsel %vm639_vm9, %v1767_v26, %v1769_v59  ;;  %v1771_v60 = vpop.permute.xlu0 %1770 }
 0x420   :  { %v1799_v61 = vmul.f32 %v1785_v53, %v1773_v47  ;;  %v1772_v56 = vsel %vm639_vm9, %v1769_v59, %v1771_v60  ;;  %v1775_v62 = vsel %vm639_vm9, %v1771_v60, %v1765_v45 }
 0x421   :  { %v1800_v0 = vmul.f32 %v1789_v57, %v1772_v56  ;;  %v1801_v48 = vmul.f32 %v1793_v58, %v1775_v62 }
 0x422   :  { %1868 = vmatprep.subr.mxu0 %v1799_v61 }
 0x423   :  { %1869 = vmatpush1.msra.mxu0 %v1798_v63  ;;  %1939 = vmatprep.subr.mxu1 %v1801_v48  ;;  %v2090_v48 = vld [vmem:[#allocation6 + $0x2] ss:$8 sm:$0xf] }
 0x424   :  { %7828 = vmatmul.mubr.msk.f32.vlgmr.msra.gmra.mrb[4].mxu0 %vm1290_vm14, %v1842_v3  ;;  %1940 = vmatpush1.msra.mxu1 %v1800_v0 }
 0x425   :  { %7829 = vmatmul.mubr.msk.f32.vlgmr.msra.gmra.mrb[4].mxu1 %vm1290_vm14, %v1842_v3  ;;  %2474 = vmatprep.mubr.f32.mxu0 %v13089_v25 }
 0x426   :  { %2545 = vmatprep.mubr.f32.mxu1 %v13089_v25 }
 0x42f   :  { %v1847_v5 = vpop.permute.xlu1 %1846 }
 0x4f7   :  { %v1918_v6 = vpop.f32.mrb[4].mxu0 }
 0x4f8   :  { %v10285_v7 = vadd.f32 %v1918_v6, %v1847_v5  ;;  %v1920_v51 = vpop.f32.mrb[5].mxu0  ;;  %v1989_v52 = vpop.f32.mrb[4].mxu1 }
 0x4f9   :  { %v10287_v4 = vadd.f32 %v1920_v51, %v1847_v5  ;;  %v1991_v11 = vpop.f32.mrb[5].mxu1  ;;  %v10293_v12 = vadd.f32 %v1989_v52, %v1847_v5  ;;  %v2099_v51 = vrot.slane %v2090_v48, %v9694_v15 }
 0x4fa   :  { %1994 = vrot.lane.b32.xlu0 %v10285_v7, %s9552_s0  ;;  %v10295_v17 = vadd.f32 %v1991_v11, %v1847_v5  ;;  %v2132_v5 = vld [vmem:[#allocation6 + $0x3] ss:$8 sm:$0xf] }
 0x4fb   :  { %1996 = vrot.lane.b32.xlu1 %v10287_v4, %s9552_s0  ;;  %v2141_v52 = vrot.slane %v2132_v5, %v9694_v15 }
 0x4fe   :  { %1998 = vrot.lane.b32.xlu0 %v10293_v12, %s9552_s0 }
 0x4ff   :  { %2000 = vrot.lane.b32.xlu1 %v10295_v17, %s9552_s0 }
 0x502   :  { %2036 = vrot.lane.b32.xlu0 %v10285_v7, %s9550_s24 }
 0x503   :  { %2038 = vrot.lane.b32.xlu1 %v10287_v4, %s9550_s24 }
 0x506   :  { %2040 = vrot.lane.b32.xlu0 %v10293_v12, %s9550_s24 }
 0x507   :  { %2042 = vrot.lane.b32.xlu1 %v10295_v17, %s9550_s24 }
 0x50a   :  { %2078 = vrot.lane.b32.xlu0 %v10285_v7, %s9553_s10 }
 0x50b   :  { %2080 = vrot.lane.b32.xlu1 %v10287_v4, %s9553_s10 }
 0x50e   :  { %2082 = vrot.lane.b32.xlu0 %v10293_v12, %s9553_s10 }
 0x50f   :  { %2084 = vrot.lane.b32.xlu1 %v10295_v17, %s9553_s10 }
 0x512   :  { %2120 = vrot.lane.b32.xlu0 %v10285_v7, %s9554_s14 }
 0x513   :  { %2122 = vrot.lane.b32.xlu1 %v10287_v4, %s9554_s14 }
 0x516   :  { %2124 = vrot.lane.b32.xlu0 %v10293_v12, %s9554_s14 }
 0x517   :  { %2126 = vrot.lane.b32.xlu1 %v10295_v17, %s9554_s14 }
 0x51a   :  { %2192 = vrot.lane.b32.xlu0 %v10285_v7, %s9555_s15 }
 0x51b   :  { %2194 = vrot.lane.b32.xlu1 %v10287_v4, %s9555_s15 }
 0x51e   :  { %2196 = vrot.lane.b32.xlu0 %v10293_v12, %s9555_s15 }
 0x51f   :  { %2198 = vrot.lane.b32.xlu1 %v10295_v17, %s9555_s15 }
 0x522   :  { %2234 = vrot.lane.b32.xlu0 %v10285_v7, %s9556_s16 }
 0x523   :  { %2236 = vrot.lane.b32.xlu1 %v10287_v4, %s9556_s16 }
 0x526   :  { %2238 = vrot.lane.b32.xlu0 %v10293_v12, %s9556_s16 }
 0x527   :  { %2240 = vrot.lane.b32.xlu1 %v10295_v17, %s9556_s16 }
 0x52a   :  { %2276 = vrot.lane.b32.xlu0 %v10285_v7, %s9557_s17 }
 0x52b   :  { %2278 = vrot.lane.b32.xlu1 %v10287_v4, %s9557_s17 }
 0x52e   :  { %2280 = vrot.lane.b32.xlu0 %v10293_v12, %s9557_s17 }
 0x52f   :  { %2282 = vrot.lane.b32.xlu1 %v10295_v17, %s9557_s17 }
 0x532   :  { %2318 = vrot.lane.b32.xlu0 %v10285_v7, %s9558_s18 }
 0x533   :  { %2320 = vrot.lane.b32.xlu1 %v10287_v4, %s9558_s18 }
 0x536   :  { %2322 = vrot.lane.b32.xlu0 %v10293_v12, %s9558_s18 }
 0x537   :  { %2324 = vrot.lane.b32.xlu1 %v10295_v17, %s9558_s18 }
 0x53a   :  { %2400 = vperm.xlu0 %9363, %v2397_v18  }
 0x56c   :  { %v1995_v1 = vpop.permute.xlu0 %1994 }
 0x56d   :  { %v1997_v27 = vpop.permute.xlu1 %1996 }
 0x56e   :  { %v2004_v29 = vsel %vm129_vm2, %v1995_v1, %v1997_v27 }
 0x56f   :  { %v2029_v30 = vmul.f32 %v2015_v23, %v2004_v29  ;;  %v2095_v23 = vrot.slane %v2090_v48, %v9688_v13  ;;  %v2145_v29 = vrot.slane %v2132_v5, %v9691_v14 }
 0x570   :  { %v1999_v33 = vpop.permute.xlu0 %1998 }
 0x571   :  { %2033 = vst [vmem:[#allocation2 + $0x8] sm:$0xff] %v2029_v30  ;;  %v2003_v35 = vsel %vm129_vm2, %v1997_v27, %v1999_v33  ;;  %v2001_v36 = vpop.permute.xlu1 %2000 }
 0x572   :  { %v2030_v37 = vmul.f32 %v2019_v22, %v2003_v35  ;;  %v2002_v38 = vsel %vm129_vm2, %v1999_v33, %v2001_v36  ;;  %v2005_v39 = vsel %vm129_vm2, %v2001_v36, %v1995_v1  ;;  %v2107_v1 = vrot.slane %v2090_v48, %v9697_v16 }
 0x573   :  { %v2028_v40 = vmul.f32 %v2011_v19, %v2005_v39  ;;  %v2031_v42 = vmul.f32 %v2023_v32, %v2002_v38  ;;  %v2137_v19 = vrot.slane %v2132_v5, %v9688_v13  ;;  %v2149_v32 = vrot.slane %v2132_v5, %v9697_v16 }
 0x574   :  { %2034 = vst [vmem:[#allocation2 + $0x10] sm:$0xff] %v2030_v37  ;;  %v2037_v44 = vpop.permute.xlu0 %2036  ;;  %v2103_v33 = vrot.slane %v2090_v48, %v9691_v14 }
 0x575   :  { %2032 = vst [vmem:[#allocation2] sm:$0xff] %v2028_v40  ;;  %2035 = vst [vmem:[#allocation2 + $0x18] sm:$0xff] %v2031_v42  ;;  %v2039_v45 = vpop.permute.xlu1 %2038 }
 0x576   :  { %v2046_v46 = vsel %vm201_vm3, %v2037_v44, %v2039_v45 }
 0x577   :  { %v2071_v26 = vmul.f32 %v2057_v43, %v2046_v46  ;;  %v2204_v46 = vld [vmem:[#allocation6 + $0x5] ss:$8 sm:$0xf] }
 0x578   :  { %v2041_v50 = vpop.permute.xlu0 %2040  ;;  %v2221_v48 = vrot.slane %v2204_v46, %v9697_v16 }
 0x579   :  { %2075 = vst [vmem:[#allocation2 + $0x28] sm:$0xff] %v2071_v26  ;;  %v2045_v53 = vsel %vm201_vm3, %v2039_v45, %v2041_v50  ;;  %v2043_v55 = vpop.permute.xlu1 %2042  ;;  %v7920_v57 = vpack.c.bf16 %v2071_v26, %v2029_v30 }
 0x57a   :  { %v2072_v58 = vmul.f32 %v2061_v31, %v2045_v53  ;;  %v2044_v41 = vsel %vm201_vm3, %v2041_v50, %v2043_v55  ;;  %v2047_v59 = vsel %vm201_vm3, %v2043_v55, %v2037_v44 }
 0x57b   :  { %v2070_v47 = vmul.f32 %v2053_v20, %v2047_v59  ;;  %v2073_v60 = vmul.f32 %v2065_v49, %v2044_v41  ;;  %7921 = vmatprep.subr.bf16.mxu0 %v7920_v57 }
 0x57c   :  { %2076 = vst [vmem:[#allocation2 + $0x30] sm:$0xff] %v2072_v58  ;;  %v2079_v61 = vpop.permute.xlu0 %2078  ;;  %v7938_v0 = vpack.c.bf16 %v2072_v58, %v2030_v37  ;;  %v2162_v37 = vld [vmem:[#allocation6 + $0x4] ss:$8 sm:$0xf]  ;;  %v2209_v58 = vrot.slane %v2204_v46, %v9688_v13 }
 0x57d   :  { %2074 = vst [vmem:[#allocation2 + $0x20] sm:$0xff] %v2070_v47  ;;  %2077 = vst [vmem:[#allocation2 + $0x38] sm:$0xff] %v2073_v60  ;;  %v2081_v56 = vpop.permute.xlu1 %2080  ;;  %v7922_v62 = vpack.c.bf16 %v2070_v47, %v2028_v40  ;;  %v7936_v63 = vpack.c.bf16 %v2073_v60, %v2031_v42  ;;  %v2167_v50 = vrot.slane %v2162_v37, %v9688_v13 }
 0x57e   :  { %v2088_v11 = vsel %vm273_vm4, %v2079_v61, %v2081_v56  ;;  %v2171_v57 = vrot.slane %v2162_v37, %v9694_v15  ;;  %v2175_v60 = vrot.slane %v2162_v37, %v9691_v14 }
 0x57f   :  { %7923 = vmatpush1.bf16.msra.mxu0 %v7922_v62  ;;  %7937 = vmatprep.subr.bf16.mxu1 %v7936_v63  ;;  %v2113_v22 = vmul.f32 %v2099_v51, %v2088_v11  ;;  %v2179_v63 = vrot.slane %v2162_v37, %v9697_v16  ;;  %v2184_v5 = vmul.f32 %v2167_v50, %v10285_v7  ;;  %v2288_v37 = vld [vmem:[#allocation6 + $0x7] ss:$8 sm:$0xf] }
 0x580   :  { %v2083_v3 = vpop.permute.xlu0 %2082  ;;  %7939 = vmatpush1.bf16.msra.mxu1 %v7938_v0  ;;  %v2217_v0 = vrot.slane %v2204_v46, %v9691_v14  ;;  %v2185_v11 = vmul.f32 %v2171_v57, %v10287_v4 }
 0x581   :  { %v2085_v6 = vpop.permute.xlu1 %2084  ;;  %v2087_v38 = vsel %vm273_vm4, %v2081_v56, %v2083_v3  ;;  %v2213_v56 = vrot.slane %v2204_v46, %v9694_v15 }
 0x582   :  { %v2086_v34 = vsel %vm273_vm4, %v2083_v3, %v2085_v6  ;;  %v2089_v35 = vsel %vm273_vm4, %v2085_v6, %v2079_v61  ;;  %v2114_v53 = vmul.f32 %v2103_v33, %v2087_v38 }
 0x583   :  { %v2112_v31 = vmul.f32 %v2095_v23, %v2089_v35  ;;  %v2115_v26 = vmul.f32 %v2107_v1, %v2086_v34  ;;  %v2186_v1 = vmul.f32 %v2175_v60, %v10293_v12 }
 0x584   :  { %v2121_v18 = vpop.permute.xlu0 %2120 }
 0x585   :  { %v2123_v21 = vpop.permute.xlu1 %2122 }
 0x586   :  { %v2130_v27 = vsel %vm345_vm5, %v2121_v18, %v2123_v21 }
 0x587   :  { %v2155_v30 = vmul.f32 %v2141_v52, %v2130_v27  ;;  %v2187_v27 = vmul.f32 %v2179_v63, %v10295_v17 }
 0x588   :  { %v2125_v36 = vpop.permute.xlu0 %2124 }
 0x589   :  { %v2129_v39 = vsel %vm345_vm5, %v2123_v21, %v2125_v36  ;;  %v2127_v40 = vpop.permute.xlu1 %2126  ;;  %v7924_v42 = vpack.c.bf16 %v2155_v30, %v2113_v22 }
 0x58a   :  { %v2156_v43 = vmul.f32 %v2145_v29, %v2129_v39  ;;  %v2128_v44 = vsel %vm345_vm5, %v2125_v36, %v2127_v40  ;;  %v2131_v45 = vsel %vm345_vm5, %v2127_v40, %v2121_v18  ;;  %v2246_v36 = vld [vmem:[#allocation6 + $0x6] ss:$8 sm:$0xf]  ;;  %v2293_v39 = vrot.slane %v2288_v37, %v9688_v13 }
 0x58b   :  { %v2154_v20 = vmul.f32 %v2137_v19, %v2131_v45  ;;  %v2157_v49 = vmul.f32 %v2149_v32, %v2128_v44  ;;  %7925 = vmatprep.subr.bf16.mxu0 %v7924_v42  ;;  %v2251_v12 = vrot.slane %v2246_v36, %v9688_v13  ;;  %v2255_v17 = vrot.slane %v2246_v36, %v9694_v15 }
 0x58c   :  { %v2193_v55 = vpop.permute.xlu0 %2192  ;;  %v7942_v62 = vpack.c.bf16 %v2156_v43, %v2114_v53  ;;  %v2259_v43 = vrot.slane %v2246_v36, %v9691_v14  ;;  %v2297_v45 = vrot.slane %v2288_v37, %v9694_v15 }
 0x58d   :  { %v2195_v41 = vpop.permute.xlu1 %2194  ;;  %v7926_v59 = vpack.c.bf16 %v2154_v20, %v2112_v31  ;;  %v7940_v47 = vpack.c.bf16 %v2157_v49, %v2115_v26  ;;  %v2263_v31 = vrot.slane %v2246_v36, %v9697_v16  ;;  %v2301_v26 = vrot.slane %v2288_v37, %v9691_v14  ;;  %v2658_v36 = vld [vmem:[#allocation9 + $0x8] sm:$0xff] }
 0x58e   :  { %v2202_v61 = vsel %vm423_vm6, %v2193_v55, %v2195_v41  ;;  %v2305_v20 = vrot.slane %v2288_v37, %v9697_v16  ;;  %v2660_v37 = vld [vmem:[#allocation9 + $0x18] sm:$0xff] }
 0x58f   :  { %7927 = vmatpush1.bf16.msra.mxu0 %v7926_v59  ;;  %7941 = vmatprep.subr.bf16.mxu1 %v7940_v47  ;;  %v2226_v6 = vmul.f32 %v2209_v58, %v2202_v61 }
 0x590   :  { %v2197_v3 = vpop.permute.xlu0 %2196  ;;  %7943 = vmatpush1.bf16.msra.mxu1 %v7942_v62 }
 0x591   :  { %v2201_v51 = vsel %vm423_vm6, %v2195_v41, %v2197_v3  ;;  %v2199_v52 = vpop.permute.xlu1 %2198  ;;  %v7930_v32 = vpack.c.bf16 %v2226_v6, %v2184_v5 }
 0x592   :  { %v2227_v18 = vmul.f32 %v2213_v56, %v2201_v51  ;;  %v2200_v21 = vsel %vm423_vm6, %v2197_v3, %v2199_v52  ;;  %v2203_v23 = vsel %vm423_vm6, %v2199_v52, %v2193_v55  ;;  %v2330_v3 = vld [vmem:[#allocation6 + $0x20] ss:$8 sm:$0xf] }
 0x593   :  { %v2228_v29 = vmul.f32 %v2217_v0, %v2200_v21  ;;  %v2229_v7 = vmul.f32 %v2221_v48, %v2203_v23  ;;  %v2335_v21 = vrot.slane %v2330_v3, %v9688_v13  ;;  %v2343_v23 = vrot.slane %v2330_v3, %v9691_v14 }
 0x594   :  { %v2235_v22 = vpop.permute.xlu0 %2234  ;;  %v7928_v30 = vpack.c.bf16 %v2227_v18, %v2185_v11  ;;  %v2339_v18 = vrot.slane %v2330_v3, %v9694_v15 }
 0x595   :  { %v2237_v19 = vpop.permute.xlu1 %2236  ;;  %v7944_v33 = vpack.c.bf16 %v2229_v7, %v2187_v27  ;;  %v7946_v34 = vpack.c.bf16 %v2228_v29, %v2186_v1  ;;  %v2347_v1 = vrot.slane %v2330_v3, %v9697_v16 }
 0x596   :  { %7929 = vmatprep.subr.bf16.mxu0 %v7928_v30  ;;  %v2244_v42 = vsel %vm495_vm7, %v2235_v22, %v2237_v19 }
 0x597   :  { %7931 = vmatpush1.bf16.msra.mxu0 %v7930_v32  ;;  %7945 = vmatprep.subr.bf16.mxu1 %v7944_v33  ;;  %v2268_v55 = vmul.f32 %v2251_v12, %v2244_v42  ;;  %v10466_v12 = vpack.c.bf16 %v2660_v37, %v2658_v36  ;;  %v2691_v36 = vld [vmem:[#allocation9 + $0x110] sm:$0xff]  ;;  %v2694_v37 = vld [vmem:[#allocation9 + $0x128] sm:$0xff] }
 0x598   :  { %v2239_v4 = vpop.permute.xlu0 %2238  ;;  %7947 = vmatpush1.bf16.msra.mxu1 %v7946_v34 }
 0x599   :  { %v2241_v35 = vpop.permute.xlu1 %2240  ;;  %v2243_v46 = vsel %vm495_vm7, %v2237_v19, %v2239_v4 }
 0x59a   :  { %v2242_v49 = vsel %vm495_vm7, %v2239_v4, %v2241_v35  ;;  %v2245_v50 = vsel %vm495_vm7, %v2241_v35, %v2235_v22  ;;  %v2269_v59 = vmul.f32 %v2255_v17, %v2243_v46  ;;  %v2396_v35 = vld [vmem:[%s13084_s8] sm:$0x1]  ;;  %v2666_v46 = vld [vmem:[#allocation9 + $0x48] sm:$0xff] }
 0x59b   :  { %v2270_v56 = vmul.f32 %v2259_v43, %v2242_v49  ;;  %v2271_v62 = vmul.f32 %v2263_v31, %v2245_v50  ;;  %v2659_v17 = vld [vmem:[#allocation9 + $0x10] sm:$0xff]  ;;  %v2668_v31 = vld [vmem:[#allocation9 + $0x58] sm:$0xff]  ;;  %v2665_v49 = vld [vmem:[#allocation9 + $0x40] sm:$0xff] }
 0x59c   :  { %v2277_v38 = vpop.permute.xlu0 %2276  ;;  %v2667_v50 = vld [vmem:[#allocation9 + $0x50] sm:$0xff] }
 0x59d   :  { %v2279_v40 = vpop.permute.xlu1 %2278 }
 0x59e   :  { %v2286_v44 = vsel %vm567_vm8, %v2277_v38, %v2279_v40 }
 0x59f   :  { %v2310_v57 = vmul.f32 %v2293_v39, %v2286_v44  ;;  %v2662_v39 = vld [vmem:[#allocation9 + $0x28] sm:$0xff]  ;;  %v2661_v44 = vld [vmem:[#allocation9 + $0x20] sm:$0xff] }
 0x5a0   :  { %v2281_v53 = vpop.permute.xlu0 %2280 }
 0x5a1   :  { %v2285_v58 = vsel %vm567_vm8, %v2279_v40, %v2281_v53  ;;  %v2283_v41 = vpop.permute.xlu1 %2282  ;;  %v7934_v51 = vpack.c.bf16 %v2310_v57, %v2268_v55  ;;  %v2664_v40 = vld [vmem:[#allocation9 + $0x38] sm:$0xff]  ;;  %v10483_v57 = vpack.c.bf16 %v2667_v50, %v2665_v49 }
 0x5a2   :  { %v2311_v47 = vmul.f32 %v2297_v45, %v2285_v58  ;;  %v2284_v60 = vsel %vm567_vm8, %v2281_v53, %v2283_v41  ;;  %v2287_v61 = vsel %vm567_vm8, %v2283_v41, %v2277_v38  ;;  %v2657_v38 = vld [vmem:[#allocation9] sm:$0xff]  ;;  %v10470_v43 = vpack.c.bf16 %v2664_v40, %v2662_v39  ;;  %v2663_v45 = vld [vmem:[#allocation9 + $0x30] sm:$0xff]  ;;  %v2670_v53 = vld [vmem:[#allocation9 + $0x68] sm:$0xff] }
 0x5a3   :  { %v2312_v63 = vmul.f32 %v2301_v26, %v2284_v60  ;;  %v2313_v0 = vmul.f32 %v2305_v20, %v2287_v61  ;;  %v10468_v42 = vpack.c.bf16 %v2659_v17, %v2657_v38  ;;  %v10475_v26 = vpack.c.bf16 %v2663_v45, %v2661_v44  ;;  %v2672_v55 = vld [vmem:[#allocation9 + $0x78] sm:$0xff]  ;;  %v2669_v41 = vld [vmem:[#allocation9 + $0x60] sm:$0xff]  ;;  %v2695_v44 = vld [vmem:[#allocation9 + $0x130] sm:$0xff] }
 0x5a4   :  { %v2319_v48 = vpop.permute.xlu0 %2318  ;;  %v7932_v5 = vpack.c.bf16 %v2311_v47, %v2269_v59  ;;  %v10479_v20 = vpack.c.bf16 %v2668_v31, %v2666_v46  ;;  %v10487_v58 = vpack.c.bf16 %v2672_v55, %v2670_v53  ;;  %v2671_v59 = vld [vmem:[#allocation9 + $0x70] sm:$0xff]  ;;  %v2674_v47 = vld [vmem:[#allocation9 + $0x88] sm:$0xff]  ;;  %v2676_v60 = vld [vmem:[#allocation9 + $0x98] sm:$0xff] }
 0x5a5   :  { %v2321_v6 = vpop.permute.xlu1 %2320  ;;  %v7948_v52 = vpack.c.bf16 %v2313_v0, %v2271_v62  ;;  %v7950_v11 = vpack.c.bf16 %v2312_v63, %v2270_v56  ;;  %v10491_v61 = vpack.c.bf16 %v2671_v59, %v2669_v41  ;;  %v10495_v56 = vpack.c.bf16 %v2676_v60, %v2674_v47  ;;  %v2673_v62 = vld [vmem:[#allocation9 + $0x80] sm:$0xff]  ;;  %v2675_v63 = vld [vmem:[#allocation9 + $0x90] sm:$0xff]  ;;  %v2678_v0 = vld [vmem:[#allocation9 + $0xa8] sm:$0xff] }
 0x5a6   :  { %7933 = vmatprep.subr.bf16.mxu0 %v7932_v5  ;;  %v2328_v27 = vsel %vm639_vm9, %v2319_v48, %v2321_v6  ;;  %v10499_v3 = vpack.c.bf16 %v2675_v63, %v2673_v62  ;;  %v2696_v38 = vld [vmem:[#allocation9 + $0x138] sm:$0xff]  ;;  %v2693_v40 = vld [vmem:[#allocation9 + $0x120] sm:$0xff] }
 0x5a7   :  { %7935 = vmatpush1.bf16.msra.mxu0 %v7934_v51  ;;  %7949 = vmatprep.subr.bf16.mxu1 %v7948_v52  ;;  %v2352_v33 = vmul.f32 %v2335_v21, %v2328_v27  ;;  %v2679_v51 = vld [vmem:[#allocation9 + $0xb0] sm:$0xff]  ;;  %v2682_v52 = vld [vmem:[#allocation9 + $0xc8] sm:$0xff]  ;;  %v10535_v39 = vpack.c.bf16 %v2696_v38, %v2694_v37  ;;  %v10539_v45 = vpack.c.bf16 %v2695_v44, %v2693_v40  ;;  %v2700_v44 = vld [vmem:[#allocation9 + $0x158] sm:$0xff] }
 0x5a8   :  { %v2323_v29 = vpop.permute.xlu0 %2322  ;;  %7951 = vmatpush1.bf16.msra.mxu1 %v7950_v11  ;;  %v2684_v11 = vld [vmem:[#allocation9 + $0xd8] sm:$0xff]  ;;  %v2686_v27 = vld [vmem:[#allocation9 + $0xe8] sm:$0xff] }
 0x5a9   :  { %v2327_v7 = vsel %vm639_vm9, %v2321_v6, %v2323_v29  ;;  %v2325_v22 = vpop.permute.xlu1 %2324  ;;  %v2677_v6 = vld [vmem:[#allocation9 + $0xa0] sm:$0xff]  ;;  %v10511_v21 = vpack.c.bf16 %v2684_v11, %v2682_v52  ;;  %v2698_v40 = vld [vmem:[#allocation9 + $0x148] sm:$0xff] }
 0x5aa   :  { %v2353_v30 = vmul.f32 %v2339_v18, %v2327_v7  ;;  %v2326_v19 = vsel %vm639_vm9, %v2323_v29, %v2325_v22  ;;  %v2329_v32 = vsel %vm639_vm9, %v2325_v22, %v2319_v48  ;;  %v2680_v48 = vld [vmem:[#allocation9 + $0xb8] sm:$0xff]  ;;  %v10507_v18 = vpack.c.bf16 %v2679_v51, %v2677_v6 }
 0x5ab   :  { %v2354_v34 = vmul.f32 %v2343_v23, %v2326_v19  ;;  %v2355_v4 = vmul.f32 %v2347_v1, %v2329_v32  ;;  %v10503_v5 = vpack.c.bf16 %v2680_v48, %v2678_v0  ;;  %v2681_v23 = vld [vmem:[#allocation9 + $0xc0] sm:$0xff]  ;;  %v2683_v1 = vld [vmem:[#allocation9 + $0xd0] sm:$0xff]  ;;  %v2688_v29 = vld [vmem:[#allocation9 + $0xf8] sm:$0xff]  ;;  %v9562_v51 = vmov 1983009808  }
 0x5ac   :  { %2426 = vmatprep.subr.mxu0 %v2353_v30  ;;  %v10515_v7 = vpack.c.bf16 %v2683_v1, %v2681_v23  ;;  %v10519_v22 = vpack.c.bf16 %v2688_v29, %v2686_v27  ;;  %v2685_v30 = vld [vmem:[#allocation9 + $0xe0] sm:$0xff]  ;;  %v2687_v19 = vld [vmem:[#allocation9 + $0xf0] sm:$0xff]  ;;  %v2690_v32 = vld [vmem:[#allocation9 + $0x108] sm:$0xff]  ;;  %v2594_v52 = vunpack.c.l.s4 %v9562_v51 }
 0x5ad   :  { %2427 = vmatpush1.msra.mxu0 %v2352_v33  ;;  %2497 = vmatprep.subr.mxu1 %v2355_v4  ;;  %v2692_v33 = vld [vmem:[#allocation9 + $0x118] sm:$0xff] }
 0x5ae   :  { %7830 = vmatmul.mubr.msk.f32.vlgmr.msra.gmra.mrb[6].mxu0 %vm1290_vm14, %v2396_v35  ;;  %2498 = vmatpush1.msra.mxu1 %v2354_v34  ;;  %v10523_v34 = vpack.c.bf16 %v2687_v19, %v2685_v30  ;;  %v10527_v4 = vpack.c.bf16 %v2692_v33, %v2690_v32  ;;  %v2595_v23 = vunpack.c.0.s8 %v2594_v52  ;;  %v2710_v52 = vld [vmem:[#allocation9 + $0x1a8] sm:$0xff] }
 0x5af   :  { %7831 = vmatmul.mubr.msk.f32.vlgmr.msra.gmra.mrb[6].mxu1 %vm1290_vm14, %v2396_v35  ;;  %7953 = vmatprep.subr.bf16.mxu0 %v10466_v12  ;;  %v2689_v35 = vld [vmem:[#allocation9 + $0x100] sm:$0xff] }
 0x5b0   :  { %8017 = vmatprep.subr.bf16.mxu1 %v10466_v12  ;;  %7955 = vmatpush1.bf16.msra.mxu0 %v10468_v42  ;;  %v10531_v17 = vpack.c.bf16 %v2691_v36, %v2689_v35  ;;  %v10556_v1 = vsub.s32 %v2595_v23, %v9674_v8 }
 0x5b1   :  { %8019 = vmatpush1.bf16.msra.mxu1 %v10468_v42  ;;  %7957 = vmatprep.subr.bf16.mxu0 %v10470_v43 }
 0x5b2   :  { %8021 = vmatprep.subr.bf16.mxu1 %v10470_v43  ;;  %13105 = vst [vmem:[#allocation19_spill] sm:$0xff] %v10556_v1 }
 0x5b4   :  { %7959 = vmatpush1.bf16.msra.mxu0 %v10475_v26 }
 0x5b5   :  { %8023 = vmatpush1.bf16.msra.mxu1 %v10475_v26  ;;  %7961 = vmatprep.subr.bf16.mxu0 %v10479_v20 }
 0x5b6   :  { %8025 = vmatprep.subr.bf16.mxu1 %v10479_v20 }
 0x5b8   :  { %7963 = vmatpush1.bf16.msra.mxu0 %v10483_v57 }
 0x5b9   :  { %8027 = vmatpush1.bf16.msra.mxu1 %v10483_v57  ;;  %7965 = vmatprep.subr.bf16.mxu0 %v10487_v58  ;;  %v2401_v46 = vpop.permute.xlu0 %2400 }
 0x5ba   :  { %8029 = vmatprep.subr.bf16.mxu1 %v10487_v58  ;;  %v2406_v31 = vrot.slane %v2401_v46, %v9688_v13  ;;  %v10567_v46 = vpack.c.bf16 %v2700_v44, %v2698_v40  ;;  %v2718_v40 = vld [vmem:[#allocation9 + $0x1e8] sm:$0xff]  ;;  %v2720_v44 = vld [vmem:[#allocation9 + $0x1f8] sm:$0xff] }
 0x5bc   :  { %7967 = vmatpush1.bf16.msra.mxu0 %v10491_v61 }
 0x5bd   :  { %8031 = vmatpush1.bf16.msra.mxu1 %v10491_v61  ;;  %7969 = vmatprep.subr.bf16.mxu0 %v10495_v56 }
 0x5be   :  { %8033 = vmatprep.subr.bf16.mxu1 %v10495_v56 }
 0x5c0   :  { %7971 = vmatpush1.bf16.msra.mxu0 %v10499_v3 }
 0x5c1   :  { %8035 = vmatpush1.bf16.msra.mxu1 %v10499_v3  ;;  %7973 = vmatprep.subr.bf16.mxu0 %v10503_v5 }
 0x5c2   :  { %8037 = vmatprep.subr.bf16.mxu1 %v10503_v5 }
 0x5c4   :  { %7975 = vmatpush1.bf16.msra.mxu0 %v10507_v18 }
 0x5c5   :  { %8039 = vmatpush1.bf16.msra.mxu1 %v10507_v18  ;;  %7977 = vmatprep.subr.bf16.mxu0 %v10511_v21 }
 0x5c6   :  { %8041 = vmatprep.subr.bf16.mxu1 %v10511_v21 }
 0x5c8   :  { %7979 = vmatpush1.bf16.msra.mxu0 %v10515_v7 }
 0x5c9   :  { %8043 = vmatpush1.bf16.msra.mxu1 %v10515_v7  ;;  %7981 = vmatprep.subr.bf16.mxu0 %v10519_v22 }
 0x5ca   :  { %8045 = vmatprep.subr.bf16.mxu1 %v10519_v22 }
 0x5cc   :  { %7983 = vmatpush1.bf16.msra.mxu0 %v10523_v34 }
 0x5cd   :  { %8047 = vmatpush1.bf16.msra.mxu1 %v10523_v34  ;;  %7985 = vmatprep.subr.bf16.mxu0 %v10527_v4 }
 0x5ce   :  { %8049 = vmatprep.subr.bf16.mxu1 %v10527_v4 }
 0x5d0   :  { %7987 = vmatpush1.bf16.msra.mxu0 %v10531_v17 }
 0x5d1   :  { %8051 = vmatpush1.bf16.msra.mxu1 %v10531_v17  ;;  %7989 = vmatprep.subr.bf16.mxu0 %v10535_v39 }
 0x5d2   :  { %8053 = vmatprep.subr.bf16.mxu1 %v10535_v39 }
 0x5d4   :  { %7991 = vmatpush1.bf16.msra.mxu0 %v10539_v45 }
 0x5d5   :  { %8055 = vmatpush1.bf16.msra.mxu1 %v10539_v45  ;;  %7993 = vmatprep.subr.bf16.mxu0 %v10567_v46 }
 0x5d6   :  { %8057 = vmatprep.subr.bf16.mxu1 %v10567_v46 }
 0x681   :  { %v2476_v49 = vpop.f32.mrb[6].mxu0 }
 0x682   :  { %v2477_v50 = vadd.f32 %v2476_v49, %v2406_v31  ;;  %v2478_v53 = vpop.f32.mrb[7].mxu0  ;;  %v2547_v55 = vpop.f32.mrb[6].mxu1  ;;  %v2699_v49 = vld [vmem:[#allocation9 + $0x150] sm:$0xff] }
 0x683   :  { %v2479_v41 = vadd.f32 %v2478_v53, %v2406_v31  ;;  %v2548_v59 = vadd.f32 %v2547_v55, %v2406_v31  ;;  %v2549_v47 = vpop.f32.mrb[7].mxu1  ;;  %v2702_v53 = vld [vmem:[#allocation9 + $0x168] sm:$0xff]  ;;  %v2704_v55 = vld [vmem:[#allocation9 + $0x178] sm:$0xff] }
 0x684   :  { %v2550_v60 = vadd.f32 %v2549_v47, %v2406_v31  ;;  %v2697_v31 = vld [vmem:[#allocation9 + $0x140] sm:$0xff]  ;;  %v2703_v47 = vld [vmem:[#allocation9 + $0x170] sm:$0xff] }
 0x685   :  { %v2554_v62 = vcombine.low %v2477_v50, %v2479_v41  ;;  %v10569_v50 = vpack.c.bf16 %v2699_v49, %v2697_v31  ;;  %v10575_v41 = vpack.c.bf16 %v2704_v55, %v2702_v53  ;;  %v10607_v31 = vpack.c.bf16 %v2720_v44, %v2718_v40  ;;  %v2717_v49 = vld [vmem:[#allocation9 + $0x1e0] sm:$0xff]  ;;  %v2719_v53 = vld [vmem:[#allocation9 + $0x1f0] sm:$0xff] }
 0x686   :  { %v2573_v63 = vcombine.low %v2548_v59, %v2550_v60  ;;  %v2701_v59 = vld [vmem:[#allocation9 + $0x160] sm:$0xff]  ;;  %v10609_v55 = vpack.c.bf16 %v2719_v53, %v2717_v49 }
 0x687   :  { %v2561_v0 = vrot.slane %v2554_v62, %v9677_v9  ;;  %7995 = vmatpush1.bf16.msra.mxu0 %v10569_v50  ;;  %8059 = vmatpush1.bf16.msra.mxu1 %v10569_v50  ;;  %v10577_v60 = vpack.c.bf16 %v2703_v47, %v2701_v59  ;;  %v2706_v62 = vld [vmem:[#allocation9 + $0x188] sm:$0xff]  ;;  %v9563_v59 = vmov 269488144  }
 0x688   :  { %v2580_v48 = vrot.slane %v2573_v63, %v9677_v9  ;;  %7997 = vmatprep.subr.bf16.mxu0 %v10575_v41  ;;  %8061 = vmatprep.subr.bf16.mxu1 %v10575_v41  ;;  %v2708_v63 = vld [vmem:[#allocation9 + $0x198] sm:$0xff]  ;;  %v2616_v47 = vunpack.c.l.s4 %v9563_v59 }
 0x689   :  { %v2568_v6 = vrot.slane %v2561_v0, %v9677_v9  ;;  %v10583_v0 = vpack.c.bf16 %v2708_v63, %v2706_v62 }
 0x68a   :  { %v2587_v11 = vrot.slane %v2580_v48, %v9677_v9  ;;  %v2705_v48 = vld [vmem:[#allocation9 + $0x180] sm:$0xff] }
 0x68b   :  { %2570 = vst.msk [vmem:[#allocation4] ss:$2 sm:$0x3] %vm9662_vm0, %v2568_v6  ;;  %7999 = vmatpush1.bf16.msra.mxu0 %v10577_v60  ;;  %8063 = vmatpush1.bf16.msra.mxu1 %v10577_v60  ;;  %v2707_v6 = vld [vmem:[#allocation9 + $0x190] sm:$0xff] }
 0x68c   :  { %2589 = vst.msk [vmem:[#allocation4 + $0x1] ss:$2 sm:$0x3] %vm9662_vm0, %v2587_v11  ;;  %v10585_v51 = vpack.c.bf16 %v2707_v6, %v2705_v48  ;;  %8001 = vmatprep.subr.bf16.mxu0 %v10583_v0  ;;  %8065 = vmatprep.subr.bf16.mxu1 %v10583_v0  ;;  %v2712_v11 = vld [vmem:[#allocation9 + $0x1b8] sm:$0xff]  ;;  %v2617_v6 = vunpack.c.0.s8 %v2616_v47 }
 0x68d   :  { %v10591_v23 = vpack.c.bf16 %v2712_v11, %v2710_v52 }
 0x68e   :  { %v10618_v52 = vsub.s32 %v2617_v6, %v9674_v8 }
 0x68f   :  { %8003 = vmatpush1.bf16.msra.mxu0 %v10585_v51  ;;  %8067 = vmatpush1.bf16.msra.mxu1 %v10585_v51 }
 0x690   :  { %8005 = vmatprep.subr.bf16.mxu0 %v10591_v23  ;;  %8069 = vmatprep.subr.bf16.mxu1 %v10591_v23  ;;  %13106 = vst [vmem:[#allocation20_spill] sm:$0xff] %v10618_v52 }
 0x693   :  { %v2590_v27 = vld [vmem:[#allocation4] sm:$0xf] }
 0x694   :  { %v10559_v29 = vadd.f32 %v2590_v27, %v9679_v10  ;;  %v2709_v27 = vld [vmem:[#allocation9 + $0x1a0] sm:$0xff] }
 0x696   :  { %v2599_v30 = vrot.slane %v10559_v29, %v10556_v1 }
 0x698   :  { %v2600_v19 = vcombine.high %v2599_v30, %v2599_v30  ;;  %v2609_v32 = vsel %vm2603_vm15, %v2599_v30, -inf  ;;  %v2604_v35 = vsel %vm2603_vm15, %v2599_v30, inf  ;;  %v2711_v30 = vld [vmem:[#allocation9 + $0x1b0] sm:$0xff] }
 0x69a   :  { %v2610_v33 = vsel %vm2603_vm15, %v2600_v19, -inf  ;;  %v2605_v36 = vsel %vm2603_vm15, %v2600_v19, inf  ;;  %v10593_v19 = vpack.c.bf16 %v2711_v30, %v2709_v27  ;;  %v10622_v30 = vmul.f32 20.0, %v9679_v10 }
 0x69b   :  { %v2611_v37 = vmax.f32 %v2609_v32, %v2610_v33  ;;  %v2606_v38 = vmin.f32 %v2604_v35, %v2605_v36  ;;  %v2714_v32 = vld [vmem:[#allocation9 + $0x1c8] sm:$0xff]  ;;  %v2716_v33 = vld [vmem:[#allocation9 + $0x1d8] sm:$0xff]  ;;  %v2713_v36 = vld [vmem:[#allocation9 + $0x1c0] sm:$0xff] }
 0x69c   :  { %8007 = vmatpush1.bf16.msra.mxu0 %v10593_v19  ;;  %8071 = vmatpush1.bf16.msra.mxu1 %v10593_v19  ;;  %v10599_v35 = vpack.c.bf16 %v2716_v33, %v2714_v32  ;;  %13107 = vst [vmem:[#allocation21_spill] sm:$0xff] %v10622_v30 }
 0x69d   :  { %2612 = vmax.xlane.f32.xlu0 %v2611_v37  ;;  %2607 = vmin.xlane.f32.xlu1 %v2606_v38  ;;  %v2715_v37 = vld [vmem:[#allocation9 + $0x1d0] sm:$0xff] }
 0x69e   :  { %v10601_v38 = vpack.c.bf16 %v2715_v37, %v2713_v36  ;;  %8009 = vmatprep.subr.bf16.mxu0 %v10599_v35  ;;  %8073 = vmatprep.subr.bf16.mxu1 %v10599_v35 }
 0x6a0   :  { %8011 = vmatpush1.bf16.msra.mxu0 %v10601_v38  ;;  %8075 = vmatpush1.bf16.msra.mxu1 %v10601_v38 }
 0x6a1   :  { %8013 = vmatprep.subr.bf16.mxu0 %v10607_v31  ;;  %8077 = vmatprep.subr.bf16.mxu1 %v10607_v31 }
 0x6a4   :  { %8015 = vmatpush1.bf16.msra.mxu0 %v10609_v55  ;;  %8079 = vmatpush1.bf16.msra.mxu1 %v10609_v55 }
 0x6a5   :  { %8081 = vmatprep.subr.bf16.mxu0 %v10466_v12  ;;  %8145 = vmatprep.subr.bf16.mxu1 %v10466_v12 }
 0x72a   :  { %v2613_v62 = vpop.xlane.xlu0 %2612  ;;  %v2608_v63 = vpop.xlane.xlu1 %2607 }
 0x72b   :  { %v2624_v48 = vsub.f32 %v2613_v62, %v2608_v63  ;;  %v2621_v11 = vrot.slane %v2608_v63, %v10618_v52 }
 0x72d   :  { %9365 = vrcp.f32 %v2624_v48  ;;  %v2623_v32 = vsub.f32 %v10559_v29, %v2621_v11 }
 0x737   :  { %v9366_v27 = vpop.eup %9365 }
 0x738   :  { %v2634_v33 = vrot.slane %v9366_v27, %v10618_v52 }
 0x73a   :  { %v2636_v36 = vmul.f32 %v2634_v33, %v2623_v32 }
 0x73c   :  { %v10627_v37 = vadd.f32 %v10622_v30, %v2636_v36  ;;  %v3914_v40 = vrot.slane %v2636_v36, %v9677_v9 }
 0x73e   :  { %v10632_v8 = vrot.slane %v10627_v37, %v10556_v1  ;;  %3916 = vst.msk [vmem:[#allocation11] ss:$2 sm:$0x3] %vm9662_vm0, %v3914_v40  ;;  %v3936_v44 = vcombine.high %v3914_v40, %v3914_v40  ;;  %v2639_v10 = vmul.f32 %v10627_v37, %v10627_v37 }
 0x740   :  { %3939 = vst.msk [vmem:[#allocation11 + $0x4] ss:$2 sm:$0x3] %vm9662_vm0, %v3936_v44  ;;  %v10642_v29 = vcombine.high %v10632_v8, %v10632_v8  ;;  %v2647_v49 = vrot.slane %v2639_v10, %v10556_v1 }
 0x742   :  { %2796 = vmatprep.mubr.f32.mxu0 %v10642_v29  ;;  %v2648_v53 = vcombine.high %v2647_v49, %v2647_v49  ;;  %v2651_v59 = vsel %vm2603_vm15, %v2647_v49, 0.0 }
 0x743   :  { %2797 = vmatmul.mubr.f32.vlgmr.msra.gmra.mrb[8].mxu0 %v10632_v8 }
 0x744   :  { %v2652_v47 = vsel %vm2603_vm15, %v2648_v53, 0.0  ;;  %8083 = vmatpush1.bf16.msra.mxu0 %v10468_v42 }
 0x745   :  { %v2653_v62 = vadd.f32 %v2652_v47, %v2651_v59  ;;  %8085 = vmatprep.subr.bf16.mxu0 %v10470_v43 }
 0x747   :  { %2654 = vadd.xlane.f32.xlu1 %v2653_v62 }
 0x748   :  { %8087 = vmatpush1.bf16.msra.mxu0 %v10475_v26 }
 0x749   :  { %8089 = vmatprep.subr.bf16.mxu0 %v10479_v20 }
 0x74c   :  { %8091 = vmatpush1.bf16.msra.mxu0 %v10483_v57 }
 0x74d   :  { %8093 = vmatprep.subr.bf16.mxu0 %v10487_v58 }
 0x750   :  { %8095 = vmatpush1.bf16.msra.mxu0 %v10491_v61 }
 0x751   :  { %8097 = vmatprep.subr.bf16.mxu0 %v10495_v56 }
 0x754   :  { %8099 = vmatpush1.bf16.msra.mxu0 %v10499_v3 }
 0x755   :  { %8101 = vmatprep.subr.bf16.mxu0 %v10503_v5 }
 0x758   :  { %8103 = vmatpush1.bf16.msra.mxu0 %v10507_v18 }
 0x759   :  { %8105 = vmatprep.subr.bf16.mxu0 %v10511_v21 }
 0x75c   :  { %8107 = vmatpush1.bf16.msra.mxu0 %v10515_v7 }
 0x75d   :  { %8109 = vmatprep.subr.bf16.mxu0 %v10519_v22 }
 0x760   :  { %8111 = vmatpush1.bf16.msra.mxu0 %v10523_v34 }
 0x761   :  { %8113 = vmatprep.subr.bf16.mxu0 %v10527_v4 }
 0x764   :  { %8115 = vmatpush1.bf16.msra.mxu0 %v10531_v17 }
 0x765   :  { %8117 = vmatprep.subr.bf16.mxu0 %v10535_v39 }
 0x768   :  { %8119 = vmatpush1.bf16.msra.mxu0 %v10539_v45 }
 0x769   :  { %8121 = vmatprep.subr.bf16.mxu0 %v10567_v46 }
 0x76c   :  { %8123 = vmatpush1.bf16.msra.mxu0 %v10569_v50 }
 0x76d   :  { %8125 = vmatprep.subr.bf16.mxu0 %v10575_v41 }
 0x770   :  { %8127 = vmatpush1.bf16.msra.mxu0 %v10577_v60 }
 0x771   :  { %8129 = vmatprep.subr.bf16.mxu0 %v10583_v0 }
 0x774   :  { %8131 = vmatpush1.bf16.msra.mxu0 %v10585_v51 }
 0x775   :  { %8133 = vmatprep.subr.bf16.mxu0 %v10591_v23 }
 0x778   :  { %8135 = vmatpush1.bf16.msra.mxu0 %v10593_v19 }
 0x779   :  { %8137 = vmatprep.subr.bf16.mxu0 %v10599_v35 }
 0x77c   :  { %8139 = vmatpush1.bf16.msra.mxu0 %v10601_v38 }
 0x77d   :  { %8141 = vmatprep.subr.bf16.mxu0 %v10607_v31 }
 0x780   :  { %8143 = vmatpush1.bf16.msra.mxu0 %v10609_v55 }
 0x781   :  { %8209 = vmatprep.subr.bf16.mxu0 %v10466_v12 }
 0x7d4   :  { %v10686_v53 = vpop.xlane.xlu1 %2654 }
 0x7d5   :  { %vm2656_vm10 = vcmp.ge.f32.partialorder %v10686_v53, 1e-05 }
 0x816   :  { %v2798_v63 = vpop.f32.mrb[8].mxu0 }
 0x817   :  { %v2800_v48 = vpop.f32.mrb[9].mxu0 }
 0x818   :  { %v2805_v6 = vcombine.low %v2798_v63, %v2800_v48 }
 0x81a   :  { %v2812_v11 = vrot.slane %v2805_v6, %v10556_v1 }
 0x81c   :  { %v2814_v27 = vmul.f32 %v2812_v11, %v10627_v37 }
 0x81e   :  { %v2822_v32 = vrot.slane %v2814_v27, %v10556_v1 }
 0x820   :  { %v2823_v33 = vcombine.high %v2822_v32, %v2822_v32  ;;  %v2826_v36 = vsel %vm2603_vm15, %v2822_v32, 0.0 }
 0x822   :  { %v2827_v40 = vsel %vm2603_vm15, %v2823_v33, 0.0 }
 0x823   :  { %v2828_v44 = vadd.f32 %v2827_v40, %v2826_v36 }
 0x825   :  { %2829 = vadd.xlane.f32.xlu0 %v2828_v44 }
 0x8b2   :  { %v2830_v10 = vpop.xlane.xlu0 %2829 }
 0x8b3   :  { %9367 = vrcp.f32 %v2830_v10 }
 0x8b4   :  { %9369 = vrcp.f32 %v10686_v53 }
 0x8bd   :  { %v9368_v49 = vpop.eup %9367 }
 0x8be   :  { %v10689_v59 = vmul.f32 %v9368_v49, %v10686_v53 }
 0x8c0   :  { %v2837_v47 = vmul.f32 %v10689_v59, %v2798_v63  ;;  %v2838_v62 = vmul.f32 %v10689_v59, %v2800_v48  ;;  %v9370_v63 = vpop.eup %9369  ;;  %v2834_v25 = vmul.f32 %v10689_v59, %v10642_v29 }
 0x8c2   :  { %v2841_v6 = vcombine.low %v2837_v47, %v2838_v62 }
 0x8c4   :  { %v2848_v11 = vrot.slane %v2841_v6, %v10556_v1 }
 0x8c6   :  { %v10695_v27 = vsub.f32 %v10627_v37, %v2848_v11 }
 0x8c8   :  { %v2851_v32 = vmul.f32 %v10695_v27, %v10695_v27 }
 0x8ca   :  { %v2859_v33 = vrot.slane %v2851_v32, %v10556_v1 }
 0x8cc   :  { %v2860_v36 = vcombine.high %v2859_v33, %v2859_v33  ;;  %v2863_v40 = vsel %vm2603_vm15, %v2859_v33, 0.0 }
 0x8ce   :  { %v2864_v44 = vsel %vm2603_vm15, %v2860_v36, 0.0 }
 0x8cf   :  { %v2865_v10 = vadd.f32 %v2864_v44, %v2863_v40 }
 0x8d1   :  { %2866 = vadd.xlane.f32.xlu0 %v2865_v10 }
 0x95e   :  { %v2867_v48 = vpop.xlane.xlu0 %2866 }
 0x95f   :  { %v2869_v49 = vmul.f32 %v9370_v63, %v2867_v48 }
 0x961   :  { %v2870_v37 = vmul.f32 %v2869_v49, %v10632_v8  ;;  %v2871_v47 = vmul.f32 %v2869_v49, %v10642_v29 }
 0x963   :  { %v2874_v62 = vcombine.low %v2870_v37, %v2871_v47 }
 0x965   :  { %v2881_v6 = vrot.slane %v2874_v62, %v10556_v1 }
 0x967   :  { %v2883_v11 = vadd.f32 %v2881_v6, %v10695_v27 }
 0x969   :  { %v2908_v32 = vrot.slane %v2883_v11, %v10556_v1  ;;  %v2895_v11 = vrot.slane %v10695_v27, %v10556_v1 }
 0x96b   :  { %v2909_v33 = vcombine.high %v2908_v32, %v2908_v32  ;;  %v10718_v40 = vsel %vm2656_vm10, %v2908_v32, %v10632_v8 }
 0x96d   :  { %v10712_v36 = vsel %vm2656_vm10, %v2909_v33, %v10642_v29  ;;  %v2833_v33 = vmul.f32 %v10689_v59, %v10632_v8  ;;  %v2887_v59 = vsel %vm2656_vm10, %v2834_v25, 0.0 }
 0x96e   :  { %2980 = vmatprep.mubr.f32.mxu1 %v10712_v36 }
 0x96f   :  { %2981 = vmatmul.mubr.f32.vlgmr.msra.gmra.mrb[8].mxu1 %v10718_v40  ;;  %v2886_v30 = vsel %vm2656_vm10, %v2833_v33, 0.0 }
 0x970   :  { %8147 = vmatpush1.bf16.msra.mxu1 %v10468_v42 }
 0x971   :  { %8149 = vmatprep.subr.bf16.mxu1 %v10470_v43 }
 0x974   :  { %8151 = vmatpush1.bf16.msra.mxu1 %v10475_v26 }
 0x975   :  { %8153 = vmatprep.subr.bf16.mxu1 %v10479_v20 }
 0x978   :  { %8155 = vmatpush1.bf16.msra.mxu1 %v10483_v57 }
 0x979   :  { %8157 = vmatprep.subr.bf16.mxu1 %v10487_v58 }
 0x97c   :  { %8159 = vmatpush1.bf16.msra.mxu1 %v10491_v61 }
 0x97d   :  { %8161 = vmatprep.subr.bf16.mxu1 %v10495_v56 }
 0x980   :  { %8163 = vmatpush1.bf16.msra.mxu1 %v10499_v3 }
 0x981   :  { %8165 = vmatprep.subr.bf16.mxu1 %v10503_v5 }
 0x984   :  { %8167 = vmatpush1.bf16.msra.mxu1 %v10507_v18 }
 0x985   :  { %8169 = vmatprep.subr.bf16.mxu1 %v10511_v21 }
 0x988   :  { %8171 = vmatpush1.bf16.msra.mxu1 %v10515_v7 }
 0x989   :  { %8173 = vmatprep.subr.bf16.mxu1 %v10519_v22 }
 0x98c   :  { %8175 = vmatpush1.bf16.msra.mxu1 %v10523_v34 }
 0x98d   :  { %8177 = vmatprep.subr.bf16.mxu1 %v10527_v4 }
 0x990   :  { %8179 = vmatpush1.bf16.msra.mxu1 %v10531_v17 }
 0x991   :  { %8181 = vmatprep.subr.bf16.mxu1 %v10535_v39 }
 0x994   :  { %8183 = vmatpush1.bf16.msra.mxu1 %v10539_v45 }
 0x995   :  { %8185 = vmatprep.subr.bf16.mxu1 %v10567_v46 }
 0x998   :  { %8187 = vmatpush1.bf16.msra.mxu1 %v10569_v50 }
 0x999   :  { %8189 = vmatprep.subr.bf16.mxu1 %v10575_v41 }
 0x99c   :  { %8191 = vmatpush1.bf16.msra.mxu1 %v10577_v60 }
 0x99d   :  { %8193 = vmatprep.subr.bf16.mxu1 %v10583_v0 }
 0x9a0   :  { %8195 = vmatpush1.bf16.msra.mxu1 %v10585_v51 }
 0x9a1   :  { %8197 = vmatprep.subr.bf16.mxu1 %v10591_v23 }
 0x9a4   :  { %8199 = vmatpush1.bf16.msra.mxu1 %v10593_v19 }
 0x9a5   :  { %8201 = vmatprep.subr.bf16.mxu1 %v10599_v35 }
 0x9a8   :  { %8203 = vmatpush1.bf16.msra.mxu1 %v10601_v38 }
 0x9a9   :  { %8205 = vmatprep.subr.bf16.mxu1 %v10607_v31 }
 0x9ac   :  { %8207 = vmatpush1.bf16.msra.mxu1 %v10609_v55 }
 0x9ad   :  { %8273 = vmatprep.subr.bf16.mxu1 %v10466_v12 }
 0xa42   :  { %v2982_v44 = vpop.f32.mrb[8].mxu1 }
 0xa43   :  { %v2987_v10 = vmul.f32 %v2982_v44, %v10718_v40  ;;  %v2984_v63 = vpop.f32.mrb[9].mxu1 }
 0xa44   :  { %v2988_v49 = vmul.f32 %v2984_v63, %v10712_v36 }
 0xa45   :  { %v2989_v37 = vsel %vm2603_vm15, %v2987_v10, 0.0  ;;  %v10766_v10 = vsel %vm2656_vm10, %v2867_v48, %v10686_v53  ;;  %v10778_v48 = vsel %vm2656_vm10, %v2895_v11, %v10632_v8 }
 0xa46   :  { %v2990_v47 = vsel %vm2603_vm15, %v2988_v49, 0.0  ;;  %v2896_v49 = vcombine.high %v2895_v11, %v2895_v11  ;;  %vm2915_vm11 = vcmp.ge.f32.partialorder %v10766_v10, 1e-05 }
 0xa47   :  { %v2991_v62 = vadd.f32 %v2990_v47, %v2989_v37 }
 0xa49   :  { %2992 = vadd.xlane.f32.xlu1 %v2991_v62 }
 0xad6   :  { %v2993_v6 = vpop.xlane.xlu1 %2992 }
 0xad7   :  { %9371 = vrcp.f32 %v2993_v6 }
 0xad8   :  { %9373 = vrcp.f32 %v10766_v10 }
 0xae1   :  { %v9372_v32 = vpop.eup %9371 }
 0xae2   :  { %v2995_v37 = vmul.f32 %v9372_v32, %v10766_v10  ;;  %v10783_v32 = vsel %vm2656_vm10, %v2896_v49, %v10642_v29 }
 0xae4   :  { %v2996_v47 = vmul.f32 %v2995_v37, %v10718_v40  ;;  %v2997_v62 = vmul.f32 %v2995_v37, %v10712_v36  ;;  %v3000_v27 = vmul.f32 %v2995_v37, %v2982_v44  ;;  %v3001_v6 = vmul.f32 %v2995_v37, %v2984_v63  ;;  %v9374_v37 = vpop.eup %9373 }
 0xae6   :  { %v2998_v52 = vadd.f32 %v2996_v47, %v2886_v30  ;;  %v2999_v1 = vadd.f32 %v2997_v62, %v2887_v59  ;;  %v10786_v44 = vsub.f32 %v10778_v48, %v3000_v27  ;;  %v10789_v63 = vsub.f32 %v10783_v32, %v3001_v6 }
 0xae8   :  { %v3004_v25 = vmul.f32 %v10786_v44, %v10786_v44  ;;  %v3005_v8 = vmul.f32 %v10789_v63, %v10789_v63  ;;  %v10798_v29 = vsel %vm2915_vm11, %v2998_v52, %v2886_v30  ;;  %v10802_v53 = vsel %vm2915_vm11, %v2999_v1, %v2887_v59 }
 0xaea   :  { %v3006_v11 = vsel %vm2603_vm15, %v3004_v25, 0.0  ;;  %v3007_v33 = vsel %vm2603_vm15, %v3005_v8, 0.0 }
 0xaeb   :  { %v3008_v49 = vadd.f32 %v3007_v33, %v3006_v11 }
 0xaed   :  { %3009 = vadd.xlane.f32.xlu0 %v3008_v49 }
 0xb7a   :  { %v3010_v47 = vpop.xlane.xlu0 %3009 }
 0xb7b   :  { %v3012_v62 = vmul.f32 %v9374_v37, %v3010_v47 }
 0xb7d   :  { %v3013_v27 = vmul.f32 %v3012_v62, %v10718_v40  ;;  %v3014_v52 = vmul.f32 %v3012_v62, %v10712_v36 }
 0xb7f   :  { %v3015_v30 = vadd.f32 %v3013_v27, %v10786_v44  ;;  %v3016_v1 = vadd.f32 %v3014_v52, %v10789_v63  ;;  %v10862_v27 = vsel %vm2915_vm11, %v3010_v47, %v10766_v10  ;;  %v10877_v47 = vsel %vm2915_vm11, %v10789_v63, %v10783_v32 }
 0xb80   :  { %vm3026_vm10 = vcmp.ge.f32.partialorder %v10862_v27, 1e-05 }
 0xb81   :  { %v10814_v6 = vsel %vm2915_vm11, %v3016_v1, %v10712_v36  ;;  %v10819_v59 = vsel %vm2915_vm11, %v3015_v30, %v10718_v40 }
 0xb82   :  { %3091 = vmatprep.mubr.f32.mxu0 %v10814_v6 }
 0xb83   :  { %3092 = vmatmul.mubr.f32.vlgmr.msra.gmra.mrb[10].mxu0 %v10819_v59 }
 0xb84   :  { %8211 = vmatpush1.bf16.msra.mxu0 %v10468_v42 }
 0xb85   :  { %8213 = vmatprep.subr.bf16.mxu0 %v10470_v43 }
 0xb88   :  { %8215 = vmatpush1.bf16.msra.mxu0 %v10475_v26 }
 0xb89   :  { %8217 = vmatprep.subr.bf16.mxu0 %v10479_v20 }
 0xb8c   :  { %8219 = vmatpush1.bf16.msra.mxu0 %v10483_v57 }
 0xb8d   :  { %8221 = vmatprep.subr.bf16.mxu0 %v10487_v58 }
 0xb90   :  { %8223 = vmatpush1.bf16.msra.mxu0 %v10491_v61 }
 0xb91   :  { %8225 = vmatprep.subr.bf16.mxu0 %v10495_v56 }
 0xb94   :  { %8227 = vmatpush1.bf16.msra.mxu0 %v10499_v3 }
 0xb95   :  { %8229 = vmatprep.subr.bf16.mxu0 %v10503_v5 }
 0xb98   :  { %8231 = vmatpush1.bf16.msra.mxu0 %v10507_v18 }
 0xb99   :  { %8233 = vmatprep.subr.bf16.mxu0 %v10511_v21 }
 0xb9c   :  { %8235 = vmatpush1.bf16.msra.mxu0 %v10515_v7 }
 0xb9d   :  { %8237 = vmatprep.subr.bf16.mxu0 %v10519_v22 }
 0xba0   :  { %8239 = vmatpush1.bf16.msra.mxu0 %v10523_v34 }
 0xba1   :  { %8241 = vmatprep.subr.bf16.mxu0 %v10527_v4 }
 0xba4   :  { %8243 = vmatpush1.bf16.msra.mxu0 %v10531_v17 }
 0xba5   :  { %8245 = vmatprep.subr.bf16.mxu0 %v10535_v39 }
 0xba8   :  { %8247 = vmatpush1.bf16.msra.mxu0 %v10539_v45 }
 0xba9   :  { %8249 = vmatprep.subr.bf16.mxu0 %v10567_v46 }
 0xbac   :  { %8251 = vmatpush1.bf16.msra.mxu0 %v10569_v50 }
 0xbad   :  { %8253 = vmatprep.subr.bf16.mxu0 %v10575_v41 }
 0xbb0   :  { %8255 = vmatpush1.bf16.msra.mxu0 %v10577_v60 }
 0xbb1   :  { %8257 = vmatprep.subr.bf16.mxu0 %v10583_v0 }
 0xbb4   :  { %8259 = vmatpush1.bf16.msra.mxu0 %v10585_v51 }
 0xbb5   :  { %8261 = vmatprep.subr.bf16.mxu0 %v10591_v23 }
 0xbb8   :  { %8263 = vmatpush1.bf16.msra.mxu0 %v10593_v19 }
 0xbb9   :  { %8265 = vmatprep.subr.bf16.mxu0 %v10599_v35 }
 0xbbc   :  { %8267 = vmatpush1.bf16.msra.mxu0 %v10601_v38 }
 0xbbd   :  { %8269 = vmatprep.subr.bf16.mxu0 %v10607_v31 }
 0xbc0   :  { %8271 = vmatpush1.bf16.msra.mxu0 %v10609_v55 }
 0xbc1   :  { %8337 = vmatprep.subr.bf16.mxu0 %v10466_v12 }
 0xc56   :  { %v3093_v36 = vpop.f32.mrb[10].mxu0 }
 0xc57   :  { %v3098_v40 = vmul.f32 %v3093_v36, %v10819_v59  ;;  %v3095_v25 = vpop.f32.mrb[11].mxu0 }
 0xc58   :  { %v3099_v8 = vmul.f32 %v3095_v25, %v10814_v6 }
 0xc59   :  { %v3100_v11 = vsel %vm2603_vm15, %v3098_v40, 0.0 }
 0xc5a   :  { %v3101_v33 = vsel %vm2603_vm15, %v3099_v8, 0.0  ;;  %v10871_v8 = vsel %vm2915_vm11, %v10786_v44, %v10778_v48 }
 0xc5b   :  { %v3102_v49 = vadd.f32 %v3101_v33, %v3100_v11 }
 0xc5d   :  { %3103 = vadd.xlane.f32.xlu1 %v3102_v49 }
 0xcea   :  { %v3104_v37 = vpop.xlane.xlu1 %3103 }
 0xceb   :  { %9375 = vrcp.f32 %v3104_v37 }
 0xcec   :  { %9377 = vrcp.f32 %v10862_v27 }
 0xcf5   :  { %v9376_v62 = vpop.eup %9375 }
 0xcf6   :  { %v3106_v52 = vmul.f32 %v9376_v62, %v10862_v27  ;;  %v9378_v37 = vpop.eup %9377 }
 0xcf8   :  { %v3107_v30 = vmul.f32 %v3106_v52, %v10819_v59  ;;  %v3108_v1 = vmul.f32 %v3106_v52, %v10814_v6  ;;  %v3111_v54 = vmul.f32 %v3106_v52, %v3093_v36  ;;  %v3112_v40 = vmul.f32 %v3106_v52, %v3095_v25 }
 0xcfa   :  { %v3109_v11 = vadd.f32 %v3107_v30, %v10798_v29  ;;  %v3110_v33 = vadd.f32 %v3108_v1, %v10802_v53  ;;  %v10882_v49 = vsub.f32 %v10871_v8, %v3111_v54  ;;  %v10885_v36 = vsub.f32 %v10877_v47, %v3112_v40 }
 0xcfc   :  { %v3115_v48 = vmul.f32 %v10882_v49, %v10882_v49  ;;  %v3116_v10 = vmul.f32 %v10885_v36, %v10885_v36  ;;  %v10895_v32 = vsel %vm3026_vm10, %v3109_v11, %v10798_v29  ;;  %v10900_v54 = vsel %vm3026_vm10, %v3110_v33, %v10802_v53 }
 0xcfe   :  { %v3117_v44 = vsel %vm2603_vm15, %v3115_v48, 0.0  ;;  %v3118_v63 = vsel %vm2603_vm15, %v3116_v10, 0.0 }
 0xcff   :  { %v3119_v25 = vadd.f32 %v3118_v63, %v3117_v44 }
 0xd01   :  { %3120 = vadd.xlane.f32.xlu0 %v3119_v25 }
 0xd8e   :  { %v3121_v62 = vpop.xlane.xlu0 %3120 }
 0xd8f   :  { %v3123_v52 = vmul.f32 %v9378_v37, %v3121_v62 }
 0xd91   :  { %v3124_v30 = vmul.f32 %v3123_v52, %v10819_v59  ;;  %v3125_v29 = vmul.f32 %v3123_v52, %v10814_v6  ;;  %v10960_v52 = vsel %vm3026_vm10, %v3121_v62, %v10862_v27  ;;  %v10975_v62 = vsel %vm3026_vm10, %v10885_v36, %v10877_v47 }
 0xd92   :  { %vm3137_vm11 = vcmp.ge.f32.partialorder %v10960_v52, 1e-05 }
 0xd93   :  { %v3126_v1 = vadd.f32 %v3124_v30, %v10882_v49  ;;  %v3127_v53 = vadd.f32 %v3125_v29, %v10885_v36 }
 0xd95   :  { %v10912_v40 = vsel %vm3026_vm10, %v3127_v53, %v10814_v6  ;;  %v10917_v11 = vsel %vm3026_vm10, %v3126_v1, %v10819_v59 }
 0xd96   :  { %3202 = vmatprep.mubr.f32.mxu1 %v10912_v40 }
 0xd97   :  { %3203 = vmatmul.mubr.f32.vlgmr.msra.gmra.mrb[10].mxu1 %v10917_v11 }
 0xd98   :  { %8275 = vmatpush1.bf16.msra.mxu1 %v10468_v42 }
 0xd99   :  { %8277 = vmatprep.subr.bf16.mxu1 %v10470_v43 }
 0xd9c   :  { %8279 = vmatpush1.bf16.msra.mxu1 %v10475_v26 }
 0xd9d   :  { %8281 = vmatprep.subr.bf16.mxu1 %v10479_v20 }
 0xda0   :  { %8283 = vmatpush1.bf16.msra.mxu1 %v10483_v57 }
 0xda1   :  { %8285 = vmatprep.subr.bf16.mxu1 %v10487_v58 }
 0xda4   :  { %8287 = vmatpush1.bf16.msra.mxu1 %v10491_v61 }
 0xda5   :  { %8289 = vmatprep.subr.bf16.mxu1 %v10495_v56 }
 0xda8   :  { %8291 = vmatpush1.bf16.msra.mxu1 %v10499_v3 }
 0xda9   :  { %8293 = vmatprep.subr.bf16.mxu1 %v10503_v5 }
 0xdac   :  { %8295 = vmatpush1.bf16.msra.mxu1 %v10507_v18 }
 0xdad   :  { %8297 = vmatprep.subr.bf16.mxu1 %v10511_v21 }
 0xdb0   :  { %8299 = vmatpush1.bf16.msra.mxu1 %v10515_v7 }
 0xdb1   :  { %8301 = vmatprep.subr.bf16.mxu1 %v10519_v22 }
 0xdb4   :  { %8303 = vmatpush1.bf16.msra.mxu1 %v10523_v34 }
 0xdb5   :  { %8305 = vmatprep.subr.bf16.mxu1 %v10527_v4 }
 0xdb8   :  { %8307 = vmatpush1.bf16.msra.mxu1 %v10531_v17 }
 0xdb9   :  { %8309 = vmatprep.subr.bf16.mxu1 %v10535_v39 }
 0xdbc   :  { %8311 = vmatpush1.bf16.msra.mxu1 %v10539_v45 }
 0xdbd   :  { %8313 = vmatprep.subr.bf16.mxu1 %v10567_v46 }
 0xdc0   :  { %8315 = vmatpush1.bf16.msra.mxu1 %v10569_v50 }
 0xdc1   :  { %8317 = vmatprep.subr.bf16.mxu1 %v10575_v41 }
 0xdc4   :  { %8319 = vmatpush1.bf16.msra.mxu1 %v10577_v60 }
 0xdc5   :  { %8321 = vmatprep.subr.bf16.mxu1 %v10583_v0 }
 0xdc8   :  { %8323 = vmatpush1.bf16.msra.mxu1 %v10585_v51 }
 0xdc9   :  { %8325 = vmatprep.subr.bf16.mxu1 %v10591_v23 }
 0xdcc   :  { %8327 = vmatpush1.bf16.msra.mxu1 %v10593_v19 }
 0xdcd   :  { %8329 = vmatprep.subr.bf16.mxu1 %v10599_v35 }
 0xdd0   :  { %8331 = vmatpush1.bf16.msra.mxu1 %v10601_v38 }
 0xdd1   :  { %8333 = vmatprep.subr.bf16.mxu1 %v10607_v31 }
 0xdd4   :  { %8335 = vmatpush1.bf16.msra.mxu1 %v10609_v55 }
 0xdd5   :  { %8401 = vmatprep.subr.bf16.mxu1 %v10466_v12 }
 0xe6a   :  { %v3204_v6 = vpop.f32.mrb[10].mxu1 }
 0xe6b   :  { %v3209_v59 = vmul.f32 %v3204_v6, %v10917_v11  ;;  %v3206_v33 = vpop.f32.mrb[11].mxu1 }
 0xe6c   :  { %v3210_v48 = vmul.f32 %v3206_v33, %v10912_v40 }
 0xe6d   :  { %v3211_v10 = vsel %vm2603_vm15, %v3209_v59, 0.0 }
 0xe6e   :  { %v3212_v44 = vsel %vm2603_vm15, %v3210_v48, 0.0  ;;  %v10969_v48 = vsel %vm3026_vm10, %v10882_v49, %v10871_v8 }
 0xe6f   :  { %v3213_v63 = vadd.f32 %v3212_v44, %v3211_v10 }
 0xe71   :  { %3214 = vadd.xlane.f32.xlu1 %v3213_v63 }
 0xefe   :  { %v3215_v25 = vpop.xlane.xlu1 %3214 }
 0xeff   :  { %9379 = vrcp.f32 %v3215_v25 }
 0xf00   :  { %9381 = vrcp.f32 %v10960_v52 }
 0xf09   :  { %v9380_v37 = vpop.eup %9379 }
 0xf0a   :  { %v3217_v30 = vmul.f32 %v9380_v37, %v10960_v52  ;;  %v9382_v37 = vpop.eup %9381 }
 0xf0c   :  { %v3218_v29 = vmul.f32 %v3217_v30, %v10917_v11  ;;  %v3219_v1 = vmul.f32 %v3217_v30, %v10912_v40  ;;  %v3222_v53 = vmul.f32 %v3217_v30, %v3204_v6  ;;  %v3223_v59 = vmul.f32 %v3217_v30, %v3206_v33 }
 0xf0e   :  { %v3220_v10 = vadd.f32 %v3218_v29, %v10895_v32  ;;  %v3221_v44 = vadd.f32 %v3219_v1, %v10900_v54  ;;  %v10980_v63 = vsub.f32 %v10969_v48, %v3222_v53  ;;  %v10983_v6 = vsub.f32 %v10975_v62, %v3223_v59 }
 0xf10   :  { %v3226_v8 = vmul.f32 %v10980_v63, %v10980_v63  ;;  %v3227_v27 = vmul.f32 %v10983_v6, %v10983_v6  ;;  %v10993_v47 = vsel %vm3137_vm11, %v3220_v10, %v10895_v32  ;;  %v10998_v49 = vsel %vm3137_vm11, %v3221_v44, %v10900_v54 }
 0xf12   :  { %v3228_v36 = vsel %vm2603_vm15, %v3226_v8, 0.0  ;;  %v3229_v33 = vsel %vm2603_vm15, %v3227_v27, 0.0 }
 0xf13   :  { %v3230_v25 = vadd.f32 %v3229_v33, %v3228_v36 }
 0xf15   :  { %3231 = vadd.xlane.f32.xlu0 %v3230_v25 }
 0xfa2   :  { %v3232_v30 = vpop.xlane.xlu0 %3231 }
 0xfa3   :  { %v3234_v29 = vmul.f32 %v9382_v37, %v3232_v30 }
 0xfa5   :  { %v3235_v1 = vmul.f32 %v3234_v29, %v10917_v11  ;;  %v3236_v32 = vmul.f32 %v3234_v29, %v10912_v40  ;;  %v11058_v29 = vsel %vm3137_vm11, %v3232_v30, %v10960_v52  ;;  %v11073_v30 = vsel %vm3137_vm11, %v10983_v6, %v10975_v62 }
 0xfa6   :  { %vm3248_vm10 = vcmp.ge.f32.partialorder %v11058_v29, 1e-05 }
 0xfa7   :  { %v3237_v53 = vadd.f32 %v3235_v1, %v10980_v63  ;;  %v3238_v54 = vadd.f32 %v3236_v32, %v10983_v6 }
 0xfa9   :  { %v11010_v59 = vsel %vm3137_vm11, %v3238_v54, %v10912_v40  ;;  %v11015_v10 = vsel %vm3137_vm11, %v3237_v53, %v10917_v11 }
 0xfaa   :  { %3313 = vmatprep.mubr.f32.mxu0 %v11010_v59 }
 0xfab   :  { %3314 = vmatmul.mubr.f32.vlgmr.msra.gmra.mrb[12].mxu0 %v11015_v10 }
 0xfac   :  { %8339 = vmatpush1.bf16.msra.mxu0 %v10468_v42 }
 0xfad   :  { %8341 = vmatprep.subr.bf16.mxu0 %v10470_v43 }
 0xfb0   :  { %8343 = vmatpush1.bf16.msra.mxu0 %v10475_v26 }
 0xfb1   :  { %8345 = vmatprep.subr.bf16.mxu0 %v10479_v20 }
 0xfb4   :  { %8347 = vmatpush1.bf16.msra.mxu0 %v10483_v57 }
 0xfb5   :  { %8349 = vmatprep.subr.bf16.mxu0 %v10487_v58 }
 0xfb8   :  { %8351 = vmatpush1.bf16.msra.mxu0 %v10491_v61 }
 0xfb9   :  { %8353 = vmatprep.subr.bf16.mxu0 %v10495_v56 }
 0xfbc   :  { %8355 = vmatpush1.bf16.msra.mxu0 %v10499_v3 }
 0xfbd   :  { %8357 = vmatprep.subr.bf16.mxu0 %v10503_v5 }
 0xfc0   :  { %8359 = vmatpush1.bf16.msra.mxu0 %v10507_v18 }
 0xfc1   :  { %8361 = vmatprep.subr.bf16.mxu0 %v10511_v21 }
 0xfc4   :  { %8363 = vmatpush1.bf16.msra.mxu0 %v10515_v7 }
 0xfc5   :  { %8365 = vmatprep.subr.bf16.mxu0 %v10519_v22 }
 0xfc8   :  { %8367 = vmatpush1.bf16.msra.mxu0 %v10523_v34 }
 0xfc9   :  { %8369 = vmatprep.subr.bf16.mxu0 %v10527_v4 }
 0xfcc   :  { %8371 = vmatpush1.bf16.msra.mxu0 %v10531_v17 }
 0xfcd   :  { %8373 = vmatprep.subr.bf16.mxu0 %v10535_v39 }
 0xfd0   :  { %8375 = vmatpush1.bf16.msra.mxu0 %v10539_v45 }
 0xfd1   :  { %8377 = vmatprep.subr.bf16.mxu0 %v10567_v46 }
 0xfd4   :  { %8379 = vmatpush1.bf16.msra.mxu0 %v10569_v50 }
 0xfd5   :  { %8381 = vmatprep.subr.bf16.mxu0 %v10575_v41 }
 0xfd8   :  { %8383 = vmatpush1.bf16.msra.mxu0 %v10577_v60 }
 0xfd9   :  { %8385 = vmatprep.subr.bf16.mxu0 %v10583_v0 }
 0xfdc   :  { %8387 = vmatpush1.bf16.msra.mxu0 %v10585_v51 }
 0xfdd   :  { %8389 = vmatprep.subr.bf16.mxu0 %v10591_v23 }
 0xfe0   :  { %8391 = vmatpush1.bf16.msra.mxu0 %v10593_v19 }
 0xfe1   :  { %8393 = vmatprep.subr.bf16.mxu0 %v10599_v35 }
 0xfe4   :  { %8395 = vmatpush1.bf16.msra.mxu0 %v10601_v38 }
 0xfe5   :  { %8397 = vmatprep.subr.bf16.mxu0 %v10607_v31 }
 0xfe8   :  { %8399 = vmatpush1.bf16.msra.mxu0 %v10609_v55 }
 0xfe9   :  { %8465 = vmatprep.subr.bf16.mxu0 %v10466_v12 }
0x107e   :  { %v3315_v40 = vpop.f32.mrb[12].mxu0 }
0x107f   :  { %v3320_v11 = vmul.f32 %v3315_v40, %v11015_v10  ;;  %v3317_v44 = vpop.f32.mrb[13].mxu0 }
0x1080   :  { %v3321_v8 = vmul.f32 %v3317_v44, %v11010_v59 }
0x1081   :  { %v3322_v27 = vsel %vm2603_vm15, %v3320_v11, 0.0 }
0x1082   :  { %v3323_v36 = vsel %vm2603_vm15, %v3321_v8, 0.0  ;;  %v11067_v8 = vsel %vm3137_vm11, %v10980_v63, %v10969_v48 }
0x1083   :  { %v3324_v33 = vadd.f32 %v3323_v36, %v3322_v27 }
0x1085   :  { %3325 = vadd.xlane.f32.xlu1 %v3324_v33 }
0x1112   :  { %v3326_v25 = vpop.xlane.xlu1 %3325 }
0x1113   :  { %9383 = vrcp.f32 %v3326_v25 }
0x1114   :  { %9385 = vrcp.f32 %v11058_v29 }
0x111d   :  { %v9384_v37 = vpop.eup %9383 }
0x111e   :  { %v3328_v1 = vmul.f32 %v9384_v37, %v11058_v29  ;;  %v9386_v37 = vpop.eup %9385 }
0x1120   :  { %v3329_v32 = vmul.f32 %v3328_v1, %v11015_v10  ;;  %v3330_v53 = vmul.f32 %v3328_v1, %v11010_v59  ;;  %v3333_v54 = vmul.f32 %v3328_v1, %v3315_v40  ;;  %v3334_v11 = vmul.f32 %v3328_v1, %v3317_v44 }
0x1122   :  { %v11076_v27 = vsub.f32 %v11067_v8, %v3333_v54  ;;  %v11079_v36 = vsub.f32 %v11073_v30, %v3334_v11  ;;  %v3331_v40 = vadd.f32 %v3329_v32, %v10993_v47  ;;  %v3332_v44 = vadd.f32 %v3330_v53, %v10998_v49 }
0x1124   :  { %v3337_v48 = vmul.f32 %v11076_v27, %v11076_v27  ;;  %v3338_v52 = vmul.f32 %v11079_v36, %v11079_v36  ;;  %v11091_v62 = vsel %vm3248_vm10, %v3331_v40, %v10993_v47  ;;  %v11096_v63 = vsel %vm3248_vm10, %v3332_v44, %v10998_v49 }
0x1126   :  { %v3339_v6 = vsel %vm2603_vm15, %v3337_v48, 0.0  ;;  %v3340_v33 = vsel %vm2603_vm15, %v3338_v52, 0.0 }
0x1127   :  { %v3341_v25 = vadd.f32 %v3340_v33, %v3339_v6 }
0x1129   :  { %3342 = vadd.xlane.f32.xlu0 %v3341_v25 }
0x11b6   :  { %v3343_v1 = vpop.xlane.xlu0 %3342 }
0x11b7   :  { %v3345_v32 = vmul.f32 %v9386_v37, %v3343_v1 }
0x11b9   :  { %v3346_v53 = vmul.f32 %v3345_v32, %v11015_v10  ;;  %v3347_v47 = vmul.f32 %v3345_v32, %v11010_v59  ;;  %v11156_v32 = vsel %vm3248_vm10, %v3343_v1, %v11058_v29  ;;  %v11171_v1 = vsel %vm3248_vm10, %v11079_v36, %v11073_v30 }
0x11ba   :  { %vm3359_vm11 = vcmp.ge.f32.partialorder %v11156_v32, 1e-05 }
0x11bb   :  { %v3348_v54 = vadd.f32 %v3346_v53, %v11076_v27  ;;  %v3349_v49 = vadd.f32 %v3347_v47, %v11079_v36 }
0x11bd   :  { %v11108_v11 = vsel %vm3248_vm10, %v3349_v49, %v11010_v59  ;;  %v11113_v40 = vsel %vm3248_vm10, %v3348_v54, %v11015_v10 }
0x11be   :  { %3424 = vmatprep.mubr.f32.mxu1 %v11108_v11 }
0x11bf   :  { %3425 = vmatmul.mubr.f32.vlgmr.msra.gmra.mrb[12].mxu1 %v11113_v40 }
0x11c0   :  { %8403 = vmatpush1.bf16.msra.mxu1 %v10468_v42 }
0x11c1   :  { %8405 = vmatprep.subr.bf16.mxu1 %v10470_v43 }
0x11c4   :  { %8407 = vmatpush1.bf16.msra.mxu1 %v10475_v26 }
0x11c5   :  { %8409 = vmatprep.subr.bf16.mxu1 %v10479_v20 }
0x11c8   :  { %8411 = vmatpush1.bf16.msra.mxu1 %v10483_v57 }
0x11c9   :  { %8413 = vmatprep.subr.bf16.mxu1 %v10487_v58 }
0x11cc   :  { %8415 = vmatpush1.bf16.msra.mxu1 %v10491_v61 }
0x11cd   :  { %8417 = vmatprep.subr.bf16.mxu1 %v10495_v56 }
0x11d0   :  { %8419 = vmatpush1.bf16.msra.mxu1 %v10499_v3 }
0x11d1   :  { %8421 = vmatprep.subr.bf16.mxu1 %v10503_v5 }
0x11d4   :  { %8423 = vmatpush1.bf16.msra.mxu1 %v10507_v18 }
0x11d5   :  { %8425 = vmatprep.subr.bf16.mxu1 %v10511_v21 }
0x11d8   :  { %8427 = vmatpush1.bf16.msra.mxu1 %v10515_v7 }
0x11d9   :  { %8429 = vmatprep.subr.bf16.mxu1 %v10519_v22 }
0x11dc   :  { %8431 = vmatpush1.bf16.msra.mxu1 %v10523_v34 }
0x11dd   :  { %8433 = vmatprep.subr.bf16.mxu1 %v10527_v4 }
0x11e0   :  { %8435 = vmatpush1.bf16.msra.mxu1 %v10531_v17 }
0x11e1   :  { %8437 = vmatprep.subr.bf16.mxu1 %v10535_v39 }
0x11e4   :  { %8439 = vmatpush1.bf16.msra.mxu1 %v10539_v45 }
0x11e5   :  { %8441 = vmatprep.subr.bf16.mxu1 %v10567_v46 }
0x11e8   :  { %8443 = vmatpush1.bf16.msra.mxu1 %v10569_v50 }
0x11e9   :  { %8445 = vmatprep.subr.bf16.mxu1 %v10575_v41 }
0x11ec   :  { %8447 = vmatpush1.bf16.msra.mxu1 %v10577_v60 }
0x11ed   :  { %8449 = vmatprep.subr.bf16.mxu1 %v10583_v0 }
0x11f0   :  { %8451 = vmatpush1.bf16.msra.mxu1 %v10585_v51 }
0x11f1   :  { %8453 = vmatprep.subr.bf16.mxu1 %v10591_v23 }
0x11f4   :  { %8455 = vmatpush1.bf16.msra.mxu1 %v10593_v19 }
0x11f5   :  { %8457 = vmatprep.subr.bf16.mxu1 %v10599_v35 }
0x11f8   :  { %8459 = vmatpush1.bf16.msra.mxu1 %v10601_v38 }
0x11f9   :  { %8461 = vmatprep.subr.bf16.mxu1 %v10607_v31 }
0x11fc   :  { %8463 = vmatpush1.bf16.msra.mxu1 %v10609_v55 }
0x11fd   :  { %8529 = vmatprep.subr.bf16.mxu1 %v10466_v12 }
0x1292   :  { %v3426_v59 = vpop.f32.mrb[12].mxu1 }
0x1293   :  { %v3431_v10 = vmul.f32 %v3426_v59, %v11113_v40  ;;  %v3428_v44 = vpop.f32.mrb[13].mxu1 }
0x1294   :  { %v3432_v48 = vmul.f32 %v3428_v44, %v11108_v11 }
0x1295   :  { %v3433_v52 = vsel %vm2603_vm15, %v3431_v10, 0.0  ;;  %v11165_v10 = vsel %vm3248_vm10, %v11076_v27, %v11067_v8 }
0x1296   :  { %v3434_v6 = vsel %vm2603_vm15, %v3432_v48, 0.0 }
0x1297   :  { %v3435_v33 = vadd.f32 %v3434_v6, %v3433_v52 }
0x1299   :  { %3436 = vadd.xlane.f32.xlu1 %v3435_v33 }
0x1326   :  { %v3437_v25 = vpop.xlane.xlu1 %3436 }
0x1327   :  { %9387 = vrcp.f32 %v3437_v25 }
0x1328   :  { %9389 = vrcp.f32 %v11156_v32 }
0x1331   :  { %v9388_v37 = vpop.eup %9387 }
0x1332   :  { %v3439_v12 = vmul.f32 %v9388_v37, %v11156_v32  ;;  %v9390_v25 = vpop.eup %9389 }
0x1334   :  { %v3440_v53 = vmul.f32 %v3439_v12, %v11113_v40  ;;  %v3441_v47 = vmul.f32 %v3439_v12, %v11108_v11  ;;  %v3444_v54 = vmul.f32 %v3439_v12, %v3426_v59  ;;  %v3445_v49 = vmul.f32 %v3439_v12, %v3428_v44 }
0x1336   :  { %v11174_v48 = vsub.f32 %v11165_v10, %v3444_v54  ;;  %v11177_v52 = vsub.f32 %v11171_v1, %v3445_v49  ;;  %v3442_v59 = vadd.f32 %v3440_v53, %v11091_v62  ;;  %v3443_v44 = vadd.f32 %v3441_v47, %v11096_v63 }
0x1338   :  { %v3448_v8 = vmul.f32 %v11174_v48, %v11174_v48  ;;  %v3449_v29 = vmul.f32 %v11177_v52, %v11177_v52  ;;  %v11189_v30 = vsel %vm3359_vm11, %v3442_v59, %v11091_v62  ;;  %v11194_v27 = vsel %vm3359_vm11, %v3443_v44, %v11096_v63 }
0x133a   :  { %v3450_v36 = vsel %vm2603_vm15, %v3448_v8, 0.0  ;;  %v3451_v6 = vsel %vm2603_vm15, %v3449_v29, 0.0 }
0x133b   :  { %v3452_v33 = vadd.f32 %v3451_v6, %v3450_v36 }
0x133d   :  { %3453 = vadd.xlane.f32.xlu0 %v3452_v33 }
0x13ca   :  { %v3454_v37 = vpop.xlane.xlu0 %3453 }
0x13cb   :  { %v3456_v12 = vmul.f32 %v9390_v25, %v3454_v37  ;;  %v11253_v25 = vsel %vm3359_vm11, %v3454_v37, %v11156_v32  ;;  %v11268_v37 = vsel %vm3359_vm11, %v11177_v52, %v11171_v1 }
0x13cc   :  { %vm3470_vm10 = vcmp.ge.f32.partialorder %v11253_v25, 1e-05 }
0x13cd   :  { %v3457_v53 = vmul.f32 %v3456_v12, %v11113_v40  ;;  %v3458_v62 = vmul.f32 %v3456_v12, %v11108_v11 }
0x13cf   :  { %v3459_v47 = vadd.f32 %v3457_v53, %v11174_v48  ;;  %v3460_v63 = vadd.f32 %v3458_v62, %v11177_v52 }
0x13d1   :  { %v11206_v54 = vsel %vm3359_vm11, %v3460_v63, %v11108_v11  ;;  %v11211_v49 = vsel %vm3359_vm11, %v3459_v47, %v11113_v40 }
0x13d2   :  { %3535 = vmatprep.mubr.f32.mxu0 %v11206_v54 }
0x13d3   :  { %3536 = vmatmul.mubr.f32.vlgmr.msra.gmra.mrb[14].mxu0 %v11211_v49 }
0x13d4   :  { %8467 = vmatpush1.bf16.msra.mxu0 %v10468_v42 }
0x13d5   :  { %8469 = vmatprep.subr.bf16.mxu0 %v10470_v43 }
0x13d8   :  { %8471 = vmatpush1.bf16.msra.mxu0 %v10475_v26 }
0x13d9   :  { %8473 = vmatprep.subr.bf16.mxu0 %v10479_v20 }
0x13dc   :  { %8475 = vmatpush1.bf16.msra.mxu0 %v10483_v57 }
0x13dd   :  { %8477 = vmatprep.subr.bf16.mxu0 %v10487_v58 }
0x13e0   :  { %8479 = vmatpush1.bf16.msra.mxu0 %v10491_v61 }
0x13e1   :  { %8481 = vmatprep.subr.bf16.mxu0 %v10495_v56 }
0x13e4   :  { %8483 = vmatpush1.bf16.msra.mxu0 %v10499_v3 }
0x13e5   :  { %8485 = vmatprep.subr.bf16.mxu0 %v10503_v5 }
0x13e8   :  { %8487 = vmatpush1.bf16.msra.mxu0 %v10507_v18 }
0x13e9   :  { %8489 = vmatprep.subr.bf16.mxu0 %v10511_v21 }
0x13ec   :  { %8491 = vmatpush1.bf16.msra.mxu0 %v10515_v7 }
0x13ed   :  { %8493 = vmatprep.subr.bf16.mxu0 %v10519_v22 }
0x13f0   :  { %8495 = vmatpush1.bf16.msra.mxu0 %v10523_v34 }
0x13f1   :  { %8497 = vmatprep.subr.bf16.mxu0 %v10527_v4 }
0x13f4   :  { %8499 = vmatpush1.bf16.msra.mxu0 %v10531_v17 }
0x13f5   :  { %8501 = vmatprep.subr.bf16.mxu0 %v10535_v39 }
0x13f8   :  { %8503 = vmatpush1.bf16.msra.mxu0 %v10539_v45 }
0x13f9   :  { %8505 = vmatprep.subr.bf16.mxu0 %v10567_v46 }
0x13fc   :  { %8507 = vmatpush1.bf16.msra.mxu0 %v10569_v50 }
0x13fd   :  { %8509 = vmatprep.subr.bf16.mxu0 %v10575_v41 }
0x1400   :  { %8511 = vmatpush1.bf16.msra.mxu0 %v10577_v60 }
0x1401   :  { %8513 = vmatprep.subr.bf16.mxu0 %v10583_v0 }
0x1404   :  { %8515 = vmatpush1.bf16.msra.mxu0 %v10585_v51 }
0x1405   :  { %8517 = vmatprep.subr.bf16.mxu0 %v10591_v23 }
0x1408   :  { %8519 = vmatpush1.bf16.msra.mxu0 %v10593_v19 }
0x1409   :  { %8521 = vmatprep.subr.bf16.mxu0 %v10599_v35 }
0x140c   :  { %8523 = vmatpush1.bf16.msra.mxu0 %v10601_v38 }
0x140d   :  { %8525 = vmatprep.subr.bf16.mxu0 %v10607_v31 }
0x1410   :  { %8527 = vmatpush1.bf16.msra.mxu0 %v10609_v55 }
0x14a6   :  { %v3537_v11 = vpop.f32.mrb[14].mxu0 }
0x14a7   :  { %v3542_v40 = vmul.f32 %v3537_v11, %v11211_v49  ;;  %v3539_v59 = vpop.f32.mrb[15].mxu0 }
0x14a8   :  { %v3543_v44 = vmul.f32 %v3539_v59, %v11206_v54 }
0x14a9   :  { %v3544_v8 = vsel %vm2603_vm15, %v3542_v40, 0.0  ;;  %v11262_v40 = vsel %vm3359_vm11, %v11174_v48, %v11165_v10 }
0x14aa   :  { %v3545_v29 = vsel %vm2603_vm15, %v3543_v44, 0.0 }
0x14ab   :  { %v3546_v36 = vadd.f32 %v3545_v29, %v3544_v8 }
0x14ad   :  { %3547 = vadd.xlane.f32.xlu1 %v3546_v36 }
0x153a   :  { %v3548_v6 = vpop.xlane.xlu1 %3547 }
0x153b   :  { %9391 = vrcp.f32 %v3548_v6 }
0x153c   :  { %9393 = vrcp.f32 %v11253_v25 }
0x1545   :  { %v9392_v33 = vpop.eup %9391 }
0x1546   :  { %v3550_v12 = vmul.f32 %v9392_v33, %v11253_v25  ;;  %v9394_v6 = vpop.eup %9393 }
0x1548   :  { %v3555_v53 = vmul.f32 %v3550_v12, %v3537_v11  ;;  %v3556_v62 = vmul.f32 %v3550_v12, %v3539_v59  ;;  %v3551_v47 = vmul.f32 %v3550_v12, %v11211_v49  ;;  %v3552_v63 = vmul.f32 %v3550_v12, %v11206_v54 }
0x154a   :  { %v11271_v44 = vsub.f32 %v11262_v40, %v3555_v53  ;;  %v11274_v11 = vsub.f32 %v11268_v37, %v3556_v62  ;;  %v3553_v59 = vadd.f32 %v3551_v47, %v11189_v30  ;;  %v3554_v8 = vadd.f32 %v3552_v63, %v11194_v27 }
0x154c   :  { %v3559_v10 = vmul.f32 %v11271_v44, %v11271_v44  ;;  %v3560_v32 = vmul.f32 %v11274_v11, %v11274_v11  ;;  %v11286_v1 = vsel %vm3470_vm10, %v3553_v59, %v11189_v30  ;;  %v11291_v48 = vsel %vm3470_vm10, %v3554_v8, %v11194_v27 }
0x154e   :  { %v3561_v52 = vsel %vm2603_vm15, %v3559_v10, 0.0  ;;  %v3562_v29 = vsel %vm2603_vm15, %v3560_v32, 0.0 }
0x154f   :  { %v3563_v36 = vadd.f32 %v3562_v29, %v3561_v52 }
0x1551   :  { %3564 = vadd.xlane.f32.xlu0 %v3563_v36 }
0x15de   :  { %v3565_v33 = vpop.xlane.xlu0 %3564 }
0x15df   :  { %v3567_v12 = vmul.f32 %v9394_v6, %v3565_v33 }
0x15e1   :  { %v3568_v53 = vmul.f32 %v3567_v12, %v11211_v49  ;;  %v3569_v30 = vmul.f32 %v3567_v12, %v11206_v54 }
0x15e3   :  { %v3570_v62 = vadd.f32 %v3568_v53, %v11271_v44  ;;  %v3571_v27 = vadd.f32 %v3569_v30, %v11274_v11 }
0x15e5   :  { %v11303_v47 = vsel %vm3470_vm10, %v3571_v27, %v11206_v54  ;;  %v11308_v63 = vsel %vm3470_vm10, %v3570_v62, %v11211_v49 }
0x15e6   :  { %3646 = vmatprep.mubr.f32.mxu1 %v11303_v47 }
0x15e7   :  { %3647 = vmatmul.mubr.f32.vlgmr.msra.gmra.mrb[14].mxu1 %v11308_v63 }
0x15e8   :  { %8531 = vmatpush1.bf16.msra.mxu1 %v10468_v42 }
0x15e9   :  { %8533 = vmatprep.subr.bf16.mxu1 %v10470_v43 }
0x15ec   :  { %8535 = vmatpush1.bf16.msra.mxu1 %v10475_v26 }
0x15ed   :  { %8537 = vmatprep.subr.bf16.mxu1 %v10479_v20 }
0x15f0   :  { %8539 = vmatpush1.bf16.msra.mxu1 %v10483_v57 }
0x15f1   :  { %8541 = vmatprep.subr.bf16.mxu1 %v10487_v58 }
0x15f4   :  { %8543 = vmatpush1.bf16.msra.mxu1 %v10491_v61 }
0x15f5   :  { %8545 = vmatprep.subr.bf16.mxu1 %v10495_v56 }
0x15f8   :  { %8547 = vmatpush1.bf16.msra.mxu1 %v10499_v3 }
0x15f9   :  { %8549 = vmatprep.subr.bf16.mxu1 %v10503_v5  ;;  %v3580_v5 = vsel %vm3470_vm10, %v3565_v33, %v11253_v25 }
0x15fa   :  { %vm3581_vm11 = vcmp.ge.f32.partialorder %v3580_v5, 1e-05 }
0x15fc   :  { %8551 = vmatpush1.bf16.msra.mxu1 %v10507_v18 }
0x15fd   :  { %8553 = vmatprep.subr.bf16.mxu1 %v10511_v21 }
0x1600   :  { %8555 = vmatpush1.bf16.msra.mxu1 %v10515_v7 }
0x1601   :  { %8557 = vmatprep.subr.bf16.mxu1 %v10519_v22 }
0x1604   :  { %8559 = vmatpush1.bf16.msra.mxu1 %v10523_v34 }
0x1605   :  { %8561 = vmatprep.subr.bf16.mxu1 %v10527_v4  ;;  %v3576_v4 = vsel %vm3470_vm10, %v11271_v44, %v11262_v40 }
0x1608   :  { %8563 = vmatpush1.bf16.msra.mxu1 %v10531_v17  ;;  %v3577_v17 = vsel %vm3470_vm10, %v11274_v11, %v11268_v37  ;;  %v13108_v11 = vmov 0.0  }
0x1609   :  { %8565 = vmatprep.subr.bf16.mxu1 %v10535_v39 }
0x160c   :  { %8567 = vmatpush1.bf16.msra.mxu1 %v10539_v45 }
0x160d   :  { %8569 = vmatprep.subr.bf16.mxu1 %v10567_v46 }
0x1610   :  { %8571 = vmatpush1.bf16.msra.mxu1 %v10569_v50 }
0x1611   :  { %8573 = vmatprep.subr.bf16.mxu1 %v10575_v41 }
0x1614   :  { %8575 = vmatpush1.bf16.msra.mxu1 %v10577_v60 }
0x1615   :  { %8577 = vmatprep.subr.bf16.mxu1 %v10583_v0 }
0x1618   :  { %8579 = vmatpush1.bf16.msra.mxu1 %v10585_v51 }
0x1619   :  { %8581 = vmatprep.subr.bf16.mxu1 %v10591_v23 }
0x161c   :  { %8583 = vmatpush1.bf16.msra.mxu1 %v10593_v19 }
0x161d   :  { %8585 = vmatprep.subr.bf16.mxu1 %v10599_v35 }
0x1620   :  { %8587 = vmatpush1.bf16.msra.mxu1 %v10601_v38 }
0x1621   :  { %8589 = vmatprep.subr.bf16.mxu1 %v10607_v31 }
0x1624   :  { %8591 = vmatpush1.bf16.msra.mxu1 %v10609_v55 }
0x16ba   :  { %v3648_v42 = vpop.f32.mrb[14].mxu1 }
0x16bb   :  { %v3653_v43 = vmul.f32 %v3648_v42, %v11308_v63  ;;  %v3650_v26 = vpop.f32.mrb[15].mxu1 }
0x16bc   :  { %v3654_v20 = vmul.f32 %v3650_v26, %v11303_v47 }
0x16bd   :  { %v3655_v57 = vsel %vm2603_vm15, %v3653_v43, 0.0 }
0x16be   :  { %v3656_v58 = vsel %vm2603_vm15, %v3654_v20, 0.0 }
0x16bf   :  { %v3657_v61 = vadd.f32 %v3656_v58, %v3655_v57 }
0x16c1   :  { %3658 = vadd.xlane.f32.xlu1 %v3657_v61 }
0x174e   :  { %v3659_v56 = vpop.xlane.xlu1 %3658 }
0x174f   :  { %9395 = vrcp.f32 %v3659_v56 }
0x1750   :  { %9397 = vrcp.f32 %v3580_v5 }
0x1759   :  { %v9396_v3 = vpop.eup %9395 }
0x175a   :  { %v3661_v18 = vmul.f32 %v9396_v3, %v3580_v5  ;;  %v9398_v38 = vpop.eup %9397 }
0x175c   :  { %v3666_v21 = vmul.f32 %v3661_v18, %v3648_v42  ;;  %v3667_v7 = vmul.f32 %v3661_v18, %v3650_v26  ;;  %v3662_v22 = vmul.f32 %v3661_v18, %v11308_v63  ;;  %v3663_v34 = vmul.f32 %v3661_v18, %v11303_v47 }
0x175e   :  { %v3668_v39 = vsub.f32 %v3576_v4, %v3666_v21  ;;  %v3669_v45 = vsub.f32 %v3577_v17, %v3667_v7  ;;  %v3664_v46 = vadd.f32 %v3662_v22, %v11286_v1  ;;  %v3665_v50 = vadd.f32 %v3663_v34, %v11291_v48 }
0x1760   :  { %v3670_v41 = vmul.f32 %v3668_v39, %v3668_v39  ;;  %v3671_v60 = vmul.f32 %v3669_v45, %v3669_v45  ;;  %v3685_v0 = vsel %vm3581_vm11, %v3664_v46, %v11286_v1  ;;  %v3686_v51 = vsel %vm3581_vm11, %v3665_v50, %v11291_v48 }
0x1761   :  { %v3687_v27 = vsel %vm3581_vm11, %v3668_v39, %v3576_v4 }
0x1762   :  { %v3672_v23 = vsel %vm2603_vm15, %v3670_v41, 0.0  ;;  %v3673_v19 = vsel %vm2603_vm15, %v3671_v60, 0.0 }
0x1763   :  { %v3674_v35 = vadd.f32 %v3673_v19, %v3672_v23 }
0x1765   :  { %3675 = vadd.xlane.f32.xlu0 %v3674_v35 }
0x17f2   :  { %v3676_v31 = vpop.xlane.xlu0 %3675 }
0x17f3   :  { %v3678_v55 = vmul.f32 %v9398_v38, %v3676_v31  ;;  %v3691_v6 = vsel %vm3581_vm11, %v3676_v31, %v3580_v5 }
0x17f4   :  { %vm3692_vm10 = vcmp.ge.f32.partialorder %v3691_v6, 1e-05 }
0x17f5   :  { %v3679_v54 = vmul.f32 %v3678_v55, %v11308_v63  ;;  %v3680_v49 = vmul.f32 %v3678_v55, %v11303_v47 }
0x17f7   :  { %v3681_v25 = vadd.f32 %v3679_v54, %v3668_v39  ;;  %v3682_v40 = vadd.f32 %v3680_v49, %v3669_v45 }
0x17f9   :  { %v3690_v37 = vsel %vm3581_vm11, %v3682_v40, %v11303_v47  ;;  %v3689_v44 = vsel %vm3581_vm11, %v3681_v25, %v11308_v63  ;;  %v3688_v47 = vsel %vm3581_vm11, %v3669_v45, %v3577_v17 }
0x17fa   :  { %3757 = vmatprep.mubr.f32.mxu0 %v3690_v37 }
0x17fb   :  { %3758 = vmatmul.mubr.f32.vlgmr.msra.gmra.mrb[16].mxu0 %v3689_v44 }
0x17fc   :  { %4625 = vmatprep.mubr.f32.mxu0 %v13108_v11 }
0x18ce   :  { %v3759_v59 = vpop.f32.mrb[16].mxu0 }
0x18cf   :  { %v3764_v8 = vmul.f32 %v3759_v59, %v3689_v44  ;;  %v3761_v10 = vpop.f32.mrb[17].mxu0 }
0x18d0   :  { %v3765_v32 = vmul.f32 %v3761_v10, %v3690_v37 }
0x18d1   :  { %v3766_v1 = vsel %vm2603_vm15, %v3764_v8, 0.0 }
0x18d2   :  { %v3767_v48 = vsel %vm2603_vm15, %v3765_v32, 0.0 }
0x18d3   :  { %v3768_v52 = vadd.f32 %v3767_v48, %v3766_v1 }
0x18d5   :  { %3769 = vadd.xlane.f32.xlu1 %v3768_v52 }
0x1962   :  { %v3770_v29 = vpop.xlane.xlu1 %3769 }
0x1963   :  { %9399 = vrcp.f32 %v3770_v29 }
0x1964   :  { %9401 = vrcp.f32 %v3691_v6 }
0x196d   :  { %v9400_v36 = vpop.eup %9399 }
0x196e   :  { %v3772_v33 = vmul.f32 %v9400_v36, %v3691_v6  ;;  %v9402_v5 = vpop.eup %9401 }
0x1970   :  { %v3777_v12 = vmul.f32 %v3772_v33, %v3759_v59  ;;  %v3778_v53 = vmul.f32 %v3772_v33, %v3761_v10  ;;  %v3773_v30 = vmul.f32 %v3772_v33, %v3689_v44  ;;  %v3774_v62 = vmul.f32 %v3772_v33, %v3690_v37 }
0x1972   :  { %v3779_v63 = vsub.f32 %v3687_v27, %v3777_v12  ;;  %v3780_v42 = vsub.f32 %v3688_v47, %v3778_v53  ;;  %v3775_v43 = vadd.f32 %v3773_v30, %v3685_v0  ;;  %v3776_v26 = vadd.f32 %v3774_v62, %v3686_v51 }
0x1974   :  { %v3781_v20 = vmul.f32 %v3779_v63, %v3779_v63  ;;  %v3782_v57 = vmul.f32 %v3780_v42, %v3780_v42  ;;  %v3796_v58 = vsel %vm3692_vm10, %v3775_v43, %v3685_v0  ;;  %v3797_v61 = vsel %vm3692_vm10, %v3776_v26, %v3686_v51 }
0x1976   :  { %v3783_v56 = vsel %vm2603_vm15, %v3781_v20, 0.0  ;;  %v3784_v3 = vsel %vm2603_vm15, %v3782_v57, 0.0 }
0x1977   :  { %v3785_v18 = vadd.f32 %v3784_v3, %v3783_v56  ;;  %v4540_v56 = vld [vmem:[%s13079_s3] sm:$0xff] }
0x1978   :  { %v3987_v3 = vld [vmem:[#allocation6] ss:$8 sm:$0xf] }
0x1979   :  { %3786 = vadd.xlane.f32.xlu0 %v3785_v18 }
0x1a06   :  { %v3787_v21 = vpop.xlane.xlu0 %3786 }
0x1a07   :  { %v3789_v7 = vmul.f32 %v9402_v5, %v3787_v21  ;;  %v3800_v38 = vsel %vm3692_vm10, %v3787_v21, %v3691_v6  ;;  %v3996_v21 = vrot.slane %v3987_v3, %v9694_v15 }
0x1a08   :  { %vm3801_vm11 = vcmp.ge.f32.partialorder %v3800_v38, 1e-05 }
0x1a09   :  { %v3790_v22 = vmul.f32 %v3789_v7, %v3689_v44  ;;  %v3791_v34 = vmul.f32 %v3789_v7, %v3690_v37  ;;  %v4000_v7 = vrot.slane %v3987_v3, %v9691_v14 }
0x1a0b   :  { %v3792_v4 = vadd.f32 %v3790_v22, %v3779_v63  ;;  %v3793_v17 = vadd.f32 %v3791_v34, %v3780_v42  ;;  %v4251_v42 = vld [vmem:[#allocation6 + $0x4] ss:$8 sm:$0xf]  ;;  %v3992_v22 = vrot.slane %v3987_v3, %v9688_v13  ;;  %v4004_v34 = vrot.slane %v3987_v3, %v9697_v16 }
0x1a0d   :  { %v3799_v39 = vsel %vm3692_vm10, %v3793_v17, %v3690_v37  ;;  %v3798_v45 = vsel %vm3692_vm10, %v3792_v4, %v3689_v44 }
0x1a0e   :  { %3866 = vmatprep.mubr.f32.mxu1 %v3799_v39 }
0x1a0f   :  { %3867 = vmatmul.mubr.f32.vlgmr.msra.gmra.mrb[16].mxu1 %v3798_v45 }
0x1a10   :  { %4696 = vmatprep.mubr.f32.mxu1 %v13108_v11 }
0x1ae2   :  { %v3868_v46 = vpop.f32.mrb[16].mxu1 }
0x1ae3   :  { %v3873_v50 = vmul.f32 %v3868_v46, %v3798_v45  ;;  %v3870_v41 = vpop.f32.mrb[17].mxu1 }
0x1ae4   :  { %v3874_v60 = vmul.f32 %v3870_v41, %v3799_v39 }
0x1ae5   :  { %v3875_v0 = vsel %vm2603_vm15, %v3873_v50, 0.0 }
0x1ae6   :  { %v3876_v51 = vsel %vm2603_vm15, %v3874_v60, 0.0 }
0x1ae7   :  { %v3877_v23 = vadd.f32 %v3876_v51, %v3875_v0 }
0x1ae9   :  { %3878 = vadd.xlane.f32.xlu1 %v3877_v23  ;;  %v4056_v23 = vld [vmem:[#allocation6 + $0x1] ss:$8 sm:$0xf] }
0x1b76   :  { %v3879_v19 = vpop.xlane.xlu1 %3878 }
0x1b77   :  { %9403 = vrcp.f32 %v3879_v19 }
0x1b81   :  { %v9404_v35 = vpop.eup %9403 }
0x1b82   :  { %v3881_v31 = vmul.f32 %v9404_v35, %v3800_v38 }
0x1b84   :  { %v3882_v55 = vmul.f32 %v3881_v31, %v3798_v45  ;;  %v3883_v54 = vmul.f32 %v3881_v31, %v3799_v39 }
0x1b86   :  { %v3884_v49 = vadd.f32 %v3882_v55, %v3796_v58  ;;  %v3885_v25 = vadd.f32 %v3883_v54, %v3797_v61  ;;  %v4065_v55 = vrot.slane %v4056_v23, %v9694_v15  ;;  %v4069_v54 = vrot.slane %v4056_v23, %v9691_v14 }
0x1b88   :  { %v3888_v40 = vsel %vm3801_vm11, %v3884_v49, %v3796_v58  ;;  %v3889_v37 = vsel %vm3801_vm11, %v3885_v25, %v3797_v61  ;;  %v4061_v49 = vrot.slane %v4056_v23, %v9688_v13 }
0x1b89   :  { %v3895_v44 = vsel %vm2603_vm15, %v3888_v40, -inf  ;;  %v3896_v59 = vsel %vm2603_vm15, %v3889_v37, -inf  ;;  %v3890_v8 = vsel %vm2603_vm15, %v3888_v40, inf  ;;  %v3891_v10 = vsel %vm2603_vm15, %v3889_v37, inf }
0x1b8a   :  { %v3897_v32 = vmax.f32 %v3895_v44, %v3896_v59  ;;  %v3892_v1 = vmin.f32 %v3890_v8, %v3891_v10  ;;  %v4073_v44 = vrot.slane %v4056_v23, %v9697_v16 }
0x1b8c   :  { %3898 = vmax.xlane.f32.xlu1 %v3897_v32  ;;  %3893 = vmin.xlane.f32.xlu0 %v3892_v1 }
0x1c19   :  { %v3899_v48 = vpop.xlane.xlu1 %3898  ;;  %v3894_v52 = vpop.xlane.xlu0 %3893 }
0x1c1a   :  { %v3902_v29 = vsub.f32 %v3899_v48, %v3894_v52  ;;  %v3900_v36 = vsub.f32 %v3888_v40, %v3894_v52  ;;  %v3901_v6 = vsub.f32 %v3889_v37, %v3894_v52 }
0x1c1c   :  { %9405 = vrcp.f32 %v3902_v29 }
0x1c26   :  { %v9406_v33 = vpop.eup %9405 }
0x1c27   :  { %v3905_v12 = vmul.f32 %v9406_v33, %v3900_v36  ;;  %v3906_v53 = vmul.f32 %v9406_v33, %v3901_v6 }
0x1c29   :  { %v11394_v30 = vcombine.low %v3905_v12, %v3906_v53  ;;  %v4125_v12 = vld [vmem:[#allocation6 + $0x2] ss:$8 sm:$0xf] }
0x1c2b   :  { %v3926_v62 = vrot.slane %v11394_v30, %v9677_v9 }
0x1c2d   :  { %v3933_v27 = vrot.slane %v3926_v62, %v9677_v9  ;;  %v3940_v47 = vcombine.high %v3926_v62, %v3926_v62 }
0x1c2f   :  { %v3947_v63 = vrot.slane %v3940_v47, %v9677_v9  ;;  %3951 = vst.msk [vmem:[#allocation3] sm:$0x3] %vm9662_vm0, %v3933_v27  ;;  %3935 = vst.msk [vmem:[#allocation12] ss:$2 sm:$0x3] %vm9662_vm0, %v3933_v27 }
0x1c31   :  { %3952 = vst.msk [vmem:[#allocation3 + $0x2] sm:$0x3] %vm9662_vm0, %v3947_v63  ;;  %3950 = vst.msk [vmem:[#allocation12 + $0x4] ss:$2 sm:$0x3] %vm9662_vm0, %v3947_v63  ;;  %v4134_v63 = vrot.slane %v4125_v12, %v9694_v15 }
0x1c38   :  { %v3953_v43 = vld [vmem:[#allocation3] sm:$0xf] }
0x1c39   :  { %v3962_v26 = vrot.slane %v3953_v43, %v9694_v15  ;;  %v4252_v20 = vmul.f32 %v4251_v42, %v3953_v43  ;;  %v3958_v57 = vrot.slane %v3953_v43, %v9688_v13  ;;  %v3966_v58 = vrot.slane %v3953_v43, %v9691_v14 }
0x1c3a   :  { %v3970_v61 = vrot.slane %v3953_v43, %v9697_v16  ;;  %v4138_v42 = vrot.slane %v4125_v12, %v9691_v14  ;;  %v4130_v43 = vrot.slane %v4125_v12, %v9688_v13 }
0x1c3b   :  { %3977 = vrot.lane.b32.xlu1 %v3962_v26, %s9552_s0  ;;  %4253 = vst.msk [vmem:[#allocation2 + $0x4] ss:$8 sm:$0xf] %vm9730_vm1, %v4252_v20  ;;  %3975 = vrot.lane.b32.xlu0 %v3958_v57, %s9552_s0 }
0x1c3f   :  { %3979 = vrot.lane.b32.xlu1 %v3966_v58, %s9552_s0  ;;  %3981 = vrot.lane.b32.xlu0 %v3970_v61, %s9552_s0 }
0x1c43   :  { %4044 = vrot.lane.b32.xlu1 %v3958_v57, %s9550_s24  ;;  %4046 = vrot.lane.b32.xlu0 %v3962_v26, %s9550_s24 }
0x1c47   :  { %4048 = vrot.lane.b32.xlu1 %v3966_v58, %s9550_s24  ;;  %4050 = vrot.lane.b32.xlu0 %v3970_v61, %s9550_s24 }
0x1c4b   :  { %4113 = vrot.lane.b32.xlu1 %v3958_v57, %s9553_s10  ;;  %4115 = vrot.lane.b32.xlu0 %v3962_v26, %s9553_s10 }
0x1c4f   :  { %4117 = vrot.lane.b32.xlu1 %v3966_v58, %s9553_s10  ;;  %4119 = vrot.lane.b32.xlu0 %v3970_v61, %s9553_s10 }
0x1c53   :  { %4182 = vrot.lane.b32.xlu1 %v3958_v57, %s9554_s14  ;;  %4184 = vrot.lane.b32.xlu0 %v3962_v26, %s9554_s14 }
0x1c57   :  { %4186 = vrot.lane.b32.xlu1 %v3966_v58, %s9554_s14  ;;  %4188 = vrot.lane.b32.xlu0 %v3970_v61, %s9554_s14 }
0x1c5b   :  { %4255 = vrot.lane.b32.xlu1 %v3958_v57, %s9555_s15  ;;  %4257 = vrot.lane.b32.xlu0 %v3962_v26, %s9555_s15 }
0x1c5f   :  { %4259 = vrot.lane.b32.xlu1 %v3966_v58, %s9555_s15  ;;  %4261 = vrot.lane.b32.xlu0 %v3970_v61, %s9555_s15 }
0x1c63   :  { %4324 = vrot.lane.b32.xlu1 %v3958_v57, %s9556_s16  ;;  %4326 = vrot.lane.b32.xlu0 %v3962_v26, %s9556_s16 }
0x1c67   :  { %4328 = vrot.lane.b32.xlu1 %v3966_v58, %s9556_s16  ;;  %4330 = vrot.lane.b32.xlu0 %v3970_v61, %s9556_s16 }
0x1c6b   :  { %4393 = vrot.lane.b32.xlu1 %v3958_v57, %s9557_s17  ;;  %4395 = vrot.lane.b32.xlu0 %v3962_v26, %s9557_s17 }
0x1c6f   :  { %4397 = vrot.lane.b32.xlu1 %v3966_v58, %s9557_s17  ;;  %4399 = vrot.lane.b32.xlu0 %v3970_v61, %s9557_s17 }
0x1c73   :  { %4462 = vrot.lane.b32.xlu1 %v3958_v57, %s9558_s18  ;;  %4464 = vrot.lane.b32.xlu0 %v3962_v26, %s9558_s18 }
0x1c77   :  { %4466 = vrot.lane.b32.xlu1 %v3966_v58, %s9558_s18  ;;  %4468 = vrot.lane.b32.xlu0 %v3970_v61, %s9558_s18  ;;  %v4142_v58 = vrot.slane %v4125_v12, %v9697_v16 }
0x1c7b   :  { %4543 = vperm.xlu1 %9364, %v4540_v56  }
0x1cad   :  { %v3978_v18 = vpop.permute.xlu1 %3977  ;;  %v3976_v5 = vpop.permute.xlu0 %3975 }
0x1cae   :  { %v3985_v4 = vsel %vm129_vm2, %v3976_v5, %v3978_v18 }
0x1caf   :  { %v4010_v41 = vmul.f32 %v3996_v21, %v3985_v4 }
0x1cb1   :  { %v3980_v17 = vpop.permute.xlu1 %3979  ;;  %v3982_v39 = vpop.permute.xlu0 %3981 }
0x1cb2   :  { %v3984_v45 = vsel %vm129_vm2, %v3978_v18, %v3980_v17  ;;  %v3983_v46 = vsel %vm129_vm2, %v3980_v17, %v3982_v39  ;;  %v3986_v50 = vsel %vm129_vm2, %v3982_v39, %v3976_v5  ;;  %v4194_v39 = vld [vmem:[#allocation6 + $0x3] ss:$8 sm:$0xf] }
0x1cb3   :  { %v4011_v60 = vmul.f32 %v4000_v7, %v3984_v45  ;;  %v4009_v0 = vmul.f32 %v3992_v22, %v3986_v50  ;;  %v4012_v51 = vmul.f32 %v4004_v34, %v3983_v46 }
0x1cb5   :  { %v4017_v19 = vcombine.low %v4009_v0, %v4010_v41  ;;  %v4018_v35 = vcombine.low %v4011_v60, %v4012_v51  ;;  %v4045_v38 = vpop.permute.xlu1 %4044  ;;  %v4047_v31 = vpop.permute.xlu0 %4046  ;;  %v4203_v60 = vrot.slane %v4194_v39, %v9694_v15  ;;  %v4207_v0 = vrot.slane %v4194_v39, %v9691_v14 }
0x1cb6   :  { %v4054_v37 = vsel %vm201_vm3, %v4045_v38, %v4047_v31  ;;  %v4199_v51 = vrot.slane %v4194_v39, %v9688_v13 }
0x1cb7   :  { %v4025_v25 = vrot.slane %v4017_v19, %v9677_v9  ;;  %v4032_v40 = vrot.slane %v4018_v35, %v9677_v9  ;;  %v4079_v32 = vmul.f32 %v4065_v55, %v4054_v37 }
0x1cb9   :  { %v4033_v59 = vcombine.low %v4025_v25, %v4032_v40  ;;  %v4049_v8 = vpop.permute.xlu1 %4048  ;;  %v4051_v10 = vpop.permute.xlu0 %4050 }
0x1cba   :  { %v4053_v1 = vsel %vm201_vm3, %v4047_v31, %v4049_v8  ;;  %v4052_v48 = vsel %vm201_vm3, %v4049_v8, %v4051_v10  ;;  %v4055_v52 = vsel %vm201_vm3, %v4051_v10, %v4045_v38  ;;  %v4211_v38 = vrot.slane %v4194_v39, %v9697_v16 }
0x1cbb   :  { %v4040_v29 = vrot.slane %v4033_v59, %v9677_v9  ;;  %v4080_v36 = vmul.f32 %v4069_v54, %v4053_v1  ;;  %v4078_v6 = vmul.f32 %v4061_v49, %v4055_v52  ;;  %v4081_v33 = vmul.f32 %v4073_v44, %v4052_v48 }
0x1cbd   :  { %4042 = vst.msk [vmem:[#allocation2] ss:$8 sm:$0xf] %vm9730_vm1, %v4040_v29  ;;  %v4086_v53 = vcombine.low %v4078_v6, %v4079_v32  ;;  %v4087_v62 = vcombine.low %v4080_v36, %v4081_v33  ;;  %v4114_v27 = vpop.permute.xlu1 %4113  ;;  %v4116_v47 = vpop.permute.xlu0 %4115  ;;  %v4267_v32 = vld [vmem:[#allocation6 + $0x5] ss:$8 sm:$0xf] }
0x1cbe   :  { %v4123_v57 = vsel %vm273_vm4, %v4114_v27, %v4116_v47  ;;  %v4272_v36 = vrot.slane %v4267_v32, %v9688_v13  ;;  %v4276_v6 = vrot.slane %v4267_v32, %v9694_v15  ;;  %v4280_v33 = vrot.slane %v4267_v32, %v9691_v14 }
0x1cbf   :  { %v4094_v26 = vrot.slane %v4086_v53, %v9677_v9  ;;  %v4101_v20 = vrot.slane %v4087_v62, %v9677_v9  ;;  %v4148_v18 = vmul.f32 %v4134_v63, %v4123_v57 }
0x1cc1   :  { %v4102_v61 = vcombine.low %v4094_v26, %v4101_v20  ;;  %v4118_v56 = vpop.permute.xlu1 %4117  ;;  %v4120_v3 = vpop.permute.xlu0 %4119 }
0x1cc2   :  { %v4122_v5 = vsel %vm273_vm4, %v4116_v47, %v4118_v56  ;;  %v4121_v21 = vsel %vm273_vm4, %v4118_v56, %v4120_v3  ;;  %v4124_v7 = vsel %vm273_vm4, %v4120_v3, %v4114_v27  ;;  %v4284_v27 = vrot.slane %v4267_v32, %v9697_v16 }
0x1cc3   :  { %v4109_v22 = vrot.slane %v4102_v61, %v9677_v9  ;;  %v4149_v34 = vmul.f32 %v4138_v42, %v4122_v5  ;;  %v4147_v4 = vmul.f32 %v4130_v43, %v4124_v7  ;;  %v4150_v17 = vmul.f32 %v4142_v58, %v4121_v21 }
0x1cc5   :  { %4111 = vst.msk [vmem:[#allocation2 + $0x1] ss:$8 sm:$0xf] %vm9730_vm1, %v4109_v22  ;;  %v4155_v45 = vcombine.low %v4147_v4, %v4148_v18  ;;  %v4156_v46 = vcombine.low %v4149_v34, %v4150_v17  ;;  %v4183_v50 = vpop.permute.xlu1 %4182  ;;  %v4185_v41 = vpop.permute.xlu0 %4184  ;;  %v4336_v18 = vld [vmem:[#allocation6 + $0x6] ss:$8 sm:$0xf] }
0x1cc6   :  { %v4192_v35 = vsel %vm345_vm5, %v4183_v50, %v4185_v41  ;;  %v4341_v34 = vrot.slane %v4336_v18, %v9688_v13  ;;  %v4345_v4 = vrot.slane %v4336_v18, %v9694_v15  ;;  %v4349_v17 = vrot.slane %v4336_v18, %v9691_v14 }
0x1cc7   :  { %v4163_v23 = vrot.slane %v4155_v45, %v9677_v9  ;;  %v4170_v19 = vrot.slane %v4156_v46, %v9677_v9  ;;  %v4217_v49 = vmul.f32 %v4203_v60, %v4192_v35 }
0x1cc9   :  { %v4171_v31 = vcombine.low %v4163_v23, %v4170_v19  ;;  %v4187_v55 = vpop.permute.xlu1 %4186  ;;  %v4189_v54 = vpop.permute.xlu0 %4188 }
0x1cca   :  { %v4191_v25 = vsel %vm345_vm5, %v4185_v41, %v4187_v55  ;;  %v4190_v40 = vsel %vm345_vm5, %v4187_v55, %v4189_v54  ;;  %v4193_v37 = vsel %vm345_vm5, %v4189_v54, %v4183_v50  ;;  %v4353_v50 = vrot.slane %v4336_v18, %v9697_v16 }
0x1ccb   :  { %v4178_v44 = vrot.slane %v4171_v31, %v9677_v9  ;;  %v4218_v59 = vmul.f32 %v4207_v0, %v4191_v25  ;;  %v4216_v8 = vmul.f32 %v4199_v51, %v4193_v37  ;;  %v4219_v10 = vmul.f32 %v4211_v38, %v4190_v40 }
0x1ccd   :  { %4180 = vst.msk [vmem:[#allocation2 + $0x2] ss:$8 sm:$0xf] %vm9730_vm1, %v4178_v44  ;;  %v4224_v1 = vcombine.low %v4216_v8, %v4217_v49  ;;  %v4225_v48 = vcombine.low %v4218_v59, %v4219_v10  ;;  %v4256_v52 = vpop.permute.xlu1 %4255  ;;  %v4258_v29 = vpop.permute.xlu0 %4257  ;;  %v4405_v49 = vld [vmem:[#allocation6 + $0x7] ss:$8 sm:$0xf] }
0x1cce   :  { %v4265_v62 = vsel %vm423_vm6, %v4256_v52, %v4258_v29  ;;  %v4410_v59 = vrot.slane %v4405_v49, %v9688_v13  ;;  %v4414_v8 = vrot.slane %v4405_v49, %v9694_v15  ;;  %v4418_v10 = vrot.slane %v4405_v49, %v9691_v14 }
0x1ccf   :  { %v4232_v12 = vrot.slane %v4224_v1, %v9677_v9  ;;  %v4239_v53 = vrot.slane %v4225_v48, %v9677_v9  ;;  %v4289_v43 = vmul.f32 %v4272_v36, %v4265_v62 }
0x1cd1   :  { %v4240_v47 = vcombine.low %v4232_v12, %v4239_v53  ;;  %v4260_v63 = vpop.permute.xlu1 %4259  ;;  %v4262_v42 = vpop.permute.xlu0 %4261 }
0x1cd2   :  { %v4264_v26 = vsel %vm423_vm6, %v4258_v29, %v4260_v63  ;;  %v4263_v20 = vsel %vm423_vm6, %v4260_v63, %v4262_v42  ;;  %v4266_v57 = vsel %vm423_vm6, %v4262_v42, %v4256_v52  ;;  %v4422_v52 = vrot.slane %v4405_v49, %v9697_v16 }
0x1cd3   :  { %v4247_v58 = vrot.slane %v4240_v47, %v9677_v9  ;;  %v4290_v61 = vmul.f32 %v4276_v6, %v4264_v26  ;;  %v4291_v56 = vmul.f32 %v4280_v33, %v4263_v20  ;;  %v4292_v3 = vmul.f32 %v4284_v27, %v4266_v57 }
0x1cd5   :  { %4249 = vst.msk [vmem:[#allocation2 + $0x3] ss:$8 sm:$0xf] %vm9730_vm1, %v4247_v58  ;;  %v4297_v5 = vcombine.low %v4289_v43, %v4290_v61  ;;  %v4298_v21 = vcombine.low %v4291_v56, %v4292_v3  ;;  %v4325_v7 = vpop.permute.xlu1 %4324  ;;  %v4327_v22 = vpop.permute.xlu0 %4326  ;;  %v4474_v43 = vld [vmem:[#allocation6 + $0x20] ss:$8 sm:$0xf] }
0x1cd6   :  { %v4334_v46 = vsel %vm495_vm7, %v4325_v7, %v4327_v22  ;;  %v4479_v61 = vrot.slane %v4474_v43, %v9688_v13  ;;  %v4483_v56 = vrot.slane %v4474_v43, %v9694_v15  ;;  %v4487_v3 = vrot.slane %v4474_v43, %v9691_v14 }
0x1cd7   :  { %v4305_v39 = vrot.slane %v4297_v5, %v9677_v9  ;;  %v4312_v45 = vrot.slane %v4298_v21, %v9677_v9  ;;  %v4358_v51 = vmul.f32 %v4341_v34, %v4334_v46 }
0x1cd9   :  { %v4313_v41 = vcombine.low %v4305_v39, %v4312_v45  ;;  %v4329_v60 = vpop.permute.xlu1 %4328  ;;  %v4331_v0 = vpop.permute.xlu0 %4330 }
0x1cda   :  { %v4333_v23 = vsel %vm495_vm7, %v4327_v22, %v4329_v60  ;;  %v4332_v19 = vsel %vm495_vm7, %v4329_v60, %v4331_v0  ;;  %v4335_v35 = vsel %vm495_vm7, %v4331_v0, %v4325_v7  ;;  %v4491_v7 = vrot.slane %v4474_v43, %v9697_v16 }
0x1cdb   :  { %v4320_v38 = vrot.slane %v4313_v41, %v9677_v9  ;;  %v4359_v31 = vmul.f32 %v4345_v4, %v4333_v23  ;;  %v4360_v55 = vmul.f32 %v4349_v17, %v4332_v19  ;;  %v4361_v54 = vmul.f32 %v4353_v50, %v4335_v35 }
0x1cdd   :  { %4322 = vst.msk [vmem:[#allocation2 + $0x5] ss:$8 sm:$0xf] %vm9730_vm1, %v4320_v38  ;;  %v4366_v25 = vcombine.low %v4358_v51, %v4359_v31  ;;  %v4367_v40 = vcombine.low %v4360_v55, %v4361_v54  ;;  %v4394_v37 = vpop.permute.xlu1 %4393  ;;  %v4396_v44 = vpop.permute.xlu0 %4395 }
0x1cde   :  { %v4403_v48 = vsel %vm567_vm8, %v4394_v37, %v4396_v44 }
0x1cdf   :  { %v4374_v32 = vrot.slane %v4366_v25, %v9677_v9  ;;  %v4381_v1 = vrot.slane %v4367_v40, %v9677_v9  ;;  %v4427_v33 = vmul.f32 %v4410_v59, %v4403_v48 }
0x1ce1   :  { %v4382_v29 = vcombine.low %v4374_v32, %v4381_v1  ;;  %v4398_v36 = vpop.permute.xlu1 %4397  ;;  %v4400_v6 = vpop.permute.xlu0 %4399 }
0x1ce2   :  { %v4402_v12 = vsel %vm567_vm8, %v4396_v44, %v4398_v36  ;;  %v4401_v53 = vsel %vm567_vm8, %v4398_v36, %v4400_v6  ;;  %v4404_v62 = vsel %vm567_vm8, %v4400_v6, %v4394_v37 }
0x1ce3   :  { %v4389_v27 = vrot.slane %v4382_v29, %v9677_v9  ;;  %v4428_v47 = vmul.f32 %v4414_v8, %v4402_v12  ;;  %v4429_v63 = vmul.f32 %v4418_v10, %v4401_v53  ;;  %v4430_v42 = vmul.f32 %v4422_v52, %v4404_v62 }
0x1ce5   :  { %4391 = vst.msk [vmem:[#allocation2 + $0x6] ss:$8 sm:$0xf] %vm9730_vm1, %v4389_v27  ;;  %v4435_v26 = vcombine.low %v4427_v33, %v4428_v47  ;;  %v4436_v20 = vcombine.low %v4429_v63, %v4430_v42  ;;  %v4463_v57 = vpop.permute.xlu1 %4462  ;;  %v4465_v58 = vpop.permute.xlu0 %4464 }
0x1ce6   :  { %v4472_v21 = vsel %vm639_vm9, %v4463_v57, %v4465_v58 }
0x1ce7   :  { %v4443_v18 = vrot.slane %v4435_v26, %v9677_v9  ;;  %v4450_v5 = vrot.slane %v4436_v20, %v9677_v9  ;;  %v4496_v17 = vmul.f32 %v4479_v61, %v4472_v21  ;;  %v5110_v26 = vld [vmem:[%s13081_s5] sm:$0xff] }
0x1ce9   :  { %v4451_v22 = vcombine.low %v4443_v18, %v4450_v5  ;;  %v4467_v34 = vpop.permute.xlu1 %4466  ;;  %v4469_v4 = vpop.permute.xlu0 %4468 }
0x1cea   :  { %v4471_v39 = vsel %vm639_vm9, %v4465_v58, %v4467_v34  ;;  %v4470_v45 = vsel %vm639_vm9, %v4467_v34, %v4469_v4  ;;  %v4473_v46 = vsel %vm639_vm9, %v4469_v4, %v4463_v57  ;;  %v4719_v58 = vld [vmem:[#allocation6] ss:$8 sm:$0xf] }
0x1ceb   :  { %v4458_v50 = vrot.slane %v4451_v22, %v9677_v9  ;;  %v4497_v41 = vmul.f32 %v4483_v56, %v4471_v39  ;;  %v4498_v60 = vmul.f32 %v4487_v3, %v4470_v45  ;;  %v4499_v0 = vmul.f32 %v4491_v7, %v4473_v46  ;;  %v4761_v56 = vld [vmem:[#allocation6 + $0x1] ss:$8 sm:$0xf] }
0x1cec   :  { %v4728_v18 = vrot.slane %v4719_v58, %v9694_v15  ;;  %v4770_v5 = vrot.slane %v4761_v56, %v9694_v15  ;;  %v4724_v34 = vrot.slane %v4719_v58, %v9688_v13  ;;  %v4736_v4 = vrot.slane %v4719_v58, %v9697_v16 }
0x1ced   :  { %4460 = vst.msk [vmem:[#allocation2 + $0x7] ss:$8 sm:$0xf] %vm9730_vm1, %v4458_v50  ;;  %v4504_v51 = vcombine.low %v4496_v17, %v4497_v41  ;;  %v4505_v23 = vcombine.low %v4498_v60, %v4499_v0  ;;  %v4774_v39 = vrot.slane %v4761_v56, %v9691_v14  ;;  %v4766_v50 = vrot.slane %v4761_v56, %v9688_v13 }
0x1cee   :  { %v4778_v41 = vrot.slane %v4761_v56, %v9697_v16  ;;  %v4732_v60 = vrot.slane %v4719_v58, %v9691_v14 }
0x1cef   :  { %v4512_v19 = vrot.slane %v4504_v51, %v9677_v9  ;;  %v4519_v35 = vrot.slane %v4505_v23, %v9677_v9 }
0x1cf1   :  { %v4520_v38 = vcombine.low %v4512_v19, %v4519_v35 }
0x1cf3   :  { %v4527_v31 = vrot.slane %v4520_v38, %v9677_v9 }
0x1cf4   :  { %v4532_v55 = vld [vmem:[#allocation2 + $0x8] sm:$0xff]  ;;  %v4534_v54 = vld [vmem:[#allocation2 + $0x18] sm:$0xff]  ;;  %v4531_v49 = vld [vmem:[#allocation2] sm:$0xff] }
0x1cf5   :  { %4529 = vst.msk [vmem:[#allocation2 + $0x20] ss:$8 sm:$0xf] %vm9730_vm1, %v4527_v31  ;;  %v4533_v10 = vld [vmem:[#allocation2 + $0x10] sm:$0xff] }
0x1cfa   :  { %v4544_v52 = vpop.permute.xlu1 %4543 }
0x1cfc   :  { %v4536_v25 = vld [vmem:[#allocation2 + $0x28] sm:$0x1]  ;;  %v4538_v40 = vld [vmem:[#allocation2 + $0x38] sm:$0x1]  ;;  %v4535_v37 = vld [vmem:[#allocation2 + $0x20] sm:$0x1] }
0x1cfd   :  { %v8592_v44 = vpack.c.bf16 %v4536_v25, %v4532_v55  ;;  %v8598_v59 = vpack.c.bf16 %v4538_v40, %v4534_v54  ;;  %v8595_v8 = vpack.c.bf16 %v4535_v37, %v4531_v49  ;;  %v4537_v32 = vld [vmem:[#allocation2 + $0x30] sm:$0x1] }
0x1cfe   :  { %v8601_v1 = vpack.c.bf16 %v4537_v32, %v4533_v10 }
0x1cff   :  { %8594 = vmatprep.subr.msk.bf16.mxu0 %vm9894_vm12, %v8592_v44  ;;  %8600 = vmatprep.subr.msk.bf16.mxu1 %vm9894_vm12, %v8598_v59 }
0x1d00   :  { %8597 = vmatpush1.bf16.msk.msra.mxu0 %vm9894_vm12, %v8595_v8  ;;  %8603 = vmatpush1.bf16.msk.msra.mxu1 %vm9894_vm12, %v8601_v1 }
0x1d03   :  { %7834 = vmatmul.mubr.msk.f32.vlgmr.msra.gmra.mrb[18].mxu0 %vm718_vm13, %v4539_v24  ;;  %7837 = vmatmul.mubr.msk.f32.vlgmr.msra.gmra.mrb[18].mxu1 %vm718_vm13, %v4539_v24  ;;  %v4803_v24 = vld [vmem:[#allocation6 + $0x2] ss:$8 sm:$0xf] }
0x1d04   :  { %5183 = vmatprep.mubr.f32.mxu0 %v13108_v11  ;;  %5254 = vmatprep.mubr.f32.mxu1 %v13108_v11 }
0x1dd6   :  { %v4627_v29 = vpop.f32.mrb[18].mxu0  ;;  %v4698_v36 = vpop.f32.mrb[18].mxu1 }
0x1dd7   :  { %v4628_v6 = vadd.f32 %v4627_v29, %v4544_v52  ;;  %v4629_v33 = vpop.f32.mrb[19].mxu0  ;;  %v4700_v12 = vpop.f32.mrb[19].mxu1  ;;  %v4699_v27 = vadd.f32 %v4698_v36, %v4544_v52  ;;  %v4845_v29 = vld [vmem:[#allocation6 + $0x3] ss:$8 sm:$0xf] }
0x1dd8   :  { %v4630_v53 = vadd.f32 %v4629_v33, %v4544_v52  ;;  %v4701_v63 = vadd.f32 %v4700_v12, %v4544_v52  ;;  %v4854_v33 = vrot.slane %v4845_v29, %v9694_v15  ;;  %v4850_v56 = vrot.slane %v4845_v29, %v9688_v13 }
0x1dd9   :  { %v11600_v62 = vmax.f32 %v4628_v6, 0.0  ;;  %v11608_v42 = vmax.f32 %v4699_v27, 0.0  ;;  %v4812_v6 = vrot.slane %v4803_v24, %v9694_v15 }
0x1dda   :  { %v11602_v47 = vmax.f32 %v4630_v53, 0.0  ;;  %v11610_v43 = vmax.f32 %v4701_v63, 0.0  ;;  %v4808_v63 = vrot.slane %v4803_v24, %v9688_v13 }
0x1ddb   :  { %4707 = vrot.lane.b32.xlu0 %v11600_v62, %s9552_s0 }
0x1ddc   :  { %4709 = vrot.lane.b32.xlu1 %v11602_v47, %s9552_s0 }
0x1ddf   :  { %4711 = vrot.lane.b32.xlu0 %v11608_v42, %s9552_s0 }
0x1de0   :  { %4713 = vrot.lane.b32.xlu1 %v11610_v43, %s9552_s0 }
0x1de3   :  { %4749 = vrot.lane.b32.xlu0 %v11600_v62, %s9550_s24 }
0x1de4   :  { %4751 = vrot.lane.b32.xlu1 %v11602_v47, %s9550_s24 }
0x1de7   :  { %4753 = vrot.lane.b32.xlu0 %v11608_v42, %s9550_s24 }
0x1de8   :  { %4755 = vrot.lane.b32.xlu1 %v11610_v43, %s9550_s24 }
0x1deb   :  { %4791 = vrot.lane.b32.xlu0 %v11600_v62, %s9553_s10 }
0x1dec   :  { %4793 = vrot.lane.b32.xlu1 %v11602_v47, %s9553_s10 }
0x1def   :  { %4795 = vrot.lane.b32.xlu0 %v11608_v42, %s9553_s10 }
0x1df0   :  { %4797 = vrot.lane.b32.xlu1 %v11610_v43, %s9553_s10 }
0x1df3   :  { %4833 = vrot.lane.b32.xlu0 %v11600_v62, %s9554_s14 }
0x1df4   :  { %4835 = vrot.lane.b32.xlu1 %v11602_v47, %s9554_s14 }
0x1df7   :  { %4837 = vrot.lane.b32.xlu0 %v11608_v42, %s9554_s14 }
0x1df8   :  { %4839 = vrot.lane.b32.xlu1 %v11610_v43, %s9554_s14 }
0x1dfb   :  { %4905 = vrot.lane.b32.xlu0 %v11600_v62, %s9555_s15 }
0x1dfc   :  { %4907 = vrot.lane.b32.xlu1 %v11602_v47, %s9555_s15 }
0x1dff   :  { %4909 = vrot.lane.b32.xlu0 %v11608_v42, %s9555_s15 }
0x1e00   :  { %4911 = vrot.lane.b32.xlu1 %v11610_v43, %s9555_s15 }
0x1e03   :  { %4947 = vrot.lane.b32.xlu0 %v11600_v62, %s9556_s16 }
0x1e04   :  { %4949 = vrot.lane.b32.xlu1 %v11602_v47, %s9556_s16 }
0x1e07   :  { %4951 = vrot.lane.b32.xlu0 %v11608_v42, %s9556_s16 }
0x1e08   :  { %4953 = vrot.lane.b32.xlu1 %v11610_v43, %s9556_s16 }
0x1e0b   :  { %4989 = vrot.lane.b32.xlu0 %v11600_v62, %s9557_s17 }
0x1e0c   :  { %4991 = vrot.lane.b32.xlu1 %v11602_v47, %s9557_s17 }
0x1e0f   :  { %4993 = vrot.lane.b32.xlu0 %v11608_v42, %s9557_s17 }
0x1e10   :  { %4995 = vrot.lane.b32.xlu1 %v11610_v43, %s9557_s17 }
0x1e13   :  { %5031 = vrot.lane.b32.xlu0 %v11600_v62, %s9558_s18 }
0x1e14   :  { %5033 = vrot.lane.b32.xlu1 %v11602_v47, %s9558_s18 }
0x1e17   :  { %5035 = vrot.lane.b32.xlu0 %v11608_v42, %s9558_s18 }
0x1e18   :  { %5037 = vrot.lane.b32.xlu1 %v11610_v43, %s9558_s18 }
0x1e1b   :  { %5113 = vperm.xlu0 %9363, %v5110_v26   ;;  %v4820_v26 = vrot.slane %v4803_v24, %v9697_v16 }
0x1e4d   :  { %v4708_v20 = vpop.permute.xlu0 %4707 }
0x1e4e   :  { %v4710_v57 = vpop.permute.xlu1 %4709 }
0x1e4f   :  { %v4717_v21 = vsel %vm129_vm2, %v4708_v20, %v4710_v57 }
0x1e50   :  { %v4742_v45 = vmul.f32 %v4728_v18, %v4717_v21  ;;  %v4816_v18 = vrot.slane %v4803_v24, %v9691_v14 }
0x1e51   :  { %v4712_v61 = vpop.permute.xlu0 %4711 }
0x1e52   :  { %v4714_v3 = vpop.permute.xlu1 %4713  ;;  %v4716_v19 = vsel %vm129_vm2, %v4710_v57, %v4712_v61  ;;  %v4858_v57 = vrot.slane %v4845_v29, %v9691_v14 }
0x1e53   :  { %v4715_v0 = vsel %vm129_vm2, %v4712_v61, %v4714_v3  ;;  %v4718_v51 = vsel %vm129_vm2, %v4714_v3, %v4708_v20  ;;  %v4743_v59 = vmul.f32 %v4732_v60, %v4716_v19  ;;  %v4862_v3 = vrot.slane %v4845_v29, %v9697_v16 }
0x1e54   :  { %v4741_v25 = vmul.f32 %v4724_v34, %v4718_v51  ;;  %v4744_v40 = vmul.f32 %v4736_v4, %v4715_v0 }
0x1e55   :  { %v4750_v7 = vpop.permute.xlu0 %4749 }
0x1e56   :  { %v4752_v22 = vpop.permute.xlu1 %4751 }
0x1e57   :  { %v4759_v17 = vsel %vm201_vm3, %v4750_v7, %v4752_v22 }
0x1e58   :  { %v4784_v46 = vmul.f32 %v4770_v5, %v4759_v17 }
0x1e59   :  { %v4754_v23 = vpop.permute.xlu0 %4753 }
0x1e5a   :  { %v4758_v35 = vsel %vm201_vm3, %v4752_v22, %v4754_v23  ;;  %v4756_v38 = vpop.permute.xlu1 %4755  ;;  %v8604_v31 = vpack.c.bf16 %v4784_v46, %v4742_v45  ;;  %v4875_v22 = vld [vmem:[#allocation6 + $0x4] ss:$8 sm:$0xf] }
0x1e5b   :  { %v4785_v55 = vmul.f32 %v4774_v39, %v4758_v35  ;;  %v4757_v54 = vsel %vm201_vm3, %v4754_v23, %v4756_v38  ;;  %v4760_v49 = vsel %vm201_vm3, %v4756_v38, %v4750_v7  ;;  %v4880_v19 = vrot.slane %v4875_v22, %v9688_v13 }
0x1e5c   :  { %v4783_v37 = vmul.f32 %v4766_v50, %v4760_v49  ;;  %v4786_v44 = vmul.f32 %v4778_v41, %v4757_v54  ;;  %8605 = vmatprep.subr.bf16.mxu0 %v8604_v31  ;;  %v4917_v41 = vld [vmem:[#allocation6 + $0x5] ss:$8 sm:$0xf]  ;;  %v4888_v31 = vrot.slane %v4875_v22, %v9691_v14 }
0x1e5d   :  { %v4792_v8 = vpop.permute.xlu0 %4791  ;;  %v8622_v48 = vpack.c.bf16 %v4785_v55, %v4743_v59  ;;  %v4922_v55 = vrot.slane %v4917_v41, %v9688_v13 }
0x1e5e   :  { %v4794_v10 = vpop.permute.xlu1 %4793  ;;  %v8606_v32 = vpack.c.bf16 %v4783_v37, %v4741_v25  ;;  %v8620_v1 = vpack.c.bf16 %v4786_v44, %v4744_v40  ;;  %v4884_v40 = vrot.slane %v4875_v22, %v9694_v15  ;;  %v4926_v44 = vrot.slane %v4917_v41, %v9694_v15 }
0x1e5f   :  { %v4801_v12 = vsel %vm273_vm4, %v4792_v8, %v4794_v10 }
0x1e60   :  { %8607 = vmatpush1.bf16.msra.mxu0 %v8606_v32  ;;  %8621 = vmatprep.subr.bf16.mxu1 %v8620_v1  ;;  %v4826_v58 = vmul.f32 %v4812_v6, %v4801_v12  ;;  %v4934_v32 = vrot.slane %v4917_v41, %v9697_v16 }
0x1e61   :  { %v4796_v52 = vpop.permute.xlu0 %4795  ;;  %8623 = vmatpush1.bf16.msra.mxu1 %v8622_v48  ;;  %v4897_v48 = vmul.f32 %v4880_v19, %v11600_v62 }
0x1e62   :  { %v4798_v36 = vpop.permute.xlu1 %4797  ;;  %v4800_v34 = vsel %vm273_vm4, %v4794_v10, %v4796_v52  ;;  %v4930_v10 = vrot.slane %v4917_v41, %v9691_v14 }
0x1e63   :  { %v4799_v5 = vsel %vm273_vm4, %v4796_v52, %v4798_v36  ;;  %v4802_v21 = vsel %vm273_vm4, %v4798_v36, %v4792_v8  ;;  %v4827_v35 = vmul.f32 %v4816_v18, %v4800_v34  ;;  %v4892_v8 = vrot.slane %v4875_v22, %v9697_v16  ;;  %v4959_v18 = vld [vmem:[#allocation6 + $0x6] ss:$8 sm:$0xf] }
0x1e64   :  { %v4825_v60 = vmul.f32 %v4808_v63, %v4802_v21  ;;  %v4828_v0 = vmul.f32 %v4820_v26, %v4799_v5  ;;  %v4898_v36 = vmul.f32 %v4884_v40, %v11602_v47  ;;  %v5001_v5 = vld [vmem:[#allocation6 + $0x7] ss:$8 sm:$0xf] }
0x1e65   :  { %v4834_v53 = vpop.permute.xlu0 %4833  ;;  %v5018_v41 = vrot.slane %v5001_v5, %v9697_v16 }
0x1e66   :  { %v4836_v27 = vpop.permute.xlu1 %4835 }
0x1e67   :  { %v4843_v20 = vsel %vm345_vm5, %v4834_v53, %v4836_v27 }
0x1e68   :  { %v4868_v61 = vmul.f32 %v4854_v33, %v4843_v20 }
0x1e69   :  { %v4838_v7 = vpop.permute.xlu0 %4837 }
0x1e6a   :  { %v4842_v4 = vsel %vm345_vm5, %v4836_v27, %v4838_v7  ;;  %v4840_v17 = vpop.permute.xlu1 %4839  ;;  %v8608_v39 = vpack.c.bf16 %v4868_v61, %v4826_v58  ;;  %v4900_v27 = vmul.f32 %v4892_v8, %v11610_v43  ;;  %v4968_v43 = vrot.slane %v4959_v18, %v9694_v15  ;;  %v5043_v8 = vld [vmem:[#allocation6 + $0x20] ss:$8 sm:$0xf] }
0x1e6b   :  { %v4869_v45 = vmul.f32 %v4858_v57, %v4842_v4  ;;  %v4841_v46 = vsel %vm345_vm5, %v4838_v7, %v4840_v17  ;;  %v4844_v50 = vsel %vm345_vm5, %v4840_v17, %v4834_v53  ;;  %v4899_v53 = vmul.f32 %v4888_v31, %v11608_v42 }
0x1e6c   :  { %v4867_v51 = vmul.f32 %v4850_v56, %v4844_v50  ;;  %v4870_v23 = vmul.f32 %v4862_v3, %v4841_v46  ;;  %8609 = vmatprep.subr.bf16.mxu0 %v8608_v39  ;;  %v4964_v42 = vrot.slane %v4959_v18, %v9688_v13  ;;  %v5006_v7 = vrot.slane %v5001_v5, %v9688_v13 }
0x1e6d   :  { %v4906_v38 = vpop.permute.xlu0 %4905  ;;  %v8626_v59 = vpack.c.bf16 %v4869_v45, %v4827_v35  ;;  %v4972_v4 = vrot.slane %v4959_v18, %v9691_v14  ;;  %v5010_v39 = vrot.slane %v5001_v5, %v9694_v15  ;;  %v4976_v46 = vrot.slane %v4959_v18, %v9697_v16 }
0x1e6e   :  { %v4908_v54 = vpop.permute.xlu1 %4907  ;;  %v8610_v49 = vpack.c.bf16 %v4867_v51, %v4825_v60  ;;  %v8624_v25 = vpack.c.bf16 %v4870_v23, %v4828_v0  ;;  %v5014_v50 = vrot.slane %v5001_v5, %v9691_v14 }
0x1e6f   :  { %v4915_v37 = vsel %vm423_vm6, %v4906_v38, %v4908_v54 }
0x1e70   :  { %8611 = vmatpush1.bf16.msra.mxu0 %v8610_v49  ;;  %8625 = vmatprep.subr.bf16.mxu1 %v8624_v25  ;;  %v4939_v24 = vmul.f32 %v4922_v55, %v4915_v37 }
0x1e71   :  { %v4910_v1 = vpop.permute.xlu0 %4909  ;;  %8627 = vmatpush1.bf16.msra.mxu1 %v8626_v59 }
0x1e72   :  { %v4914_v52 = vsel %vm423_vm6, %v4908_v54, %v4910_v1  ;;  %v4912_v29 = vpop.permute.xlu1 %4911  ;;  %v8614_v58 = vpack.c.bf16 %v4939_v24, %v4897_v48 }
0x1e73   :  { %v4940_v6 = vmul.f32 %v4926_v44, %v4914_v52  ;;  %v4913_v33 = vsel %vm423_vm6, %v4910_v1, %v4912_v29  ;;  %v4916_v12 = vsel %vm423_vm6, %v4912_v29, %v4906_v38  ;;  %v5052_v52 = vrot.slane %v5043_v8, %v9694_v15 }
0x1e74   :  { %v4941_v63 = vmul.f32 %v4930_v10, %v4913_v33  ;;  %v4942_v62 = vmul.f32 %v4934_v32, %v4916_v12  ;;  %v5048_v29 = vrot.slane %v5043_v8, %v9688_v13 }
0x1e75   :  { %v4948_v26 = vpop.permute.xlu0 %4947  ;;  %v8612_v20 = vpack.c.bf16 %v4940_v6, %v4898_v36  ;;  %v5056_v36 = vrot.slane %v5043_v8, %v9691_v14  ;;  %v5060_v6 = vrot.slane %v5043_v8, %v9697_v16 }
0x1e76   :  { %v4950_v57 = vpop.permute.xlu1 %4949  ;;  %v8628_v61 = vpack.c.bf16 %v4942_v62, %v4900_v27  ;;  %v8630_v56 = vpack.c.bf16 %v4941_v63, %v4899_v53 }
0x1e77   :  { %8613 = vmatprep.subr.bf16.mxu0 %v8612_v20  ;;  %v4957_v34 = vsel %vm495_vm7, %v4948_v26, %v4950_v57 }
0x1e78   :  { %8615 = vmatpush1.bf16.msra.mxu0 %v8614_v58  ;;  %8629 = vmatprep.subr.bf16.mxu1 %v8628_v61  ;;  %v4981_v23 = vmul.f32 %v4964_v42, %v4957_v34  ;;  %v5109_v61 = vld [vmem:[%s13080_s4] sm:$0xff] }
0x1e79   :  { %v4952_v47 = vpop.permute.xlu0 %4951  ;;  %8631 = vmatpush1.bf16.msra.mxu1 %v8630_v56 }
0x1e7a   :  { %v4954_v3 = vpop.permute.xlu1 %4953  ;;  %v4956_v45 = vsel %vm495_vm7, %v4950_v57, %v4952_v47 }
0x1e7b   :  { %v4955_v60 = vsel %vm495_vm7, %v4952_v47, %v4954_v3  ;;  %v4958_v0 = vsel %vm495_vm7, %v4954_v3, %v4948_v26  ;;  %v4982_v31 = vmul.f32 %v4968_v43, %v4956_v45 }
0x1e7c   :  { %v4983_v25 = vmul.f32 %v4972_v4, %v4955_v60  ;;  %v4984_v40 = vmul.f32 %v4976_v46, %v4958_v0  ;;  %v5319_v60 = vld [vmem:[#allocation6 + $0x1] ss:$8 sm:$0xf] }
0x1e7d   :  { %v4990_v21 = vpop.permute.xlu0 %4989 }
0x1e7e   :  { %v4992_v22 = vpop.permute.xlu1 %4991 }
0x1e7f   :  { %v4999_v17 = vsel %vm567_vm8, %v4990_v21, %v4992_v22 }
0x1e80   :  { %v5023_v19 = vmul.f32 %v5006_v7, %v4999_v17 }
0x1e81   :  { %v4994_v51 = vpop.permute.xlu0 %4993 }
0x1e82   :  { %v4998_v35 = vsel %vm567_vm8, %v4992_v22, %v4994_v51  ;;  %v4996_v38 = vpop.permute.xlu1 %4995  ;;  %v8618_v1 = vpack.c.bf16 %v5023_v19, %v4981_v23  ;;  %v5328_v23 = vrot.slane %v5319_v60, %v9694_v15 }
0x1e83   :  { %v5024_v55 = vmul.f32 %v5010_v39, %v4998_v35  ;;  %v4997_v54 = vsel %vm567_vm8, %v4994_v51, %v4996_v38  ;;  %v5000_v49 = vsel %vm567_vm8, %v4996_v38, %v4990_v21  ;;  %v5668_v39 = vld [vmem:[%s13083_s7] sm:$0xff] }
0x1e84   :  { %v5025_v37 = vmul.f32 %v5014_v50, %v4997_v54  ;;  %v5026_v44 = vmul.f32 %v5018_v41, %v5000_v49  ;;  %v5277_v50 = vld [vmem:[#allocation6] ss:$8 sm:$0xf]  ;;  %v5332_v49 = vrot.slane %v5319_v60, %v9691_v14 }
0x1e85   :  { %v5032_v59 = vpop.permute.xlu0 %5031  ;;  %v8616_v10 = vpack.c.bf16 %v5024_v55, %v4982_v31  ;;  %v5286_v51 = vrot.slane %v5277_v50, %v9694_v15  ;;  %v5282_v31 = vrot.slane %v5277_v50, %v9688_v13  ;;  %v5294_v55 = vrot.slane %v5277_v50, %v9697_v16 }
0x1e86   :  { %v5034_v32 = vpop.permute.xlu1 %5033  ;;  %v8632_v48 = vpack.c.bf16 %v5026_v44, %v4984_v40  ;;  %v8634_v24 = vpack.c.bf16 %v5025_v37, %v4983_v25  ;;  %v5324_v37 = vrot.slane %v5319_v60, %v9688_v13  ;;  %v5336_v44 = vrot.slane %v5319_v60, %v9697_v16 }
0x1e87   :  { %8617 = vmatprep.subr.bf16.mxu0 %v8616_v10  ;;  %v5041_v33 = vsel %vm639_vm9, %v5032_v59, %v5034_v32 }
0x1e88   :  { %8619 = vmatpush1.bf16.msra.mxu0 %v8618_v1  ;;  %8633 = vmatprep.subr.bf16.mxu1 %v8632_v48  ;;  %v5065_v20 = vmul.f32 %v5048_v29, %v5041_v33 }
0x1e89   :  { %v5036_v12 = vpop.permute.xlu0 %5035  ;;  %8635 = vmatpush1.bf16.msra.mxu1 %v8634_v24 }
0x1e8a   :  { %v5040_v53 = vsel %vm639_vm9, %v5034_v32, %v5036_v12  ;;  %v5038_v27 = vpop.permute.xlu1 %5037 }
0x1e8b   :  { %v5066_v63 = vmul.f32 %v5052_v52, %v5040_v53  ;;  %v5039_v62 = vsel %vm639_vm9, %v5036_v12, %v5038_v27  ;;  %v5042_v26 = vsel %vm639_vm9, %v5038_v27, %v5032_v59  ;;  %v5290_v59 = vrot.slane %v5277_v50, %v9691_v14 }
0x1e8c   :  { %v5067_v57 = vmul.f32 %v5056_v36, %v5039_v62  ;;  %v5068_v58 = vmul.f32 %v5060_v6, %v5042_v26 }
0x1e8d   :  { %5135 = vmatprep.subr.mxu0 %v5066_v63 }
0x1e8e   :  { %5136 = vmatpush1.msra.mxu0 %v5065_v20  ;;  %5206 = vmatprep.subr.mxu1 %v5068_v58 }
0x1e8f   :  { %7838 = vmatmul.mubr.msk.f32.vlgmr.msra.gmra.mrb[20].mxu0 %vm1290_vm14, %v5109_v61  ;;  %5207 = vmatpush1.msra.mxu1 %v5067_v57 }
0x1e90   :  { %7839 = vmatmul.mubr.msk.f32.vlgmr.msra.gmra.mrb[20].mxu1 %vm1290_vm14, %v5109_v61  ;;  %5741 = vmatprep.mubr.f32.mxu0 %v13108_v11  ;;  %v5361_v61 = vld [vmem:[#allocation6 + $0x2] ss:$8 sm:$0xf] }
0x1e91   :  { %5812 = vmatprep.mubr.f32.mxu1 %v13108_v11 }
0x1e9a   :  { %v5114_v56 = vpop.permute.xlu0 %5113 }
0x1f62   :  { %v5185_v47 = vpop.f32.mrb[20].mxu0 }
0x1f63   :  { %v5186_v3 = vadd.f32 %v5185_v47, %v5114_v56  ;;  %v5187_v18 = vpop.f32.mrb[21].mxu0  ;;  %v5256_v5 = vpop.f32.mrb[20].mxu1  ;;  %v5403_v47 = vld [vmem:[#allocation6 + $0x3] ss:$8 sm:$0xf] }
0x1f64   :  { %v5188_v21 = vadd.f32 %v5187_v18, %v5114_v56  ;;  %v5258_v42 = vpop.f32.mrb[21].mxu1  ;;  %v5257_v7 = vadd.f32 %v5256_v5, %v5114_v56  ;;  %v5370_v18 = vrot.slane %v5361_v61, %v9694_v15  ;;  %v5412_v5 = vrot.slane %v5403_v47, %v9694_v15 }
0x1f65   :  { %v11786_v43 = vmax.f32 %v5186_v3, 0.0  ;;  %v5259_v34 = vadd.f32 %v5258_v42, %v5114_v56  ;;  %v5408_v60 = vrot.slane %v5403_v47, %v9688_v13 }
0x1f66   :  { %v11788_v22 = vmax.f32 %v5188_v21, 0.0  ;;  %v11794_v4 = vmax.f32 %v5257_v7, 0.0 }
0x1f67   :  { %5265 = vrot.lane.b32.xlu1 %v11786_v43, %s9552_s0  ;;  %v11796_v17 = vmax.f32 %v5259_v34, 0.0  ;;  %v5366_v34 = vrot.slane %v5361_v61, %v9688_v13 }
0x1f68   :  { %5267 = vrot.lane.b32.xlu0 %v11788_v22, %s9552_s0 }
0x1f6b   :  { %5269 = vrot.lane.b32.xlu1 %v11794_v4, %s9552_s0 }
0x1f6c   :  { %5271 = vrot.lane.b32.xlu0 %v11796_v17, %s9552_s0 }
0x1f6f   :  { %5307 = vrot.lane.b32.xlu1 %v11786_v43, %s9550_s24 }
0x1f70   :  { %5309 = vrot.lane.b32.xlu0 %v11788_v22, %s9550_s24 }
0x1f73   :  { %5311 = vrot.lane.b32.xlu1 %v11794_v4, %s9550_s24 }
0x1f74   :  { %5313 = vrot.lane.b32.xlu0 %v11796_v17, %s9550_s24 }
0x1f77   :  { %5349 = vrot.lane.b32.xlu1 %v11786_v43, %s9553_s10 }
0x1f78   :  { %5351 = vrot.lane.b32.xlu0 %v11788_v22, %s9553_s10 }
0x1f7b   :  { %5353 = vrot.lane.b32.xlu1 %v11794_v4, %s9553_s10 }
0x1f7c   :  { %5355 = vrot.lane.b32.xlu0 %v11796_v17, %s9553_s10 }
0x1f7f   :  { %5391 = vrot.lane.b32.xlu1 %v11786_v43, %s9554_s14 }
0x1f80   :  { %5393 = vrot.lane.b32.xlu0 %v11788_v22, %s9554_s14 }
0x1f83   :  { %5395 = vrot.lane.b32.xlu1 %v11794_v4, %s9554_s14 }
0x1f84   :  { %5397 = vrot.lane.b32.xlu0 %v11796_v17, %s9554_s14 }
0x1f87   :  { %5463 = vrot.lane.b32.xlu1 %v11786_v43, %s9555_s15 }
0x1f88   :  { %5465 = vrot.lane.b32.xlu0 %v11788_v22, %s9555_s15 }
0x1f8b   :  { %5467 = vrot.lane.b32.xlu1 %v11794_v4, %s9555_s15 }
0x1f8c   :  { %5469 = vrot.lane.b32.xlu0 %v11796_v17, %s9555_s15 }
0x1f8f   :  { %5505 = vrot.lane.b32.xlu1 %v11786_v43, %s9556_s16 }
0x1f90   :  { %5507 = vrot.lane.b32.xlu0 %v11788_v22, %s9556_s16 }
0x1f93   :  { %5509 = vrot.lane.b32.xlu1 %v11794_v4, %s9556_s16 }
0x1f94   :  { %5511 = vrot.lane.b32.xlu0 %v11796_v17, %s9556_s16 }
0x1f97   :  { %5547 = vrot.lane.b32.xlu1 %v11786_v43, %s9557_s17 }
0x1f98   :  { %5549 = vrot.lane.b32.xlu0 %v11788_v22, %s9557_s17 }
0x1f9b   :  { %5551 = vrot.lane.b32.xlu1 %v11794_v4, %s9557_s17 }
0x1f9c   :  { %5553 = vrot.lane.b32.xlu0 %v11796_v17, %s9557_s17 }
0x1f9f   :  { %5589 = vrot.lane.b32.xlu1 %v11786_v43, %s9558_s18 }
0x1fa0   :  { %5591 = vrot.lane.b32.xlu0 %v11788_v22, %s9558_s18 }
0x1fa3   :  { %5593 = vrot.lane.b32.xlu1 %v11794_v4, %s9558_s18 }
0x1fa4   :  { %5595 = vrot.lane.b32.xlu0 %v11796_v17, %s9558_s18 }
0x1fa7   :  { %5671 = vperm.xlu1 %9364, %v5668_v39   ;;  %v5378_v39 = vrot.slane %v5361_v61, %v9697_v16 }
0x1fd9   :  { %v5266_v45 = vpop.permute.xlu1 %5265 }
0x1fda   :  { %v5268_v46 = vpop.permute.xlu0 %5267 }
0x1fdb   :  { %v5275_v19 = vsel %vm129_vm2, %v5266_v45, %v5268_v46 }
0x1fdc   :  { %v5300_v25 = vmul.f32 %v5286_v51, %v5275_v19  ;;  %v5374_v51 = vrot.slane %v5361_v61, %v9691_v14 }
0x1fdd   :  { %v5270_v41 = vpop.permute.xlu1 %5269 }
0x1fde   :  { %v5272_v0 = vpop.permute.xlu0 %5271  ;;  %v5274_v1 = vsel %vm129_vm2, %v5268_v46, %v5270_v41  ;;  %v5416_v46 = vrot.slane %v5403_v47, %v9691_v14 }
0x1fdf   :  { %v5273_v8 = vsel %vm129_vm2, %v5270_v41, %v5272_v0  ;;  %v5276_v10 = vsel %vm129_vm2, %v5272_v0, %v5266_v45  ;;  %v5301_v63 = vmul.f32 %v5290_v59, %v5274_v1  ;;  %v5420_v0 = vrot.slane %v5403_v47, %v9697_v16 }
0x1fe0   :  { %v5299_v33 = vmul.f32 %v5282_v31, %v5276_v10  ;;  %v5302_v12 = vmul.f32 %v5294_v55, %v5273_v8 }
0x1fe1   :  { %v5308_v35 = vpop.permute.xlu1 %5307 }
0x1fe2   :  { %v5310_v38 = vpop.permute.xlu0 %5309 }
0x1fe3   :  { %v5317_v54 = vsel %vm201_vm3, %v5308_v35, %v5310_v38 }
0x1fe4   :  { %v5342_v40 = vmul.f32 %v5328_v23, %v5317_v54 }
0x1fe5   :  { %v5312_v32 = vpop.permute.xlu1 %5311 }
0x1fe6   :  { %v5316_v48 = vsel %vm201_vm3, %v5310_v38, %v5312_v32  ;;  %v5314_v24 = vpop.permute.xlu0 %5313  ;;  %v8636_v52 = vpack.c.bf16 %v5342_v40, %v5300_v25  ;;  %v5433_v38 = vld [vmem:[#allocation6 + $0x4] ss:$8 sm:$0xf] }
0x1fe7   :  { %v5343_v29 = vmul.f32 %v5332_v49, %v5316_v48  ;;  %v5315_v36 = vsel %vm201_vm3, %v5312_v32, %v5314_v24  ;;  %v5318_v6 = vsel %vm201_vm3, %v5314_v24, %v5308_v35  ;;  %v5438_v1 = vrot.slane %v5433_v38, %v9688_v13 }
0x1fe8   :  { %v5341_v53 = vmul.f32 %v5324_v37, %v5318_v6  ;;  %v5344_v27 = vmul.f32 %v5336_v44, %v5315_v36  ;;  %8637 = vmatprep.subr.bf16.mxu0 %v8636_v52  ;;  %v5475_v44 = vld [vmem:[#allocation6 + $0x5] ss:$8 sm:$0xf]  ;;  %v5442_v52 = vrot.slane %v5433_v38, %v9694_v15 }
0x1fe9   :  { %v5350_v62 = vpop.permute.xlu1 %5349  ;;  %v8654_v58 = vpack.c.bf16 %v5343_v29, %v5301_v63  ;;  %v5480_v29 = vrot.slane %v5475_v44, %v9688_v13 }
0x1fea   :  { %v5352_v26 = vpop.permute.xlu0 %5351  ;;  %v8638_v20 = vpack.c.bf16 %v5341_v53, %v5299_v33  ;;  %v8652_v57 = vpack.c.bf16 %v5344_v27, %v5302_v12  ;;  %v5446_v12 = vrot.slane %v5433_v38, %v9691_v14  ;;  %v5484_v27 = vrot.slane %v5475_v44, %v9694_v15 }
0x1feb   :  { %v5359_v21 = vsel %vm273_vm4, %v5350_v62, %v5352_v26 }
0x1fec   :  { %8639 = vmatpush1.bf16.msra.mxu0 %v8638_v20  ;;  %8653 = vmatprep.subr.bf16.mxu1 %v8652_v57  ;;  %v5384_v50 = vmul.f32 %v5370_v18, %v5359_v21  ;;  %v5492_v20 = vrot.slane %v5475_v44, %v9697_v16 }
0x1fed   :  { %v5354_v56 = vpop.permute.xlu1 %5353  ;;  %8655 = vmatpush1.bf16.msra.mxu1 %v8654_v58  ;;  %v5455_v58 = vmul.f32 %v5438_v1, %v11786_v43 }
0x1fee   :  { %v5356_v3 = vpop.permute.xlu0 %5355  ;;  %v5358_v31 = vsel %vm273_vm4, %v5352_v26, %v5354_v56  ;;  %v5488_v26 = vrot.slane %v5475_v44, %v9691_v14 }
0x1fef   :  { %v5357_v23 = vsel %vm273_vm4, %v5354_v56, %v5356_v3  ;;  %v5360_v19 = vsel %vm273_vm4, %v5356_v3, %v5350_v62  ;;  %v5385_v48 = vmul.f32 %v5374_v51, %v5358_v31  ;;  %v5450_v62 = vrot.slane %v5433_v38, %v9697_v16  ;;  %v5517_v51 = vld [vmem:[#allocation6 + $0x6] ss:$8 sm:$0xf] }
0x1ff0   :  { %v5383_v59 = vmul.f32 %v5366_v34, %v5360_v19  ;;  %v5386_v8 = vmul.f32 %v5378_v39, %v5357_v23  ;;  %v5456_v3 = vmul.f32 %v5442_v52, %v11788_v22  ;;  %v5559_v23 = vld [vmem:[#allocation6 + $0x7] ss:$8 sm:$0xf] }
0x1ff1   :  { %v5392_v42 = vpop.permute.xlu1 %5391  ;;  %v5576_v44 = vrot.slane %v5559_v23, %v9697_v16 }
0x1ff2   :  { %v5394_v7 = vpop.permute.xlu0 %5393 }
0x1ff3   :  { %v5401_v45 = vsel %vm345_vm5, %v5392_v42, %v5394_v7 }
0x1ff4   :  { %v5426_v41 = vmul.f32 %v5412_v5, %v5401_v45 }
0x1ff5   :  { %v5396_v35 = vpop.permute.xlu1 %5395 }
0x1ff6   :  { %v5400_v55 = vsel %vm345_vm5, %v5394_v7, %v5396_v35  ;;  %v5398_v54 = vpop.permute.xlu0 %5397  ;;  %v8640_v49 = vpack.c.bf16 %v5426_v41, %v5384_v50  ;;  %v5458_v7 = vmul.f32 %v5450_v62, %v11796_v17  ;;  %v5526_v17 = vrot.slane %v5517_v51, %v9694_v15  ;;  %v5601_v62 = vld [vmem:[#allocation6 + $0x20] ss:$8 sm:$0xf] }
0x1ff7   :  { %v5427_v25 = vmul.f32 %v5416_v46, %v5400_v55  ;;  %v5399_v40 = vsel %vm345_vm5, %v5396_v35, %v5398_v54  ;;  %v5402_v37 = vsel %vm345_vm5, %v5398_v54, %v5392_v42  ;;  %v5457_v42 = vmul.f32 %v5446_v12, %v11794_v4 }
0x1ff8   :  { %v5425_v10 = vmul.f32 %v5408_v60, %v5402_v37  ;;  %v5428_v32 = vmul.f32 %v5420_v0, %v5399_v40  ;;  %8641 = vmatprep.subr.bf16.mxu0 %v8640_v49  ;;  %v5522_v4 = vrot.slane %v5517_v51, %v9688_v13  ;;  %v5564_v35 = vrot.slane %v5559_v23, %v9688_v13 }
0x1ff9   :  { %v5464_v24 = vpop.permute.xlu1 %5463  ;;  %v8658_v63 = vpack.c.bf16 %v5427_v25, %v5385_v48  ;;  %v5530_v55 = vrot.slane %v5517_v51, %v9691_v14  ;;  %v5568_v49 = vrot.slane %v5559_v23, %v9694_v15  ;;  %v5534_v40 = vrot.slane %v5517_v51, %v9697_v16 }
0x1ffa   :  { %v5466_v36 = vpop.permute.xlu0 %5465  ;;  %v8642_v6 = vpack.c.bf16 %v5425_v10, %v5383_v59  ;;  %v8656_v33 = vpack.c.bf16 %v5428_v32, %v5386_v8  ;;  %v5572_v37 = vrot.slane %v5559_v23, %v9691_v14 }
0x1ffb   :  { %v5473_v53 = vsel %vm423_vm6, %v5464_v24, %v5466_v36 }
0x1ffc   :  { %8643 = vmatpush1.bf16.msra.mxu0 %v8642_v6  ;;  %8657 = vmatprep.subr.bf16.mxu1 %v8656_v33  ;;  %v5497_v61 = vmul.f32 %v5480_v29, %v5473_v53 }
0x1ffd   :  { %v5468_v57 = vpop.permute.xlu1 %5467  ;;  %8659 = vmatpush1.bf16.msra.mxu1 %v8658_v63 }
0x1ffe   :  { %v5472_v56 = vsel %vm423_vm6, %v5466_v36, %v5468_v57  ;;  %v5470_v47 = vpop.permute.xlu0 %5469  ;;  %v8646_v50 = vpack.c.bf16 %v5497_v61, %v5455_v58 }
0x1fff   :  { %v5498_v18 = vmul.f32 %v5484_v27, %v5472_v56  ;;  %v5471_v5 = vsel %vm423_vm6, %v5468_v57, %v5470_v47  ;;  %v5474_v21 = vsel %vm423_vm6, %v5470_v47, %v5464_v24  ;;  %v5610_v56 = vrot.slane %v5601_v62, %v9694_v15 }
0x2000   :  { %v5499_v34 = vmul.f32 %v5488_v26, %v5471_v5  ;;  %v5500_v43 = vmul.f32 %v5492_v20, %v5474_v21  ;;  %v5606_v47 = vrot.slane %v5601_v62, %v9688_v13 }
0x2001   :  { %v5506_v39 = vpop.permute.xlu1 %5505  ;;  %v8644_v45 = vpack.c.bf16 %v5498_v18, %v5456_v3  ;;  %v5614_v3 = vrot.slane %v5601_v62, %v9691_v14  ;;  %v5618_v18 = vrot.slane %v5601_v62, %v9697_v16 }
0x2002   :  { %v5508_v46 = vpop.permute.xlu0 %5507  ;;  %v8660_v41 = vpack.c.bf16 %v5500_v43, %v5458_v7  ;;  %v8662_v60 = vpack.c.bf16 %v5499_v34, %v5457_v42 }
0x2003   :  { %8645 = vmatprep.subr.bf16.mxu0 %v8644_v45  ;;  %v5515_v31 = vsel %vm495_vm7, %v5506_v39, %v5508_v46 }
0x2004   :  { %8647 = vmatpush1.bf16.msra.mxu0 %v8646_v50  ;;  %8661 = vmatprep.subr.bf16.mxu1 %v8660_v41  ;;  %v5539_v32 = vmul.f32 %v5522_v4, %v5515_v31  ;;  %v5667_v41 = vld [vmem:[%s13082_s6] sm:$0xff] }
0x2005   :  { %v5510_v22 = vpop.permute.xlu1 %5509  ;;  %8663 = vmatpush1.bf16.msra.mxu1 %v8662_v60  ;;  %v5987_v60 = vld [vmem:[#allocation6 + $0x4] ss:$8 sm:$0xf] }
0x2006   :  { %v5512_v0 = vpop.permute.xlu0 %5511  ;;  %v5514_v25 = vsel %vm495_vm7, %v5508_v46, %v5510_v22  ;;  %v5996_v23 = vrot.slane %v5987_v60, %v9694_v15 }
0x2007   :  { %v5513_v59 = vsel %vm495_vm7, %v5510_v22, %v5512_v0  ;;  %v5516_v8 = vsel %vm495_vm7, %v5512_v0, %v5506_v39  ;;  %v5540_v52 = vmul.f32 %v5526_v17, %v5514_v25  ;;  %v5992_v22 = vrot.slane %v5987_v60, %v9688_v13 }
0x2008   :  { %v5541_v33 = vmul.f32 %v5530_v55, %v5513_v59  ;;  %v5542_v12 = vmul.f32 %v5534_v40, %v5516_v8  ;;  %v5831_v59 = vld [vmem:[#allocation6] ss:$8 sm:$0xf] }
0x2009   :  { %v5548_v19 = vpop.permute.xlu1 %5547  ;;  %v5840_v8 = vrot.slane %v5831_v59, %v9694_v15 }
0x200a   :  { %v5550_v38 = vpop.permute.xlu0 %5549 }
0x200b   :  { %v5557_v54 = vsel %vm567_vm8, %v5548_v19, %v5550_v38 }
0x200c   :  { %v5581_v1 = vmul.f32 %v5564_v35, %v5557_v54 }
0x200d   :  { %v5552_v10 = vpop.permute.xlu1 %5551 }
0x200e   :  { %v5556_v48 = vsel %vm567_vm8, %v5550_v38, %v5552_v10  ;;  %v5554_v24 = vpop.permute.xlu0 %5553  ;;  %v8650_v57 = vpack.c.bf16 %v5581_v1, %v5539_v32  ;;  %v6004_v38 = vrot.slane %v5987_v60, %v9697_v16 }
0x200f   :  { %v5582_v29 = vmul.f32 %v5568_v49, %v5556_v48  ;;  %v5555_v36 = vsel %vm567_vm8, %v5552_v10, %v5554_v24  ;;  %v5558_v6 = vsel %vm567_vm8, %v5554_v24, %v5548_v19  ;;  %v6000_v19 = vrot.slane %v5987_v60, %v9691_v14 }
0x2010   :  { %v5583_v53 = vmul.f32 %v5572_v37, %v5555_v36  ;;  %v5584_v27 = vmul.f32 %v5576_v44, %v5558_v6  ;;  %v6222_v44 = vld [vmem:[#allocation5] sm:$0x1]  ;;  %v5844_v48 = vrot.slane %v5831_v59, %v9691_v14  ;;  %v5873_v6 = vld [vmem:[#allocation6 + $0x1] ss:$8 sm:$0xf] }
0x2011   :  { %v5590_v63 = vpop.permute.xlu1 %5589  ;;  %v8648_v26 = vpack.c.bf16 %v5582_v29, %v5540_v52  ;;  %v5836_v52 = vrot.slane %v5831_v59, %v9688_v13  ;;  %v5848_v29 = vrot.slane %v5831_v59, %v9697_v16 }
0x2012   :  { %v5592_v20 = vpop.permute.xlu0 %5591  ;;  %v8664_v58 = vpack.c.bf16 %v5584_v27, %v5542_v12  ;;  %v8666_v61 = vpack.c.bf16 %v5583_v53, %v5541_v33 }
0x2013   :  { %8649 = vmatprep.subr.bf16.mxu0 %v8648_v26  ;;  %v5599_v5 = vsel %vm639_vm9, %v5590_v63, %v5592_v20 }
0x2014   :  { %8651 = vmatpush1.bf16.msra.mxu0 %v8650_v57  ;;  %8665 = vmatprep.subr.bf16.mxu1 %v8664_v58  ;;  %v5623_v45 = vmul.f32 %v5606_v47, %v5599_v5 }
0x2015   :  { %v5594_v21 = vpop.permute.xlu1 %5593  ;;  %8667 = vmatpush1.bf16.msra.mxu1 %v8666_v61 }
0x2016   :  { %v5598_v42 = vsel %vm639_vm9, %v5592_v20, %v5594_v21  ;;  %v5596_v7 = vpop.permute.xlu0 %5595  ;;  %v5882_v20 = vrot.slane %v5873_v6, %v9694_v15 }
0x2017   :  { %v5624_v34 = vmul.f32 %v5610_v56, %v5598_v42  ;;  %v5597_v43 = vsel %vm639_vm9, %v5594_v21, %v5596_v7  ;;  %v5600_v39 = vsel %vm639_vm9, %v5596_v7, %v5590_v63  ;;  %v5886_v56 = vrot.slane %v5873_v6, %v9691_v14  ;;  %v5915_v21 = vld [vmem:[#allocation6 + $0x2] ss:$8 sm:$0xf] }
0x2018   :  { %v5625_v46 = vmul.f32 %v5614_v3, %v5597_v43  ;;  %v5626_v50 = vmul.f32 %v5618_v18, %v5600_v39  ;;  %v5878_v3 = vrot.slane %v5873_v6, %v9688_v13  ;;  %v5890_v18 = vrot.slane %v5873_v6, %v9697_v16 }
0x2019   :  { %5693 = vmatprep.subr.mxu0 %v5624_v34 }
0x201a   :  { %5694 = vmatpush1.msra.mxu0 %v5623_v45  ;;  %5764 = vmatprep.subr.mxu1 %v5626_v50 }
0x201b   :  { %7840 = vmatmul.mubr.msk.f32.vlgmr.msra.gmra.mrb[22].mxu0 %vm1290_vm14, %v5667_v41  ;;  %5765 = vmatpush1.msra.mxu1 %v5625_v46 }
0x201c   :  { %7841 = vmatmul.mubr.msk.f32.vlgmr.msra.gmra.mrb[22].mxu1 %vm1290_vm14, %v5667_v41  ;;  %6299 = vmatprep.mubr.f32.mxu0 %v13108_v11  ;;  %v5924_v41 = vrot.slane %v5915_v21, %v9694_v15 }
0x201d   :  { %6370 = vmatprep.mubr.f32.mxu1 %v13108_v11 }
0x2026   :  { %v5672_v0 = vpop.permute.xlu1 %5671 }
0x20ee   :  { %v5743_v51 = vpop.f32.mrb[22].mxu0 }
0x20ef   :  { %v5744_v4 = vadd.f32 %v5743_v51, %v5672_v0  ;;  %v5745_v17 = vpop.f32.mrb[23].mxu0  ;;  %v5814_v35 = vpop.f32.mrb[22].mxu1 }
0x20f0   :  { %v5746_v31 = vadd.f32 %v5745_v17, %v5672_v0  ;;  %v5815_v55 = vadd.f32 %v5814_v35, %v5672_v0  ;;  %v5816_v54 = vpop.f32.mrb[23].mxu1  ;;  %v5920_v35 = vrot.slane %v5915_v21, %v9688_v13 }
0x20f1   :  { %v11976_v49 = vmul.f32 %v5992_v22, %v5744_v4  ;;  %v5817_v11 = vadd.f32 %v5816_v54, %v5672_v0  ;;  %5819 = vrot.lane.b32.xlu0 %v5744_v4, %s9552_s0 }
0x20f2   :  { %v11979_v25 = vmul.f32 %v5996_v23, %v5746_v31  ;;  %v11981_v40 = vmul.f32 %v6000_v19, %v5815_v55  ;;  %5821 = vrot.lane.b32.xlu1 %v5746_v31, %s9552_s0  ;;  %v5928_v19 = vrot.slane %v5915_v21, %v9691_v14 }
0x20f3   :  { %v11984_v37 = vmul.f32 %v6004_v38, %v5817_v11  ;;  %v5932_v38 = vrot.slane %v5915_v21, %v9697_v16 }
0x20f5   :  { %5823 = vrot.lane.b32.xlu0 %v5815_v55, %s9552_s0 }
0x20f6   :  { %5825 = vrot.lane.b32.xlu1 %v5817_v11, %s9552_s0 }
0x20f9   :  { %5861 = vrot.lane.b32.xlu0 %v5744_v4, %s9550_s24 }
0x20fa   :  { %5863 = vrot.lane.b32.xlu1 %v5746_v31, %s9550_s24 }
0x20fd   :  { %5865 = vrot.lane.b32.xlu0 %v5815_v55, %s9550_s24 }
0x20fe   :  { %5867 = vrot.lane.b32.xlu1 %v5817_v11, %s9550_s24 }
0x2101   :  { %5903 = vrot.lane.b32.xlu0 %v5744_v4, %s9553_s10 }
0x2102   :  { %5905 = vrot.lane.b32.xlu1 %v5746_v31, %s9553_s10 }
0x2105   :  { %5907 = vrot.lane.b32.xlu0 %v5815_v55, %s9553_s10 }
0x2106   :  { %5909 = vrot.lane.b32.xlu1 %v5817_v11, %s9553_s10 }
0x2109   :  { %5945 = vrot.lane.b32.xlu0 %v5744_v4, %s9554_s14 }
0x210a   :  { %5947 = vrot.lane.b32.xlu1 %v5746_v31, %s9554_s14 }
0x210d   :  { %5949 = vrot.lane.b32.xlu0 %v5815_v55, %s9554_s14 }
0x210e   :  { %5951 = vrot.lane.b32.xlu1 %v5817_v11, %s9554_s14 }
0x2111   :  { %6017 = vrot.lane.b32.xlu0 %v5744_v4, %s9555_s15 }
0x2112   :  { %6019 = vrot.lane.b32.xlu1 %v5746_v31, %s9555_s15 }
0x2115   :  { %6021 = vrot.lane.b32.xlu0 %v5815_v55, %s9555_s15 }
0x2116   :  { %6023 = vrot.lane.b32.xlu1 %v5817_v11, %s9555_s15 }
0x2119   :  { %6059 = vrot.lane.b32.xlu0 %v5744_v4, %s9556_s16 }
0x211a   :  { %6061 = vrot.lane.b32.xlu1 %v5746_v31, %s9556_s16 }
0x211d   :  { %6063 = vrot.lane.b32.xlu0 %v5815_v55, %s9556_s16 }
0x211e   :  { %6065 = vrot.lane.b32.xlu1 %v5817_v11, %s9556_s16 }
0x2121   :  { %6101 = vrot.lane.b32.xlu0 %v5744_v4, %s9557_s17 }
0x2122   :  { %6103 = vrot.lane.b32.xlu1 %v5746_v31, %s9557_s17 }
0x2125   :  { %6105 = vrot.lane.b32.xlu0 %v5815_v55, %s9557_s17 }
0x2126   :  { %6107 = vrot.lane.b32.xlu1 %v5817_v11, %s9557_s17 }
0x2129   :  { %6143 = vrot.lane.b32.xlu0 %v5744_v4, %s9558_s18 }
0x212a   :  { %6145 = vrot.lane.b32.xlu1 %v5746_v31, %s9558_s18 }
0x212d   :  { %6147 = vrot.lane.b32.xlu0 %v5815_v55, %s9558_s18  ;;  %v5957_v55 = vld [vmem:[#allocation6 + $0x3] ss:$8 sm:$0xf] }
0x212e   :  { %6149 = vrot.lane.b32.xlu1 %v5817_v11, %s9558_s18  ;;  %v5962_v6 = vrot.slane %v5957_v55, %v9688_v13 }
0x2131   :  { %6225 = vperm.xlu0 %9363, %v6222_v44  }
0x2163   :  { %v5820_v10 = vpop.permute.xlu0 %5819 }
0x2164   :  { %v5822_v32 = vpop.permute.xlu1 %5821 }
0x2165   :  { %v5829_v1 = vsel %vm129_vm2, %v5820_v10, %v5822_v32 }
0x2166   :  { %v5854_v24 = vmul.f32 %v5840_v8, %v5829_v1  ;;  %v5966_v1 = vrot.slane %v5957_v55, %v9694_v15 }
0x2167   :  { %v5824_v36 = vpop.permute.xlu0 %5823 }
0x2168   :  { %5858 = vst [vmem:[#allocation2 + $0x8] sm:$0xff] %v5854_v24  ;;  %v5828_v33 = vsel %vm129_vm2, %v5822_v32, %v5824_v36  ;;  %v5826_v12 = vpop.permute.xlu1 %5825 }
0x2169   :  { %v5855_v53 = vmul.f32 %v5844_v48, %v5828_v33  ;;  %v5827_v27 = vsel %vm129_vm2, %v5824_v36, %v5826_v12  ;;  %v5830_v63 = vsel %vm129_vm2, %v5826_v12, %v5820_v10  ;;  %v5974_v33 = vrot.slane %v5957_v55, %v9697_v16 }
0x216a   :  { %v5853_v62 = vmul.f32 %v5836_v52, %v5830_v63  ;;  %v5856_v26 = vmul.f32 %v5848_v29, %v5827_v27  ;;  %v5970_v29 = vrot.slane %v5957_v55, %v9691_v14 }
0x216b   :  { %5859 = vst [vmem:[#allocation2 + $0x10] sm:$0xff] %v5855_v53  ;;  %v5862_v57 = vpop.permute.xlu0 %5861 }
0x216c   :  { %5857 = vst [vmem:[#allocation2] sm:$0xff] %v5853_v62  ;;  %5860 = vst [vmem:[#allocation2 + $0x18] sm:$0xff] %v5856_v26  ;;  %v5864_v58 = vpop.permute.xlu1 %5863 }
0x216d   :  { %v5871_v61 = vsel %vm201_vm3, %v5862_v57, %v5864_v58 }
0x216e   :  { %v5896_v47 = vmul.f32 %v5882_v20, %v5871_v61 }
0x216f   :  { %v5866_v5 = vpop.permute.xlu0 %5865 }
0x2170   :  { %5900 = vst [vmem:[#allocation2 + $0x28] sm:$0xff] %v5896_v47  ;;  %v5870_v42 = vsel %vm201_vm3, %v5864_v58, %v5866_v5  ;;  %v5868_v7 = vpop.permute.xlu1 %5867  ;;  %v8668_v34 = vpack.c.bf16 %v5896_v47, %v5854_v24 }
0x2171   :  { %v5897_v43 = vmul.f32 %v5886_v56, %v5870_v42  ;;  %v5869_v39 = vsel %vm201_vm3, %v5866_v5, %v5868_v7  ;;  %v5872_v45 = vsel %vm201_vm3, %v5868_v7, %v5862_v57 }
0x2172   :  { %v5895_v46 = vmul.f32 %v5878_v3, %v5872_v45  ;;  %v5898_v50 = vmul.f32 %v5890_v18, %v5869_v39  ;;  %8669 = vmatprep.subr.bf16.mxu0 %v8668_v34 }
0x2173   :  { %5901 = vst [vmem:[#allocation2 + $0x30] sm:$0xff] %v5897_v43  ;;  %v5904_v60 = vpop.permute.xlu0 %5903  ;;  %v8686_v4 = vpack.c.bf16 %v5897_v43, %v5855_v53  ;;  %v6029_v53 = vld [vmem:[#allocation6 + $0x5] ss:$8 sm:$0xf] }
0x2174   :  { %5899 = vst [vmem:[#allocation2 + $0x20] sm:$0xff] %v5895_v46  ;;  %5902 = vst [vmem:[#allocation2 + $0x38] sm:$0xff] %v5898_v50  ;;  %v5906_v22 = vpop.permute.xlu1 %5905  ;;  %v8670_v0 = vpack.c.bf16 %v5895_v46, %v5853_v62  ;;  %v8684_v51 = vpack.c.bf16 %v5898_v50, %v5856_v26  ;;  %v6034_v56 = vrot.slane %v6029_v53, %v9688_v13  ;;  %v6071_v46 = vld [vmem:[#allocation6 + $0x6] ss:$8 sm:$0xf] }
0x2175   :  { %v5913_v23 = vsel %vm273_vm4, %v5904_v60, %v5906_v22  ;;  %v6038_v42 = vrot.slane %v6029_v53, %v9694_v15  ;;  %v6042_v43 = vrot.slane %v6029_v53, %v9691_v14  ;;  %v6046_v39 = vrot.slane %v6029_v53, %v9697_v16 }
0x2176   :  { %v5938_v17 = vmul.f32 %v5924_v41, %v5913_v23  ;;  %8671 = vmatpush1.bf16.msra.mxu0 %v8670_v0  ;;  %8685 = vmatprep.subr.bf16.mxu1 %v8684_v51 }
0x2177   :  { %v5908_v31 = vpop.permute.xlu0 %5907  ;;  %8687 = vmatpush1.bf16.msra.mxu1 %v8686_v4 }
0x2178   :  { %v5912_v54 = vsel %vm273_vm4, %v5906_v22, %v5908_v31  ;;  %v5910_v11 = vpop.permute.xlu1 %5909 }
0x2179   :  { %v5939_v44 = vmul.f32 %v5928_v19, %v5912_v54  ;;  %v5911_v59 = vsel %vm273_vm4, %v5908_v31, %v5910_v11  ;;  %v5914_v8 = vsel %vm273_vm4, %v5910_v11, %v5904_v60  ;;  %v6076_v19 = vrot.slane %v6071_v46, %v9688_v13 }
0x217a   :  { %v5937_v10 = vmul.f32 %v5920_v35, %v5914_v8  ;;  %v5940_v32 = vmul.f32 %v5932_v38, %v5911_v59  ;;  %v6080_v11 = vrot.slane %v6071_v46, %v9694_v15  ;;  %v6084_v59 = vrot.slane %v6071_v46, %v9691_v14 }
0x217b   :  { %v5946_v48 = vpop.permute.xlu0 %5945  ;;  %v6088_v8 = vrot.slane %v6071_v46, %v9697_v16 }
0x217c   :  { %v5948_v24 = vpop.permute.xlu1 %5947 }
0x217d   :  { %v5955_v52 = vsel %vm345_vm5, %v5946_v48, %v5948_v24 }
0x217e   :  { %v5980_v36 = vmul.f32 %v5966_v1, %v5955_v52 }
0x217f   :  { %v5950_v12 = vpop.permute.xlu0 %5949 }
0x2180   :  { %v5954_v27 = vsel %vm345_vm5, %v5948_v24, %v5950_v12  ;;  %v5952_v63 = vpop.permute.xlu1 %5951  ;;  %v8672_v62 = vpack.c.bf16 %v5980_v36, %v5938_v17 }
0x2181   :  { %v5981_v26 = vmul.f32 %v5970_v29, %v5954_v27  ;;  %v5953_v20 = vsel %vm345_vm5, %v5950_v12, %v5952_v63  ;;  %v5956_v57 = vsel %vm345_vm5, %v5952_v63, %v5946_v48 }
0x2182   :  { %v5979_v58 = vmul.f32 %v5962_v6, %v5956_v57  ;;  %v5982_v61 = vmul.f32 %v5974_v33, %v5953_v20  ;;  %8673 = vmatprep.subr.bf16.mxu0 %v8672_v62  ;;  %v6155_v62 = vld [vmem:[#allocation6 + $0x20] ss:$8 sm:$0xf] }
0x2183   :  { %v6018_v47 = vpop.permute.xlu0 %6017  ;;  %v8690_v7 = vpack.c.bf16 %v5981_v26, %v5939_v44  ;;  %v6168_v46 = vrot.slane %v6155_v62, %v9691_v14 }
0x2184   :  { %v6020_v3 = vpop.permute.xlu1 %6019  ;;  %v8674_v18 = vpack.c.bf16 %v5979_v58, %v5937_v10  ;;  %v8688_v5 = vpack.c.bf16 %v5982_v61, %v5940_v32  ;;  %v6113_v10 = vld [vmem:[#allocation6 + $0x7] ss:$8 sm:$0xf] }
0x2185   :  { %v6027_v21 = vsel %vm423_vm6, %v6018_v47, %v6020_v3  ;;  %v6118_v52 = vrot.slane %v6113_v10, %v9688_v13  ;;  %v6122_v33 = vrot.slane %v6113_v10, %v9694_v15  ;;  %v6126_v53 = vrot.slane %v6113_v10, %v9691_v14  ;;  %v6221_v14 = vld [vmem:[%s13084_s8] sm:$0x1]  ;;  %s9564_s8 = smov [#allocation11]  }
0x2186   :  { %v6051_v34 = vmul.f32 %v6034_v56, %v6027_v21  ;;  %8675 = vmatpush1.bf16.msra.mxu0 %v8674_v18  ;;  %8689 = vmatprep.subr.bf16.mxu1 %v8688_v5  ;;  %v6130_v27 = vrot.slane %v6113_v10, %v9697_v16  ;;  %s7789_s0 = sshll.u32 %s9564_s8, 4  ;;  %s7790_s0 = int_to_ptr.vmem [resolvable:$true] %s7789_s0 }
0x2187   :  { %v6022_v45 = vpop.permute.xlu0 %6021  ;;  %8691 = vmatpush1.bf16.msra.mxu1 %v8690_v7  ;;  %s9493_s10 = scalar_lea.vmem %s7790_s0, 128  ;;  %p9498_p3 = scmp.lt.s32.totalorder %s7790_s0, %s7790_s0 }
0x2188   :  { %v6026_v50 = vsel %vm423_vm6, %v6020_v3, %v6022_v45  ;;  %v6024_v41 = vpop.permute.xlu1 %6023  ;;  %v8678_v38 = vpack.c.bf16 %v6051_v34, %v11976_v49  ;;  %v6160_v3 = vrot.slane %v6155_v62, %v9688_v13  ;;  %p9494_p2 = scmp.ne.s32.totalorder %s7790_s0, %s9493_s10  ;;  %p9499_p4 = scmp.lt.s32.totalorder %s9493_s10, %s9493_s10 }
0x2189   :  { %v6052_v60 = vmul.f32 %v6038_v42, %v6026_v50  ;;  %v6025_v22 = vsel %vm423_vm6, %v6022_v45, %v6024_v41  ;;  %v6028_v0 = vsel %vm423_vm6, %v6024_v41, %v6018_v47  ;;  %v6172_v50 = vrot.slane %v6155_v62, %v9697_v16  ;;  %v6489_v16 = vld [vmem:[#allocation9 + $0x8] sm:$0xff] }
0x218a   :  { %v6053_v51 = vmul.f32 %v6042_v43, %v6025_v22  ;;  %v6054_v23 = vmul.f32 %v6046_v39, %v6028_v0  ;;  %v6164_v39 = vrot.slane %v6155_v62, %v9694_v15  ;;  %p9500_p5 = por %p9499_p4, %p9498_p3 }
0x218b   :  { %v6060_v4 = vpop.permute.xlu0 %6059  ;;  %v8676_v17 = vpack.c.bf16 %v6052_v60, %v11979_v25 }
0x218c   :  { %v6062_v35 = vpop.permute.xlu1 %6061  ;;  %v8692_v31 = vpack.c.bf16 %v6054_v23, %v11984_v37  ;;  %v8694_v55 = vpack.c.bf16 %v6053_v51, %v11981_v40  ;;  %p9501_p6 = pnand %p9500_p5, %p9494_p2 }
0x218d   :  { %v6069_v54 = vsel %vm495_vm7, %v6060_v4, %v6062_v35  ;;  %8677 = vmatprep.subr.bf16.mxu0 %v8676_v17  ;;  %v6488_v17 = vld [vmem:[#allocation9] sm:$0xff] }
0x218e   :  { %v6093_v44 = vmul.f32 %v6076_v19, %v6069_v54  ;;  %8679 = vmatpush1.bf16.msra.mxu0 %v8678_v38  ;;  %8693 = vmatprep.subr.bf16.mxu1 %v8692_v31  ;;  %v6493_v38 = vld [vmem:[#allocation9 + $0x28] sm:$0xff]  ;;  %v6495_v31 = vld [vmem:[#allocation9 + $0x38] sm:$0xff] }
0x218f   :  { %v6064_v25 = vpop.permute.xlu0 %6063  ;;  %8695 = vmatpush1.bf16.msra.mxu1 %v8694_v55  ;;  %v12123_v55 = vpack.c.bf16 %v6490_v28, %v6488_v17  ;;  %v12125_v54 = vpack.c.bf16 %v6495_v31, %v6493_v38 }
0x2190   :  { %v6068_v49 = vsel %vm495_vm7, %v6062_v35, %v6064_v25  ;;  %v6066_v40 = vpop.permute.xlu1 %6065 }
0x2191   :  { %v6094_v37 = vmul.f32 %v6080_v11, %v6068_v49  ;;  %v6067_v32 = vsel %vm495_vm7, %v6064_v25, %v6066_v40  ;;  %v6070_v1 = vsel %vm495_vm7, %v6066_v40, %v6060_v4  ;;  %v6491_v4 = vld [vmem:[#allocation9 + $0x18] sm:$0xff]  ;;  %v6492_v11 = vld [vmem:[#allocation9 + $0x20] sm:$0xff]  ;;  %v6498_v40 = vld [vmem:[#allocation9 + $0x50] sm:$0xff] }
0x2192   :  { %v6095_v48 = vmul.f32 %v6084_v59, %v6067_v32  ;;  %v6096_v24 = vmul.f32 %v6088_v8, %v6070_v1  ;;  %v12121_v35 = vpack.c.bf16 %v6491_v4, %v6489_v16  ;;  %v6497_v59 = vld [vmem:[#allocation9 + $0x48] sm:$0xff]  ;;  %v6499_v8 = vld [vmem:[#allocation9 + $0x58] sm:$0xff]  ;;  %v6496_v49 = vld [vmem:[#allocation9 + $0x40] sm:$0xff] }
0x2193   :  { %v6102_v29 = vpop.permute.xlu0 %6101  ;;  %v12134_v10 = vpack.c.bf16 %v6499_v8, %v6497_v59  ;;  %v6503_v32 = vld [vmem:[#allocation9 + $0x78] sm:$0xff]  ;;  %v12138_v1 = vpack.c.bf16 %v6498_v40, %v6496_v49 }
0x2194   :  { %v6104_v36 = vpop.permute.xlu1 %6103 }
0x2195   :  { %v6111_v6 = vsel %vm567_vm8, %v6102_v29, %v6104_v36 }
0x2196   :  { %v6135_v12 = vmul.f32 %v6118_v52, %v6111_v6  ;;  %v6502_v52 = vld [vmem:[#allocation9 + $0x70] sm:$0xff] }
0x2197   :  { %v6106_v63 = vpop.permute.xlu0 %6105 }
0x2198   :  { %v6110_v26 = vsel %vm567_vm8, %v6104_v36, %v6106_v63  ;;  %v6108_v20 = vpop.permute.xlu1 %6107  ;;  %v8682_v42 = vpack.c.bf16 %v6135_v12, %v6093_v44  ;;  %v6494_v44 = vld [vmem:[#allocation9 + $0x30] sm:$0xff]  ;;  %v6507_v36 = vld [vmem:[#allocation9 + $0x98] sm:$0xff]  ;;  %v6504_v12 = vld [vmem:[#allocation9 + $0x80] sm:$0xff] }
0x2199   :  { %v6136_v57 = vmul.f32 %v6122_v33, %v6110_v26  ;;  %v6109_v58 = vsel %vm567_vm8, %v6106_v63, %v6108_v20  ;;  %v6112_v61 = vsel %vm567_vm8, %v6108_v20, %v6102_v29  ;;  %v12130_v25 = vpack.c.bf16 %v6494_v44, %v6492_v11  ;;  %v6505_v29 = vld [vmem:[#allocation9 + $0x88] sm:$0xff]  ;;  %v6511_v63 = vld [vmem:[#allocation9 + $0xb8] sm:$0xff]  ;;  %v6508_v20 = vld [vmem:[#allocation9 + $0xa0] sm:$0xff] }
0x219a   :  { %v6137_v56 = vmul.f32 %v6126_v53, %v6109_v58  ;;  %v6138_v47 = vmul.f32 %v6130_v27, %v6112_v61  ;;  %v12150_v33 = vpack.c.bf16 %v6507_v36, %v6505_v29  ;;  %v6506_v53 = vld [vmem:[#allocation9 + $0x90] sm:$0xff]  ;;  %v6509_v27 = vld [vmem:[#allocation9 + $0xa8] sm:$0xff]  ;;  %v6515_v61 = vld [vmem:[#allocation9 + $0xd8] sm:$0xff] }
0x219b   :  { %v6144_v18 = vpop.permute.xlu0 %6143  ;;  %v8680_v5 = vpack.c.bf16 %v6136_v57, %v6094_v37  ;;  %v6501_v37 = vld [vmem:[#allocation9 + $0x68] sm:$0xff]  ;;  %v12154_v62 = vpack.c.bf16 %v6506_v53, %v6504_v12  ;;  %v12158_v26 = vpack.c.bf16 %v6511_v63, %v6509_v27  ;;  %v6510_v57 = vld [vmem:[#allocation9 + $0xb0] sm:$0xff] }
0x219c   :  { %v6146_v21 = vpop.permute.xlu1 %6145  ;;  %v8696_v7 = vpack.c.bf16 %v6138_v47, %v6096_v24  ;;  %v8698_v34 = vpack.c.bf16 %v6137_v56, %v6095_v48  ;;  %v12142_v48 = vpack.c.bf16 %v6503_v32, %v6501_v37  ;;  %v6500_v24 = vld [vmem:[#allocation9 + $0x60] sm:$0xff]  ;;  %v6513_v58 = vld [vmem:[#allocation9 + $0xc8] sm:$0xff]  ;;  %v12162_v56 = vpack.c.bf16 %v6510_v57, %v6508_v20 }
0x219d   :  { %v6153_v43 = vsel %vm639_vm9, %v6144_v18, %v6146_v21  ;;  %8681 = vmatprep.subr.bf16.mxu0 %v8680_v5  ;;  %v12146_v6 = vpack.c.bf16 %v6502_v52, %v6500_v24  ;;  %v12166_v47 = vpack.c.bf16 %v6515_v61, %v6513_v58  ;;  %v6517_v5 = vld [vmem:[#allocation9 + $0xe8] sm:$0xff] }
0x219e   :  { %v6177_v45 = vmul.f32 %v6160_v3, %v6153_v43  ;;  %8683 = vmatpush1.bf16.msra.mxu0 %v8682_v42  ;;  %8697 = vmatprep.subr.bf16.mxu1 %v8696_v7  ;;  %v6512_v3 = vld [vmem:[#allocation9 + $0xc0] sm:$0xff]  ;;  %v6518_v43 = vld [vmem:[#allocation9 + $0xf0] sm:$0xff] }
0x219f   :  { %v6148_v41 = vpop.permute.xlu0 %6147  ;;  %8699 = vmatpush1.bf16.msra.mxu1 %v8698_v34  ;;  %v6516_v34 = vld [vmem:[#allocation9 + $0xe0] sm:$0xff] }
0x21a0   :  { %v6152_v60 = vsel %vm639_vm9, %v6146_v21, %v6148_v41  ;;  %v6150_v22 = vpop.permute.xlu1 %6149  ;;  %v6519_v21 = vld [vmem:[#allocation9 + $0xf8] sm:$0xff] }
0x21a1   :  { %v6178_v0 = vmul.f32 %v6164_v39, %v6152_v60  ;;  %v6151_v51 = vsel %vm639_vm9, %v6148_v41, %v6150_v22  ;;  %v6154_v15 = vsel %vm639_vm9, %v6150_v22, %v6144_v18  ;;  %v6514_v18 = vld [vmem:[#allocation9 + $0xd0] sm:$0xff]  ;;  %v12174_v7 = vpack.c.bf16 %v6519_v21, %v6517_v5  ;;  %v6521_v39 = vld [vmem:[#allocation9 + $0x108] sm:$0xff]  ;;  %v6520_v41 = vld [vmem:[#allocation9 + $0x100] sm:$0xff] }
0x21a2   :  { %v6179_v23 = vmul.f32 %v6168_v46, %v6151_v51  ;;  %v6180_v19 = vmul.f32 %v6172_v50, %v6154_v15  ;;  %v12170_v42 = vpack.c.bf16 %v6514_v18, %v6512_v3  ;;  %v12178_v46 = vpack.c.bf16 %v6518_v43, %v6516_v34  ;;  %v6522_v60 = vld [vmem:[#allocation9 + $0x110] sm:$0xff]  ;;  %v6525_v22 = vld [vmem:[#allocation9 + $0x128] sm:$0xff]  ;;  %v6531_v18 = vld [vmem:[#allocation9 + $0x158] sm:$0xff] }
0x21a3   :  { %6251 = vmatprep.subr.mxu0 %v6178_v0  ;;  %v6527_v0 = vld [vmem:[#allocation9 + $0x138] sm:$0xff]  ;;  %v12186_v51 = vpack.c.bf16 %v6522_v60, %v6520_v41  ;;  %v6528_v21 = vld [vmem:[#allocation9 + $0x140] sm:$0xff]  ;;  %v6530_v34 = vld [vmem:[#allocation9 + $0x150] sm:$0xff] }
0x21a4   :  { %6252 = vmatpush1.msra.mxu0 %v6177_v45  ;;  %6322 = vmatprep.subr.mxu1 %v6180_v19  ;;  %v6523_v45 = vld [vmem:[#allocation9 + $0x118] sm:$0xff]  ;;  %v12190_v15 = vpack.c.bf16 %v6527_v0, %v6525_v22  ;;  %v6526_v19 = vld [vmem:[#allocation9 + $0x130] sm:$0xff]  ;;  %v12222_v43 = vpack.c.bf16 %v6530_v34, %v6528_v21  ;;  %v6532_v60 = vld [vmem:[#allocation9 + $0x160] sm:$0xff] }
0x21a5   :  { %7842 = vmatmul.mubr.msk.f32.vlgmr.msra.gmra.mrb[24].mxu0 %vm1290_vm14, %v6221_v14  ;;  %6323 = vmatpush1.msra.mxu1 %v6179_v23  ;;  %v12182_v50 = vpack.c.bf16 %v6523_v45, %v6521_v39  ;;  %v6524_v23 = vld [vmem:[#allocation9 + $0x120] sm:$0xff]  ;;  %v6533_v39 = vld [vmem:[#allocation9 + $0x168] sm:$0xff]  ;;  %v6535_v45 = vld [vmem:[#allocation9 + $0x178] sm:$0xff] }
0x21a6   :  { %7843 = vmatmul.mubr.msk.f32.vlgmr.msra.gmra.mrb[24].mxu1 %vm1290_vm14, %v6221_v14  ;;  %8701 = vmatprep.subr.bf16.mxu0 %v12121_v35  ;;  %v12194_v14 = vpack.c.bf16 %v6526_v19, %v6524_v23  ;;  %v12228_v41 = vpack.c.bf16 %v6535_v45, %v6533_v39  ;;  %v6534_v22 = vld [vmem:[#allocation9 + $0x170] sm:$0xff]  ;;  %v6537_v23 = vld [vmem:[#allocation9 + $0x188] sm:$0xff]  ;;  %v6539_v19 = vld [vmem:[#allocation9 + $0x198] sm:$0xff] }
0x21a7   :  { %8765 = vmatprep.subr.bf16.mxu1 %v12121_v35  ;;  %8703 = vmatpush1.bf16.msra.mxu0 %v12123_v55  ;;  %v12230_v0 = vpack.c.bf16 %v6534_v22, %v6532_v60  ;;  %v13112_v45 = vld [vmem:[#allocation21_spill] sm:$0xff] }
0x21a8   :  { %8767 = vmatpush1.bf16.msra.mxu1 %v12123_v55  ;;  %8705 = vmatprep.subr.bf16.mxu0 %v12125_v54 }
0x21a9   :  { %8769 = vmatprep.subr.bf16.mxu1 %v12125_v54 }
0x21ab   :  { %8707 = vmatpush1.bf16.msra.mxu0 %v12130_v25 }
0x21ac   :  { %8771 = vmatpush1.bf16.msra.mxu1 %v12130_v25  ;;  %8709 = vmatprep.subr.bf16.mxu0 %v12134_v10 }
0x21ad   :  { %8773 = vmatprep.subr.bf16.mxu1 %v12134_v10 }
0x21af   :  { %8711 = vmatpush1.bf16.msra.mxu0 %v12138_v1 }
0x21b0   :  { %8775 = vmatpush1.bf16.msra.mxu1 %v12138_v1  ;;  %8713 = vmatprep.subr.bf16.mxu0 %v12142_v48  ;;  %v6226_v16 = vpop.permute.xlu0 %6225 }
0x21b1   :  { %8777 = vmatprep.subr.bf16.mxu1 %v12142_v48  ;;  %v6231_v4 = vrot.slane %v6226_v16, %v9688_v13  ;;  %v13110_v13 = vld [vmem:[#allocation19_spill] sm:$0xff]  ;;  %v12236_v16 = vpack.c.bf16 %v6539_v19, %v6537_v23 }
0x21b2   :  { %v6422_v29 = vrot.slane %v11394_v30, %v13110_v13  ;;  %v6529_v30 = vld [vmem:[#allocation9 + $0x148] sm:$0xff] }
0x21b3   :  { %8715 = vmatpush1.bf16.msra.mxu0 %v12146_v6  ;;  %v12220_v5 = vpack.c.bf16 %v6531_v18, %v6529_v30 }
0x21b4   :  { %8779 = vmatpush1.bf16.msra.mxu1 %v12146_v6  ;;  %8717 = vmatprep.subr.bf16.mxu0 %v12150_v33 }
0x21b5   :  { %8781 = vmatprep.subr.bf16.mxu1 %v12150_v33 }
0x21b7   :  { %8719 = vmatpush1.bf16.msra.mxu0 %v12154_v62 }
0x21b8   :  { %8783 = vmatpush1.bf16.msra.mxu1 %v12154_v62  ;;  %8721 = vmatprep.subr.bf16.mxu0 %v12158_v26 }
0x21b9   :  { %8785 = vmatprep.subr.bf16.mxu1 %v12158_v26 }
0x21bb   :  { %8723 = vmatpush1.bf16.msra.mxu0 %v12162_v56 }
0x21bc   :  { %8787 = vmatpush1.bf16.msra.mxu1 %v12162_v56  ;;  %8725 = vmatprep.subr.bf16.mxu0 %v12166_v47 }
0x21bd   :  { %8789 = vmatprep.subr.bf16.mxu1 %v12166_v47 }
0x21bf   :  { %8727 = vmatpush1.bf16.msra.mxu0 %v12170_v42 }
0x21c0   :  { %8791 = vmatpush1.bf16.msra.mxu1 %v12170_v42  ;;  %8729 = vmatprep.subr.bf16.mxu0 %v12174_v7 }
0x21c1   :  { %8793 = vmatprep.subr.bf16.mxu1 %v12174_v7 }
0x21c3   :  { %8731 = vmatpush1.bf16.msra.mxu0 %v12178_v46 }
0x21c4   :  { %8795 = vmatpush1.bf16.msra.mxu1 %v12178_v46  ;;  %8733 = vmatprep.subr.bf16.mxu0 %v12182_v50 }
0x21c5   :  { %8797 = vmatprep.subr.bf16.mxu1 %v12182_v50 }
0x21c7   :  { %8735 = vmatpush1.bf16.msra.mxu0 %v12186_v51 }
0x21c8   :  { %8799 = vmatpush1.bf16.msra.mxu1 %v12186_v51  ;;  %8737 = vmatprep.subr.bf16.mxu0 %v12190_v15 }
0x21c9   :  { %8801 = vmatprep.subr.bf16.mxu1 %v12190_v15 }
0x21cb   :  { %8739 = vmatpush1.bf16.msra.mxu0 %v12194_v14 }
0x21cc   :  { %8803 = vmatpush1.bf16.msra.mxu1 %v12194_v14  ;;  %8741 = vmatprep.subr.bf16.mxu0 %v12220_v5 }
0x21cd   :  { %8805 = vmatprep.subr.bf16.mxu1 %v12220_v5 }
0x21cf   :  { %8743 = vmatpush1.bf16.msra.mxu0 %v12222_v43 }
0x21d0   :  { %8807 = vmatpush1.bf16.msra.mxu1 %v12222_v43  ;;  %8745 = vmatprep.subr.bf16.mxu0 %v12228_v41 }
0x21d1   :  { %8809 = vmatprep.subr.bf16.mxu1 %v12228_v41 }
0x21d3   :  { %8747 = vmatpush1.bf16.msra.mxu0 %v12230_v0 }
0x21d4   :  { %8811 = vmatpush1.bf16.msra.mxu1 %v12230_v0  ;;  %8749 = vmatprep.subr.bf16.mxu0 %v12236_v16 }
0x21d5   :  { %8813 = vmatprep.subr.bf16.mxu1 %v12236_v16 }
0x2278   :  { %v6301_v17 = vpop.f32.mrb[24].mxu0 }
0x2279   :  { %v6302_v28 = vadd.f32 %v6301_v17, %v6231_v4  ;;  %v6303_v38 = vpop.f32.mrb[25].mxu0  ;;  %v6372_v31 = vpop.f32.mrb[24].mxu1  ;;  %v6538_v17 = vld [vmem:[#allocation9 + $0x190] sm:$0xff] }
0x227a   :  { %v6304_v11 = vadd.f32 %v6303_v38, %v6231_v4  ;;  %v6373_v44 = vadd.f32 %v6372_v31, %v6231_v4  ;;  %v6374_v59 = vpop.f32.mrb[25].mxu1  ;;  %v6541_v38 = vld [vmem:[#allocation9 + $0x1a8] sm:$0xff]  ;;  %v6543_v31 = vld [vmem:[#allocation9 + $0x1b8] sm:$0xff] }
0x227b   :  { %v6375_v8 = vadd.f32 %v6374_v59, %v6231_v4  ;;  %v6536_v4 = vld [vmem:[#allocation9 + $0x180] sm:$0xff]  ;;  %v6542_v59 = vld [vmem:[#allocation9 + $0x1b0] sm:$0xff] }
0x227c   :  { %v6379_v49 = vcombine.low %v6302_v28, %v6304_v11  ;;  %v12238_v28 = vpack.c.bf16 %v6538_v17, %v6536_v4  ;;  %v12244_v11 = vpack.c.bf16 %v6543_v31, %v6541_v38 }
0x227d   :  { %v6398_v40 = vcombine.low %v6373_v44, %v6375_v8  ;;  %v6540_v44 = vld [vmem:[#allocation9 + $0x1a0] sm:$0xff] }
0x227e   :  { %v6386_v37 = vrot.slane %v6379_v49, %v9677_v9  ;;  %8751 = vmatpush1.bf16.msra.mxu0 %v12238_v28  ;;  %8815 = vmatpush1.bf16.msra.mxu1 %v12238_v28  ;;  %v12246_v8 = vpack.c.bf16 %v6542_v59, %v6540_v44  ;;  %v6545_v49 = vld [vmem:[#allocation9 + $0x1c8] sm:$0xff] }
0x227f   :  { %v6405_v32 = vrot.slane %v6398_v40, %v9677_v9  ;;  %8753 = vmatprep.subr.bf16.mxu0 %v12244_v11  ;;  %8817 = vmatprep.subr.bf16.mxu1 %v12244_v11  ;;  %v6547_v40 = vld [vmem:[#allocation9 + $0x1d8] sm:$0xff] }
0x2280   :  { %v6393_v24 = vrot.slane %v6386_v37, %v9677_v9  ;;  %v12252_v37 = vpack.c.bf16 %v6547_v40, %v6545_v49 }
0x2281   :  { %v6412_v52 = vrot.slane %v6405_v32, %v9677_v9  ;;  %v6544_v32 = vld [vmem:[#allocation9 + $0x1c0] sm:$0xff] }
0x2282   :  { %6395 = vst.msk [vmem:[#allocation4] ss:$2 sm:$0x3] %vm9662_vm0, %v6393_v24  ;;  %8755 = vmatpush1.bf16.msra.mxu0 %v12246_v8  ;;  %8819 = vmatpush1.bf16.msra.mxu1 %v12246_v8  ;;  %v6546_v24 = vld [vmem:[#allocation9 + $0x1d0] sm:$0xff] }
0x2283   :  { %6414 = vst.msk [vmem:[#allocation4 + $0x1] ss:$2 sm:$0x3] %vm9662_vm0, %v6412_v52  ;;  %v12254_v52 = vpack.c.bf16 %v6546_v24, %v6544_v32  ;;  %8757 = vmatprep.subr.bf16.mxu0 %v12252_v37  ;;  %8821 = vmatprep.subr.bf16.mxu1 %v12252_v37 }
0x2286   :  { %8759 = vmatpush1.bf16.msra.mxu0 %v12254_v52  ;;  %8823 = vmatpush1.bf16.msra.mxu1 %v12254_v52 }
0x228a   :  { %v6415_v36 = vld [vmem:[#allocation4] sm:$0xf] }
0x228b   :  { %v12212_v12 = vadd.f32 %v6422_v29, %v6415_v36  ;;  %v6549_v29 = vld [vmem:[#allocation9 + $0x1e8] sm:$0xff]  ;;  %v6551_v36 = vld [vmem:[#allocation9 + $0x1f8] sm:$0xff] }
0x228d   :  { %v6432_v53 = vrot.slane %v12212_v12, %v13110_v13 }
0x228f   :  { %v6433_v27 = vcombine.high %v6432_v53, %v6432_v53  ;;  %v6441_v63 = vsel %vm2603_vm15, %v6432_v53, -inf  ;;  %v6436_v57 = vsel %vm2603_vm15, %v6432_v53, inf  ;;  %v12260_v53 = vpack.c.bf16 %v6551_v36, %v6549_v29 }
0x2291   :  { %v6442_v20 = vsel %vm2603_vm15, %v6433_v27, -inf  ;;  %v6437_v58 = vsel %vm2603_vm15, %v6433_v27, inf  ;;  %v6548_v27 = vld [vmem:[#allocation9 + $0x1e0] sm:$0xff]  ;;  %8761 = vmatprep.subr.bf16.mxu0 %v12260_v53  ;;  %8825 = vmatprep.subr.bf16.mxu1 %v12260_v53 }
0x2292   :  { %v6443_v61 = vmax.f32 %v6441_v63, %v6442_v20  ;;  %v6438_v3 = vmin.f32 %v6436_v57, %v6437_v58  ;;  %v6550_v63 = vld [vmem:[#allocation9 + $0x1f0] sm:$0xff] }
0x2293   :  { %v12262_v20 = vpack.c.bf16 %v6550_v63, %v6548_v27 }
0x2294   :  { %6444 = vmax.xlane.f32.xlu0 %v6443_v61  ;;  %6439 = vmin.xlane.f32.xlu1 %v6438_v3  ;;  %v13111_v3 = vld [vmem:[#allocation20_spill] sm:$0xff] }
0x2295   :  { %8763 = vmatpush1.bf16.msra.mxu0 %v12262_v20  ;;  %8827 = vmatpush1.bf16.msra.mxu1 %v12262_v20 }
0x2296   :  { %8829 = vmatprep.subr.bf16.mxu0 %v12121_v35  ;;  %8893 = vmatprep.subr.bf16.mxu1 %v12121_v35 }
0x2321   :  { %v6445_v57 = vpop.xlane.xlu0 %6444  ;;  %v6440_v58 = vpop.xlane.xlu1 %6439 }
0x2322   :  { %v6456_v61 = vsub.f32 %v6445_v57, %v6440_v58  ;;  %v6453_v30 = vrot.slane %v6440_v58, %v13111_v3 }
0x2324   :  { %9407 = vrcp.f32 %v6456_v61  ;;  %v6455_v21 = vsub.f32 %v12212_v12, %v6453_v30 }
0x232e   :  { %v9408_v18 = vpop.eup %9407 }
0x232f   :  { %v6466_v34 = vrot.slane %v9408_v18, %v13111_v3 }
0x2331   :  { %v6468_v39 = vmul.f32 %v6466_v34, %v6455_v21 }
0x2333   :  { %v12274_v60 = vadd.f32 %v6468_v39, %v13112_v45  ;;  %v7745_v22 = vrot.slane %v6468_v39, %v9677_v9 }
0x2335   :  { %v12279_v23 = vrot.slane %v12274_v60, %v13110_v13  ;;  %7748 = vst.msk [vmem:[#allocation11 + $0x1] ss:$2 sm:$0x3] %vm9662_vm0, %v7745_v22  ;;  %v7769_v19 = vcombine.high %v7745_v22, %v7745_v22  ;;  %v6470_v4 = vmul.f32 %v12274_v60, %v12274_v60 }
0x2337   :  { %7772 = vst.msk [vmem:[#allocation11 + $0x5] ss:$2 sm:$0x3] %vm9662_vm0, %v7769_v19  ;;  %v12289_v12 = vcombine.high %v12279_v23, %v12279_v23  ;;  %v6478_v17 = vrot.slane %v6470_v4, %v13110_v13 }
0x2339   :  { %6627 = vmatprep.mubr.f32.mxu0 %v12289_v12  ;;  %v6479_v38 = vcombine.high %v6478_v17, %v6478_v17  ;;  %v6482_v31 = vsel %vm2603_vm15, %v6478_v17, 0.0 }
0x233a   :  { %6628 = vmatmul.mubr.f32.vlgmr.msra.gmra.mrb[26].mxu0 %v12279_v23 }
0x233b   :  { %v6483_v44 = vsel %vm2603_vm15, %v6479_v38, 0.0  ;;  %8831 = vmatpush1.bf16.msra.mxu0 %v12123_v55 }
0x233c   :  { %v6484_v59 = vadd.f32 %v6483_v44, %v6482_v31  ;;  %8833 = vmatprep.subr.bf16.mxu0 %v12125_v54 }
0x233e   :  { %6485 = vadd.xlane.f32.xlu1 %v6484_v59 }
0x233f   :  { %8835 = vmatpush1.bf16.msra.mxu0 %v12130_v25 }
0x2340   :  { %8837 = vmatprep.subr.bf16.mxu0 %v12134_v10 }
0x2343   :  { %8839 = vmatpush1.bf16.msra.mxu0 %v12138_v1 }
0x2344   :  { %8841 = vmatprep.subr.bf16.mxu0 %v12142_v48 }
0x2347   :  { %8843 = vmatpush1.bf16.msra.mxu0 %v12146_v6 }
0x2348   :  { %8845 = vmatprep.subr.bf16.mxu0 %v12150_v33 }
0x234b   :  { %8847 = vmatpush1.bf16.msra.mxu0 %v12154_v62 }
0x234c   :  { %8849 = vmatprep.subr.bf16.mxu0 %v12158_v26 }
0x234f   :  { %8851 = vmatpush1.bf16.msra.mxu0 %v12162_v56 }
0x2350   :  { %8853 = vmatprep.subr.bf16.mxu0 %v12166_v47 }
0x2353   :  { %8855 = vmatpush1.bf16.msra.mxu0 %v12170_v42 }
0x2354   :  { %8857 = vmatprep.subr.bf16.mxu0 %v12174_v7 }
0x2357   :  { %8859 = vmatpush1.bf16.msra.mxu0 %v12178_v46 }
0x2358   :  { %8861 = vmatprep.subr.bf16.mxu0 %v12182_v50 }
0x235b   :  { %8863 = vmatpush1.bf16.msra.mxu0 %v12186_v51 }
0x235c   :  { %8865 = vmatprep.subr.bf16.mxu0 %v12190_v15 }
0x235f   :  { %8867 = vmatpush1.bf16.msra.mxu0 %v12194_v14 }
0x2360   :  { %8869 = vmatprep.subr.bf16.mxu0 %v12220_v5 }
0x2363   :  { %8871 = vmatpush1.bf16.msra.mxu0 %v12222_v43 }
0x2364   :  { %8873 = vmatprep.subr.bf16.mxu0 %v12228_v41 }
0x2367   :  { %8875 = vmatpush1.bf16.msra.mxu0 %v12230_v0 }
0x2368   :  { %8877 = vmatprep.subr.bf16.mxu0 %v12236_v16 }
0x236b   :  { %8879 = vmatpush1.bf16.msra.mxu0 %v12238_v28 }
0x236c   :  { %8881 = vmatprep.subr.bf16.mxu0 %v12244_v11 }
0x236f   :  { %8883 = vmatpush1.bf16.msra.mxu0 %v12246_v8 }
0x2370   :  { %8885 = vmatprep.subr.bf16.mxu0 %v12252_v37 }
0x2373   :  { %8887 = vmatpush1.bf16.msra.mxu0 %v12254_v52 }
0x2374   :  { %8889 = vmatprep.subr.bf16.mxu0 %v12260_v53 }
0x2377   :  { %8891 = vmatpush1.bf16.msra.mxu0 %v12262_v20 }
0x2378   :  { %8957 = vmatprep.subr.bf16.mxu0 %v12121_v35 }
0x23cb   :  { %v12333_v30 = vpop.xlane.xlu1 %6485 }
0x23cc   :  { %vm6487_vm1 = vcmp.ge.f32.partialorder %v12333_v30, 1e-05 }
0x240d   :  { %v6629_v49 = vpop.f32.mrb[26].mxu0 }
0x240e   :  { %v6631_v40 = vpop.f32.mrb[27].mxu0 }
0x240f   :  { %v6636_v32 = vcombine.low %v6629_v49, %v6631_v40 }
0x2411   :  { %v6643_v24 = vrot.slane %v6636_v32, %v13110_v13 }
0x2413   :  { %v6645_v29 = vmul.f32 %v6643_v24, %v12274_v60 }
0x2415   :  { %v6653_v36 = vrot.slane %v6645_v29, %v13110_v13 }
0x2417   :  { %v6654_v27 = vcombine.high %v6653_v36, %v6653_v36  ;;  %v6657_v63 = vsel %vm2603_vm15, %v6653_v36, 0.0 }
0x2419   :  { %v6658_v57 = vsel %vm2603_vm15, %v6654_v27, 0.0 }
0x241a   :  { %v6659_v58 = vadd.f32 %v6658_v57, %v6657_v63 }
0x241c   :  { %6660 = vadd.xlane.f32.xlu0 %v6659_v58 }
0x24a9   :  { %v6661_v61 = vpop.xlane.xlu0 %6660 }
0x24aa   :  { %9409 = vrcp.f32 %v6661_v61 }
0x24ab   :  { %9411 = vrcp.f32 %v12333_v30 }
0x24b4   :  { %v9410_v3 = vpop.eup %9409 }
0x24b5   :  { %v12336_v18 = vmul.f32 %v9410_v3, %v12333_v30  ;;  %v9412_v59 = vpop.eup %9411 }
0x24b7   :  { %v6668_v21 = vmul.f32 %v12336_v18, %v6629_v49  ;;  %v6669_v34 = vmul.f32 %v12336_v18, %v6631_v40 }
0x24b9   :  { %v6672_v39 = vcombine.low %v6668_v21, %v6669_v34 }
0x24bb   :  { %v6679_v45 = vrot.slane %v6672_v39, %v13110_v13 }
0x24bd   :  { %v12342_v22 = vsub.f32 %v12274_v60, %v6679_v45 }
0x24bf   :  { %v6682_v19 = vmul.f32 %v12342_v22, %v12342_v22 }
0x24c1   :  { %v6690_v4 = vrot.slane %v6682_v19, %v13110_v13 }
0x24c3   :  { %v6691_v17 = vcombine.high %v6690_v4, %v6690_v4  ;;  %v6694_v38 = vsel %vm2603_vm15, %v6690_v4, 0.0 }
0x24c5   :  { %v6695_v31 = vsel %vm2603_vm15, %v6691_v17, 0.0  ;;  %v6726_v17 = vrot.slane %v12342_v22, %v13110_v13 }
0x24c6   :  { %v6696_v44 = vadd.f32 %v6695_v31, %v6694_v38  ;;  %v6664_v31 = vmul.f32 %v12336_v18, %v12279_v23 }
0x24c8   :  { %6697 = vadd.xlane.f32.xlu0 %v6696_v44  ;;  %v6665_v44 = vmul.f32 %v12336_v18, %v12289_v12 }
0x24ca   :  { %v6718_v18 = vsel %vm6487_vm1, %v6665_v44, 0.0 }
0x2555   :  { %v6698_v49 = vpop.xlane.xlu0 %6697 }
0x2556   :  { %v6700_v40 = vmul.f32 %v9412_v59, %v6698_v49  ;;  %v12413_v59 = vsel %vm6487_vm1, %v6698_v49, %v12333_v30  ;;  %v12425_v49 = vsel %vm6487_vm1, %v6726_v17, %v12279_v23 }
0x2557   :  { %vm6746_vm2 = vcmp.ge.f32.partialorder %v12413_v59, 1e-05 }
0x2558   :  { %v6701_v60 = vmul.f32 %v6700_v40, %v12279_v23  ;;  %v6702_v32 = vmul.f32 %v6700_v40, %v12289_v12  ;;  %v6727_v40 = vcombine.high %v6726_v17, %v6726_v17 }
0x255a   :  { %v6705_v24 = vcombine.low %v6701_v60, %v6702_v32 }
0x255c   :  { %v6712_v29 = vrot.slane %v6705_v24, %v13110_v13 }
0x255e   :  { %v6714_v36 = vadd.f32 %v6712_v29, %v12342_v22  ;;  %v6717_v29 = vsel %vm6487_vm1, %v6664_v31, 0.0 }
0x2560   :  { %v6739_v27 = vrot.slane %v6714_v36, %v13110_v13  ;;  %v12430_v36 = vsel %vm6487_vm1, %v6727_v40, %v12289_v12 }
0x2562   :  { %v6740_v63 = vcombine.high %v6739_v27, %v6739_v27  ;;  %v12365_v58 = vsel %vm6487_vm1, %v6739_v27, %v12279_v23 }
0x2564   :  { %v12359_v57 = vsel %vm6487_vm1, %v6740_v63, %v12289_v12 }
0x2565   :  { %6811 = vmatprep.mubr.f32.mxu1 %v12359_v57 }
0x2566   :  { %6812 = vmatmul.mubr.f32.vlgmr.msra.gmra.mrb[26].mxu1 %v12365_v58 }
0x2567   :  { %8895 = vmatpush1.bf16.msra.mxu1 %v12123_v55 }
0x2568   :  { %8897 = vmatprep.subr.bf16.mxu1 %v12125_v54 }
0x256b   :  { %8899 = vmatpush1.bf16.msra.mxu1 %v12130_v25 }
0x256c   :  { %8901 = vmatprep.subr.bf16.mxu1 %v12134_v10 }
0x256f   :  { %8903 = vmatpush1.bf16.msra.mxu1 %v12138_v1 }
0x2570   :  { %8905 = vmatprep.subr.bf16.mxu1 %v12142_v48 }
0x2573   :  { %8907 = vmatpush1.bf16.msra.mxu1 %v12146_v6 }
0x2574   :  { %8909 = vmatprep.subr.bf16.mxu1 %v12150_v33 }
0x2577   :  { %8911 = vmatpush1.bf16.msra.mxu1 %v12154_v62 }
0x2578   :  { %8913 = vmatprep.subr.bf16.mxu1 %v12158_v26 }
0x257b   :  { %8915 = vmatpush1.bf16.msra.mxu1 %v12162_v56 }
0x257c   :  { %8917 = vmatprep.subr.bf16.mxu1 %v12166_v47 }
0x257f   :  { %8919 = vmatpush1.bf16.msra.mxu1 %v12170_v42 }
0x2580   :  { %8921 = vmatprep.subr.bf16.mxu1 %v12174_v7 }
0x2583   :  { %8923 = vmatpush1.bf16.msra.mxu1 %v12178_v46 }
0x2584   :  { %8925 = vmatprep.subr.bf16.mxu1 %v12182_v50 }
0x2587   :  { %8927 = vmatpush1.bf16.msra.mxu1 %v12186_v51 }
0x2588   :  { %8929 = vmatprep.subr.bf16.mxu1 %v12190_v15 }
0x258b   :  { %8931 = vmatpush1.bf16.msra.mxu1 %v12194_v14 }
0x258c   :  { %8933 = vmatprep.subr.bf16.mxu1 %v12220_v5 }
0x258f   :  { %8935 = vmatpush1.bf16.msra.mxu1 %v12222_v43 }
0x2590   :  { %8937 = vmatprep.subr.bf16.mxu1 %v12228_v41 }
0x2593   :  { %8939 = vmatpush1.bf16.msra.mxu1 %v12230_v0 }
0x2594   :  { %8941 = vmatprep.subr.bf16.mxu1 %v12236_v16 }
0x2597   :  { %8943 = vmatpush1.bf16.msra.mxu1 %v12238_v28 }
0x2598   :  { %8945 = vmatprep.subr.bf16.mxu1 %v12244_v11 }
0x259b   :  { %8947 = vmatpush1.bf16.msra.mxu1 %v12246_v8 }
0x259c   :  { %8949 = vmatprep.subr.bf16.mxu1 %v12252_v37 }
0x259f   :  { %8951 = vmatpush1.bf16.msra.mxu1 %v12254_v52 }
0x25a0   :  { %8953 = vmatprep.subr.bf16.mxu1 %v12260_v53 }
0x25a3   :  { %8955 = vmatpush1.bf16.msra.mxu1 %v12262_v20 }
0x25a4   :  { %9021 = vmatprep.subr.bf16.mxu1 %v12121_v35 }
0x2639   :  { %v6813_v61 = vpop.f32.mrb[26].mxu1 }
0x263a   :  { %v6818_v3 = vmul.f32 %v6813_v61, %v12365_v58  ;;  %v6815_v21 = vpop.f32.mrb[27].mxu1 }
0x263b   :  { %v6819_v34 = vmul.f32 %v6815_v21, %v12359_v57 }
0x263c   :  { %v6820_v39 = vsel %vm2603_vm15, %v6818_v3, 0.0 }
0x263d   :  { %v6821_v45 = vsel %vm2603_vm15, %v6819_v34, 0.0 }
0x263e   :  { %v6822_v19 = vadd.f32 %v6821_v45, %v6820_v39 }
0x2640   :  { %6823 = vadd.xlane.f32.xlu1 %v6822_v19 }
0x26cd   :  { %v6824_v4 = vpop.xlane.xlu1 %6823 }
0x26ce   :  { %9413 = vrcp.f32 %v6824_v4 }
0x26cf   :  { %9415 = vrcp.f32 %v12413_v59 }
0x26d8   :  { %v9414_v38 = vpop.eup %9413 }
0x26d9   :  { %v6826_v60 = vmul.f32 %v9414_v38, %v12413_v59  ;;  %v9416_v19 = vpop.eup %9415 }
0x26db   :  { %v6827_v32 = vmul.f32 %v6826_v60, %v12365_v58  ;;  %v6828_v24 = vmul.f32 %v6826_v60, %v12359_v57  ;;  %v6831_v13 = vmul.f32 %v6826_v60, %v6813_v61  ;;  %v6832_v22 = vmul.f32 %v6826_v60, %v6815_v21 }
0x26dd   :  { %v6829_v27 = vadd.f32 %v6827_v32, %v6717_v29  ;;  %v6830_v63 = vadd.f32 %v6828_v24, %v6718_v18  ;;  %v12433_v61 = vsub.f32 %v12425_v49, %v6831_v13  ;;  %v12436_v3 = vsub.f32 %v12430_v36, %v6832_v22 }
0x26df   :  { %v6835_v21 = vmul.f32 %v12433_v61, %v12433_v61  ;;  %v6836_v23 = vmul.f32 %v12436_v3, %v12436_v3  ;;  %v12445_v12 = vsel %vm6746_vm2, %v6829_v27, %v6717_v29  ;;  %v12449_v30 = vsel %vm6746_vm2, %v6830_v63, %v6718_v18 }
0x26e1   :  { %v6837_v34 = vsel %vm2603_vm15, %v6835_v21, 0.0  ;;  %v6838_v39 = vsel %vm2603_vm15, %v6836_v23, 0.0 }
0x26e2   :  { %v6839_v45 = vadd.f32 %v6838_v39, %v6837_v34 }
0x26e4   :  { %6840 = vadd.xlane.f32.xlu0 %v6839_v45 }
0x2771   :  { %v6841_v4 = vpop.xlane.xlu0 %6840 }
0x2772   :  { %v6843_v17 = vmul.f32 %v9416_v19, %v6841_v4  ;;  %v12509_v21 = vsel %vm6746_vm2, %v6841_v4, %v12413_v59  ;;  %v12524_v4 = vsel %vm6746_vm2, %v12436_v3, %v12430_v36 }
0x2773   :  { %vm6857_vm3 = vcmp.ge.f32.partialorder %v12509_v21, 1e-05 }
0x2774   :  { %v6844_v38 = vmul.f32 %v6843_v17, %v12365_v58  ;;  %v6845_v31 = vmul.f32 %v6843_v17, %v12359_v57  ;;  %v12518_v17 = vsel %vm6746_vm2, %v12433_v61, %v12425_v49 }
0x2776   :  { %v6846_v44 = vadd.f32 %v6844_v38, %v12433_v61  ;;  %v6847_v40 = vadd.f32 %v6845_v31, %v12436_v3 }
0x2778   :  { %v12461_v60 = vsel %vm6746_vm2, %v6847_v40, %v12359_v57  ;;  %v12466_v32 = vsel %vm6746_vm2, %v6846_v44, %v12365_v58 }
0x2779   :  { %6922 = vmatprep.mubr.f32.mxu0 %v12461_v60 }
0x277a   :  { %6923 = vmatmul.mubr.f32.vlgmr.msra.gmra.mrb[28].mxu0 %v12466_v32 }
0x277b   :  { %8959 = vmatpush1.bf16.msra.mxu0 %v12123_v55 }
0x277c   :  { %8961 = vmatprep.subr.bf16.mxu0 %v12125_v54 }
0x277f   :  { %8963 = vmatpush1.bf16.msra.mxu0 %v12130_v25 }
0x2780   :  { %8965 = vmatprep.subr.bf16.mxu0 %v12134_v10 }
0x2783   :  { %8967 = vmatpush1.bf16.msra.mxu0 %v12138_v1 }
0x2784   :  { %8969 = vmatprep.subr.bf16.mxu0 %v12142_v48 }
0x2787   :  { %8971 = vmatpush1.bf16.msra.mxu0 %v12146_v6 }
0x2788   :  { %8973 = vmatprep.subr.bf16.mxu0 %v12150_v33 }
0x278b   :  { %8975 = vmatpush1.bf16.msra.mxu0 %v12154_v62 }
0x278c   :  { %8977 = vmatprep.subr.bf16.mxu0 %v12158_v26 }
0x278f   :  { %8979 = vmatpush1.bf16.msra.mxu0 %v12162_v56 }
0x2790   :  { %8981 = vmatprep.subr.bf16.mxu0 %v12166_v47 }
0x2793   :  { %8983 = vmatpush1.bf16.msra.mxu0 %v12170_v42 }
0x2794   :  { %8985 = vmatprep.subr.bf16.mxu0 %v12174_v7 }
0x2797   :  { %8987 = vmatpush1.bf16.msra.mxu0 %v12178_v46 }
0x2798   :  { %8989 = vmatprep.subr.bf16.mxu0 %v12182_v50 }
0x279b   :  { %8991 = vmatpush1.bf16.msra.mxu0 %v12186_v51 }
0x279c   :  { %8993 = vmatprep.subr.bf16.mxu0 %v12190_v15 }
0x279f   :  { %8995 = vmatpush1.bf16.msra.mxu0 %v12194_v14 }
0x27a0   :  { %8997 = vmatprep.subr.bf16.mxu0 %v12220_v5 }
0x27a3   :  { %8999 = vmatpush1.bf16.msra.mxu0 %v12222_v43 }
0x27a4   :  { %9001 = vmatprep.subr.bf16.mxu0 %v12228_v41 }
0x27a7   :  { %9003 = vmatpush1.bf16.msra.mxu0 %v12230_v0 }
0x27a8   :  { %9005 = vmatprep.subr.bf16.mxu0 %v12236_v16 }
0x27ab   :  { %9007 = vmatpush1.bf16.msra.mxu0 %v12238_v28 }
0x27ac   :  { %9009 = vmatprep.subr.bf16.mxu0 %v12244_v11 }
0x27af   :  { %9011 = vmatpush1.bf16.msra.mxu0 %v12246_v8 }
0x27b0   :  { %9013 = vmatprep.subr.bf16.mxu0 %v12252_v37 }
0x27b3   :  { %9015 = vmatpush1.bf16.msra.mxu0 %v12254_v52 }
0x27b4   :  { %9017 = vmatprep.subr.bf16.mxu0 %v12260_v53 }
0x27b7   :  { %9019 = vmatpush1.bf16.msra.mxu0 %v12262_v20 }
0x27b8   :  { %9085 = vmatprep.subr.bf16.mxu0 %v12121_v35 }
0x284d   :  { %v6924_v57 = vpop.f32.mrb[28].mxu0 }
0x284e   :  { %v6929_v58 = vmul.f32 %v6924_v57, %v12466_v32  ;;  %v6926_v24 = vpop.f32.mrb[29].mxu0 }
0x284f   :  { %v6930_v13 = vmul.f32 %v6926_v24, %v12461_v60 }
0x2850   :  { %v6931_v22 = vsel %vm2603_vm15, %v6929_v58, 0.0 }
0x2851   :  { %v6932_v29 = vsel %vm2603_vm15, %v6930_v13, 0.0 }
0x2852   :  { %v6933_v18 = vadd.f32 %v6932_v29, %v6931_v22 }
0x2854   :  { %6934 = vadd.xlane.f32.xlu1 %v6933_v18 }
0x28e1   :  { %v6935_v27 = vpop.xlane.xlu1 %6934 }
0x28e2   :  { %9417 = vrcp.f32 %v6935_v27 }
0x28e3   :  { %9419 = vrcp.f32 %v12509_v21 }
0x28ec   :  { %v9418_v63 = vpop.eup %9417 }
0x28ed   :  { %v6937_v23 = vmul.f32 %v9418_v63, %v12509_v21 }
0x28ef   :  { %v6938_v34 = vmul.f32 %v6937_v23, %v12466_v32  ;;  %v6939_v39 = vmul.f32 %v6937_v23, %v12461_v60  ;;  %v6942_v45 = vmul.f32 %v6937_v23, %v6924_v57  ;;  %v6943_v19 = vmul.f32 %v6937_v23, %v6926_v24  ;;  %v9420_v24 = vpop.eup %9419 }
0x28f1   :  { %v6940_v38 = vadd.f32 %v6938_v34, %v12445_v12  ;;  %v6941_v31 = vadd.f32 %v6939_v39, %v12449_v30  ;;  %v12529_v44 = vsub.f32 %v12518_v17, %v6942_v45  ;;  %v12532_v40 = vsub.f32 %v12524_v4, %v6943_v19 }
0x28f3   :  { %v6946_v49 = vmul.f32 %v12529_v44, %v12529_v44  ;;  %v6947_v59 = vmul.f32 %v12532_v40, %v12532_v40  ;;  %v12542_v36 = vsel %vm6857_vm3, %v6940_v38, %v12445_v12  ;;  %v12547_v61 = vsel %vm6857_vm3, %v6941_v31, %v12449_v30 }
0x28f5   :  { %v6948_v3 = vsel %vm2603_vm15, %v6946_v49, 0.0  ;;  %v6949_v57 = vsel %vm2603_vm15, %v6947_v59, 0.0 }
0x28f6   :  { %v6950_v58 = vadd.f32 %v6949_v57, %v6948_v3 }
0x28f8   :  { %6951 = vadd.xlane.f32.xlu0 %v6950_v58 }
0x2985   :  { %v6952_v13 = vpop.xlane.xlu0 %6951 }
0x2986   :  { %v6954_v22 = vmul.f32 %v9420_v24, %v6952_v13  ;;  %v12607_v49 = vsel %vm6857_vm3, %v6952_v13, %v12509_v21  ;;  %v12622_v13 = vsel %vm6857_vm3, %v12532_v40, %v12524_v4 }
0x2987   :  { %vm6968_vm4 = vcmp.ge.f32.partialorder %v12607_v49, 1e-05 }
0x2988   :  { %v6955_v29 = vmul.f32 %v6954_v22, %v12466_v32  ;;  %v6956_v12 = vmul.f32 %v6954_v22, %v12461_v60  ;;  %v12616_v22 = vsel %vm6857_vm3, %v12529_v44, %v12518_v17 }
0x298a   :  { %v6957_v18 = vadd.f32 %v6955_v29, %v12529_v44  ;;  %v6958_v30 = vadd.f32 %v6956_v12, %v12532_v40 }
0x298c   :  { %v12559_v27 = vsel %vm6857_vm3, %v6958_v30, %v12461_v60  ;;  %v12564_v63 = vsel %vm6857_vm3, %v6957_v18, %v12466_v32 }
0x298d   :  { %7033 = vmatprep.mubr.f32.mxu1 %v12559_v27 }
0x298e   :  { %7034 = vmatmul.mubr.f32.vlgmr.msra.gmra.mrb[28].mxu1 %v12564_v63 }
0x298f   :  { %9023 = vmatpush1.bf16.msra.mxu1 %v12123_v55 }
0x2990   :  { %9025 = vmatprep.subr.bf16.mxu1 %v12125_v54 }
0x2993   :  { %9027 = vmatpush1.bf16.msra.mxu1 %v12130_v25 }
0x2994   :  { %9029 = vmatprep.subr.bf16.mxu1 %v12134_v10 }
0x2997   :  { %9031 = vmatpush1.bf16.msra.mxu1 %v12138_v1 }
0x2998   :  { %9033 = vmatprep.subr.bf16.mxu1 %v12142_v48 }
0x299b   :  { %9035 = vmatpush1.bf16.msra.mxu1 %v12146_v6 }
0x299c   :  { %9037 = vmatprep.subr.bf16.mxu1 %v12150_v33 }
0x299f   :  { %9039 = vmatpush1.bf16.msra.mxu1 %v12154_v62 }
0x29a0   :  { %9041 = vmatprep.subr.bf16.mxu1 %v12158_v26 }
0x29a3   :  { %9043 = vmatpush1.bf16.msra.mxu1 %v12162_v56 }
0x29a4   :  { %9045 = vmatprep.subr.bf16.mxu1 %v12166_v47 }
0x29a7   :  { %9047 = vmatpush1.bf16.msra.mxu1 %v12170_v42 }
0x29a8   :  { %9049 = vmatprep.subr.bf16.mxu1 %v12174_v7 }
0x29ab   :  { %9051 = vmatpush1.bf16.msra.mxu1 %v12178_v46 }
0x29ac   :  { %9053 = vmatprep.subr.bf16.mxu1 %v12182_v50 }
0x29af   :  { %9055 = vmatpush1.bf16.msra.mxu1 %v12186_v51 }
0x29b0   :  { %9057 = vmatprep.subr.bf16.mxu1 %v12190_v15 }
0x29b3   :  { %9059 = vmatpush1.bf16.msra.mxu1 %v12194_v14 }
0x29b4   :  { %9061 = vmatprep.subr.bf16.mxu1 %v12220_v5 }
0x29b7   :  { %9063 = vmatpush1.bf16.msra.mxu1 %v12222_v43 }
0x29b8   :  { %9065 = vmatprep.subr.bf16.mxu1 %v12228_v41 }
0x29bb   :  { %9067 = vmatpush1.bf16.msra.mxu1 %v12230_v0 }
0x29bc   :  { %9069 = vmatprep.subr.bf16.mxu1 %v12236_v16 }
0x29bf   :  { %9071 = vmatpush1.bf16.msra.mxu1 %v12238_v28 }
0x29c0   :  { %9073 = vmatprep.subr.bf16.mxu1 %v12244_v11 }
0x29c3   :  { %9075 = vmatpush1.bf16.msra.mxu1 %v12246_v8 }
0x29c4   :  { %9077 = vmatprep.subr.bf16.mxu1 %v12252_v37 }
0x29c7   :  { %9079 = vmatpush1.bf16.msra.mxu1 %v12254_v52 }
0x29c8   :  { %9081 = vmatprep.subr.bf16.mxu1 %v12260_v53 }
0x29cb   :  { %9083 = vmatpush1.bf16.msra.mxu1 %v12262_v20 }
0x29cc   :  { %9149 = vmatprep.subr.bf16.mxu1 %v12121_v35 }
0x2a61   :  { %v7035_v60 = vpop.f32.mrb[28].mxu1 }
0x2a62   :  { %v7040_v32 = vmul.f32 %v7035_v60, %v12564_v63  ;;  %v7037_v23 = vpop.f32.mrb[29].mxu1 }
0x2a63   :  { %v7041_v34 = vmul.f32 %v7037_v23, %v12559_v27 }
0x2a64   :  { %v7042_v39 = vsel %vm2603_vm15, %v7040_v32, 0.0 }
0x2a65   :  { %v7043_v45 = vsel %vm2603_vm15, %v7041_v34, 0.0 }
0x2a66   :  { %v7044_v19 = vadd.f32 %v7043_v45, %v7042_v39 }
0x2a68   :  { %7045 = vadd.xlane.f32.xlu1 %v7044_v19 }
0x2af5   :  { %v7046_v38 = vpop.xlane.xlu1 %7045 }
0x2af6   :  { %9421 = vrcp.f32 %v7046_v38 }
0x2af7   :  { %9423 = vrcp.f32 %v12607_v49 }
0x2b00   :  { %v9422_v31 = vpop.eup %9421 }
0x2b01   :  { %v7048_v59 = vmul.f32 %v9422_v31, %v12607_v49 }
0x2b03   :  { %v7049_v3 = vmul.f32 %v7048_v59, %v12564_v63  ;;  %v7050_v57 = vmul.f32 %v7048_v59, %v12559_v27  ;;  %v7053_v58 = vmul.f32 %v7048_v59, %v7035_v60  ;;  %v7054_v24 = vmul.f32 %v7048_v59, %v7037_v23  ;;  %v9424_v23 = vpop.eup %9423 }
0x2b05   :  { %v7051_v29 = vadd.f32 %v7049_v3, %v12542_v36  ;;  %v7052_v12 = vadd.f32 %v7050_v57, %v12547_v61  ;;  %v12627_v18 = vsub.f32 %v12616_v22, %v7053_v58  ;;  %v12630_v30 = vsub.f32 %v12622_v13, %v7054_v24 }
0x2b07   :  { %v7057_v17 = vmul.f32 %v12627_v18, %v12627_v18  ;;  %v7058_v21 = vmul.f32 %v12630_v30, %v12630_v30  ;;  %v12640_v4 = vsel %vm6968_vm4, %v7051_v29, %v12542_v36  ;;  %v12645_v44 = vsel %vm6968_vm4, %v7052_v12, %v12547_v61 }
0x2b09   :  { %v7059_v40 = vsel %vm2603_vm15, %v7057_v17, 0.0  ;;  %v7060_v60 = vsel %vm2603_vm15, %v7058_v21, 0.0 }
0x2b0a   :  { %v7061_v32 = vadd.f32 %v7060_v60, %v7059_v40 }
0x2b0c   :  { %7062 = vadd.xlane.f32.xlu0 %v7061_v32 }
0x2b99   :  { %v7063_v34 = vpop.xlane.xlu0 %7062 }
0x2b9a   :  { %v7065_v39 = vmul.f32 %v9424_v23, %v7063_v34  ;;  %v12705_v17 = vsel %vm6968_vm4, %v7063_v34, %v12607_v49  ;;  %v12720_v34 = vsel %vm6968_vm4, %v12630_v30, %v12622_v13 }
0x2b9b   :  { %vm7079_vm5 = vcmp.ge.f32.partialorder %v12705_v17, 1e-05 }
0x2b9c   :  { %v7066_v45 = vmul.f32 %v7065_v39, %v12564_v63  ;;  %v7067_v36 = vmul.f32 %v7065_v39, %v12559_v27  ;;  %v12714_v39 = vsel %vm6968_vm4, %v12627_v18, %v12616_v22 }
0x2b9e   :  { %v7068_v19 = vadd.f32 %v7066_v45, %v12627_v18  ;;  %v7069_v61 = vadd.f32 %v7067_v36, %v12630_v30 }
0x2ba0   :  { %v12657_v38 = vsel %vm6968_vm4, %v7069_v61, %v12559_v27  ;;  %v12662_v31 = vsel %vm6968_vm4, %v7068_v19, %v12564_v63 }
0x2ba1   :  { %7144 = vmatprep.mubr.f32.mxu0 %v12657_v38 }
0x2ba2   :  { %7145 = vmatmul.mubr.f32.vlgmr.msra.gmra.mrb[30].mxu0 %v12662_v31 }
0x2ba3   :  { %9087 = vmatpush1.bf16.msra.mxu0 %v12123_v55 }
0x2ba4   :  { %9089 = vmatprep.subr.bf16.mxu0 %v12125_v54 }
0x2ba7   :  { %9091 = vmatpush1.bf16.msra.mxu0 %v12130_v25 }
0x2ba8   :  { %9093 = vmatprep.subr.bf16.mxu0 %v12134_v10 }
0x2bab   :  { %9095 = vmatpush1.bf16.msra.mxu0 %v12138_v1 }
0x2bac   :  { %9097 = vmatprep.subr.bf16.mxu0 %v12142_v48 }
0x2baf   :  { %9099 = vmatpush1.bf16.msra.mxu0 %v12146_v6 }
0x2bb0   :  { %9101 = vmatprep.subr.bf16.mxu0 %v12150_v33 }
0x2bb3   :  { %9103 = vmatpush1.bf16.msra.mxu0 %v12154_v62 }
0x2bb4   :  { %9105 = vmatprep.subr.bf16.mxu0 %v12158_v26 }
0x2bb7   :  { %9107 = vmatpush1.bf16.msra.mxu0 %v12162_v56 }
0x2bb8   :  { %9109 = vmatprep.subr.bf16.mxu0 %v12166_v47 }
0x2bbb   :  { %9111 = vmatpush1.bf16.msra.mxu0 %v12170_v42 }
0x2bbc   :  { %9113 = vmatprep.subr.bf16.mxu0 %v12174_v7 }
0x2bbf   :  { %9115 = vmatpush1.bf16.msra.mxu0 %v12178_v46 }
0x2bc0   :  { %9117 = vmatprep.subr.bf16.mxu0 %v12182_v50 }
0x2bc3   :  { %9119 = vmatpush1.bf16.msra.mxu0 %v12186_v51 }
0x2bc4   :  { %9121 = vmatprep.subr.bf16.mxu0 %v12190_v15 }
0x2bc7   :  { %9123 = vmatpush1.bf16.msra.mxu0 %v12194_v14 }
0x2bc8   :  { %9125 = vmatprep.subr.bf16.mxu0 %v12220_v5 }
0x2bcb   :  { %9127 = vmatpush1.bf16.msra.mxu0 %v12222_v43 }
0x2bcc   :  { %9129 = vmatprep.subr.bf16.mxu0 %v12228_v41 }
0x2bcf   :  { %9131 = vmatpush1.bf16.msra.mxu0 %v12230_v0 }
0x2bd0   :  { %9133 = vmatprep.subr.bf16.mxu0 %v12236_v16 }
0x2bd3   :  { %9135 = vmatpush1.bf16.msra.mxu0 %v12238_v28 }
0x2bd4   :  { %9137 = vmatprep.subr.bf16.mxu0 %v12244_v11 }
0x2bd7   :  { %9139 = vmatpush1.bf16.msra.mxu0 %v12246_v8 }
0x2bd8   :  { %9141 = vmatprep.subr.bf16.mxu0 %v12252_v37 }
0x2bdb   :  { %9143 = vmatpush1.bf16.msra.mxu0 %v12254_v52 }
0x2bdc   :  { %9145 = vmatprep.subr.bf16.mxu0 %v12260_v53 }
0x2bdf   :  { %9147 = vmatpush1.bf16.msra.mxu0 %v12262_v20 }
0x2be0   :  { %9213 = vmatprep.subr.bf16.mxu0 %v12121_v35 }
0x2c75   :  { %v7146_v27 = vpop.f32.mrb[30].mxu0 }
0x2c76   :  { %v7151_v63 = vmul.f32 %v7146_v27, %v12662_v31  ;;  %v7148_v59 = vpop.f32.mrb[31].mxu0 }
0x2c77   :  { %v7152_v3 = vmul.f32 %v7148_v59, %v12657_v38 }
0x2c78   :  { %v7153_v57 = vsel %vm2603_vm15, %v7151_v63, 0.0 }
0x2c79   :  { %v7154_v58 = vsel %vm2603_vm15, %v7152_v3, 0.0 }
0x2c7a   :  { %v7155_v24 = vadd.f32 %v7154_v58, %v7153_v57 }
0x2c7c   :  { %7156 = vadd.xlane.f32.xlu1 %v7155_v24 }
0x2d09   :  { %v7157_v29 = vpop.xlane.xlu1 %7156 }
0x2d0a   :  { %9425 = vrcp.f32 %v7157_v29 }
0x2d0b   :  { %9427 = vrcp.f32 %v12705_v17 }
0x2d14   :  { %v9426_v12 = vpop.eup %9425 }
0x2d15   :  { %v7159_v21 = vmul.f32 %v9426_v12, %v12705_v17 }
0x2d17   :  { %v7160_v40 = vmul.f32 %v7159_v21, %v12662_v31  ;;  %v7161_v60 = vmul.f32 %v7159_v21, %v12657_v38  ;;  %v7164_v32 = vmul.f32 %v7159_v21, %v7146_v27  ;;  %v7165_v23 = vmul.f32 %v7159_v21, %v7148_v59  ;;  %v9428_v59 = vpop.eup %9427 }
0x2d19   :  { %v12723_v45 = vsub.f32 %v12714_v39, %v7164_v32  ;;  %v12726_v36 = vsub.f32 %v12720_v34, %v7165_v23  ;;  %v7162_v19 = vadd.f32 %v7160_v40, %v12640_v4  ;;  %v7163_v61 = vadd.f32 %v7161_v60, %v12645_v44 }
0x2d1b   :  { %v7168_v22 = vmul.f32 %v12723_v45, %v12723_v45  ;;  %v7169_v49 = vmul.f32 %v12726_v36, %v12726_v36  ;;  %v12738_v13 = vsel %vm7079_vm5, %v7162_v19, %v12640_v4  ;;  %v12743_v18 = vsel %vm7079_vm5, %v7163_v61, %v12645_v44 }
0x2d1d   :  { %v7170_v30 = vsel %vm2603_vm15, %v7168_v22, 0.0  ;;  %v7171_v27 = vsel %vm2603_vm15, %v7169_v49, 0.0 }
0x2d1e   :  { %v7172_v63 = vadd.f32 %v7171_v27, %v7170_v30 }
0x2d20   :  { %7173 = vadd.xlane.f32.xlu0 %v7172_v63 }
0x2dad   :  { %v7174_v3 = vpop.xlane.xlu0 %7173 }
0x2dae   :  { %v7176_v57 = vmul.f32 %v9428_v59, %v7174_v3  ;;  %v12803_v22 = vsel %vm7079_vm5, %v7174_v3, %v12705_v17  ;;  %v12812_v59 = vsel %vm7079_vm5, %v12723_v45, %v12714_v39  ;;  %v12818_v3 = vsel %vm7079_vm5, %v12726_v36, %v12720_v34 }
0x2daf   :  { %vm7190_vm6 = vcmp.ge.f32.partialorder %v12803_v22, 1e-05 }
0x2db0   :  { %v7177_v58 = vmul.f32 %v7176_v57, %v12662_v31  ;;  %v7178_v4 = vmul.f32 %v7176_v57, %v12657_v38 }
0x2db2   :  { %v7179_v24 = vadd.f32 %v7177_v58, %v12723_v45  ;;  %v7180_v44 = vadd.f32 %v7178_v4, %v12726_v36 }
0x2db4   :  { %v12755_v29 = vsel %vm7079_vm5, %v7180_v44, %v12657_v38  ;;  %v12760_v12 = vsel %vm7079_vm5, %v7179_v24, %v12662_v31 }
0x2db5   :  { %7255 = vmatprep.mubr.f32.mxu1 %v12755_v29 }
0x2db6   :  { %7256 = vmatmul.mubr.f32.vlgmr.msra.gmra.mrb[30].mxu1 %v12760_v12 }
0x2db7   :  { %9151 = vmatpush1.bf16.msra.mxu1 %v12123_v55 }
0x2db8   :  { %9153 = vmatprep.subr.bf16.mxu1 %v12125_v54 }
0x2dbb   :  { %9155 = vmatpush1.bf16.msra.mxu1 %v12130_v25 }
0x2dbc   :  { %9157 = vmatprep.subr.bf16.mxu1 %v12134_v10 }
0x2dbf   :  { %9159 = vmatpush1.bf16.msra.mxu1 %v12138_v1 }
0x2dc0   :  { %9161 = vmatprep.subr.bf16.mxu1 %v12142_v48 }
0x2dc3   :  { %9163 = vmatpush1.bf16.msra.mxu1 %v12146_v6 }
0x2dc4   :  { %9165 = vmatprep.subr.bf16.mxu1 %v12150_v33 }
0x2dc7   :  { %9167 = vmatpush1.bf16.msra.mxu1 %v12154_v62 }
0x2dc8   :  { %9169 = vmatprep.subr.bf16.mxu1 %v12158_v26 }
0x2dcb   :  { %9171 = vmatpush1.bf16.msra.mxu1 %v12162_v56 }
0x2dcc   :  { %9173 = vmatprep.subr.bf16.mxu1 %v12166_v47 }
0x2dcf   :  { %9175 = vmatpush1.bf16.msra.mxu1 %v12170_v42 }
0x2dd0   :  { %9177 = vmatprep.subr.bf16.mxu1 %v12174_v7 }
0x2dd3   :  { %9179 = vmatpush1.bf16.msra.mxu1 %v12178_v46 }
0x2dd4   :  { %9181 = vmatprep.subr.bf16.mxu1 %v12182_v50 }
0x2dd7   :  { %9183 = vmatpush1.bf16.msra.mxu1 %v12186_v51 }
0x2dd8   :  { %9185 = vmatprep.subr.bf16.mxu1 %v12190_v15 }
0x2ddb   :  { %9187 = vmatpush1.bf16.msra.mxu1 %v12194_v14 }
0x2ddc   :  { %9189 = vmatprep.subr.bf16.mxu1 %v12220_v5 }
0x2ddf   :  { %9191 = vmatpush1.bf16.msra.mxu1 %v12222_v43 }
0x2de0   :  { %9193 = vmatprep.subr.bf16.mxu1 %v12228_v41 }
0x2de3   :  { %9195 = vmatpush1.bf16.msra.mxu1 %v12230_v0 }
0x2de4   :  { %9197 = vmatprep.subr.bf16.mxu1 %v12236_v16 }
0x2de7   :  { %9199 = vmatpush1.bf16.msra.mxu1 %v12238_v28 }
0x2de8   :  { %9201 = vmatprep.subr.bf16.mxu1 %v12244_v11 }
0x2deb   :  { %9203 = vmatpush1.bf16.msra.mxu1 %v12246_v8 }
0x2dec   :  { %9205 = vmatprep.subr.bf16.mxu1 %v12252_v37 }
0x2def   :  { %9207 = vmatpush1.bf16.msra.mxu1 %v12254_v52 }
0x2df0   :  { %9209 = vmatprep.subr.bf16.mxu1 %v12260_v53 }
0x2df3   :  { %9211 = vmatpush1.bf16.msra.mxu1 %v12262_v20 }
0x2df4   :  { %9277 = vmatprep.subr.bf16.mxu1 %v12121_v35 }
0x2e89   :  { %v7257_v38 = vpop.f32.mrb[30].mxu1 }
0x2e8a   :  { %v7262_v31 = vmul.f32 %v7257_v38, %v12760_v12  ;;  %v7259_v21 = vpop.f32.mrb[31].mxu1 }
0x2e8b   :  { %v7263_v40 = vmul.f32 %v7259_v21, %v12755_v29 }
0x2e8c   :  { %v7264_v60 = vsel %vm2603_vm15, %v7262_v31, 0.0 }
0x2e8d   :  { %v7265_v32 = vsel %vm2603_vm15, %v7263_v40, 0.0 }
0x2e8e   :  { %v7266_v23 = vadd.f32 %v7265_v32, %v7264_v60 }
0x2e90   :  { %7267 = vadd.xlane.f32.xlu1 %v7266_v23 }
0x2f1d   :  { %v7268_v19 = vpop.xlane.xlu1 %7267 }
0x2f1e   :  { %9429 = vrcp.f32 %v7268_v19 }
0x2f1f   :  { %9431 = vrcp.f32 %v12803_v22 }
0x2f28   :  { %v9430_v61 = vpop.eup %9429 }
0x2f29   :  { %v7270_v35 = vmul.f32 %v9430_v61, %v12803_v22  ;;  %v9432_v31 = vpop.eup %9431 }
0x2f2b   :  { %v7271_v49 = vmul.f32 %v7270_v35, %v12760_v12  ;;  %v7272_v30 = vmul.f32 %v7270_v35, %v12755_v29  ;;  %v7275_v27 = vmul.f32 %v7270_v35, %v7257_v38  ;;  %v7276_v63 = vmul.f32 %v7270_v35, %v7259_v21 }
0x2f2d   :  { %v12821_v57 = vsub.f32 %v12812_v59, %v7275_v27  ;;  %v12824_v58 = vsub.f32 %v12818_v3, %v7276_v63  ;;  %v7273_v4 = vadd.f32 %v7271_v49, %v12738_v13  ;;  %v7274_v24 = vadd.f32 %v7272_v30, %v12743_v18 }
0x2f2f   :  { %v7279_v39 = vmul.f32 %v12821_v57, %v12821_v57  ;;  %v7280_v17 = vmul.f32 %v12824_v58, %v12824_v58  ;;  %v12836_v34 = vsel %vm7190_vm6, %v7273_v4, %v12738_v13  ;;  %v12841_v45 = vsel %vm7190_vm6, %v7274_v24, %v12743_v18 }
0x2f31   :  { %v7281_v36 = vsel %vm2603_vm15, %v7279_v39, 0.0  ;;  %v7282_v44 = vsel %vm2603_vm15, %v7280_v17, 0.0 }
0x2f32   :  { %v7283_v38 = vadd.f32 %v7282_v44, %v7281_v36 }
0x2f34   :  { %7284 = vadd.xlane.f32.xlu0 %v7283_v38 }
0x2fc1   :  { %v7285_v21 = vpop.xlane.xlu0 %7284 }
0x2fc2   :  { %v7287_v40 = vmul.f32 %v9432_v31, %v7285_v21  ;;  %v12900_v24 = vsel %vm7190_vm6, %v7285_v21, %v12803_v22  ;;  %v12909_v31 = vsel %vm7190_vm6, %v12821_v57, %v12812_v59  ;;  %v12915_v21 = vsel %vm7190_vm6, %v12824_v58, %v12818_v3 }
0x2fc3   :  { %vm7301_vm7 = vcmp.ge.f32.partialorder %v12900_v24, 1e-05 }
0x2fc4   :  { %v7288_v60 = vmul.f32 %v7287_v40, %v12760_v12  ;;  %v7289_v13 = vmul.f32 %v7287_v40, %v12755_v29 }
0x2fc6   :  { %v7290_v32 = vadd.f32 %v7288_v60, %v12821_v57  ;;  %v7291_v18 = vadd.f32 %v7289_v13, %v12824_v58 }
0x2fc8   :  { %v12853_v23 = vsel %vm7190_vm6, %v7291_v18, %v12755_v29  ;;  %v12858_v19 = vsel %vm7190_vm6, %v7290_v32, %v12760_v12 }
0x2fc9   :  { %7366 = vmatprep.mubr.f32.mxu0 %v12853_v23 }
0x2fca   :  { %7367 = vmatmul.mubr.f32.vlgmr.msra.gmra.mrb[32].mxu0 %v12858_v19 }
0x2fcb   :  { %9215 = vmatpush1.bf16.msra.mxu0 %v12123_v55 }
0x2fcc   :  { %9217 = vmatprep.subr.bf16.mxu0 %v12125_v54 }
0x2fcf   :  { %9219 = vmatpush1.bf16.msra.mxu0 %v12130_v25 }
0x2fd0   :  { %9221 = vmatprep.subr.bf16.mxu0 %v12134_v10 }
0x2fd3   :  { %9223 = vmatpush1.bf16.msra.mxu0 %v12138_v1 }
0x2fd4   :  { %9225 = vmatprep.subr.bf16.mxu0 %v12142_v48 }
0x2fd7   :  { %9227 = vmatpush1.bf16.msra.mxu0 %v12146_v6 }
0x2fd8   :  { %9229 = vmatprep.subr.bf16.mxu0 %v12150_v33 }
0x2fdb   :  { %9231 = vmatpush1.bf16.msra.mxu0 %v12154_v62 }
0x2fdc   :  { %9233 = vmatprep.subr.bf16.mxu0 %v12158_v26 }
0x2fdf   :  { %9235 = vmatpush1.bf16.msra.mxu0 %v12162_v56 }
0x2fe0   :  { %9237 = vmatprep.subr.bf16.mxu0 %v12166_v47 }
0x2fe3   :  { %9239 = vmatpush1.bf16.msra.mxu0 %v12170_v42 }
0x2fe4   :  { %9241 = vmatprep.subr.bf16.mxu0 %v12174_v7 }
0x2fe7   :  { %9243 = vmatpush1.bf16.msra.mxu0 %v12178_v46 }
0x2fe8   :  { %9245 = vmatprep.subr.bf16.mxu0 %v12182_v50 }
0x2feb   :  { %9247 = vmatpush1.bf16.msra.mxu0 %v12186_v51 }
0x2fec   :  { %9249 = vmatprep.subr.bf16.mxu0 %v12190_v15 }
0x2fef   :  { %9251 = vmatpush1.bf16.msra.mxu0 %v12194_v14 }
0x2ff0   :  { %9253 = vmatprep.subr.bf16.mxu0 %v12220_v5 }
0x2ff3   :  { %9255 = vmatpush1.bf16.msra.mxu0 %v12222_v43 }
0x2ff4   :  { %9257 = vmatprep.subr.bf16.mxu0 %v12228_v41 }
0x2ff7   :  { %9259 = vmatpush1.bf16.msra.mxu0 %v12230_v0 }
0x2ff8   :  { %9261 = vmatprep.subr.bf16.mxu0 %v12236_v16 }
0x2ffb   :  { %9263 = vmatpush1.bf16.msra.mxu0 %v12238_v28 }
0x2ffc   :  { %9265 = vmatprep.subr.bf16.mxu0 %v12244_v11 }
0x2fff   :  { %9267 = vmatpush1.bf16.msra.mxu0 %v12246_v8 }
0x3000   :  { %9269 = vmatprep.subr.bf16.mxu0 %v12252_v37 }
0x3003   :  { %9271 = vmatpush1.bf16.msra.mxu0 %v12254_v52 }
0x3004   :  { %9273 = vmatprep.subr.bf16.mxu0 %v12260_v53 }
0x3007   :  { %9275 = vmatpush1.bf16.msra.mxu0 %v12262_v20 }
0x309d   :  { %v7368_v29 = vpop.f32.mrb[32].mxu0 }
0x309e   :  { %v7373_v12 = vmul.f32 %v7368_v29, %v12858_v19  ;;  %v7370_v61 = vpop.f32.mrb[33].mxu0 }
0x309f   :  { %v7374_v35 = vmul.f32 %v7370_v61, %v12853_v23 }
0x30a0   :  { %v7375_v49 = vsel %vm2603_vm15, %v7373_v12, 0.0 }
0x30a1   :  { %v7376_v30 = vsel %vm2603_vm15, %v7374_v35, 0.0 }
0x30a2   :  { %v7377_v27 = vadd.f32 %v7376_v30, %v7375_v49 }
0x30a4   :  { %7378 = vadd.xlane.f32.xlu1 %v7377_v27 }
0x3131   :  { %v7379_v63 = vpop.xlane.xlu1 %7378 }
0x3132   :  { %9433 = vrcp.f32 %v7379_v63 }
0x3133   :  { %9435 = vrcp.f32 %v12900_v24 }
0x313c   :  { %v9434_v4 = vpop.eup %9433 }
0x313d   :  { %v7381_v39 = vmul.f32 %v9434_v4, %v12900_v24  ;;  %v9436_v12 = vpop.eup %9435 }
0x313f   :  { %v7386_v17 = vmul.f32 %v7381_v39, %v7368_v29  ;;  %v7387_v36 = vmul.f32 %v7381_v39, %v7370_v61  ;;  %v7382_v44 = vmul.f32 %v7381_v39, %v12858_v19  ;;  %v7383_v38 = vmul.f32 %v7381_v39, %v12853_v23 }
0x3141   :  { %v12918_v40 = vsub.f32 %v12909_v31, %v7386_v17  ;;  %v12921_v60 = vsub.f32 %v12915_v21, %v7387_v36  ;;  %v7384_v13 = vadd.f32 %v7382_v44, %v12836_v34  ;;  %v7385_v32 = vadd.f32 %v7383_v38, %v12841_v45 }
0x3143   :  { %v7390_v59 = vmul.f32 %v12918_v40, %v12918_v40  ;;  %v7391_v22 = vmul.f32 %v12921_v60, %v12921_v60  ;;  %v12933_v3 = vsel %vm7301_vm7, %v7384_v13, %v12836_v34  ;;  %v12938_v57 = vsel %vm7301_vm7, %v7385_v32, %v12841_v45 }
0x3145   :  { %v7392_v58 = vsel %vm2603_vm15, %v7390_v59, 0.0  ;;  %v7393_v18 = vsel %vm2603_vm15, %v7391_v22, 0.0 }
0x3146   :  { %v7394_v29 = vadd.f32 %v7393_v18, %v7392_v58 }
0x3148   :  { %7395 = vadd.xlane.f32.xlu0 %v7394_v29 }
0x31d5   :  { %v7396_v61 = vpop.xlane.xlu0 %7395 }
0x31d6   :  { %v7398_v35 = vmul.f32 %v9436_v12, %v7396_v61 }
0x31d8   :  { %v7399_v49 = vmul.f32 %v7398_v35, %v12858_v19  ;;  %v7400_v34 = vmul.f32 %v7398_v35, %v12853_v23 }
0x31da   :  { %v7401_v30 = vadd.f32 %v7399_v49, %v12918_v40  ;;  %v7402_v45 = vadd.f32 %v7400_v34, %v12921_v60 }
0x31dc   :  { %v12950_v27 = vsel %vm7301_vm7, %v7402_v45, %v12853_v23  ;;  %v12955_v63 = vsel %vm7301_vm7, %v7401_v30, %v12858_v19 }
0x31dd   :  { %7477 = vmatprep.mubr.f32.mxu1 %v12950_v27 }
0x31de   :  { %7478 = vmatmul.mubr.f32.vlgmr.msra.gmra.mrb[32].mxu1 %v12955_v63 }
0x31df   :  { %9279 = vmatpush1.bf16.msra.mxu1 %v12123_v55 }
0x31e0   :  { %9281 = vmatprep.subr.bf16.mxu1 %v12125_v54 }
0x31e3   :  { %9283 = vmatpush1.bf16.msra.mxu1 %v12130_v25 }
0x31e4   :  { %9285 = vmatprep.subr.bf16.mxu1 %v12134_v10 }
0x31e7   :  { %9287 = vmatpush1.bf16.msra.mxu1 %v12138_v1 }
0x31e8   :  { %9289 = vmatprep.subr.bf16.mxu1 %v12142_v48 }
0x31eb   :  { %9291 = vmatpush1.bf16.msra.mxu1 %v12146_v6 }
0x31ec   :  { %9293 = vmatprep.subr.bf16.mxu1 %v12150_v33 }
0x31ef   :  { %9295 = vmatpush1.bf16.msra.mxu1 %v12154_v62 }
0x31f0   :  { %9297 = vmatprep.subr.bf16.mxu1 %v12158_v26  ;;  %v7411_v26 = vsel %vm7301_vm7, %v7396_v61, %v12900_v24 }
0x31f1   :  { %vm7412_vm8 = vcmp.ge.f32.partialorder %v7411_v26, 1e-05 }
0x31f3   :  { %9299 = vmatpush1.bf16.msra.mxu1 %v12162_v56 }
0x31f4   :  { %9301 = vmatprep.subr.bf16.mxu1 %v12166_v47 }
0x31f7   :  { %9303 = vmatpush1.bf16.msra.mxu1 %v12170_v42 }
0x31f8   :  { %9305 = vmatprep.subr.bf16.mxu1 %v12174_v7 }
0x31fb   :  { %9307 = vmatpush1.bf16.msra.mxu1 %v12178_v46 }
0x31fc   :  { %9309 = vmatprep.subr.bf16.mxu1 %v12182_v50  ;;  %v7407_v50 = vsel %vm7301_vm7, %v12918_v40, %v12909_v31 }
0x31ff   :  { %9311 = vmatpush1.bf16.msra.mxu1 %v12186_v51  ;;  %v7408_v51 = vsel %vm7301_vm7, %v12921_v60, %v12915_v21 }
0x3200   :  { %9313 = vmatprep.subr.bf16.mxu1 %v12190_v15 }
0x3203   :  { %9315 = vmatpush1.bf16.msra.mxu1 %v12194_v14 }
0x3204   :  { %9317 = vmatprep.subr.bf16.mxu1 %v12220_v5 }
0x3207   :  { %9319 = vmatpush1.bf16.msra.mxu1 %v12222_v43 }
0x3208   :  { %9321 = vmatprep.subr.bf16.mxu1 %v12228_v41 }
0x320b   :  { %9323 = vmatpush1.bf16.msra.mxu1 %v12230_v0 }
0x320c   :  { %9325 = vmatprep.subr.bf16.mxu1 %v12236_v16 }
0x320f   :  { %9327 = vmatpush1.bf16.msra.mxu1 %v12238_v28 }
0x3210   :  { %9329 = vmatprep.subr.bf16.mxu1 %v12244_v11 }
0x3213   :  { %9331 = vmatpush1.bf16.msra.mxu1 %v12246_v8 }
0x3214   :  { %9333 = vmatprep.subr.bf16.mxu1 %v12252_v37 }
0x3217   :  { %9335 = vmatpush1.bf16.msra.mxu1 %v12254_v52 }
0x3218   :  { %9337 = vmatprep.subr.bf16.mxu1 %v12260_v53 }
0x321b   :  { %9339 = vmatpush1.bf16.msra.mxu1 %v12262_v20 }
0x32b1   :  { %v7479_v55 = vpop.f32.mrb[32].mxu1 }
0x32b2   :  { %v7484_v54 = vmul.f32 %v7479_v55, %v12955_v63  ;;  %v7481_v25 = vpop.f32.mrb[33].mxu1 }
0x32b3   :  { %v7485_v10 = vmul.f32 %v7481_v25, %v12950_v27 }
0x32b4   :  { %v7486_v1 = vsel %vm2603_vm15, %v7484_v54, 0.0 }
0x32b5   :  { %v7487_v48 = vsel %vm2603_vm15, %v7485_v10, 0.0 }
0x32b6   :  { %v7488_v6 = vadd.f32 %v7487_v48, %v7486_v1 }
0x32b8   :  { %7489 = vadd.xlane.f32.xlu1 %v7488_v6 }
0x3345   :  { %v7490_v33 = vpop.xlane.xlu1 %7489 }
0x3346   :  { %9437 = vrcp.f32 %v7490_v33 }
0x3347   :  { %9439 = vrcp.f32 %v7411_v26 }
0x3350   :  { %v9438_v62 = vpop.eup %9437 }
0x3351   :  { %v7492_v56 = vmul.f32 %v9438_v62, %v7411_v26  ;;  %v9440_v52 = vpop.eup %9439 }
0x3353   :  { %v7497_v47 = vmul.f32 %v7492_v56, %v7479_v55  ;;  %v7498_v42 = vmul.f32 %v7492_v56, %v7481_v25  ;;  %v7493_v7 = vmul.f32 %v7492_v56, %v12955_v63  ;;  %v7494_v46 = vmul.f32 %v7492_v56, %v12950_v27 }
0x3355   :  { %v7499_v15 = vsub.f32 %v7407_v50, %v7497_v47  ;;  %v7500_v14 = vsub.f32 %v7408_v51, %v7498_v42  ;;  %v7495_v5 = vadd.f32 %v7493_v7, %v12933_v3  ;;  %v7496_v43 = vadd.f32 %v7494_v46, %v12938_v57 }
0x3357   :  { %v7501_v41 = vmul.f32 %v7499_v15, %v7499_v15  ;;  %v7502_v0 = vmul.f32 %v7500_v14, %v7500_v14  ;;  %v7516_v16 = vsel %vm7412_vm8, %v7495_v5, %v12933_v3  ;;  %v7517_v28 = vsel %vm7412_vm8, %v7496_v43, %v12938_v57 }
0x3358   :  { %v7518_v29 = vsel %vm7412_vm8, %v7499_v15, %v7407_v50  ;;  %v7519_v12 = vsel %vm7412_vm8, %v7500_v14, %v7408_v51 }
0x3359   :  { %v7503_v11 = vsel %vm2603_vm15, %v7501_v41, 0.0  ;;  %v7504_v8 = vsel %vm2603_vm15, %v7502_v0, 0.0 }
0x335a   :  { %v7505_v37 = vadd.f32 %v7504_v8, %v7503_v11 }
0x335c   :  { %7506 = vadd.xlane.f32.xlu0 %v7505_v37 }
0x33e9   :  { %v7507_v53 = vpop.xlane.xlu0 %7506 }
0x33ea   :  { %v7509_v20 = vmul.f32 %v9440_v52, %v7507_v53  ;;  %v7522_v59 = vsel %vm7412_vm8, %v7507_v53, %v7411_v26 }
0x33eb   :  { %vm7523_vm9 = vcmp.ge.f32.partialorder %v7522_v59, 1e-05 }
0x33ec   :  { %v7510_v23 = vmul.f32 %v7509_v20, %v12955_v63  ;;  %v7511_v19 = vmul.f32 %v7509_v20, %v12950_v27 }
0x33ee   :  { %v7512_v4 = vadd.f32 %v7510_v23, %v7499_v15  ;;  %v7513_v24 = vadd.f32 %v7511_v19, %v7500_v14 }
0x33f0   :  { %v7521_v39 = vsel %vm7412_vm8, %v7513_v24, %v12950_v27  ;;  %v7520_v17 = vsel %vm7412_vm8, %v7512_v4, %v12955_v63 }
0x33f1   :  { %7588 = vmatprep.mubr.f32.mxu0 %v7521_v39 }
0x33f2   :  { %7589 = vmatmul.mubr.f32.vlgmr.msra.gmra.mrb[34].mxu0 %v7520_v17 }
0x34c5   :  { %v7590_v36 = vpop.f32.mrb[34].mxu0 }
0x34c6   :  { %v7595_v44 = vmul.f32 %v7590_v36, %v7520_v17  ;;  %v7592_v38 = vpop.f32.mrb[35].mxu0 }
0x34c7   :  { %v7596_v31 = vmul.f32 %v7592_v38, %v7521_v39 }
0x34c8   :  { %v7597_v21 = vsel %vm2603_vm15, %v7595_v44, 0.0 }
0x34c9   :  { %v7598_v40 = vsel %vm2603_vm15, %v7596_v31, 0.0 }
0x34ca   :  { %v7599_v60 = vadd.f32 %v7598_v40, %v7597_v21 }
0x34cc   :  { %7600 = vadd.xlane.f32.xlu1 %v7599_v60 }
0x3559   :  { %v7601_v13 = vpop.xlane.xlu1 %7600 }
0x355a   :  { %9441 = vrcp.f32 %v7601_v13 }
0x355b   :  { %9443 = vrcp.f32 %v7522_v59 }
0x3564   :  { %v9442_v32 = vpop.eup %9441 }
0x3565   :  { %v7603_v22 = vmul.f32 %v9442_v32, %v7522_v59  ;;  %v9444_v10 = vpop.eup %9443 }
0x3567   :  { %v7608_v3 = vmul.f32 %v7603_v22, %v7590_v36  ;;  %v7609_v57 = vmul.f32 %v7603_v22, %v7592_v38  ;;  %v7604_v58 = vmul.f32 %v7603_v22, %v7520_v17  ;;  %v7605_v18 = vmul.f32 %v7603_v22, %v7521_v39 }
0x3569   :  { %v7610_v61 = vsub.f32 %v7518_v29, %v7608_v3  ;;  %v7611_v35 = vsub.f32 %v7519_v12, %v7609_v57  ;;  %v7606_v49 = vadd.f32 %v7604_v58, %v7516_v16  ;;  %v7607_v34 = vadd.f32 %v7605_v18, %v7517_v28 }
0x356b   :  { %v7612_v30 = vmul.f32 %v7610_v61, %v7610_v61  ;;  %v7613_v45 = vmul.f32 %v7611_v35, %v7611_v35  ;;  %v7627_v27 = vsel %vm7523_vm9, %v7606_v49, %v7516_v16  ;;  %v7628_v63 = vsel %vm7523_vm9, %v7607_v34, %v7517_v28 }
0x356d   :  { %v7614_v55 = vsel %vm2603_vm15, %v7612_v30, 0.0  ;;  %v7615_v54 = vsel %vm2603_vm15, %v7613_v45, 0.0 }
0x356e   :  { %v7616_v25 = vadd.f32 %v7615_v54, %v7614_v55 }
0x3570   :  { %7617 = vadd.xlane.f32.xlu0 %v7616_v25 }
0x35fd   :  { %v7618_v1 = vpop.xlane.xlu0 %7617 }
0x35fe   :  { %v7620_v48 = vmul.f32 %v9444_v10, %v7618_v1  ;;  %v7631_v41 = vsel %vm7523_vm9, %v7618_v1, %v7522_v59 }
0x35ff   :  { %vm7632_vm12 = vcmp.ge.f32.partialorder %v7631_v41, 1e-05 }
0x3600   :  { %v7621_v6 = vmul.f32 %v7620_v48, %v7520_v17  ;;  %v7622_v33 = vmul.f32 %v7620_v48, %v7521_v39 }
0x3602   :  { %v7623_v62 = vadd.f32 %v7621_v6, %v7610_v61  ;;  %v7624_v26 = vadd.f32 %v7622_v33, %v7611_v35 }
0x3604   :  { %v7630_v56 = vsel %vm7523_vm9, %v7624_v26, %v7521_v39  ;;  %v7629_v47 = vsel %vm7523_vm9, %v7623_v62, %v7520_v17 }
0x3605   :  { %7697 = vmatprep.mubr.f32.mxu1 %v7630_v56 }
0x3606   :  { %7698 = vmatmul.mubr.f32.vlgmr.msra.gmra.mrb[34].mxu1 %v7629_v47 }
0x36d9   :  { %v7699_v42 = vpop.f32.mrb[34].mxu1 }
0x36da   :  { %v7704_v7 = vmul.f32 %v7699_v42, %v7629_v47  ;;  %v7701_v46 = vpop.f32.mrb[35].mxu1 }
0x36db   :  { %v7705_v50 = vmul.f32 %v7701_v46, %v7630_v56 }
0x36dc   :  { %v7706_v51 = vsel %vm2603_vm15, %v7704_v7, 0.0 }
0x36dd   :  { %v7707_v15 = vsel %vm2603_vm15, %v7705_v50, 0.0 }
0x36de   :  { %v7708_v14 = vadd.f32 %v7707_v15, %v7706_v51 }
0x36e0   :  { %7709 = vadd.xlane.f32.xlu1 %v7708_v14 }
0x376d   :  { %v7710_v5 = vpop.xlane.xlu1 %7709 }
0x376e   :  { %9445 = vrcp.f32 %v7710_v5 }
0x3778   :  { %v9446_v43 = vpop.eup %9445 }
0x3779   :  { %v7712_v0 = vmul.f32 %v9446_v43, %v7631_v41 }
0x377b   :  { %v7713_v16 = vmul.f32 %v7712_v0, %v7629_v47  ;;  %v7714_v28 = vmul.f32 %v7712_v0, %v7630_v56 }
0x377d   :  { %v7715_v11 = vadd.f32 %v7713_v16, %v7627_v27  ;;  %v7716_v8 = vadd.f32 %v7714_v28, %v7628_v63 }
0x377f   :  { %v7719_v37 = vsel %vm7632_vm12, %v7715_v11, %v7627_v27  ;;  %v7720_v52 = vsel %vm7632_vm12, %v7716_v8, %v7628_v63 }
0x3780   :  { %v7726_v53 = vsel %vm2603_vm15, %v7719_v37, -inf  ;;  %v7727_v20 = vsel %vm2603_vm15, %v7720_v52, -inf  ;;  %v7721_v23 = vsel %vm2603_vm15, %v7719_v37, inf  ;;  %v7722_v19 = vsel %vm2603_vm15, %v7720_v52, inf }
0x3781   :  { %v7728_v4 = vmax.f32 %v7726_v53, %v7727_v20  ;;  %v7723_v24 = vmin.f32 %v7721_v23, %v7722_v19 }
0x3783   :  { %7729 = vmax.xlane.f32.xlu1 %v7728_v4  ;;  %7724 = vmin.xlane.f32.xlu0 %v7723_v24 }
0x3784   :  { %9504 = shalt.err (!%p9501_p6)
}
0x3785   :  { %s9505_s16 = scalar_lea.hbm %s13087_s11, 128 }
0x3786   :  { %p9506_p7 = scmp.ne.s32.totalorder %s13087_s11, %s9505_s16  ;;  %p9509_p8 = scmp.lt.u32.totalorder %s9505_s16, %s13087_s11 }
0x3788   :  { %p9511_p9 = pnand %p9509_p8, %p9506_p7 }
0x378a   :  { %9514 = shalt.err (!%p9511_p9)
}
0x378b   :  { %s9565_s1 = smov 64   ;;  %s9566_s29 = smov 4  }
0x378c   :  { %7795 = dma.vmem_to_hbm [thread:$0]  %s7790_s0, 128, %s13087_s11, [#allocation8], %s9565_s1, %s9565_s1, %s9566_s29  }
0x378d   :  { %s9567_s9 = smov [#allocation12]  }
0x378e   :  { %s7801_s19 = sshll.u32 %s9567_s9, 4  ;;  %s7802_s19 = int_to_ptr.vmem [resolvable:$true] %s7801_s19 }
0x378f   :  { %s9515_s11 = scalar_lea.vmem %s7802_s19, 128  ;;  %p9520_p11 = scmp.lt.s32.totalorder %s7802_s19, %s7802_s19 }
0x3790   :  { %p9516_p10 = scmp.ne.s32.totalorder %s7802_s19, %s9515_s11  ;;  %p9521_p12 = scmp.lt.s32.totalorder %s9515_s11, %s9515_s11 }
0x3792   :  { %p9522_p13 = por %p9521_p12, %p9520_p11 }
0x3794   :  { %p9523_p0 = pnand %p9522_p13, %p9516_p10 }
0x3810   :  { %v7730_v39 = vpop.xlane.xlu1 %7729  ;;  %v7725_v17 = vpop.xlane.xlu0 %7724 }
0x3811   :  { %v7733_v36 = vsub.f32 %v7730_v39, %v7725_v17  ;;  %v7731_v44 = vsub.f32 %v7719_v37, %v7725_v17  ;;  %v7732_v38 = vsub.f32 %v7720_v52, %v7725_v17 }
0x3813   :  { %9447 = vrcp.f32 %v7733_v36 }
0x381d   :  { %v9448_v31 = vpop.eup %9447 }
0x381e   :  { %v7736_v21 = vmul.f32 %v9448_v31, %v7731_v44  ;;  %v7737_v40 = vmul.f32 %v9448_v31, %v7732_v38 }
0x3820   :  { %v7751_v60 = vcombine.low %v7736_v21, %v7737_v40 }
0x3822   :  { %v7758_v13 = vrot.slane %v7751_v60, %v9677_v9 }
0x3824   :  { %v7765_v32 = vrot.slane %v7758_v13, %v9677_v9  ;;  %v7773_v59 = vcombine.high %v7758_v13, %v7758_v13 }
0x3826   :  { %7768 = vst.msk [vmem:[#allocation12 + $0x1] ss:$2 sm:$0x3] %vm9662_vm0, %v7765_v32  ;;  %v7780_v22 = vrot.slane %v7773_v59, %v9677_v9 }
0x3828   :  { %7783 = vst.msk [vmem:[#allocation12 + $0x5] ss:$2 sm:$0x3] %vm9662_vm0, %v7780_v22 }
0x3829   :  { %9526 = shalt.err (!%p9523_p0)
}
0x382a   :  { %s9527_s21 = scalar_lea.hbm %s13088_s12, 128 }
0x382b   :  { %p9528_p1 = scmp.ne.s32.totalorder %s13088_s12, %s9527_s21  ;;  %p9531_p2 = scmp.lt.u32.totalorder %s9527_s21, %s13088_s12 }
0x382d   :  { %p9533_p3 = pnand %p9531_p2, %p9528_p1 }
0x382f   :  { %9536 = shalt.err (!%p9533_p3)
}
0x3830   :  { %7807 = dma.vmem_to_hbm [thread:$0]  %s7802_s19, 128, %s13088_s12, [#allocation13], %s9565_s1, %s9565_s1, %s9566_s29  }
0x3831   :  { %9541 = dma.done.wait [#allocation8], 128  }
0x3832   :  { %9542 = vsyncadd [#allocation8], 4294967168 }
0x3833   :  { %9543 = dma.done.wait [#allocation13], 128  }
0x3834   :  { %9544 = vsyncadd [#allocation13], 4294967168 }
0x3835   :  { %7814 = vsyncpa [#allocation7], 1 }
0x3836   :  { %7815 = vsyncpa [#allocation10], 1 }
0x3837   :  { %7816 = vsyncpa [#allocation8], 1 }
0x3838   :  { %7817 = vsyncpa [#allocation13], 1 }

</bundles_post_ra>
